<compile_context>
chip_gen: v7x
topology: tpu7x:2x2x1
jax: 0.10.0
libtpu: 0.0.40
codegen_flags: <defaults>
</compile_context>

<pallas_src>
import functools

import jax
import jax.numpy as jnp
from jax.experimental import pallas as pl
from jax.experimental.pallas import tpu as pltpu


_MASK_VALUE = -1e30  # large negative, avoids -inf arithmetic corner cases


def _flash_attend_kernel(q_ref, k_ref, v_ref, o_ref,
                         m_scr, l_scr, acc_scr,
                         *, kv_len, block_kv, scale, kv_ragged):
    kv_idx = pl.program_id(2)

    @pl.when(kv_idx == 0)
    def _init():
        m_scr[...] = jnp.full_like(m_scr, -jnp.inf)
        l_scr[...] = jnp.zeros_like(l_scr)
        acc_scr[...] = jnp.zeros_like(acc_scr)

    # Native-dtype operands; scale folded into q (D-wide, not Nk-wide).
    q = q_ref[0] * scale          # (H, tq, D)
    k = k_ref[0]                  # (H, tkv, D)
    v = v_ref[0]                  # (H, tkv, D)

    # s = einsum('h i d, h j d -> h i j') with f32 accumulation on the MXU.
    s = jnp.einsum("hqd,hkd->hqk", q, k,
                   preferred_element_type=jnp.float32)    # (H, tq, tkv) f32

    if kv_ragged:
        pos = kv_idx * block_kv + jax.lax.broadcasted_iota(
            jnp.int32, s.shape, dimension=2)
        s = jnp.where(pos < kv_len, s, _MASK_VALUE)

    # Online softmax update.
    m_prev = m_scr[...]                                       # (H, tq, 1)
    m_new = jnp.maximum(m_prev, jnp.max(s, axis=-1, keepdims=True))
    alpha = jnp.exp(m_prev - m_new)
    p = jnp.exp(s - m_new)

    l_scr[...] = alpha * l_scr[...] + jnp.sum(p, axis=-1, keepdims=True)
    acc_scr[...] = alpha * acc_scr[...] + jnp.einsum(
        "hqk,hkd->hqd", p.astype(v.dtype), v,
        preferred_element_type=jnp.float32)
    m_scr[...] = m_new

    @pl.when(kv_idx == pl.num_programs(2) - 1)
    def _finalize():
        inv_l = pl.reciprocal(l_scr[...], approx=True)        # EUP slot
        o_ref[0] = (acc_scr[...] * inv_l).astype(o_ref.dtype)


def attend(q, k, v, *, block_q=128, block_kv=512):
    """Pallas equivalent of Attend.forward(q, k, v). q,k,v: (B, H, N, D)."""
    B, H, Nq, D = q.shape
    Nk = k.shape[-2]
    assert k.shape == (B, H, Nk, D) and v.shape == (B, H, Nk, D)
    out_dtype = q.dtype

    tq = Nq if Nq <= block_q else block_q
    tkv = Nk if Nk <= block_kv else block_kv

    # Pad ragged sequence lengths so every block is fully in-bounds; padded
    # key positions are excluded from the softmax via in-kernel masking.
    nq_pad = tq * pl.cdiv(Nq, tq)
    nk_pad = tkv * pl.cdiv(Nk, tkv)
    if nq_pad != Nq:
        q = jnp.pad(q, ((0, 0), (0, 0), (0, nq_pad - Nq), (0, 0)))
    if nk_pad != Nk:
        pad = ((0, 0), (0, 0), (0, nk_pad - Nk), (0, 0))
        k = jnp.pad(k, pad)
        v = jnp.pad(v, pad)

    grid = (B, nq_pad // tq, nk_pad // tkv)

    kernel = functools.partial(
        _flash_attend_kernel,
        kv_len=Nk,
        block_kv=tkv,
        scale=float(D) ** -0.5,
        kv_ragged=(nk_pad != Nk),
    )

    # Explicit VMEM budget: double-buffered q/k/v/out blocks + f32 scratch,
    # with headroom, capped for v7x's 64 MiB physical VMEM.
    itemsize = jnp.dtype(q.dtype).itemsize
    qo_block = H * tq * D * itemsize
    kv_block = H * tkv * D * itemsize
    scratch = H * tq * (D + 2) * 4
    vmem_limit = 2 * (2 * qo_block + 2 * kv_block) + scratch
    vmem_limit = int(min(max(2 * vmem_limit, 32 << 20), 64 << 20))

    out = pl.pallas_call(
        kernel,
        out_shape=jax.ShapeDtypeStruct((B, H, nq_pad, D), out_dtype),
        grid_spec=pltpu.PrefetchScalarGridSpec(
            num_scalar_prefetch=0,
            grid=grid,
            in_specs=[
                # q / out index maps ignore the kv index -> loaded once per
                # (b, q-tile) and held resident across the kv loop.
                pl.BlockSpec((1, H, tq, D), lambda b, qi, ki: (b, 0, qi, 0)),
                pl.BlockSpec((1, H, tkv, D), lambda b, qi, ki: (b, 0, ki, 0)),
                pl.BlockSpec((1, H, tkv, D), lambda b, qi, ki: (b, 0, ki, 0)),
            ],
            out_specs=pl.BlockSpec((1, H, tq, D), lambda b, qi, ki: (b, 0, qi, 0)),
            scratch_shapes=[
                pltpu.VMEM((H, tq, 1), jnp.float32),   # running max
                pltpu.VMEM((H, tq, 1), jnp.float32),   # running sum
                pltpu.VMEM((H, tq, D), jnp.float32),   # output accumulator
            ],
        ),
        compiler_params=pltpu.CompilerParams(
            dimension_semantics=("parallel", "parallel", "arbitrary"),
            vmem_limit_bytes=vmem_limit,
        ),
    )(q, k, v)

    if nq_pad != Nq:
        out = out[:, :, :Nq, :]
    return out


def attend_ref(q, k, v):
    """Pure-JAX reference matching the PyTorch forward exactly (f32 math)."""
    scale = q.shape[-1] ** -0.5
    qf, kf, vf = (x.astype(jnp.float32) for x in (q, k, v))
    sim = jnp.einsum("bhid,bhjd->bhij", qf, kf) * scale
    attn = jax.nn.softmax(sim, axis=-1)
    return jnp.einsum("bhij,bhjd->bhid", attn, vf)


if __name__ == "__main__":
    # Test 1: f32, multi-tile kv loop (exercises online-softmax accumulation).
    k1, k2, k3 = jax.random.split(jax.random.PRNGKey(0), 3)
    B, H, N, D = 2, 4, 256, 32
    q = jax.random.normal(k1, (B, H, N, D), dtype=jnp.float32)
    kk = jax.random.normal(k2, (B, H, N, D), dtype=jnp.float32)
    v = jax.random.normal(k3, (B, H, N, D), dtype=jnp.float32)

    out = jax.block_until_ready(attend(q, kk, v, block_q=128, block_kv=128))
    ref = attend_ref(q, kk, v)
    assert out.shape == (B, H, N, D)
    err = float(jnp.max(jnp.abs(out - ref)))
    # approx reciprocal in the finalize loosens tolerance vs exact divide
    assert jnp.allclose(out, ref, atol=1e-2, rtol=1e-2), f"max abs err = {err}"

    # Test 2: bf16 inputs, ragged kv length (exercises masking + native-dtype
    # MXU path).
    k4, k5, k6 = jax.random.split(jax.random.PRNGKey(0), 3)
    B2, H2, Nq2, Nk2, D2 = 1, 2, 128, 160, 32
    q2 = jax.random.normal(k4, (B2, H2, Nq2, D2), dtype=jnp.bfloat16)
    k2_ = jax.random.normal(k5, (B2, H2, Nk2, D2), dtype=jnp.bfloat16)
    v2 = jax.random.normal(k6, (B2, H2, Nk2, D2), dtype=jnp.bfloat16)

    out2 = jax.block_until_ready(attend(q2, k2_, v2, block_q=128, block_kv=128))
    ref2 = attend_ref(q2, k2_, v2)
    assert out2.shape == (B2, H2, Nq2, D2)
    err2 = float(jnp.max(jnp.abs(out2.astype(jnp.float32) - ref2)))
    assert err2 < 5e-2, f"bf16 max abs err = {err2}"

    print("KERNEL_OK")
</pallas_src>

<mosaic_0001>
module attributes {stable_mosaic.version = 11 : i64} {
  func.func @_flash_attend_kernel(%arg0: i32, %arg1: i32, %arg2: i32, %arg3: memref<1x4x128x32xf32, #tpu.memory_space<vmem>>, %arg4: memref<1x4x128x32xf32, #tpu.memory_space<vmem>>, %arg5: memref<1x4x128x32xf32, #tpu.memory_space<vmem>>, %arg6: memref<1x4x128x32xf32, #tpu.memory_space<vmem>>, %arg7: memref<4x128x1xf32, #tpu.memory_space<vmem>>, %arg8: memref<4x128x1xf32, #tpu.memory_space<vmem>>, %arg9: memref<4x128x32xf32, #tpu.memory_space<vmem>>) attributes {dimension_semantics = [#tpu.dimension_semantics<parallel>, #tpu.dimension_semantics<parallel>, #tpu.dimension_semantics<arbitrary>], iteration_bounds = array<i64: 2, 2, 2>, scalar_prefetch = 0 : i64, scratch_operands = 3 : i64, tpu.core_type = #tpu.core_type<tc>, window_params = [{transform_indices = @transform_0, window_bounds = array<i64: 1, 4, 128, 32>}, {transform_indices = @transform_1, window_bounds = array<i64: 1, 4, 128, 32>}, {transform_indices = @transform_2, window_bounds = array<i64: 1, 4, 128, 32>}, {transform_indices = @transform_3, window_bounds = array<i64: 1, 4, 128, 32>}]} {
    %c0_i32 = arith.constant 0 : i32
    %0 = arith.cmpi eq, %arg2, %c0_i32 : i32
    %1 = arith.extui %0 : i1 to i32
    %c0_i32_0 = arith.constant 0 : i32
    %2 = arith.cmpi ne, %1, %c0_i32_0 : i32
    scf.if %2 {
      %cst_35 = arith.constant 0xFF800000 : f32
      %37 = vector.broadcast %cst_35 : f32 to vector<4x128x1xf32>
      %c0_36 = arith.constant 0 : index
      %c0_37 = arith.constant 0 : index
      %c0_38 = arith.constant 0 : index
      %38 = vector.load %arg7[%c0_36, %c0_37, %c0_38] : memref<4x128x1xf32, #tpu.memory_space<vmem>>, vector<4x128x1xf32>
      tpu.vector_store %arg7[%c0_36, %c0_37, %c0_38], %37 {strides = array<i32>} : memref<4x128x1xf32, #tpu.memory_space<vmem>>, vector<4x128x1xf32>,
      %cst_39 = arith.constant 0.000000e+00 : f32
      %39 = vector.broadcast %cst_39 : f32 to vector<4x128x1xf32>
      %c0_40 = arith.constant 0 : index
      %c0_41 = arith.constant 0 : index
      %c0_42 = arith.constant 0 : index
      %40 = vector.load %arg8[%c0_40, %c0_41, %c0_42] : memref<4x128x1xf32, #tpu.memory_space<vmem>>, vector<4x128x1xf32>
      tpu.vector_store %arg8[%c0_40, %c0_41, %c0_42], %39 {strides = array<i32>} : memref<4x128x1xf32, #tpu.memory_space<vmem>>, vector<4x128x1xf32>,
      %cst_43 = arith.constant 0.000000e+00 : f32
      %41 = vector.broadcast %cst_43 : f32 to vector<4x128x32xf32>
      %c0_44 = arith.constant 0 : index
      %c0_45 = arith.constant 0 : index
      %c0_46 = arith.constant 0 : index
      %42 = vector.load %arg9[%c0_44, %c0_45, %c0_46] : memref<4x128x32xf32, #tpu.memory_space<vmem>>, vector<4x128x32xf32>
      tpu.vector_store %arg9[%c0_44, %c0_45, %c0_46], %41 {strides = array<i32>} : memref<4x128x32xf32, #tpu.memory_space<vmem>>, vector<4x128x32xf32>,
    } else {
    }
    %c0 = arith.constant 0 : index
    %c0_1 = arith.constant 0 : index
    %c0_2 = arith.constant 0 : index
    %c0_3 = arith.constant 0 : index
    %3 = vector.load %arg3[%c0, %c0_1, %c0_2, %c0_3] : memref<1x4x128x32xf32, #tpu.memory_space<vmem>>, vector<1x4x128x32xf32>
    %4 = vector.shape_cast %3 : vector<1x4x128x32xf32> to vector<4x128x32xf32>
    %cst = arith.constant 0.176776692 : f32
    %5 = vector.broadcast %cst : f32 to vector<4x128x32xf32>
    %6 = arith.mulf %4, %5 : vector<4x128x32xf32>
    %c0_4 = arith.constant 0 : index
    %c0_5 = arith.constant 0 : index
    %c0_6 = arith.constant 0 : index
    %c0_7 = arith.constant 0 : index
    %7 = vector.load %arg4[%c0_4, %c0_5, %c0_6, %c0_7] : memref<1x4x128x32xf32, #tpu.memory_space<vmem>>, vector<1x4x128x32xf32>
    %8 = vector.shape_cast %7 : vector<1x4x128x32xf32> to vector<4x128x32xf32>
    %c0_8 = arith.constant 0 : index
    %c0_9 = arith.constant 0 : index
    %c0_10 = arith.constant 0 : index
    %c0_11 = arith.constant 0 : index
    %9 = vector.load %arg5[%c0_8, %c0_9, %c0_10, %c0_11] : memref<1x4x128x32xf32, #tpu.memory_space<vmem>>, vector<1x4x128x32xf32>
    %10 = vector.shape_cast %9 : vector<1x4x128x32xf32> to vector<4x128x32xf32>
    "tpu.trace_start"() <{level = 10 : i32, message = "hqd,hkd->hqk"}> : () -> ()
    %cst_12 = arith.constant dense<0.000000e+00> : vector<4x128x128xf32>
    %11 = tpu.matmul %6, %8, %cst_12 {dimension_numbers = #tpu.dot_dimension_numbers<[2], [2], [1], [1], [0, 0, 0, 1, 1, 1], [0], [0]>} : vector<4x128x32xf32>, vector<4x128x32xf32>, vector<4x128x128xf32> -> vector<4x128x128xf32>
    "tpu.trace_stop"() : () -> ()
    %c0_13 = arith.constant 0 : index
    %c0_14 = arith.constant 0 : index
    %c0_15 = arith.constant 0 : index
    %12 = vector.load %arg7[%c0_13, %c0_14, %c0_15] : memref<4x128x1xf32, #tpu.memory_space<vmem>>, vector<4x128x1xf32>
    %cst_16 = arith.constant dense<0xFF800000> : vector<4x128xf32>
    %13 = vector.multi_reduction <maximumf>, %11, %cst_16 [2] : vector<4x128x128xf32> to vector<4x128xf32>
    %14 = vector.shape_cast %13 : vector<4x128xf32> to vector<4x128x1xf32>
    %15 = arith.maximumf %12, %14 : vector<4x128x1xf32>
    %16 = arith.subf %12, %15 : vector<4x128x1xf32>
    %17 = math.exp %16 : vector<4x128x1xf32>
    %18 = vector.broadcast %15 : vector<4x128x1xf32> to vector<4x128x128xf32>
    %19 = arith.subf %11, %18 : vector<4x128x128xf32>
    %20 = math.exp %19 : vector<4x128x128xf32>
    %c0_17 = arith.constant 0 : index
    %c0_18 = arith.constant 0 : index
    %c0_19 = arith.constant 0 : index
    %21 = vector.load %arg8[%c0_17, %c0_18, %c0_19] : memref<4x128x1xf32, #tpu.memory_space<vmem>>, vector<4x128x1xf32>
    %22 = arith.mulf %17, %21 : vector<4x128x1xf32>
    %cst_20 = arith.constant dense<0.000000e+00> : vector<4x128xf32>
    %23 = vector.multi_reduction <add>, %20, %cst_20 [2] : vector<4x128x128xf32> to vector<4x128xf32>
    %24 = vector.shape_cast %23 : vector<4x128xf32> to vector<4x128x1xf32>
    %25 = arith.addf %22, %24 : vector<4x128x1xf32>
    %c0_21 = arith.constant 0 : index
    %c0_22 = arith.constant 0 : index
    %c0_23 = arith.constant 0 : index
    %26 = vector.load %arg8[%c0_21, %c0_22, %c0_23] : memref<4x128x1xf32, #tpu.memory_space<vmem>>, vector<4x128x1xf32>
    tpu.vector_store %arg8[%c0_21, %c0_22, %c0_23], %25 {strides = array<i32>} : memref<4x128x1xf32, #tpu.memory_space<vmem>>, vector<4x128x1xf32>,
    %c0_24 = arith.constant 0 : index
    %c0_25 = arith.constant 0 : index
    %c0_26 = arith.constant 0 : index
    %27 = vector.load %arg9[%c0_24, %c0_25, %c0_26] : memref<4x128x32xf32, #tpu.memory_space<vmem>>, vector<4x128x32xf32>
    %28 = vector.broadcast %17 : vector<4x128x1xf32> to vector<4x128x32xf32>
    %29 = arith.mulf %28, %27 : vector<4x128x32xf32>
    "tpu.trace_start"() <{level = 10 : i32, message = "hqk,hkd->hqd"}> : () -> ()
    %cst_27 = arith.constant dense<0.000000e+00> : vector<4x128x32xf32>
    %30 = tpu.matmul %20, %10, %cst_27 {dimension_numbers = #tpu.dot_dimension_numbers<[2], [1], [1], [2], [0, 0, 0, 1, 1, 2], [0], [0]>} : vector<4x128x128xf32>, vector<4x128x32xf32>, vector<4x128x32xf32> -> vector<4x128x32xf32>
    "tpu.trace_stop"() : () -> ()
    %31 = arith.addf %29, %30 : vector<4x128x32xf32>
    %c0_28 = arith.constant 0 : index
    %c0_29 = arith.constant 0 : index
    %c0_30 = arith.constant 0 : index
    %32 = vector.load %arg9[%c0_28, %c0_29, %c0_30] : memref<4x128x32xf32, #tpu.memory_space<vmem>>, vector<4x128x32xf32>
    tpu.vector_store %arg9[%c0_28, %c0_29, %c0_30], %31 {strides = array<i32>} : memref<4x128x32xf32, #tpu.memory_space<vmem>>, vector<4x128x32xf32>,
    %c0_31 = arith.constant 0 : index
    %c0_32 = arith.constant 0 : index
    %c0_33 = arith.constant 0 : index
    %33 = vector.load %arg7[%c0_31, %c0_32, %c0_33] : memref<4x128x1xf32, #tpu.memory_space<vmem>>, vector<4x128x1xf32>
    tpu.vector_store %arg7[%c0_31, %c0_32, %c0_33], %15 {strides = array<i32>} : memref<4x128x1xf32, #tpu.memory_space<vmem>>, vector<4x128x1xf32>,
    %c1_i32 = arith.constant 1 : i32
    %34 = arith.cmpi eq, %arg2, %c1_i32 : i32
    %35 = arith.extui %34 : i1 to i32
    %c0_i32_34 = arith.constant 0 : i32
    %36 = arith.cmpi ne, %35, %c0_i32_34 : i32
    scf.if %36 {
      %c0_35 = arith.constant 0 : index
      %c0_36 = arith.constant 0 : index
      %c0_37 = arith.constant 0 : index
      %37 = vector.load %arg8[%c0_35, %c0_36, %c0_37] : memref<4x128x1xf32, #tpu.memory_space<vmem>>, vector<4x128x1xf32>
      %38 = tpu.reciprocal %37 {approx = true} : vector<4x128x1xf32> -> vector<4x128x1xf32>
      %c0_38 = arith.constant 0 : index
      %c0_39 = arith.constant 0 : index
      %c0_40 = arith.constant 0 : index
      %39 = vector.load %arg9[%c0_38, %c0_39, %c0_40] : memref<4x128x32xf32, #tpu.memory_space<vmem>>, vector<4x128x32xf32>
      %40 = vector.broadcast %38 : vector<4x128x1xf32> to vector<4x128x32xf32>
      %41 = arith.mulf %39, %40 : vector<4x128x32xf32>
      %c0_41 = arith.constant 0 : index
      %c0_42 = arith.constant 0 : index
      %c0_43 = arith.constant 0 : index
      %c0_44 = arith.constant 0 : index
      %42 = vector.load %arg6[%c0_41, %c0_42, %c0_43, %c0_44] : memref<1x4x128x32xf32, #tpu.memory_space<vmem>>, vector<1x4x128x32xf32>
      %43 = vector.shape_cast %42 : vector<1x4x128x32xf32> to vector<4x128x32xf32>
      %44 = vector.shape_cast %41 : vector<4x128x32xf32> to vector<1x4x128x32xf32>
      tpu.vector_store %arg6[%c0_41, %c0_42, %c0_43, %c0_44], %44 {strides = array<i32>} : memref<1x4x128x32xf32, #tpu.memory_space<vmem>>, vector<1x4x128x32xf32>,
    } else {
    }
    return
  }
  func.func @transform_0(%arg0: i32, %arg1: i32, %arg2: i32) -> (i32, i32, i32, i32) {
    %c0_i32 = arith.constant 0 : i32
    %c0_i32_0 = arith.constant 0 : i32
    %c0_i32_1 = arith.constant 0 : i32
    return %arg0, %c0_i32, %arg1, %c0_i32_0 : i32, i32, i32, i32
  }
  func.func @transform_1(%arg0: i32, %arg1: i32, %arg2: i32) -> (i32, i32, i32, i32) {
    %c0_i32 = arith.constant 0 : i32
    %c0_i32_0 = arith.constant 0 : i32
    %c0_i32_1 = arith.constant 0 : i32
    return %arg0, %c0_i32, %arg2, %c0_i32_0 : i32, i32, i32, i32
  }
  func.func @transform_2(%arg0: i32, %arg1: i32, %arg2: i32) -> (i32, i32, i32, i32) {
    %c0_i32 = arith.constant 0 : i32
    %c0_i32_0 = arith.constant 0 : i32
    %c0_i32_1 = arith.constant 0 : i32
    return %arg0, %c0_i32, %arg2, %c0_i32_0 : i32, i32, i32, i32
  }
  func.func @transform_3(%arg0: i32, %arg1: i32, %arg2: i32) -> (i32, i32, i32, i32) {
    %c0_i32 = arith.constant 0 : i32
    %c0_i32_0 = arith.constant 0 : i32
    %c0_i32_1 = arith.constant 0 : i32
    return %arg0, %c0_i32, %arg1, %c0_i32_0 : i32, i32, i32, i32
  }
}

</mosaic_0001>

<bundles_post_ra>
// kernel: tpu_custom_call.1
= control target key start
LH: loop header
LB: loop body
LE: loop exit
PB: predicated region body
PF: predicated region fallthrough
CT: control target
= control target key end

     0   :  { %s7922_s12 = smov 0   ;;  %s7924_s13 = smov 0   ;;  %s11332_s0 = inlined_call_operand.vmem [shape: f32[2,4,256,32], index: 0, kind: input, shape index: {}]   ;;  %s11333_s1 = inlined_call_operand.vmem [shape: f32[2,4,256,32], index: 1, kind: input, shape index: {}]   ;;  %s11334_s2 = inlined_call_operand.vmem [shape: f32[2,4,256,32], index: 2, kind: input, shape index: {}]   ;;  %s11335_s3 = inlined_call_operand.vmem [shape: f32[2,4,256,32], index: 3, kind: output, shape index: {}]  }
   0x1   :  { %s7926_s14 = smov 0   ;;  %s7928_s15 = smov 0  }
   0x2   :  { %s7930_s16 = smov 0   ;;  %s7932_s17 = smov 0  }
   0x3   :  { %s7934_s18 = smov 0   ;;  %s7936_s19 = smov 0  }
   0x4   :  { %s7938_s20 = smov 0   ;;  %s7940_s21 = smov 0  }
   0x5   :  { %s7942_s22 = smov 0  }
   0x6 LB: > { %s25_s23 = sadd.s32 1, %s7884_s19  ;;  %s28_s24 = sadd.s32 1, %s7888_s20  ;;  %s7896_s22 = sphi %s7942_s22, %s13_s22   ;;  %s7892_s21 = sphi %s7940_s21, %s11859_s21   ;;  %s7888_s20 = sphi %s7938_s20, %s11858_s20   ;;  %s7884_s19 = sphi %s7936_s19, %s11857_s19   ;;  %s7880_s18 = sphi %s7934_s18, %s11856_s18   ;;  %s7876_s17 = sphi %s7932_s17, %s11855_s17   ;;  %s7872_s16 = sphi %s7930_s16, %s11854_s16   ;;  %s7868_s15 = sphi %s7928_s15, %s11853_s15   ;;  %s7864_s14 = sphi %s7926_s14, %s11852_s14   ;;  %s7860_s13 = sphi %s7924_s13, %s11851_s13   ;;  %s7856_s12 = sphi %s7922_s12, %s11850_s12  }
   0x7   : > { %p26_p0 = scmp.ge.s32.totalorder %s25_s23, 2  ;;  %p48_p1 = scmp.ne.s32.totalorder %s7868_s15, %s7864_s14 }
   0x8   : > { %p49_p2 = scmp.eq.s32.totalorder %s7896_s22, 0  ;;  %s32_s25 = sadd.s32 1, %s7892_s21 }
   0x9   : > { %s11861_s23 = smov (%p26_p0, %s25_s23), 0  ;;  %s11863_s24 = smov (!%p26_p0, %s28_s24), %s7888_s20 }
   0xa   : > { %p30_p3 = scmp.ge.s32.totalorder %s11863_s24, 2  ;;  %s6149_s26 = sadd.s32 4294967295, %s7896_s22  }
   0xb   : > { %p7990_p4 = por %p49_p2, %p48_p1  ;;  %s65_s28 = ssub.s32 %s7884_s19, %s11861_s23 }
   0xc   : > { %s11865_s24 = smov (%p30_p3, %s11863_s24), 0  ;;  %s11867_s25 = smov (!%p30_p3, %s32_s25), %s7892_s21 }
   0xd   : > { %11488 = sst [smem:[#allocation9_spill]] %s11865_s24  ;;  %p76_p5 = scmp.ne.s32.totalorder %s7860_s13, %s7856_s12 }
   0xe   : > { %p34_p6 = scmp.ge.s32.totalorder %s11867_s25, 2  ;;  %p136_p7 = scmp.eq.s32.totalorder %s6149_s26, 7 }
   0xf   : > { %s37_s29 = ssub.s32 %s7888_s20, %s11865_s24  ;;  %p8003_p8 = por %p76_p5, %p49_p2 }
  0x10   : > { %s11869_s25 = smov (%p34_p6, %s11867_s25), 0  ;;  %s41_s4 = sadd.s32 1, %s7868_s15 }
  0x11   : > { %11490 = sst [smem:[#allocation10_spill]] %s11869_s25  ;;  %p8013_p9 = por %p136_p7, %p48_p1 }
  0x12   : > { %s36_s6 = ssub.s32 %s7892_s21, %s11869_s25  ;;  %s69_s7 = sadd.s32 1, %s7860_s13 }
  0x13   : > { %s38_s8 = sor.u32 %s37_s29, %s36_s6  ;;  %s66_s9 = sor.u32 %s65_s28, %s36_s6 }
  0x14   : > { %p39_p10 = scmp.eq.s32.totalorder %s38_s8, 0  ;;  %p67_p11 = scmp.eq.s32.totalorder %s66_s9, 0 }
  0x15   : > { %p6152_p12 = scmp.ge.s32.totalorder %s7896_s22, 8 }
  0x16   : > { %s8021_s10 = scalar_select %p39_p10, %s7868_s15, %s41_s4  }
  0x17   : > { %s8024_s11 = scalar_select %p67_p11, %s7860_s13, %s69_s7  }
  0x18   : > { %158 = sbr.rel (%p6152_p12) target bundleno = 148 (0x94), region = 16 }
  0x1f   : > { %161 = sbr.rel (!%p7990_p4) target bundleno = 70 (0x46), region = 20  ;;  %s163_s26 = sand.u32 (%p7990_p4), 1, %s7868_s15  }
  0x20   : > { %s6154_s25 = sshll.u32 (%p7990_p4), %s7888_s20, 4  ;;  %s6153_s24 = sshll.u32 (%p7990_p4), %s163_s26, 9 }
  0x21   : > { %s6155_s29 = sshll.u32 (%p7990_p4), %s7892_s21, 7  ;;  %s8040_s27 = scalar_lea.vmem (%p7990_p4), [#allocation5], %s6153_s24 }
  0x22   : > { %s168_s28 = sadd.s32 (%p7990_p4), %s6155_s29, %s6154_s25 }
  0x23   : > { %s6156_s6 = sshll.u32 (%p7990_p4), %s168_s28, 3 }
  0x24   : > { %s8035_s7 = scalar_lea.vmem (%p7990_p4), %s11332_s0, %s6156_s6 }
  0x25   : > { %v324_v0 = vld [vmem:[%s8035_s7] sm:$0xff] (%p7990_p4)  ;;  %v326_v1 = vld [vmem:[%s8035_s7 + $0x8] sm:$0xff] (%p7990_p4)  ;;  %v328_v2 = vld [vmem:[%s8035_s7 + $0x10] sm:$0xff] (%p7990_p4) }
  0x26   : > { %325 = vst [vmem:[%s8040_s27] sm:$0xff] %v324_v0  ;;  %327 = vst [vmem:[%s8040_s27 + $0x8] sm:$0xff] %v326_v1  ;;  %v330_v3 = vld [vmem:[%s8035_s7 + $0x18] sm:$0xff]  ;;  %v332_v4 = vld [vmem:[%s8035_s7 + $0x20] sm:$0xff] }
  0x27   : > { %329 = vst [vmem:[%s8040_s27 + $0x10] sm:$0xff] %v328_v2  ;;  %v334_v5 = vld [vmem:[%s8035_s7 + $0x28] sm:$0xff]  ;;  %331 = vst [vmem:[%s8040_s27 + $0x18] sm:$0xff] %v330_v3  ;;  %v336_v6 = vld [vmem:[%s8035_s7 + $0x30] sm:$0xff] }
  0x28   : > { %333 = vst [vmem:[%s8040_s27 + $0x20] sm:$0xff] %v332_v4  ;;  %335 = vst [vmem:[%s8040_s27 + $0x28] sm:$0xff] %v334_v5  ;;  %v338_v7 = vld [vmem:[%s8035_s7 + $0x38] sm:$0xff]  ;;  %v340_v8 = vld [vmem:[%s8035_s7 + $0x40] sm:$0xff] }
  0x29   : > { %337 = vst [vmem:[%s8040_s27 + $0x30] sm:$0xff] %v336_v6  ;;  %339 = vst [vmem:[%s8040_s27 + $0x38] sm:$0xff] %v338_v7  ;;  %v342_v9 = vld [vmem:[%s8035_s7 + $0x48] sm:$0xff]  ;;  %v344_v10 = vld [vmem:[%s8035_s7 + $0x50] sm:$0xff] }
  0x2a   : > { %341 = vst [vmem:[%s8040_s27 + $0x40] sm:$0xff] %v340_v8  ;;  %v346_v11 = vld [vmem:[%s8035_s7 + $0x58] sm:$0xff]  ;;  %343 = vst [vmem:[%s8040_s27 + $0x48] sm:$0xff] %v342_v9  ;;  %v348_v12 = vld [vmem:[%s8035_s7 + $0x60] sm:$0xff] }
  0x2b   : > { %345 = vst [vmem:[%s8040_s27 + $0x50] sm:$0xff] %v344_v10  ;;  %347 = vst [vmem:[%s8040_s27 + $0x58] sm:$0xff] %v346_v11  ;;  %v350_v13 = vld [vmem:[%s8035_s7 + $0x68] sm:$0xff]  ;;  %v352_v14 = vld [vmem:[%s8035_s7 + $0x70] sm:$0xff] }
  0x2c   : > { %349 = vst [vmem:[%s8040_s27 + $0x60] sm:$0xff] %v348_v12  ;;  %351 = vst [vmem:[%s8040_s27 + $0x68] sm:$0xff] %v350_v13  ;;  %v354_v15 = vld [vmem:[%s8035_s7 + $0x78] sm:$0xff]  ;;  %v356_v16 = vld [vmem:[%s8035_s7 + $0x100] sm:$0xff] }
  0x2d   : > { %353 = vst [vmem:[%s8040_s27 + $0x70] sm:$0xff] %v352_v14  ;;  %v358_v17 = vld [vmem:[%s8035_s7 + $0x108] sm:$0xff]  ;;  %355 = vst [vmem:[%s8040_s27 + $0x78] sm:$0xff] %v354_v15  ;;  %v360_v18 = vld [vmem:[%s8035_s7 + $0x110] sm:$0xff] }
  0x2e   : > { %357 = vst [vmem:[%s8040_s27 + $0x80] sm:$0xff] %v356_v16  ;;  %359 = vst [vmem:[%s8040_s27 + $0x88] sm:$0xff] %v358_v17  ;;  %v362_v19 = vld [vmem:[%s8035_s7 + $0x118] sm:$0xff]  ;;  %v364_v20 = vld [vmem:[%s8035_s7 + $0x120] sm:$0xff] }
  0x2f   : > { %361 = vst [vmem:[%s8040_s27 + $0x90] sm:$0xff] %v360_v18  ;;  %363 = vst [vmem:[%s8040_s27 + $0x98] sm:$0xff] %v362_v19  ;;  %v366_v21 = vld [vmem:[%s8035_s7 + $0x128] sm:$0xff]  ;;  %v368_v22 = vld [vmem:[%s8035_s7 + $0x130] sm:$0xff] }
  0x30   : > { %365 = vst [vmem:[%s8040_s27 + $0xa0] sm:$0xff] %v364_v20  ;;  %v370_v23 = vld [vmem:[%s8035_s7 + $0x138] sm:$0xff]  ;;  %367 = vst [vmem:[%s8040_s27 + $0xa8] sm:$0xff] %v366_v21  ;;  %v372_v24 = vld [vmem:[%s8035_s7 + $0x140] sm:$0xff] }
  0x31   : > { %369 = vst [vmem:[%s8040_s27 + $0xb0] sm:$0xff] %v368_v22  ;;  %371 = vst [vmem:[%s8040_s27 + $0xb8] sm:$0xff] %v370_v23  ;;  %v374_v25 = vld [vmem:[%s8035_s7 + $0x148] sm:$0xff]  ;;  %v376_v26 = vld [vmem:[%s8035_s7 + $0x150] sm:$0xff] }
  0x32   : > { %373 = vst [vmem:[%s8040_s27 + $0xc0] sm:$0xff] %v372_v24  ;;  %375 = vst [vmem:[%s8040_s27 + $0xc8] sm:$0xff] %v374_v25  ;;  %v378_v27 = vld [vmem:[%s8035_s7 + $0x158] sm:$0xff]  ;;  %v380_v28 = vld [vmem:[%s8035_s7 + $0x160] sm:$0xff] }
  0x33   : > { %377 = vst [vmem:[%s8040_s27 + $0xd0] sm:$0xff] %v376_v26  ;;  %v382_v29 = vld [vmem:[%s8035_s7 + $0x168] sm:$0xff]  ;;  %379 = vst [vmem:[%s8040_s27 + $0xd8] sm:$0xff] %v378_v27  ;;  %v384_v30 = vld [vmem:[%s8035_s7 + $0x170] sm:$0xff] }
  0x34   : > { %381 = vst [vmem:[%s8040_s27 + $0xe0] sm:$0xff] %v380_v28  ;;  %383 = vst [vmem:[%s8040_s27 + $0xe8] sm:$0xff] %v382_v29  ;;  %v386_v31 = vld [vmem:[%s8035_s7 + $0x178] sm:$0xff]  ;;  %v388_v32 = vld [vmem:[%s8035_s7 + $0x200] sm:$0xff] }
  0x35   : > { %385 = vst [vmem:[%s8040_s27 + $0xf0] sm:$0xff] %v384_v30  ;;  %387 = vst [vmem:[%s8040_s27 + $0xf8] sm:$0xff] %v386_v31  ;;  %v390_v33 = vld [vmem:[%s8035_s7 + $0x208] sm:$0xff]  ;;  %v392_v34 = vld [vmem:[%s8035_s7 + $0x210] sm:$0xff] }
  0x36   : > { %389 = vst [vmem:[%s8040_s27 + $0x100] sm:$0xff] %v388_v32  ;;  %v394_v35 = vld [vmem:[%s8035_s7 + $0x218] sm:$0xff]  ;;  %391 = vst [vmem:[%s8040_s27 + $0x108] sm:$0xff] %v390_v33  ;;  %v396_v36 = vld [vmem:[%s8035_s7 + $0x220] sm:$0xff] }
  0x37   : > { %393 = vst [vmem:[%s8040_s27 + $0x110] sm:$0xff] %v392_v34  ;;  %395 = vst [vmem:[%s8040_s27 + $0x118] sm:$0xff] %v394_v35  ;;  %v398_v37 = vld [vmem:[%s8035_s7 + $0x228] sm:$0xff]  ;;  %v400_v38 = vld [vmem:[%s8035_s7 + $0x230] sm:$0xff] }
  0x38   : > { %397 = vst [vmem:[%s8040_s27 + $0x120] sm:$0xff] %v396_v36  ;;  %399 = vst [vmem:[%s8040_s27 + $0x128] sm:$0xff] %v398_v37  ;;  %v402_v39 = vld [vmem:[%s8035_s7 + $0x238] sm:$0xff]  ;;  %v404_v40 = vld [vmem:[%s8035_s7 + $0x240] sm:$0xff] }
  0x39   : > { %401 = vst [vmem:[%s8040_s27 + $0x130] sm:$0xff] %v400_v38  ;;  %v406_v41 = vld [vmem:[%s8035_s7 + $0x248] sm:$0xff]  ;;  %403 = vst [vmem:[%s8040_s27 + $0x138] sm:$0xff] %v402_v39  ;;  %v408_v42 = vld [vmem:[%s8035_s7 + $0x250] sm:$0xff] }
  0x3a   : > { %405 = vst [vmem:[%s8040_s27 + $0x140] sm:$0xff] %v404_v40  ;;  %407 = vst [vmem:[%s8040_s27 + $0x148] sm:$0xff] %v406_v41  ;;  %v410_v43 = vld [vmem:[%s8035_s7 + $0x258] sm:$0xff]  ;;  %v412_v44 = vld [vmem:[%s8035_s7 + $0x260] sm:$0xff] }
  0x3b   : > { %409 = vst [vmem:[%s8040_s27 + $0x150] sm:$0xff] %v408_v42  ;;  %411 = vst [vmem:[%s8040_s27 + $0x158] sm:$0xff] %v410_v43  ;;  %v414_v45 = vld [vmem:[%s8035_s7 + $0x268] sm:$0xff]  ;;  %v416_v46 = vld [vmem:[%s8035_s7 + $0x270] sm:$0xff] }
  0x3c   : > { %413 = vst [vmem:[%s8040_s27 + $0x160] sm:$0xff] %v412_v44  ;;  %v418_v47 = vld [vmem:[%s8035_s7 + $0x278] sm:$0xff]  ;;  %415 = vst [vmem:[%s8040_s27 + $0x168] sm:$0xff] %v414_v45  ;;  %v420_v48 = vld [vmem:[%s8035_s7 + $0x300] sm:$0xff] }
  0x3d   : > { %417 = vst [vmem:[%s8040_s27 + $0x170] sm:$0xff] %v416_v46  ;;  %419 = vst [vmem:[%s8040_s27 + $0x178] sm:$0xff] %v418_v47  ;;  %v422_v49 = vld [vmem:[%s8035_s7 + $0x308] sm:$0xff]  ;;  %v424_v50 = vld [vmem:[%s8035_s7 + $0x310] sm:$0xff] }
  0x3e   : > { %421 = vst [vmem:[%s8040_s27 + $0x180] sm:$0xff] %v420_v48  ;;  %423 = vst [vmem:[%s8040_s27 + $0x188] sm:$0xff] %v422_v49  ;;  %v426_v51 = vld [vmem:[%s8035_s7 + $0x318] sm:$0xff]  ;;  %v428_v52 = vld [vmem:[%s8035_s7 + $0x320] sm:$0xff] }
  0x3f   : > { %425 = vst [vmem:[%s8040_s27 + $0x190] sm:$0xff] %v424_v50  ;;  %v430_v53 = vld [vmem:[%s8035_s7 + $0x328] sm:$0xff]  ;;  %427 = vst [vmem:[%s8040_s27 + $0x198] sm:$0xff] %v426_v51  ;;  %v432_v54 = vld [vmem:[%s8035_s7 + $0x330] sm:$0xff] }
  0x40   : > { %429 = vst [vmem:[%s8040_s27 + $0x1a0] sm:$0xff] %v428_v52  ;;  %431 = vst [vmem:[%s8040_s27 + $0x1a8] sm:$0xff] %v430_v53  ;;  %v434_v55 = vld [vmem:[%s8035_s7 + $0x338] sm:$0xff]  ;;  %v436_v56 = vld [vmem:[%s8035_s7 + $0x340] sm:$0xff] }
  0x41   : > { %433 = vst [vmem:[%s8040_s27 + $0x1b0] sm:$0xff] %v432_v54  ;;  %435 = vst [vmem:[%s8040_s27 + $0x1b8] sm:$0xff] %v434_v55  ;;  %v438_v57 = vld [vmem:[%s8035_s7 + $0x348] sm:$0xff]  ;;  %v440_v58 = vld [vmem:[%s8035_s7 + $0x350] sm:$0xff] }
  0x42   : > { %437 = vst [vmem:[%s8040_s27 + $0x1c0] sm:$0xff] %v436_v56  ;;  %v442_v59 = vld [vmem:[%s8035_s7 + $0x358] sm:$0xff]  ;;  %439 = vst [vmem:[%s8040_s27 + $0x1c8] sm:$0xff] %v438_v57  ;;  %v444_v60 = vld [vmem:[%s8035_s7 + $0x360] sm:$0xff] }
  0x43   : > { %441 = vst [vmem:[%s8040_s27 + $0x1d0] sm:$0xff] %v440_v58  ;;  %443 = vst [vmem:[%s8040_s27 + $0x1d8] sm:$0xff] %v442_v59  ;;  %v446_v61 = vld [vmem:[%s8035_s7 + $0x368] sm:$0xff]  ;;  %v448_v62 = vld [vmem:[%s8035_s7 + $0x370] sm:$0xff] }
  0x44   : > { %445 = vst [vmem:[%s8040_s27 + $0x1e0] sm:$0xff] %v444_v60  ;;  %447 = vst [vmem:[%s8040_s27 + $0x1e8] sm:$0xff] %v446_v61  ;;  %v450_v63 = vld [vmem:[%s8035_s7 + $0x378] sm:$0xff] }
  0x45   : > { %449 = vst [vmem:[%s8040_s27 + $0x1f0] sm:$0xff] %v448_v62  ;;  %451 = vst [vmem:[%s8040_s27 + $0x1f8] sm:$0xff] %v450_v63 }
  0x46 PF: > { %457 = sbr.rel (!%p8003_p8) target bundleno = 109 (0x6d), region = 58  ;;  %s459_s24 = sand.u32 (%p8003_p8), 1, %s7860_s13  }
  0x47   : > { %s6158_s25 = sshll.u32 (%p8003_p8), %s7884_s19, 4  ;;  %s6157_s9 = sshll.u32 (%p8003_p8), %s459_s24, 9 }
  0x48   : > { %s6159_s26 = sshll.u32 (%p8003_p8), %s7892_s21, 7  ;;  %s8180_s7 = scalar_lea.vmem (%p8003_p8), [#allocation6], %s6157_s9 }
  0x49   : > { %s464_s29 = sadd.s32 (%p8003_p8), %s6159_s26, %s6158_s25 }
  0x4a   : > { %s6160_s28 = sshll.u32 (%p8003_p8), %s464_s29, 3 }
  0x4b   : > { %s8175_s4 = scalar_lea.vmem (%p8003_p8), %s11333_s1, %s6160_s28 }
  0x4c   : > { %v620_v0 = vld [vmem:[%s8175_s4] sm:$0xff] (%p8003_p8)  ;;  %v622_v1 = vld [vmem:[%s8175_s4 + $0x8] sm:$0xff] (%p8003_p8)  ;;  %v624_v2 = vld [vmem:[%s8175_s4 + $0x10] sm:$0xff] (%p8003_p8) }
  0x4d   : > { %621 = vst [vmem:[%s8180_s7] sm:$0xff] %v620_v0  ;;  %623 = vst [vmem:[%s8180_s7 + $0x8] sm:$0xff] %v622_v1  ;;  %v626_v3 = vld [vmem:[%s8175_s4 + $0x18] sm:$0xff]  ;;  %v628_v4 = vld [vmem:[%s8175_s4 + $0x20] sm:$0xff] }
  0x4e   : > { %625 = vst [vmem:[%s8180_s7 + $0x10] sm:$0xff] %v624_v2  ;;  %v630_v5 = vld [vmem:[%s8175_s4 + $0x28] sm:$0xff]  ;;  %627 = vst [vmem:[%s8180_s7 + $0x18] sm:$0xff] %v626_v3  ;;  %v632_v6 = vld [vmem:[%s8175_s4 + $0x30] sm:$0xff] }
  0x4f   : > { %629 = vst [vmem:[%s8180_s7 + $0x20] sm:$0xff] %v628_v4  ;;  %631 = vst [vmem:[%s8180_s7 + $0x28] sm:$0xff] %v630_v5  ;;  %v634_v7 = vld [vmem:[%s8175_s4 + $0x38] sm:$0xff]  ;;  %v636_v8 = vld [vmem:[%s8175_s4 + $0x40] sm:$0xff] }
  0x50   : > { %633 = vst [vmem:[%s8180_s7 + $0x30] sm:$0xff] %v632_v6  ;;  %635 = vst [vmem:[%s8180_s7 + $0x38] sm:$0xff] %v634_v7  ;;  %v638_v9 = vld [vmem:[%s8175_s4 + $0x48] sm:$0xff]  ;;  %v640_v10 = vld [vmem:[%s8175_s4 + $0x50] sm:$0xff] }
  0x51   : > { %637 = vst [vmem:[%s8180_s7 + $0x40] sm:$0xff] %v636_v8  ;;  %v642_v11 = vld [vmem:[%s8175_s4 + $0x58] sm:$0xff]  ;;  %639 = vst [vmem:[%s8180_s7 + $0x48] sm:$0xff] %v638_v9  ;;  %v644_v12 = vld [vmem:[%s8175_s4 + $0x60] sm:$0xff] }
  0x52   : > { %641 = vst [vmem:[%s8180_s7 + $0x50] sm:$0xff] %v640_v10  ;;  %643 = vst [vmem:[%s8180_s7 + $0x58] sm:$0xff] %v642_v11  ;;  %v646_v13 = vld [vmem:[%s8175_s4 + $0x68] sm:$0xff]  ;;  %v648_v14 = vld [vmem:[%s8175_s4 + $0x70] sm:$0xff] }
  0x53   : > { %645 = vst [vmem:[%s8180_s7 + $0x60] sm:$0xff] %v644_v12  ;;  %647 = vst [vmem:[%s8180_s7 + $0x68] sm:$0xff] %v646_v13  ;;  %v650_v15 = vld [vmem:[%s8175_s4 + $0x78] sm:$0xff]  ;;  %v652_v16 = vld [vmem:[%s8175_s4 + $0x100] sm:$0xff] }
  0x54   : > { %649 = vst [vmem:[%s8180_s7 + $0x70] sm:$0xff] %v648_v14  ;;  %v654_v17 = vld [vmem:[%s8175_s4 + $0x108] sm:$0xff]  ;;  %651 = vst [vmem:[%s8180_s7 + $0x78] sm:$0xff] %v650_v15  ;;  %v656_v18 = vld [vmem:[%s8175_s4 + $0x110] sm:$0xff] }
  0x55   : > { %653 = vst [vmem:[%s8180_s7 + $0x80] sm:$0xff] %v652_v16  ;;  %655 = vst [vmem:[%s8180_s7 + $0x88] sm:$0xff] %v654_v17  ;;  %v658_v19 = vld [vmem:[%s8175_s4 + $0x118] sm:$0xff]  ;;  %v660_v20 = vld [vmem:[%s8175_s4 + $0x120] sm:$0xff] }
  0x56   : > { %657 = vst [vmem:[%s8180_s7 + $0x90] sm:$0xff] %v656_v18  ;;  %659 = vst [vmem:[%s8180_s7 + $0x98] sm:$0xff] %v658_v19  ;;  %v662_v21 = vld [vmem:[%s8175_s4 + $0x128] sm:$0xff]  ;;  %v664_v22 = vld [vmem:[%s8175_s4 + $0x130] sm:$0xff] }
  0x57   : > { %661 = vst [vmem:[%s8180_s7 + $0xa0] sm:$0xff] %v660_v20  ;;  %v666_v23 = vld [vmem:[%s8175_s4 + $0x138] sm:$0xff]  ;;  %663 = vst [vmem:[%s8180_s7 + $0xa8] sm:$0xff] %v662_v21  ;;  %v668_v24 = vld [vmem:[%s8175_s4 + $0x140] sm:$0xff] }
  0x58   : > { %665 = vst [vmem:[%s8180_s7 + $0xb0] sm:$0xff] %v664_v22  ;;  %667 = vst [vmem:[%s8180_s7 + $0xb8] sm:$0xff] %v666_v23  ;;  %v670_v25 = vld [vmem:[%s8175_s4 + $0x148] sm:$0xff]  ;;  %v672_v26 = vld [vmem:[%s8175_s4 + $0x150] sm:$0xff] }
  0x59   : > { %669 = vst [vmem:[%s8180_s7 + $0xc0] sm:$0xff] %v668_v24  ;;  %671 = vst [vmem:[%s8180_s7 + $0xc8] sm:$0xff] %v670_v25  ;;  %v674_v27 = vld [vmem:[%s8175_s4 + $0x158] sm:$0xff]  ;;  %v676_v28 = vld [vmem:[%s8175_s4 + $0x160] sm:$0xff] }
  0x5a   : > { %673 = vst [vmem:[%s8180_s7 + $0xd0] sm:$0xff] %v672_v26  ;;  %v678_v29 = vld [vmem:[%s8175_s4 + $0x168] sm:$0xff]  ;;  %675 = vst [vmem:[%s8180_s7 + $0xd8] sm:$0xff] %v674_v27  ;;  %v680_v30 = vld [vmem:[%s8175_s4 + $0x170] sm:$0xff] }
  0x5b   : > { %677 = vst [vmem:[%s8180_s7 + $0xe0] sm:$0xff] %v676_v28  ;;  %679 = vst [vmem:[%s8180_s7 + $0xe8] sm:$0xff] %v678_v29  ;;  %v682_v31 = vld [vmem:[%s8175_s4 + $0x178] sm:$0xff]  ;;  %v684_v32 = vld [vmem:[%s8175_s4 + $0x200] sm:$0xff] }
  0x5c   : > { %681 = vst [vmem:[%s8180_s7 + $0xf0] sm:$0xff] %v680_v30  ;;  %683 = vst [vmem:[%s8180_s7 + $0xf8] sm:$0xff] %v682_v31  ;;  %v686_v33 = vld [vmem:[%s8175_s4 + $0x208] sm:$0xff]  ;;  %v688_v34 = vld [vmem:[%s8175_s4 + $0x210] sm:$0xff] }
  0x5d   : > { %685 = vst [vmem:[%s8180_s7 + $0x100] sm:$0xff] %v684_v32  ;;  %v690_v35 = vld [vmem:[%s8175_s4 + $0x218] sm:$0xff]  ;;  %687 = vst [vmem:[%s8180_s7 + $0x108] sm:$0xff] %v686_v33  ;;  %v692_v36 = vld [vmem:[%s8175_s4 + $0x220] sm:$0xff] }
  0x5e   : > { %689 = vst [vmem:[%s8180_s7 + $0x110] sm:$0xff] %v688_v34  ;;  %691 = vst [vmem:[%s8180_s7 + $0x118] sm:$0xff] %v690_v35  ;;  %v694_v37 = vld [vmem:[%s8175_s4 + $0x228] sm:$0xff]  ;;  %v696_v38 = vld [vmem:[%s8175_s4 + $0x230] sm:$0xff] }
  0x5f   : > { %693 = vst [vmem:[%s8180_s7 + $0x120] sm:$0xff] %v692_v36  ;;  %695 = vst [vmem:[%s8180_s7 + $0x128] sm:$0xff] %v694_v37  ;;  %v698_v39 = vld [vmem:[%s8175_s4 + $0x238] sm:$0xff]  ;;  %v700_v40 = vld [vmem:[%s8175_s4 + $0x240] sm:$0xff] }
  0x60   : > { %697 = vst [vmem:[%s8180_s7 + $0x130] sm:$0xff] %v696_v38  ;;  %v702_v41 = vld [vmem:[%s8175_s4 + $0x248] sm:$0xff]  ;;  %699 = vst [vmem:[%s8180_s7 + $0x138] sm:$0xff] %v698_v39  ;;  %v704_v42 = vld [vmem:[%s8175_s4 + $0x250] sm:$0xff] }
  0x61   : > { %701 = vst [vmem:[%s8180_s7 + $0x140] sm:$0xff] %v700_v40  ;;  %703 = vst [vmem:[%s8180_s7 + $0x148] sm:$0xff] %v702_v41  ;;  %v706_v43 = vld [vmem:[%s8175_s4 + $0x258] sm:$0xff]  ;;  %v708_v44 = vld [vmem:[%s8175_s4 + $0x260] sm:$0xff] }
  0x62   : > { %705 = vst [vmem:[%s8180_s7 + $0x150] sm:$0xff] %v704_v42  ;;  %707 = vst [vmem:[%s8180_s7 + $0x158] sm:$0xff] %v706_v43  ;;  %v710_v45 = vld [vmem:[%s8175_s4 + $0x268] sm:$0xff]  ;;  %v712_v46 = vld [vmem:[%s8175_s4 + $0x270] sm:$0xff] }
  0x63   : > { %709 = vst [vmem:[%s8180_s7 + $0x160] sm:$0xff] %v708_v44  ;;  %v714_v47 = vld [vmem:[%s8175_s4 + $0x278] sm:$0xff]  ;;  %711 = vst [vmem:[%s8180_s7 + $0x168] sm:$0xff] %v710_v45  ;;  %v716_v48 = vld [vmem:[%s8175_s4 + $0x300] sm:$0xff] }
  0x64   : > { %713 = vst [vmem:[%s8180_s7 + $0x170] sm:$0xff] %v712_v46  ;;  %715 = vst [vmem:[%s8180_s7 + $0x178] sm:$0xff] %v714_v47  ;;  %v718_v49 = vld [vmem:[%s8175_s4 + $0x308] sm:$0xff]  ;;  %v720_v50 = vld [vmem:[%s8175_s4 + $0x310] sm:$0xff] }
  0x65   : > { %717 = vst [vmem:[%s8180_s7 + $0x180] sm:$0xff] %v716_v48  ;;  %719 = vst [vmem:[%s8180_s7 + $0x188] sm:$0xff] %v718_v49  ;;  %v722_v51 = vld [vmem:[%s8175_s4 + $0x318] sm:$0xff]  ;;  %v724_v52 = vld [vmem:[%s8175_s4 + $0x320] sm:$0xff] }
  0x66   : > { %721 = vst [vmem:[%s8180_s7 + $0x190] sm:$0xff] %v720_v50  ;;  %v726_v53 = vld [vmem:[%s8175_s4 + $0x328] sm:$0xff]  ;;  %723 = vst [vmem:[%s8180_s7 + $0x198] sm:$0xff] %v722_v51  ;;  %v728_v54 = vld [vmem:[%s8175_s4 + $0x330] sm:$0xff] }
  0x67   : > { %725 = vst [vmem:[%s8180_s7 + $0x1a0] sm:$0xff] %v724_v52  ;;  %727 = vst [vmem:[%s8180_s7 + $0x1a8] sm:$0xff] %v726_v53  ;;  %v730_v55 = vld [vmem:[%s8175_s4 + $0x338] sm:$0xff]  ;;  %v732_v56 = vld [vmem:[%s8175_s4 + $0x340] sm:$0xff] }
  0x68   : > { %729 = vst [vmem:[%s8180_s7 + $0x1b0] sm:$0xff] %v728_v54  ;;  %731 = vst [vmem:[%s8180_s7 + $0x1b8] sm:$0xff] %v730_v55  ;;  %v734_v57 = vld [vmem:[%s8175_s4 + $0x348] sm:$0xff]  ;;  %v736_v58 = vld [vmem:[%s8175_s4 + $0x350] sm:$0xff] }
  0x69   : > { %733 = vst [vmem:[%s8180_s7 + $0x1c0] sm:$0xff] %v732_v56  ;;  %v738_v59 = vld [vmem:[%s8175_s4 + $0x358] sm:$0xff]  ;;  %735 = vst [vmem:[%s8180_s7 + $0x1c8] sm:$0xff] %v734_v57  ;;  %v740_v60 = vld [vmem:[%s8175_s4 + $0x360] sm:$0xff] }
  0x6a   : > { %737 = vst [vmem:[%s8180_s7 + $0x1d0] sm:$0xff] %v736_v58  ;;  %739 = vst [vmem:[%s8180_s7 + $0x1d8] sm:$0xff] %v738_v59  ;;  %v742_v61 = vld [vmem:[%s8175_s4 + $0x368] sm:$0xff]  ;;  %v744_v62 = vld [vmem:[%s8175_s4 + $0x370] sm:$0xff] }
  0x6b   : > { %741 = vst [vmem:[%s8180_s7 + $0x1e0] sm:$0xff] %v740_v60  ;;  %743 = vst [vmem:[%s8180_s7 + $0x1e8] sm:$0xff] %v742_v61  ;;  %v746_v63 = vld [vmem:[%s8175_s4 + $0x378] sm:$0xff] }
  0x6c   : > { %745 = vst [vmem:[%s8180_s7 + $0x1f0] sm:$0xff] %v744_v62  ;;  %747 = vst [vmem:[%s8180_s7 + $0x1f8] sm:$0xff] %v746_v63 }
  0x6d PF: > { %753 = sbr.rel (!%p8003_p8) target bundleno = 148 (0x94), region = 96  ;;  %s755_s27 = sand.u32 (%p8003_p8), 1, %s7860_s13  }
  0x6e   : > { %s6162_s24 = sshll.u32 (%p8003_p8), %s7884_s19, 4  ;;  %s6161_s25 = sshll.u32 (%p8003_p8), %s755_s27, 9 }
  0x6f   : > { %s6163_s9 = sshll.u32 (%p8003_p8), %s7892_s21, 7  ;;  %s8320_s30 = scalar_lea.vmem (%p8003_p8), [#allocation7], %s6161_s25 }
  0x70   : > { %s760_s26 = sadd.s32 (%p8003_p8), %s6163_s9, %s6162_s24 }
  0x71   : > { %s6164_s29 = sshll.u32 (%p8003_p8), %s760_s26, 3 }
  0x72   : > { %s8315_s8 = scalar_lea.vmem (%p8003_p8), %s11334_s2, %s6164_s29 }
  0x73   : > { %v916_v0 = vld [vmem:[%s8315_s8] sm:$0xff] (%p8003_p8)  ;;  %v918_v1 = vld [vmem:[%s8315_s8 + $0x8] sm:$0xff] (%p8003_p8)  ;;  %v920_v2 = vld [vmem:[%s8315_s8 + $0x10] sm:$0xff] (%p8003_p8) }
  0x74   : > { %917 = vst [vmem:[%s8320_s30] sm:$0xff] %v916_v0  ;;  %919 = vst [vmem:[%s8320_s30 + $0x8] sm:$0xff] %v918_v1  ;;  %v922_v3 = vld [vmem:[%s8315_s8 + $0x18] sm:$0xff]  ;;  %v924_v4 = vld [vmem:[%s8315_s8 + $0x20] sm:$0xff] }
  0x75   : > { %921 = vst [vmem:[%s8320_s30 + $0x10] sm:$0xff] %v920_v2  ;;  %v926_v5 = vld [vmem:[%s8315_s8 + $0x28] sm:$0xff]  ;;  %923 = vst [vmem:[%s8320_s30 + $0x18] sm:$0xff] %v922_v3  ;;  %v928_v6 = vld [vmem:[%s8315_s8 + $0x30] sm:$0xff] }
  0x76   : > { %925 = vst [vmem:[%s8320_s30 + $0x20] sm:$0xff] %v924_v4  ;;  %927 = vst [vmem:[%s8320_s30 + $0x28] sm:$0xff] %v926_v5  ;;  %v930_v7 = vld [vmem:[%s8315_s8 + $0x38] sm:$0xff]  ;;  %v932_v8 = vld [vmem:[%s8315_s8 + $0x40] sm:$0xff] }
  0x77   : > { %929 = vst [vmem:[%s8320_s30 + $0x30] sm:$0xff] %v928_v6  ;;  %931 = vst [vmem:[%s8320_s30 + $0x38] sm:$0xff] %v930_v7  ;;  %v934_v9 = vld [vmem:[%s8315_s8 + $0x48] sm:$0xff]  ;;  %v936_v10 = vld [vmem:[%s8315_s8 + $0x50] sm:$0xff] }
  0x78   : > { %933 = vst [vmem:[%s8320_s30 + $0x40] sm:$0xff] %v932_v8  ;;  %v938_v11 = vld [vmem:[%s8315_s8 + $0x58] sm:$0xff]  ;;  %935 = vst [vmem:[%s8320_s30 + $0x48] sm:$0xff] %v934_v9  ;;  %v940_v12 = vld [vmem:[%s8315_s8 + $0x60] sm:$0xff] }
  0x79   : > { %937 = vst [vmem:[%s8320_s30 + $0x50] sm:$0xff] %v936_v10  ;;  %939 = vst [vmem:[%s8320_s30 + $0x58] sm:$0xff] %v938_v11  ;;  %v942_v13 = vld [vmem:[%s8315_s8 + $0x68] sm:$0xff]  ;;  %v944_v14 = vld [vmem:[%s8315_s8 + $0x70] sm:$0xff] }
  0x7a   : > { %941 = vst [vmem:[%s8320_s30 + $0x60] sm:$0xff] %v940_v12  ;;  %943 = vst [vmem:[%s8320_s30 + $0x68] sm:$0xff] %v942_v13  ;;  %v946_v15 = vld [vmem:[%s8315_s8 + $0x78] sm:$0xff]  ;;  %v948_v16 = vld [vmem:[%s8315_s8 + $0x100] sm:$0xff] }
  0x7b   : > { %945 = vst [vmem:[%s8320_s30 + $0x70] sm:$0xff] %v944_v14  ;;  %v950_v17 = vld [vmem:[%s8315_s8 + $0x108] sm:$0xff]  ;;  %947 = vst [vmem:[%s8320_s30 + $0x78] sm:$0xff] %v946_v15  ;;  %v952_v18 = vld [vmem:[%s8315_s8 + $0x110] sm:$0xff] }
  0x7c   : > { %949 = vst [vmem:[%s8320_s30 + $0x80] sm:$0xff] %v948_v16  ;;  %951 = vst [vmem:[%s8320_s30 + $0x88] sm:$0xff] %v950_v17  ;;  %v954_v19 = vld [vmem:[%s8315_s8 + $0x118] sm:$0xff]  ;;  %v956_v20 = vld [vmem:[%s8315_s8 + $0x120] sm:$0xff] }
  0x7d   : > { %953 = vst [vmem:[%s8320_s30 + $0x90] sm:$0xff] %v952_v18  ;;  %955 = vst [vmem:[%s8320_s30 + $0x98] sm:$0xff] %v954_v19  ;;  %v958_v21 = vld [vmem:[%s8315_s8 + $0x128] sm:$0xff]  ;;  %v960_v22 = vld [vmem:[%s8315_s8 + $0x130] sm:$0xff] }
  0x7e   : > { %957 = vst [vmem:[%s8320_s30 + $0xa0] sm:$0xff] %v956_v20  ;;  %v962_v23 = vld [vmem:[%s8315_s8 + $0x138] sm:$0xff]  ;;  %959 = vst [vmem:[%s8320_s30 + $0xa8] sm:$0xff] %v958_v21  ;;  %v964_v24 = vld [vmem:[%s8315_s8 + $0x140] sm:$0xff] }
  0x7f   : > { %961 = vst [vmem:[%s8320_s30 + $0xb0] sm:$0xff] %v960_v22  ;;  %963 = vst [vmem:[%s8320_s30 + $0xb8] sm:$0xff] %v962_v23  ;;  %v966_v25 = vld [vmem:[%s8315_s8 + $0x148] sm:$0xff]  ;;  %v968_v26 = vld [vmem:[%s8315_s8 + $0x150] sm:$0xff] }
  0x80   : > { %965 = vst [vmem:[%s8320_s30 + $0xc0] sm:$0xff] %v964_v24  ;;  %967 = vst [vmem:[%s8320_s30 + $0xc8] sm:$0xff] %v966_v25  ;;  %v970_v27 = vld [vmem:[%s8315_s8 + $0x158] sm:$0xff]  ;;  %v972_v28 = vld [vmem:[%s8315_s8 + $0x160] sm:$0xff] }
  0x81   : > { %969 = vst [vmem:[%s8320_s30 + $0xd0] sm:$0xff] %v968_v26  ;;  %v974_v29 = vld [vmem:[%s8315_s8 + $0x168] sm:$0xff]  ;;  %971 = vst [vmem:[%s8320_s30 + $0xd8] sm:$0xff] %v970_v27  ;;  %v976_v30 = vld [vmem:[%s8315_s8 + $0x170] sm:$0xff] }
  0x82   : > { %973 = vst [vmem:[%s8320_s30 + $0xe0] sm:$0xff] %v972_v28  ;;  %975 = vst [vmem:[%s8320_s30 + $0xe8] sm:$0xff] %v974_v29  ;;  %v978_v31 = vld [vmem:[%s8315_s8 + $0x178] sm:$0xff]  ;;  %v980_v32 = vld [vmem:[%s8315_s8 + $0x200] sm:$0xff] }
  0x83   : > { %977 = vst [vmem:[%s8320_s30 + $0xf0] sm:$0xff] %v976_v30  ;;  %979 = vst [vmem:[%s8320_s30 + $0xf8] sm:$0xff] %v978_v31  ;;  %v982_v33 = vld [vmem:[%s8315_s8 + $0x208] sm:$0xff]  ;;  %v984_v34 = vld [vmem:[%s8315_s8 + $0x210] sm:$0xff] }
  0x84   : > { %981 = vst [vmem:[%s8320_s30 + $0x100] sm:$0xff] %v980_v32  ;;  %v986_v35 = vld [vmem:[%s8315_s8 + $0x218] sm:$0xff]  ;;  %983 = vst [vmem:[%s8320_s30 + $0x108] sm:$0xff] %v982_v33  ;;  %v988_v36 = vld [vmem:[%s8315_s8 + $0x220] sm:$0xff] }
  0x85   : > { %985 = vst [vmem:[%s8320_s30 + $0x110] sm:$0xff] %v984_v34  ;;  %987 = vst [vmem:[%s8320_s30 + $0x118] sm:$0xff] %v986_v35  ;;  %v990_v37 = vld [vmem:[%s8315_s8 + $0x228] sm:$0xff]  ;;  %v992_v38 = vld [vmem:[%s8315_s8 + $0x230] sm:$0xff] }
  0x86   : > { %989 = vst [vmem:[%s8320_s30 + $0x120] sm:$0xff] %v988_v36  ;;  %991 = vst [vmem:[%s8320_s30 + $0x128] sm:$0xff] %v990_v37  ;;  %v994_v39 = vld [vmem:[%s8315_s8 + $0x238] sm:$0xff]  ;;  %v996_v40 = vld [vmem:[%s8315_s8 + $0x240] sm:$0xff] }
  0x87   : > { %993 = vst [vmem:[%s8320_s30 + $0x130] sm:$0xff] %v992_v38  ;;  %v998_v41 = vld [vmem:[%s8315_s8 + $0x248] sm:$0xff]  ;;  %995 = vst [vmem:[%s8320_s30 + $0x138] sm:$0xff] %v994_v39  ;;  %v1000_v42 = vld [vmem:[%s8315_s8 + $0x250] sm:$0xff] }
  0x88   : > { %997 = vst [vmem:[%s8320_s30 + $0x140] sm:$0xff] %v996_v40  ;;  %999 = vst [vmem:[%s8320_s30 + $0x148] sm:$0xff] %v998_v41  ;;  %v1002_v43 = vld [vmem:[%s8315_s8 + $0x258] sm:$0xff]  ;;  %v1004_v44 = vld [vmem:[%s8315_s8 + $0x260] sm:$0xff] }
  0x89   : > { %1001 = vst [vmem:[%s8320_s30 + $0x150] sm:$0xff] %v1000_v42  ;;  %1003 = vst [vmem:[%s8320_s30 + $0x158] sm:$0xff] %v1002_v43  ;;  %v1006_v45 = vld [vmem:[%s8315_s8 + $0x268] sm:$0xff]  ;;  %v1008_v46 = vld [vmem:[%s8315_s8 + $0x270] sm:$0xff] }
  0x8a   : > { %1005 = vst [vmem:[%s8320_s30 + $0x160] sm:$0xff] %v1004_v44  ;;  %v1010_v47 = vld [vmem:[%s8315_s8 + $0x278] sm:$0xff]  ;;  %1007 = vst [vmem:[%s8320_s30 + $0x168] sm:$0xff] %v1006_v45  ;;  %v1012_v48 = vld [vmem:[%s8315_s8 + $0x300] sm:$0xff] }
  0x8b   : > { %1009 = vst [vmem:[%s8320_s30 + $0x170] sm:$0xff] %v1008_v46  ;;  %1011 = vst [vmem:[%s8320_s30 + $0x178] sm:$0xff] %v1010_v47  ;;  %v1014_v49 = vld [vmem:[%s8315_s8 + $0x308] sm:$0xff]  ;;  %v1016_v50 = vld [vmem:[%s8315_s8 + $0x310] sm:$0xff] }
  0x8c   : > { %1013 = vst [vmem:[%s8320_s30 + $0x180] sm:$0xff] %v1012_v48  ;;  %1015 = vst [vmem:[%s8320_s30 + $0x188] sm:$0xff] %v1014_v49  ;;  %v1018_v51 = vld [vmem:[%s8315_s8 + $0x318] sm:$0xff]  ;;  %v1020_v52 = vld [vmem:[%s8315_s8 + $0x320] sm:$0xff] }
  0x8d   : > { %1017 = vst [vmem:[%s8320_s30 + $0x190] sm:$0xff] %v1016_v50  ;;  %v1022_v53 = vld [vmem:[%s8315_s8 + $0x328] sm:$0xff]  ;;  %1019 = vst [vmem:[%s8320_s30 + $0x198] sm:$0xff] %v1018_v51  ;;  %v1024_v54 = vld [vmem:[%s8315_s8 + $0x330] sm:$0xff] }
  0x8e   : > { %1021 = vst [vmem:[%s8320_s30 + $0x1a0] sm:$0xff] %v1020_v52  ;;  %1023 = vst [vmem:[%s8320_s30 + $0x1a8] sm:$0xff] %v1022_v53  ;;  %v1026_v55 = vld [vmem:[%s8315_s8 + $0x338] sm:$0xff]  ;;  %v1028_v56 = vld [vmem:[%s8315_s8 + $0x340] sm:$0xff] }
  0x8f   : > { %1025 = vst [vmem:[%s8320_s30 + $0x1b0] sm:$0xff] %v1024_v54  ;;  %1027 = vst [vmem:[%s8320_s30 + $0x1b8] sm:$0xff] %v1026_v55  ;;  %v1030_v57 = vld [vmem:[%s8315_s8 + $0x348] sm:$0xff]  ;;  %v1032_v58 = vld [vmem:[%s8315_s8 + $0x350] sm:$0xff] }
  0x90   : > { %1029 = vst [vmem:[%s8320_s30 + $0x1c0] sm:$0xff] %v1028_v56  ;;  %v1034_v59 = vld [vmem:[%s8315_s8 + $0x358] sm:$0xff]  ;;  %1031 = vst [vmem:[%s8320_s30 + $0x1c8] sm:$0xff] %v1030_v57  ;;  %v1036_v60 = vld [vmem:[%s8315_s8 + $0x360] sm:$0xff] }
  0x91   : > { %1033 = vst [vmem:[%s8320_s30 + $0x1d0] sm:$0xff] %v1032_v58  ;;  %1035 = vst [vmem:[%s8320_s30 + $0x1d8] sm:$0xff] %v1034_v59  ;;  %v1038_v61 = vld [vmem:[%s8315_s8 + $0x368] sm:$0xff]  ;;  %v1040_v62 = vld [vmem:[%s8315_s8 + $0x370] sm:$0xff] }
  0x92   : > { %1037 = vst [vmem:[%s8320_s30 + $0x1e0] sm:$0xff] %v1036_v60  ;;  %1039 = vst [vmem:[%s8320_s30 + $0x1e8] sm:$0xff] %v1038_v61  ;;  %v1042_v63 = vld [vmem:[%s8315_s8 + $0x378] sm:$0xff] }
  0x93   : > { %1041 = vst [vmem:[%s8320_s30 + $0x1f0] sm:$0xff] %v1040_v62  ;;  %1043 = vst [vmem:[%s8320_s30 + $0x1f8] sm:$0xff] %v1042_v63 }
  0x94 PF: > { %p6165_p13 = scmp.ge.s32.totalorder %s7896_s22, 1  ;;  %p1048_p0 = scmp.lt.s32.totalorder %s7896_s22, 9 }
  0x96   : > { %p1049_p1 = pnand %p6165_p13, %p1048_p0 }
  0x98   : > { %1052 = sbr.rel (%p1049_p1) target bundleno = 1539 (0x603), region = 134 }
  0x9f   : > { %s1055_s4 = sand.u32 1, %s7864_s14   ;;  %s1062_s7 = sand.u32 1, %s7856_s12  }
  0xa0   : > { %s6166_s27 = sshll.u32 %s1055_s4, 9  ;;  %s6167_s24 = sshll.u32 %s1062_s7, 9 }
  0xa1   : > { %s8451_s25 = scalar_lea.vmem [#allocation5], %s6166_s27  ;;  %s8453_s9 = scalar_lea.vmem [#allocation6], %s6167_s24 }
  0xa2   : > { %s8455_s26 = scalar_lea.vmem [#allocation7], %s6167_s24  ;;  %s8457_s29 = scalar_lea.vmem [#allocation8], %s6166_s27 }
  0xa3   : > { %p6170_p2 = scmp.ne.s32.totalorder %s7872_s16, 0 }
  0xa4   : > { %vm1107_vm0 = vcmask (!%p6170_p2), 7168   ;;  %vm1236_vm1 = vcmask (!%p6170_p2), 261120   ;;  %v7898_v0 = vmov (!%p6170_p2), -inf   ;;  %v7899_v1 = vmov (!%p6170_p2), 0.0  }
  0xa5   : > { %1106 = sbr.rel (%p6170_p2) target bundleno = 261 (0x105), region = 150  ;;  %1108 = vst.msk [vmem:[#allocation2] sm:$0xff] (!%p6170_p2), %vm1107_vm0, %v7898_v0  ;;  %1109 = vst.msk [vmem:[#allocation2 + $0x8] sm:$0xff] (!%p6170_p2), %vm1107_vm0, %v7898_v0 }
  0xa6   : > { %1110 = vst.msk [vmem:[#allocation2 + $0x10] sm:$0xff] (!%p6170_p2), %vm1107_vm0, %v7898_v0  ;;  %1111 = vst.msk [vmem:[#allocation2 + $0x18] sm:$0xff] (!%p6170_p2), %vm1107_vm0, %v7898_v0 }
  0xa7   : > { %1112 = vst.msk [vmem:[#allocation2 + $0x20] sm:$0xff] (!%p6170_p2), %vm1107_vm0, %v7898_v0  ;;  %1113 = vst.msk [vmem:[#allocation2 + $0x28] sm:$0xff] (!%p6170_p2), %vm1107_vm0, %v7898_v0 }
  0xa8   : > { %1114 = vst.msk [vmem:[#allocation2 + $0x30] sm:$0xff] (!%p6170_p2), %vm1107_vm0, %v7898_v0  ;;  %1115 = vst.msk [vmem:[#allocation2 + $0x38] sm:$0xff] (!%p6170_p2), %vm1107_vm0, %v7898_v0 }
  0xa9   : > { %1116 = vst.msk [vmem:[#allocation2 + $0x40] sm:$0xff] (!%p6170_p2), %vm1107_vm0, %v7898_v0  ;;  %1117 = vst.msk [vmem:[#allocation2 + $0x48] sm:$0xff] (!%p6170_p2), %vm1107_vm0, %v7898_v0 }
  0xaa   : > { %1118 = vst.msk [vmem:[#allocation2 + $0x50] sm:$0xff] (!%p6170_p2), %vm1107_vm0, %v7898_v0  ;;  %1119 = vst.msk [vmem:[#allocation2 + $0x58] sm:$0xff] (!%p6170_p2), %vm1107_vm0, %v7898_v0 }
  0xab   : > { %1120 = vst.msk [vmem:[#allocation2 + $0x60] sm:$0xff] (!%p6170_p2), %vm1107_vm0, %v7898_v0  ;;  %1121 = vst.msk [vmem:[#allocation2 + $0x68] sm:$0xff] (!%p6170_p2), %vm1107_vm0, %v7898_v0 }
  0xac   : > { %1122 = vst.msk [vmem:[#allocation2 + $0x70] sm:$0xff] %vm1107_vm0, %v7898_v0  ;;  %1123 = vst.msk [vmem:[#allocation2 + $0x78] sm:$0xff] %vm1107_vm0, %v7898_v0 }
  0xad   : > { %1124 = vst.msk [vmem:[#allocation2 + $0x80] sm:$0xff] %vm1107_vm0, %v7898_v0  ;;  %1125 = vst.msk [vmem:[#allocation2 + $0x88] sm:$0xff] %vm1107_vm0, %v7898_v0 }
  0xae   : > { %1126 = vst.msk [vmem:[#allocation2 + $0x90] sm:$0xff] %vm1107_vm0, %v7898_v0  ;;  %1127 = vst.msk [vmem:[#allocation2 + $0x98] sm:$0xff] %vm1107_vm0, %v7898_v0 }
  0xaf   : > { %1128 = vst.msk [vmem:[#allocation2 + $0xa0] sm:$0xff] %vm1107_vm0, %v7898_v0  ;;  %1129 = vst.msk [vmem:[#allocation2 + $0xa8] sm:$0xff] %vm1107_vm0, %v7898_v0 }
  0xb0   : > { %1130 = vst.msk [vmem:[#allocation2 + $0xb0] sm:$0xff] %vm1107_vm0, %v7898_v0  ;;  %1131 = vst.msk [vmem:[#allocation2 + $0xb8] sm:$0xff] %vm1107_vm0, %v7898_v0 }
  0xb1   : > { %1132 = vst.msk [vmem:[#allocation2 + $0xc0] sm:$0xff] %vm1107_vm0, %v7898_v0  ;;  %1133 = vst.msk [vmem:[#allocation2 + $0xc8] sm:$0xff] %vm1107_vm0, %v7898_v0 }
  0xb2   : > { %1134 = vst.msk [vmem:[#allocation2 + $0xd0] sm:$0xff] %vm1107_vm0, %v7898_v0  ;;  %1135 = vst.msk [vmem:[#allocation2 + $0xd8] sm:$0xff] %vm1107_vm0, %v7898_v0 }
  0xb3   : > { %1136 = vst.msk [vmem:[#allocation2 + $0xe0] sm:$0xff] %vm1107_vm0, %v7898_v0  ;;  %1137 = vst.msk [vmem:[#allocation2 + $0xe8] sm:$0xff] %vm1107_vm0, %v7898_v0 }
  0xb4   : > { %1138 = vst.msk [vmem:[#allocation2 + $0xf0] sm:$0xff] %vm1107_vm0, %v7898_v0  ;;  %1139 = vst.msk [vmem:[#allocation2 + $0xf8] sm:$0xff] %vm1107_vm0, %v7898_v0 }
  0xb5   : > { %1140 = vst.msk [vmem:[#allocation2 + $0x100] sm:$0xff] %vm1107_vm0, %v7898_v0  ;;  %1141 = vst.msk [vmem:[#allocation2 + $0x108] sm:$0xff] %vm1107_vm0, %v7898_v0 }
  0xb6   : > { %1142 = vst.msk [vmem:[#allocation2 + $0x110] sm:$0xff] %vm1107_vm0, %v7898_v0  ;;  %1143 = vst.msk [vmem:[#allocation2 + $0x118] sm:$0xff] %vm1107_vm0, %v7898_v0 }
  0xb7   : > { %1144 = vst.msk [vmem:[#allocation2 + $0x120] sm:$0xff] %vm1107_vm0, %v7898_v0  ;;  %1145 = vst.msk [vmem:[#allocation2 + $0x128] sm:$0xff] %vm1107_vm0, %v7898_v0 }
  0xb8   : > { %1146 = vst.msk [vmem:[#allocation2 + $0x130] sm:$0xff] %vm1107_vm0, %v7898_v0  ;;  %1147 = vst.msk [vmem:[#allocation2 + $0x138] sm:$0xff] %vm1107_vm0, %v7898_v0 }
  0xb9   : > { %1148 = vst.msk [vmem:[#allocation2 + $0x140] sm:$0xff] %vm1107_vm0, %v7898_v0  ;;  %1149 = vst.msk [vmem:[#allocation2 + $0x148] sm:$0xff] %vm1107_vm0, %v7898_v0 }
  0xba   : > { %1150 = vst.msk [vmem:[#allocation2 + $0x150] sm:$0xff] %vm1107_vm0, %v7898_v0  ;;  %1151 = vst.msk [vmem:[#allocation2 + $0x158] sm:$0xff] %vm1107_vm0, %v7898_v0 }
  0xbb   : > { %1152 = vst.msk [vmem:[#allocation2 + $0x160] sm:$0xff] %vm1107_vm0, %v7898_v0  ;;  %1153 = vst.msk [vmem:[#allocation2 + $0x168] sm:$0xff] %vm1107_vm0, %v7898_v0 }
  0xbc   : > { %1154 = vst.msk [vmem:[#allocation2 + $0x170] sm:$0xff] %vm1107_vm0, %v7898_v0  ;;  %1155 = vst.msk [vmem:[#allocation2 + $0x178] sm:$0xff] %vm1107_vm0, %v7898_v0 }
  0xbd   : > { %1156 = vst.msk [vmem:[#allocation2 + $0x180] sm:$0xff] %vm1107_vm0, %v7898_v0  ;;  %1157 = vst.msk [vmem:[#allocation2 + $0x188] sm:$0xff] %vm1107_vm0, %v7898_v0 }
  0xbe   : > { %1158 = vst.msk [vmem:[#allocation2 + $0x190] sm:$0xff] %vm1107_vm0, %v7898_v0  ;;  %1159 = vst.msk [vmem:[#allocation2 + $0x198] sm:$0xff] %vm1107_vm0, %v7898_v0 }
  0xbf   : > { %1160 = vst.msk [vmem:[#allocation2 + $0x1a0] sm:$0xff] %vm1107_vm0, %v7898_v0  ;;  %1161 = vst.msk [vmem:[#allocation2 + $0x1a8] sm:$0xff] %vm1107_vm0, %v7898_v0 }
  0xc0   : > { %1162 = vst.msk [vmem:[#allocation2 + $0x1b0] sm:$0xff] %vm1107_vm0, %v7898_v0  ;;  %1163 = vst.msk [vmem:[#allocation2 + $0x1b8] sm:$0xff] %vm1107_vm0, %v7898_v0 }
  0xc1   : > { %1164 = vst.msk [vmem:[#allocation2 + $0x1c0] sm:$0xff] %vm1107_vm0, %v7898_v0  ;;  %1165 = vst.msk [vmem:[#allocation2 + $0x1c8] sm:$0xff] %vm1107_vm0, %v7898_v0 }
  0xc2   : > { %1166 = vst.msk [vmem:[#allocation2 + $0x1d0] sm:$0xff] %vm1107_vm0, %v7898_v0  ;;  %1167 = vst.msk [vmem:[#allocation2 + $0x1d8] sm:$0xff] %vm1107_vm0, %v7898_v0 }
  0xc3   : > { %1168 = vst.msk [vmem:[#allocation2 + $0x1e0] sm:$0xff] %vm1107_vm0, %v7898_v0  ;;  %1169 = vst.msk [vmem:[#allocation2 + $0x1e8] sm:$0xff] %vm1107_vm0, %v7898_v0 }
  0xc4   : > { %1170 = vst.msk [vmem:[#allocation2 + $0x1f0] sm:$0xff] %vm1107_vm0, %v7898_v0  ;;  %1171 = vst.msk [vmem:[#allocation2 + $0x1f8] sm:$0xff] %vm1107_vm0, %v7898_v0 }
  0xc5   : > { %1172 = vst.msk [vmem:[#allocation3] sm:$0xff] %vm1107_vm0, %v7899_v1  ;;  %1173 = vst.msk [vmem:[#allocation3 + $0x8] sm:$0xff] %vm1107_vm0, %v7899_v1 }
  0xc6   : > { %1174 = vst.msk [vmem:[#allocation3 + $0x10] sm:$0xff] %vm1107_vm0, %v7899_v1  ;;  %1175 = vst.msk [vmem:[#allocation3 + $0x18] sm:$0xff] %vm1107_vm0, %v7899_v1 }
  0xc7   : > { %1176 = vst.msk [vmem:[#allocation3 + $0x20] sm:$0xff] %vm1107_vm0, %v7899_v1  ;;  %1177 = vst.msk [vmem:[#allocation3 + $0x28] sm:$0xff] %vm1107_vm0, %v7899_v1 }
  0xc8   : > { %1178 = vst.msk [vmem:[#allocation3 + $0x30] sm:$0xff] %vm1107_vm0, %v7899_v1  ;;  %1179 = vst.msk [vmem:[#allocation3 + $0x38] sm:$0xff] %vm1107_vm0, %v7899_v1 }
  0xc9   : > { %1180 = vst.msk [vmem:[#allocation3 + $0x40] sm:$0xff] %vm1107_vm0, %v7899_v1  ;;  %1181 = vst.msk [vmem:[#allocation3 + $0x48] sm:$0xff] %vm1107_vm0, %v7899_v1 }
  0xca   : > { %1182 = vst.msk [vmem:[#allocation3 + $0x50] sm:$0xff] %vm1107_vm0, %v7899_v1  ;;  %1183 = vst.msk [vmem:[#allocation3 + $0x58] sm:$0xff] %vm1107_vm0, %v7899_v1 }
  0xcb   : > { %1184 = vst.msk [vmem:[#allocation3 + $0x60] sm:$0xff] %vm1107_vm0, %v7899_v1  ;;  %1185 = vst.msk [vmem:[#allocation3 + $0x68] sm:$0xff] %vm1107_vm0, %v7899_v1 }
  0xcc   : > { %1186 = vst.msk [vmem:[#allocation3 + $0x70] sm:$0xff] %vm1107_vm0, %v7899_v1  ;;  %1187 = vst.msk [vmem:[#allocation3 + $0x78] sm:$0xff] %vm1107_vm0, %v7899_v1 }
  0xcd   : > { %1188 = vst.msk [vmem:[#allocation3 + $0x80] sm:$0xff] %vm1107_vm0, %v7899_v1  ;;  %1189 = vst.msk [vmem:[#allocation3 + $0x88] sm:$0xff] %vm1107_vm0, %v7899_v1 }
  0xce   : > { %1190 = vst.msk [vmem:[#allocation3 + $0x90] sm:$0xff] %vm1107_vm0, %v7899_v1  ;;  %1191 = vst.msk [vmem:[#allocation3 + $0x98] sm:$0xff] %vm1107_vm0, %v7899_v1 }
  0xcf   : > { %1192 = vst.msk [vmem:[#allocation3 + $0xa0] sm:$0xff] %vm1107_vm0, %v7899_v1  ;;  %1193 = vst.msk [vmem:[#allocation3 + $0xa8] sm:$0xff] %vm1107_vm0, %v7899_v1 }
  0xd0   : > { %1194 = vst.msk [vmem:[#allocation3 + $0xb0] sm:$0xff] %vm1107_vm0, %v7899_v1  ;;  %1195 = vst.msk [vmem:[#allocation3 + $0xb8] sm:$0xff] %vm1107_vm0, %v7899_v1 }
  0xd1   : > { %1196 = vst.msk [vmem:[#allocation3 + $0xc0] sm:$0xff] %vm1107_vm0, %v7899_v1  ;;  %1197 = vst.msk [vmem:[#allocation3 + $0xc8] sm:$0xff] %vm1107_vm0, %v7899_v1 }
  0xd2   : > { %1198 = vst.msk [vmem:[#allocation3 + $0xd0] sm:$0xff] %vm1107_vm0, %v7899_v1  ;;  %1199 = vst.msk [vmem:[#allocation3 + $0xd8] sm:$0xff] %vm1107_vm0, %v7899_v1 }
  0xd3   : > { %1200 = vst.msk [vmem:[#allocation3 + $0xe0] sm:$0xff] %vm1107_vm0, %v7899_v1  ;;  %1201 = vst.msk [vmem:[#allocation3 + $0xe8] sm:$0xff] %vm1107_vm0, %v7899_v1 }
  0xd4   : > { %1202 = vst.msk [vmem:[#allocation3 + $0xf0] sm:$0xff] %vm1107_vm0, %v7899_v1  ;;  %1203 = vst.msk [vmem:[#allocation3 + $0xf8] sm:$0xff] %vm1107_vm0, %v7899_v1 }
  0xd5   : > { %1204 = vst.msk [vmem:[#allocation3 + $0x100] sm:$0xff] %vm1107_vm0, %v7899_v1  ;;  %1205 = vst.msk [vmem:[#allocation3 + $0x108] sm:$0xff] %vm1107_vm0, %v7899_v1 }
  0xd6   : > { %1206 = vst.msk [vmem:[#allocation3 + $0x110] sm:$0xff] %vm1107_vm0, %v7899_v1  ;;  %1207 = vst.msk [vmem:[#allocation3 + $0x118] sm:$0xff] %vm1107_vm0, %v7899_v1 }
  0xd7   : > { %1208 = vst.msk [vmem:[#allocation3 + $0x120] sm:$0xff] %vm1107_vm0, %v7899_v1  ;;  %1209 = vst.msk [vmem:[#allocation3 + $0x128] sm:$0xff] %vm1107_vm0, %v7899_v1 }
  0xd8   : > { %1210 = vst.msk [vmem:[#allocation3 + $0x130] sm:$0xff] %vm1107_vm0, %v7899_v1  ;;  %1211 = vst.msk [vmem:[#allocation3 + $0x138] sm:$0xff] %vm1107_vm0, %v7899_v1 }
  0xd9   : > { %1212 = vst.msk [vmem:[#allocation3 + $0x140] sm:$0xff] %vm1107_vm0, %v7899_v1  ;;  %1213 = vst.msk [vmem:[#allocation3 + $0x148] sm:$0xff] %vm1107_vm0, %v7899_v1 }
  0xda   : > { %1214 = vst.msk [vmem:[#allocation3 + $0x150] sm:$0xff] %vm1107_vm0, %v7899_v1  ;;  %1215 = vst.msk [vmem:[#allocation3 + $0x158] sm:$0xff] %vm1107_vm0, %v7899_v1 }
  0xdb   : > { %1216 = vst.msk [vmem:[#allocation3 + $0x160] sm:$0xff] %vm1107_vm0, %v7899_v1  ;;  %1217 = vst.msk [vmem:[#allocation3 + $0x168] sm:$0xff] %vm1107_vm0, %v7899_v1 }
  0xdc   : > { %1218 = vst.msk [vmem:[#allocation3 + $0x170] sm:$0xff] %vm1107_vm0, %v7899_v1  ;;  %1219 = vst.msk [vmem:[#allocation3 + $0x178] sm:$0xff] %vm1107_vm0, %v7899_v1 }
  0xdd   : > { %1220 = vst.msk [vmem:[#allocation3 + $0x180] sm:$0xff] %vm1107_vm0, %v7899_v1  ;;  %1221 = vst.msk [vmem:[#allocation3 + $0x188] sm:$0xff] %vm1107_vm0, %v7899_v1 }
  0xde   : > { %1222 = vst.msk [vmem:[#allocation3 + $0x190] sm:$0xff] %vm1107_vm0, %v7899_v1  ;;  %1223 = vst.msk [vmem:[#allocation3 + $0x198] sm:$0xff] %vm1107_vm0, %v7899_v1 }
  0xdf   : > { %1224 = vst.msk [vmem:[#allocation3 + $0x1a0] sm:$0xff] %vm1107_vm0, %v7899_v1  ;;  %1225 = vst.msk [vmem:[#allocation3 + $0x1a8] sm:$0xff] %vm1107_vm0, %v7899_v1 }
  0xe0   : > { %1226 = vst.msk [vmem:[#allocation3 + $0x1b0] sm:$0xff] %vm1107_vm0, %v7899_v1  ;;  %1227 = vst.msk [vmem:[#allocation3 + $0x1b8] sm:$0xff] %vm1107_vm0, %v7899_v1 }
  0xe1   : > { %1228 = vst.msk [vmem:[#allocation3 + $0x1c0] sm:$0xff] %vm1107_vm0, %v7899_v1  ;;  %1229 = vst.msk [vmem:[#allocation3 + $0x1c8] sm:$0xff] %vm1107_vm0, %v7899_v1 }
  0xe2   : > { %1230 = vst.msk [vmem:[#allocation3 + $0x1d0] sm:$0xff] %vm1107_vm0, %v7899_v1  ;;  %1231 = vst.msk [vmem:[#allocation3 + $0x1d8] sm:$0xff] %vm1107_vm0, %v7899_v1 }
  0xe3   : > { %1232 = vst.msk [vmem:[#allocation3 + $0x1e0] sm:$0xff] %vm1107_vm0, %v7899_v1  ;;  %1233 = vst.msk [vmem:[#allocation3 + $0x1e8] sm:$0xff] %vm1107_vm0, %v7899_v1 }
  0xe4   : > { %1234 = vst.msk [vmem:[#allocation3 + $0x1f0] sm:$0xff] %vm1107_vm0, %v7899_v1  ;;  %1235 = vst.msk [vmem:[#allocation3 + $0x1f8] sm:$0xff] %vm1107_vm0, %v7899_v1 }
  0xe5   : > { %1237 = vst.msk [vmem:[#allocation4] sm:$0xff] %vm1236_vm1, %v7899_v1  ;;  %1238 = vst.msk [vmem:[#allocation4 + $0x8] sm:$0xff] %vm1236_vm1, %v7899_v1 }
  0xe6   : > { %1239 = vst.msk [vmem:[#allocation4 + $0x10] sm:$0xff] %vm1236_vm1, %v7899_v1  ;;  %1240 = vst.msk [vmem:[#allocation4 + $0x18] sm:$0xff] %vm1236_vm1, %v7899_v1 }
  0xe7   : > { %1241 = vst.msk [vmem:[#allocation4 + $0x20] sm:$0xff] %vm1236_vm1, %v7899_v1  ;;  %1242 = vst.msk [vmem:[#allocation4 + $0x28] sm:$0xff] %vm1236_vm1, %v7899_v1 }
  0xe8   : > { %1243 = vst.msk [vmem:[#allocation4 + $0x30] sm:$0xff] %vm1236_vm1, %v7899_v1  ;;  %1244 = vst.msk [vmem:[#allocation4 + $0x38] sm:$0xff] %vm1236_vm1, %v7899_v1 }
  0xe9   : > { %1245 = vst.msk [vmem:[#allocation4 + $0x40] sm:$0xff] %vm1236_vm1, %v7899_v1  ;;  %1246 = vst.msk [vmem:[#allocation4 + $0x48] sm:$0xff] %vm1236_vm1, %v7899_v1 }
  0xea   : > { %1247 = vst.msk [vmem:[#allocation4 + $0x50] sm:$0xff] %vm1236_vm1, %v7899_v1  ;;  %1248 = vst.msk [vmem:[#allocation4 + $0x58] sm:$0xff] %vm1236_vm1, %v7899_v1 }
  0xeb   : > { %1249 = vst.msk [vmem:[#allocation4 + $0x60] sm:$0xff] %vm1236_vm1, %v7899_v1  ;;  %1250 = vst.msk [vmem:[#allocation4 + $0x68] sm:$0xff] %vm1236_vm1, %v7899_v1 }
  0xec   : > { %1251 = vst.msk [vmem:[#allocation4 + $0x70] sm:$0xff] %vm1236_vm1, %v7899_v1  ;;  %1252 = vst.msk [vmem:[#allocation4 + $0x78] sm:$0xff] %vm1236_vm1, %v7899_v1 }
  0xed   : > { %1253 = vst.msk [vmem:[#allocation4 + $0x80] sm:$0xff] %vm1236_vm1, %v7899_v1  ;;  %1254 = vst.msk [vmem:[#allocation4 + $0x88] sm:$0xff] %vm1236_vm1, %v7899_v1 }
  0xee   : > { %1255 = vst.msk [vmem:[#allocation4 + $0x90] sm:$0xff] %vm1236_vm1, %v7899_v1  ;;  %1256 = vst.msk [vmem:[#allocation4 + $0x98] sm:$0xff] %vm1236_vm1, %v7899_v1 }
  0xef   : > { %1257 = vst.msk [vmem:[#allocation4 + $0xa0] sm:$0xff] %vm1236_vm1, %v7899_v1  ;;  %1258 = vst.msk [vmem:[#allocation4 + $0xa8] sm:$0xff] %vm1236_vm1, %v7899_v1 }
  0xf0   : > { %1259 = vst.msk [vmem:[#allocation4 + $0xb0] sm:$0xff] %vm1236_vm1, %v7899_v1  ;;  %1260 = vst.msk [vmem:[#allocation4 + $0xb8] sm:$0xff] %vm1236_vm1, %v7899_v1 }
  0xf1   : > { %1261 = vst.msk [vmem:[#allocation4 + $0xc0] sm:$0xff] %vm1236_vm1, %v7899_v1  ;;  %1262 = vst.msk [vmem:[#allocation4 + $0xc8] sm:$0xff] %vm1236_vm1, %v7899_v1 }
  0xf2   : > { %1263 = vst.msk [vmem:[#allocation4 + $0xd0] sm:$0xff] %vm1236_vm1, %v7899_v1  ;;  %1264 = vst.msk [vmem:[#allocation4 + $0xd8] sm:$0xff] %vm1236_vm1, %v7899_v1 }
  0xf3   : > { %1265 = vst.msk [vmem:[#allocation4 + $0xe0] sm:$0xff] %vm1236_vm1, %v7899_v1  ;;  %1266 = vst.msk [vmem:[#allocation4 + $0xe8] sm:$0xff] %vm1236_vm1, %v7899_v1 }
  0xf4   : > { %1267 = vst.msk [vmem:[#allocation4 + $0xf0] sm:$0xff] %vm1236_vm1, %v7899_v1  ;;  %1268 = vst.msk [vmem:[#allocation4 + $0xf8] sm:$0xff] %vm1236_vm1, %v7899_v1 }
  0xf5   : > { %1269 = vst.msk [vmem:[#allocation4 + $0x100] sm:$0xff] %vm1236_vm1, %v7899_v1  ;;  %1270 = vst.msk [vmem:[#allocation4 + $0x108] sm:$0xff] %vm1236_vm1, %v7899_v1 }
  0xf6   : > { %1271 = vst.msk [vmem:[#allocation4 + $0x110] sm:$0xff] %vm1236_vm1, %v7899_v1  ;;  %1272 = vst.msk [vmem:[#allocation4 + $0x118] sm:$0xff] %vm1236_vm1, %v7899_v1 }
  0xf7   : > { %1273 = vst.msk [vmem:[#allocation4 + $0x120] sm:$0xff] %vm1236_vm1, %v7899_v1  ;;  %1274 = vst.msk [vmem:[#allocation4 + $0x128] sm:$0xff] %vm1236_vm1, %v7899_v1 }
  0xf8   : > { %1275 = vst.msk [vmem:[#allocation4 + $0x130] sm:$0xff] %vm1236_vm1, %v7899_v1  ;;  %1276 = vst.msk [vmem:[#allocation4 + $0x138] sm:$0xff] %vm1236_vm1, %v7899_v1 }
  0xf9   : > { %1277 = vst.msk [vmem:[#allocation4 + $0x140] sm:$0xff] %vm1236_vm1, %v7899_v1  ;;  %1278 = vst.msk [vmem:[#allocation4 + $0x148] sm:$0xff] %vm1236_vm1, %v7899_v1 }
  0xfa   : > { %1279 = vst.msk [vmem:[#allocation4 + $0x150] sm:$0xff] %vm1236_vm1, %v7899_v1  ;;  %1280 = vst.msk [vmem:[#allocation4 + $0x158] sm:$0xff] %vm1236_vm1, %v7899_v1 }
  0xfb   : > { %1281 = vst.msk [vmem:[#allocation4 + $0x160] sm:$0xff] %vm1236_vm1, %v7899_v1  ;;  %1282 = vst.msk [vmem:[#allocation4 + $0x168] sm:$0xff] %vm1236_vm1, %v7899_v1 }
  0xfc   : > { %1283 = vst.msk [vmem:[#allocation4 + $0x170] sm:$0xff] %vm1236_vm1, %v7899_v1  ;;  %1284 = vst.msk [vmem:[#allocation4 + $0x178] sm:$0xff] %vm1236_vm1, %v7899_v1 }
  0xfd   : > { %1285 = vst.msk [vmem:[#allocation4 + $0x180] sm:$0xff] %vm1236_vm1, %v7899_v1  ;;  %1286 = vst.msk [vmem:[#allocation4 + $0x188] sm:$0xff] %vm1236_vm1, %v7899_v1 }
  0xfe   : > { %1287 = vst.msk [vmem:[#allocation4 + $0x190] sm:$0xff] %vm1236_vm1, %v7899_v1  ;;  %1288 = vst.msk [vmem:[#allocation4 + $0x198] sm:$0xff] %vm1236_vm1, %v7899_v1 }
  0xff   : > { %1289 = vst.msk [vmem:[#allocation4 + $0x1a0] sm:$0xff] %vm1236_vm1, %v7899_v1  ;;  %1290 = vst.msk [vmem:[#allocation4 + $0x1a8] sm:$0xff] %vm1236_vm1, %v7899_v1 }
 0x100   : > { %1291 = vst.msk [vmem:[#allocation4 + $0x1b0] sm:$0xff] %vm1236_vm1, %v7899_v1  ;;  %1292 = vst.msk [vmem:[#allocation4 + $0x1b8] sm:$0xff] %vm1236_vm1, %v7899_v1 }
 0x101   : > { %1293 = vst.msk [vmem:[#allocation4 + $0x1c0] sm:$0xff] %vm1236_vm1, %v7899_v1  ;;  %1294 = vst.msk [vmem:[#allocation4 + $0x1c8] sm:$0xff] %vm1236_vm1, %v7899_v1 }
 0x102   : > { %1295 = vst.msk [vmem:[#allocation4 + $0x1d0] sm:$0xff] %vm1236_vm1, %v7899_v1  ;;  %1296 = vst.msk [vmem:[#allocation4 + $0x1d8] sm:$0xff] %vm1236_vm1, %v7899_v1 }
 0x103   : > { %1297 = vst.msk [vmem:[#allocation4 + $0x1e0] sm:$0xff] %vm1236_vm1, %v7899_v1  ;;  %1298 = vst.msk [vmem:[#allocation4 + $0x1e8] sm:$0xff] %vm1236_vm1, %v7899_v1 }
 0x104   : > { %1299 = vst.msk [vmem:[#allocation4 + $0x1f0] sm:$0xff] %vm1236_vm1, %v7899_v1  ;;  %1300 = vst.msk [vmem:[#allocation4 + $0x1f8] sm:$0xff] %vm1236_vm1, %v7899_v1 }
 0x105 PF: > { %v1429_v2 = vld [vmem:[%s8453_s9] sm:$0xff]  ;;  %v1430_v3 = vld [vmem:[%s8453_s9 + $0x8] sm:$0xff]  ;;  %vm1557_vm2 = vcmask 261120   ;;  %v1431_v8 = vld [vmem:[%s8453_s9 + $0x10] sm:$0xff]  ;;  %vm3802_vm4 = vcmask 7168   ;;  %p6299_p3 = scmp.ne.s32.totalorder %s7872_s16, 1 }
 0x106   : > { %v1445_v4 = vld [vmem:[%s8453_s9 + $0x80] sm:$0xff]  ;;  %v7010_v5 = vpack.c.bf16 %v1430_v3, %v1429_v2  ;;  %vm8849_vm3 = vmpackc.low %vm1557_vm2, %vm1557_vm2  ;;  %v1446_v7 = vld [vmem:[%s8453_s9 + $0x88] sm:$0xff] }
 0x107   : > { %v7058_v9 = vpack.c.bf16 %v1446_v7, %v1445_v4  ;;  %v1432_v10 = vld [vmem:[%s8453_s9 + $0x18] sm:$0xff]  ;;  %v1447_v11 = vld [vmem:[%s8453_s9 + $0x90] sm:$0xff]  ;;  %v1433_v15 = vld [vmem:[%s8453_s9 + $0x20] sm:$0xff] }
 0x108   : > { %v1448_v12 = vld [vmem:[%s8453_s9 + $0x98] sm:$0xff]  ;;  %7012 = vmatprep.subr.msk.bf16.mxu0 %vm8849_vm3, %v7010_v5  ;;  %v7016_v13 = vpack.c.bf16 %v1432_v10, %v1431_v8  ;;  %v1434_v16 = vld [vmem:[%s8453_s9 + $0x28] sm:$0xff]  ;;  %v1449_v17 = vld [vmem:[%s8453_s9 + $0xa0] sm:$0xff] }
 0x109   : > { %v7064_v14 = vpack.c.bf16 %v1448_v12, %v1447_v11  ;;  %7060 = vmatprep.subr.msk.bf16.mxu1 %vm8849_vm3, %v7058_v9  ;;  %7015 = vmatpush3.bf16.xpose.msk.msra.mxu0 %vm8849_vm3, %v7010_v5  ;;  %v1450_v18 = vld [vmem:[%s8453_s9 + $0xa8] sm:$0xff]  ;;  %v7022_v19 = vpack.c.bf16 %v1434_v16, %v1433_v15  ;;  %v1301_v21 = vld [vmem:[%s8451_s25] sm:$0xff]  ;;  %v1435_v25 = vld [vmem:[%s8453_s9 + $0x30] sm:$0xff] }
 0x10a   : > { %7063 = vmatpush3.bf16.xpose.msk.msra.mxu1 %vm8849_vm3, %v7058_v9  ;;  %7018 = vmatprep.subr.msk.bf16.mxu0 %vm8849_vm3, %v7016_v13  ;;  %v7070_v20 = vpack.c.bf16 %v1450_v18, %v1449_v17  ;;  %v1317_v22 = vld [vmem:[%s8451_s25 + $0x80] sm:$0xff]  ;;  %v1365_v23 = vmul.f32 0.17677669, %v1301_v21  ;;  %v1436_v26 = vld [vmem:[%s8453_s9 + $0x38] sm:$0xff]  ;;  %v1451_v27 = vld [vmem:[%s8453_s9 + $0xb0] sm:$0xff] }
 0x10b   : > { %7066 = vmatprep.subr.msk.bf16.mxu1 %vm8849_vm3, %v7064_v14  ;;  %v1381_v24 = vmul.f32 0.17677669, %v1317_v22  ;;  %v1452_v28 = vld [vmem:[%s8453_s9 + $0xb8] sm:$0xff]  ;;  %v7028_v29 = vpack.c.bf16 %v1436_v26, %v1435_v25  ;;  %v1437_v31 = vld [vmem:[%s8453_s9 + $0x40] sm:$0xff]  ;;  %v1438_v32 = vld [vmem:[%s8453_s9 + $0x48] sm:$0xff] }
 0x10c   : > { %6594 = vmatprep.mubr.msk.f32.mxu0 %vm1557_vm2, %v1365_v23  ;;  %v7076_v30 = vpack.c.bf16 %v1452_v28, %v1451_v27  ;;  %v1453_v33 = vld [vmem:[%s8453_s9 + $0xc0] sm:$0xff]  ;;  %v1454_v34 = vld [vmem:[%s8453_s9 + $0xc8] sm:$0xff]  ;;  %v7034_v35 = vpack.c.bf16 %v1438_v32, %v1437_v31  ;;  %v1439_v37 = vld [vmem:[%s8453_s9 + $0x50] sm:$0xff] }
 0x10d   : > { %6650 = vmatprep.mubr.msk.f32.mxu1 %vm1557_vm2, %v1381_v24  ;;  %v7082_v36 = vpack.c.bf16 %v1454_v34, %v1453_v33  ;;  %v1440_v38 = vld [vmem:[%s8453_s9 + $0x58] sm:$0xff]  ;;  %v1455_v39 = vld [vmem:[%s8453_s9 + $0xd0] sm:$0xff]  ;;  %v1441_v43 = vld [vmem:[%s8453_s9 + $0x60] sm:$0xff] }
 0x10e   : > { %v1456_v40 = vld [vmem:[%s8453_s9 + $0xd8] sm:$0xff]  ;;  %v7040_v41 = vpack.c.bf16 %v1440_v38, %v1439_v37  ;;  %v1442_v44 = vld [vmem:[%s8453_s9 + $0x68] sm:$0xff]  ;;  %v1457_v45 = vld [vmem:[%s8453_s9 + $0xe0] sm:$0xff] }
 0x10f   : > { %v7088_v42 = vpack.c.bf16 %v1456_v40, %v1455_v39  ;;  %v1458_v46 = vld [vmem:[%s8453_s9 + $0xe8] sm:$0xff]  ;;  %v7046_v47 = vpack.c.bf16 %v1442_v44, %v1441_v43  ;;  %v1443_v49 = vld [vmem:[%s8453_s9 + $0x70] sm:$0xff]  ;;  %v1444_v50 = vld [vmem:[%s8453_s9 + $0x78] sm:$0xff] }
 0x110   : > { %v7094_v48 = vpack.c.bf16 %v1458_v46, %v1457_v45  ;;  %v1459_v51 = vld [vmem:[%s8453_s9 + $0xf0] sm:$0xff]  ;;  %v1460_v52 = vld [vmem:[%s8453_s9 + $0xf8] sm:$0xff]  ;;  %v7052_v53 = vpack.c.bf16 %v1444_v50, %v1443_v49  ;;  %v1461_v55 = vld [vmem:[%s8453_s9 + $0x100] sm:$0xff] }
 0x111   : > { %7021 = vmatpush3.bf16.xpose.msk.msra.mxu0 %vm8849_vm3, %v7016_v13  ;;  %v7100_v54 = vpack.c.bf16 %v1460_v52, %v1459_v51  ;;  %v1462_v56 = vld [vmem:[%s8453_s9 + $0x108] sm:$0xff]  ;;  %v1477_v57 = vld [vmem:[%s8453_s9 + $0x180] sm:$0xff]  ;;  %v1303_v63 = vld [vmem:[%s8451_s25 + $0x10] sm:$0xff] }
 0x112   : > { %7069 = vmatpush3.bf16.xpose.msk.msra.mxu1 %vm8849_vm3, %v7064_v14  ;;  %7024 = vmatprep.subr.msk.bf16.mxu0 %vm8849_vm3, %v7022_v19  ;;  %v1478_v58 = vld [vmem:[%s8453_s9 + $0x188] sm:$0xff]  ;;  %v7106_v59 = vpack.c.bf16 %v1462_v56, %v1461_v55  ;;  %v1319_v1 = vld [vmem:[%s8451_s25 + $0x90] sm:$0xff]  ;;  %v1464_v3 = vld [vmem:[%s8453_s9 + $0x118] sm:$0xff]  ;;  %v1367_v9 = vmul.f32 0.17677669, %v1303_v63 }
 0x113   : > { %7072 = vmatprep.subr.msk.bf16.mxu1 %vm8849_vm3, %v7070_v20  ;;  %v7154_v60 = vpack.c.bf16 %v1478_v58, %v1477_v57  ;;  %v1302_v61 = vld [vmem:[%s8451_s25 + $0x8] sm:$0xff]  ;;  %v1463_v2 = vld [vmem:[%s8453_s9 + $0x110] sm:$0xff]  ;;  %v1304_v5 = vld [vmem:[%s8451_s25 + $0x18] sm:$0xff]  ;;  %v1383_v12 = vmul.f32 0.17677669, %v1319_v1 }
 0x114   : > { %v1318_v62 = vld [vmem:[%s8451_s25 + $0x88] sm:$0xff]  ;;  %v1366_v0 = vmul.f32 0.17677669, %v1302_v61  ;;  %v1479_v7 = vld [vmem:[%s8453_s9 + $0x190] sm:$0xff]  ;;  %v1480_v8 = vld [vmem:[%s8453_s9 + $0x198] sm:$0xff]  ;;  %v7112_v13 = vpack.c.bf16 %v1464_v3, %v1463_v2 }
 0x115   : > { %v1382_v4 = vmul.f32 0.17677669, %v1318_v62  ;;  %v1320_v10 = vld [vmem:[%s8451_s25 + $0x98] sm:$0xff]  ;;  %v1305_v11 = vld [vmem:[%s8451_s25 + $0x20] sm:$0xff]  ;;  %v1368_v15 = vmul.f32 0.17677669, %v1304_v5  ;;  %v7160_v16 = vpack.c.bf16 %v1480_v8, %v1479_v7 }
 0x116   : > { %v1321_v14 = vld [vmem:[%s8451_s25 + $0xa0] sm:$0xff]  ;;  %v1384_v17 = vmul.f32 0.17677669, %v1320_v10  ;;  %v1369_v18 = vmul.f32 0.17677669, %v1305_v11  ;;  %v1322_v21 = vld [vmem:[%s8451_s25 + $0xa8] sm:$0xff] }
 0x117   : > { %v1465_v22 = vld [vmem:[%s8453_s9 + $0x120] sm:$0xff]  ;;  %v1466_v23 = vld [vmem:[%s8453_s9 + $0x128] sm:$0xff]  ;;  %v1307_v27 = vld [vmem:[%s8451_s25 + $0x30] sm:$0xff]  ;;  %v1386_v28 = vmul.f32 0.17677669, %v1322_v21 }
 0x118   : > { %v1481_v25 = vld [vmem:[%s8453_s9 + $0x1a0] sm:$0xff]  ;;  %v1482_v26 = vld [vmem:[%s8453_s9 + $0x1a8] sm:$0xff]  ;;  %v7118_v31 = vpack.c.bf16 %v1466_v23, %v1465_v22  ;;  %v1324_v32 = vld [vmem:[%s8451_s25 + $0xb8] sm:$0xff] }
 0x119   : > { %7027 = vmatpush3.bf16.xpose.msk.msra.mxu0 %vm8849_vm3, %v7022_v19  ;;  %v1306_v19 = vld [vmem:[%s8451_s25 + $0x28] sm:$0xff]  ;;  %v1309_v33 = vld [vmem:[%s8451_s25 + $0x40] sm:$0xff]  ;;  %v7166_v34 = vpack.c.bf16 %v1482_v26, %v1481_v25  ;;  %v1388_v39 = vmul.f32 0.17677669, %v1324_v32  ;;  %v1467_v44 = vld [vmem:[%s8453_s9 + $0x130] sm:$0xff] }
 0x11a   : > { %7075 = vmatpush3.bf16.xpose.msk.msra.mxu1 %vm8849_vm3, %v7070_v20  ;;  %7030 = vmatprep.subr.msk.bf16.mxu0 %vm8849_vm3, %v7028_v29  ;;  %v1385_v20 = vmul.f32 0.17677669, %v1321_v14  ;;  %v1370_v24 = vmul.f32 0.17677669, %v1306_v19  ;;  %v1373_v40 = vmul.f32 0.17677669, %v1309_v33 }
 0x11b   : > { %7078 = vmatprep.subr.msk.bf16.mxu1 %vm8849_vm3, %v7076_v30  ;;  %v1326_v43 = vld [vmem:[%s8451_s25 + $0xc8] sm:$0xff]  ;;  %v1468_v45 = vld [vmem:[%s8453_s9 + $0x138] sm:$0xff]  ;;  %v1483_v46 = vld [vmem:[%s8453_s9 + $0x1b0] sm:$0xff] }
 0x11c   : > { %v1311_v49 = vld [vmem:[%s8451_s25 + $0x50] sm:$0xff]  ;;  %v1390_v50 = vmul.f32 0.17677669, %v1326_v43  ;;  %v1312_v51 = vld [vmem:[%s8451_s25 + $0x58] sm:$0xff]  ;;  %v1313_v55 = vld [vmem:[%s8451_s25 + $0x60] sm:$0xff] }
 0x11d   : > { %v1327_v52 = vld [vmem:[%s8451_s25 + $0xd0] sm:$0xff]  ;;  %v1375_v57 = vmul.f32 0.17677669, %v1311_v49  ;;  %v1329_v58 = vld [vmem:[%s8451_s25 + $0xe0] sm:$0xff]  ;;  %v1377_v62 = vmul.f32 0.17677669, %v1313_v55 }
 0x11e   : > { %v1314_v63 = vld [vmem:[%s8451_s25 + $0x68] sm:$0xff]  ;;  %v1469_v2 = vld [vmem:[%s8453_s9 + $0x140] sm:$0xff]  ;;  %v1315_v8 = vld [vmem:[%s8451_s25 + $0x70] sm:$0xff] }
 0x11f   : > { %v1330_v1 = vld [vmem:[%s8451_s25 + $0xe8] sm:$0xff]  ;;  %v1378_v7 = vmul.f32 0.17677669, %v1314_v63  ;;  %v1316_v10 = vld [vmem:[%s8451_s25 + $0x78] sm:$0xff]  ;;  %v1331_v11 = vld [vmem:[%s8451_s25 + $0xf0] sm:$0xff] }
 0x120   : > { %v1470_v3 = vld [vmem:[%s8453_s9 + $0x148] sm:$0xff]  ;;  %v1333_v14 = vld [vmem:[%s8451_s25 + $0x100] sm:$0xff]  ;;  %v1395_v19 = vmul.f32 0.17677669, %v1331_v11  ;;  %v1471_v23 = vld [vmem:[%s8453_s9 + $0x150] sm:$0xff] }
 0x121   : > { %7033 = vmatpush3.bf16.xpose.msk.msra.mxu0 %vm8849_vm3, %v7028_v29  ;;  %v1308_v29 = vld [vmem:[%s8451_s25 + $0x38] sm:$0xff]  ;;  %v1486_v5 = vld [vmem:[%s8453_s9 + $0x1c8] sm:$0xff]  ;;  %v1397_v21 = vmul.f32 0.17677669, %v1333_v14  ;;  %v1487_v25 = vld [vmem:[%s8453_s9 + $0x1d0] sm:$0xff] }
 0x122   : > { %7081 = vmatpush3.bf16.xpose.msk.msra.mxu1 %vm8849_vm3, %v7076_v30  ;;  %7036 = vmatprep.subr.msk.bf16.mxu0 %vm8849_vm3, %v7034_v35  ;;  %v1323_v30 = vld [vmem:[%s8451_s25 + $0xb0] sm:$0xff]  ;;  %v1372_v37 = vmul.f32 0.17677669, %v1308_v29  ;;  %v1488_v26 = vld [vmem:[%s8453_s9 + $0x1d8] sm:$0xff]  ;;  %v1473_v29 = vld [vmem:[%s8453_s9 + $0x160] sm:$0xff] }
 0x123   : > { %7084 = vmatprep.subr.msk.bf16.mxu1 %vm8849_vm3, %v7082_v36  ;;  %v1387_v38 = vmul.f32 0.17677669, %v1323_v30  ;;  %v1474_v30 = vld [vmem:[%s8453_s9 + $0x168] sm:$0xff]  ;;  %v1335_v43 = vld [vmem:[%s8451_s25 + $0x110] sm:$0xff]  ;;  %v1340_v63 = vld [vmem:[%s8451_s25 + $0x138] sm:$0xff] }
 0x124   : > { %v1490_v32 = vld [vmem:[%s8453_s9 + $0x1e8] sm:$0xff]  ;;  %v7142_v33 = vpack.c.bf16 %v1474_v30, %v1473_v29  ;;  %v1343_v11 = vld [vmem:[%s8451_s25 + $0x150] sm:$0xff] }
 0x125   : > { %v1338_v55 = vld [vmem:[%s8451_s25 + $0x128] sm:$0xff] }
 0x129   : > { %7039 = vmatpush3.bf16.xpose.msk.msra.mxu0 %vm8849_vm3, %v7034_v35  ;;  %v1371_v35 = vmul.f32 0.17677669, %v1307_v27 }
 0x12a   : > { %7087 = vmatpush3.bf16.xpose.msk.msra.mxu1 %vm8849_vm3, %v7082_v36  ;;  %7042 = vmatprep.subr.msk.bf16.mxu0 %vm8849_vm3, %v7040_v41  ;;  %v1325_v36 = vld [vmem:[%s8451_s25 + $0xc0] sm:$0xff] }
 0x12b   : > { %7090 = vmatprep.subr.msk.bf16.mxu1 %vm8849_vm3, %v7088_v42 }
 0x131   : > { %7045 = vmatpush3.bf16.xpose.msk.msra.mxu0 %vm8849_vm3, %v7040_v41  ;;  %v1310_v41 = vld [vmem:[%s8451_s25 + $0x48] sm:$0xff] }
 0x132   : > { %7093 = vmatpush3.bf16.xpose.msk.msra.mxu1 %vm8849_vm3, %v7088_v42  ;;  %7048 = vmatprep.subr.msk.bf16.mxu0 %vm8849_vm3, %v7046_v47  ;;  %v1389_v42 = vmul.f32 0.17677669, %v1325_v36  ;;  %v1476_v36 = vld [vmem:[%s8453_s9 + $0x178] sm:$0xff] }
 0x133   : > { %7096 = vmatprep.subr.msk.bf16.mxu1 %vm8849_vm3, %v7094_v48 }
 0x139   : > { %7051 = vmatpush3.bf16.xpose.msk.msra.mxu0 %vm8849_vm3, %v7046_v47  ;;  %v1484_v47 = vld [vmem:[%s8453_s9 + $0x1b8] sm:$0xff] }
 0x13a   : > { %7099 = vmatpush3.bf16.xpose.msk.msra.mxu1 %vm8849_vm3, %v7094_v48  ;;  %7054 = vmatprep.subr.msk.bf16.mxu0 %vm8849_vm3, %v7052_v53  ;;  %v1374_v48 = vmul.f32 0.17677669, %v1310_v41  ;;  %v7172_v56 = vpack.c.bf16 %v1484_v47, %v1483_v46  ;;  %v1334_v41 = vld [vmem:[%s8451_s25 + $0x108] sm:$0xff]  ;;  %v1399_v47 = vmul.f32 0.17677669, %v1335_v43 }
 0x13b   : > { %7102 = vmatprep.subr.msk.bf16.mxu1 %vm8849_vm3, %v7100_v54 }
 0x141   : > { %7057 = vmatpush3.bf16.xpose.msk.msra.mxu0 %vm8849_vm3, %v7052_v53  ;;  %v7124_v53 = vpack.c.bf16 %v1468_v45, %v1467_v44  ;;  %v1351_v44 = vld [vmem:[%s8451_s25 + $0x190] sm:$0xff]  ;;  %v1398_v45 = vmul.f32 0.17677669, %v1334_v41 }
 0x142   : > { %7105 = vmatpush3.bf16.xpose.msk.msra.mxu1 %vm8849_vm3, %v7100_v54  ;;  %7108 = vmatprep.subr.msk.bf16.mxu0 %vm8849_vm3, %v7106_v59  ;;  %v1328_v54 = vld [vmem:[%s8451_s25 + $0xd8] sm:$0xff]  ;;  %v1415_v49 = vmul.f32 0.17677669, %v1351_v44 }
 0x143   : > { %7156 = vmatprep.subr.msk.bf16.mxu1 %vm8849_vm3, %v7154_v60  ;;  %v1392_v61 = vmul.f32 0.17677669, %v1328_v54 }
 0x148   : > { %6595 = vmatmul.mubr.msk.f32.vlgmr.msra.gmra.mrb[0].mxu0 %vm1557_vm2, %v1366_v0  ;;  %v1393_v0 = vmul.f32 0.17677669, %v1329_v58  ;;  %v1339_v58 = vld [vmem:[%s8451_s25 + $0x130] sm:$0xff] }
 0x149   : > { %6651 = vmatmul.mubr.msk.f32.vlgmr.msra.gmra.mrb[0].mxu1 %vm1557_vm2, %v1382_v4  ;;  %7111 = vmatpush3.bf16.xpose.msk.msra.mxu0 %vm8849_vm3, %v7106_v59  ;;  %v1376_v59 = vmul.f32 0.17677669, %v1312_v51  ;;  %v1485_v4 = vld [vmem:[%s8453_s9 + $0x1c0] sm:$0xff] }
 0x14a   : > { %6597 = vmatprep.mubr.msk.f32.mxu0 %vm1557_vm2, %v1367_v9  ;;  %7159 = vmatpush3.bf16.xpose.msk.msra.mxu1 %vm8849_vm3, %v7154_v60  ;;  %v1391_v60 = vmul.f32 0.17677669, %v1327_v52  ;;  %v1394_v9 = vmul.f32 0.17677669, %v1330_v1  ;;  %v1337_v51 = vld [vmem:[%s8451_s25 + $0x120] sm:$0xff]  ;;  %v1356_v1 = vld [vmem:[%s8451_s25 + $0x1b8] sm:$0xff] }
 0x14b   : > { %6653 = vmatprep.mubr.msk.f32.mxu1 %vm1557_vm2, %v1383_v12  ;;  %7114 = vmatprep.subr.msk.bf16.mxu0 %vm8849_vm3, %v7112_v13  ;;  %v7130_v12 = vpack.c.bf16 %v1470_v3, %v1469_v2  ;;  %v1353_v52 = vld [vmem:[%s8451_s25 + $0x1a0] sm:$0xff]  ;;  %v1401_v54 = vmul.f32 0.17677669, %v1337_v51 }
 0x14c   : > { %6598 = vmatmul.mubr.msk.f32.gmra.mrb[2].mxu0 %vm1557_vm2, %v1368_v15  ;;  %7162 = vmatprep.subr.msk.bf16.mxu1 %vm8849_vm3, %v7160_v16  ;;  %v7178_v15 = vpack.c.bf16 %v1486_v5, %v1485_v4  ;;  %v1341_v2 = vld [vmem:[%s8451_s25 + $0x140] sm:$0xff]  ;;  %v1404_v4 = vmul.f32 0.17677669, %v1340_v63  ;;  %v1420_v5 = vmul.f32 0.17677669, %v1356_v1 }
 0x14d   : > { %6654 = vmatmul.mubr.msk.f32.gmra.mrb[2].mxu1 %vm1557_vm2, %v1384_v17  ;;  %6600 = vmatprep.mubr.msk.f32.mxu0 %vm1557_vm2, %v1369_v18  ;;  %v1349_v17 = vld [vmem:[%s8451_s25 + $0x180] sm:$0xff]  ;;  %v1380_v18 = vmul.f32 0.17677669, %v1316_v10  ;;  %v1358_v10 = vld [vmem:[%s8451_s25 + $0x1c8] sm:$0xff] }
 0x14e   : > { %6656 = vmatprep.mubr.msk.f32.mxu1 %vm1557_vm2, %v1385_v20  ;;  %v1413_v22 = vmul.f32 0.17677669, %v1349_v17  ;;  %v1357_v3 = vld [vmem:[%s8451_s25 + $0x1c0] sm:$0xff]  ;;  %v1422_v14 = vmul.f32 0.17677669, %v1358_v10 }
 0x150   : > { %6601 = vmatmul.mubr.msk.f32.gmra.mrb[4].mxu0 %vm1557_vm2, %v1370_v24  ;;  %v1472_v24 = vld [vmem:[%s8453_s9 + $0x158] sm:$0xff] }
 0x151   : > { %7117 = vmatpush3.bf16.xpose.msk.msra.mxu0 %vm8849_vm3, %v7112_v13  ;;  %6657 = vmatmul.mubr.msk.f32.gmra.mrb[4].mxu1 %vm1557_vm2, %v1386_v28  ;;  %v1332_v13 = vld [vmem:[%s8451_s25 + $0xf8] sm:$0xff]  ;;  %v7136_v27 = vpack.c.bf16 %v1472_v24, %v1471_v23  ;;  %v7184_v28 = vpack.c.bf16 %v1488_v26, %v1487_v25  ;;  %v1346_v24 = vld [vmem:[%s8451_s25 + $0x168] sm:$0xff] }
 0x152   : > { %7165 = vmatpush3.bf16.xpose.msk.msra.mxu1 %vm8849_vm3, %v7160_v16  ;;  %7120 = vmatprep.subr.msk.bf16.mxu0 %vm8849_vm3, %v7118_v31  ;;  %v1379_v16 = vmul.f32 0.17677669, %v1315_v8  ;;  %v1396_v20 = vmul.f32 0.17677669, %v1332_v13  ;;  %v1342_v8 = vld [vmem:[%s8451_s25 + $0x148] sm:$0xff] }
 0x153   : > { %7168 = vmatprep.subr.msk.bf16.mxu1 %vm8849_vm3, %v7166_v34  ;;  %6603 = vmatprep.mubr.msk.f32.mxu0 %vm1557_vm2, %v1371_v35  ;;  %v1475_v35 = vld [vmem:[%s8453_s9 + $0x170] sm:$0xff]  ;;  %v1406_v13 = vmul.f32 0.17677669, %v1342_v8  ;;  %v1362_v26 = vld [vmem:[%s8451_s25 + $0x1e8] sm:$0xff]  ;;  %v1410_v29 = vmul.f32 0.17677669, %v1346_v24 }
 0x154   : > { %6604 = vmatmul.mubr.msk.f32.gmra.mrb[6].mxu0 %vm1557_vm2, %v1372_v37  ;;  %6659 = vmatprep.mubr.msk.f32.mxu1 %vm1557_vm2, %v1387_v38  ;;  %v1491_v37 = vld [vmem:[%s8453_s9 + $0x1f0] sm:$0xff]  ;;  %v1492_v38 = vld [vmem:[%s8453_s9 + $0x1f8] sm:$0xff]  ;;  %v1426_v30 = vmul.f32 0.17677669, %v1362_v26 }
 0x155   : > { %6660 = vmatmul.mubr.msk.f32.gmra.mrb[6].mxu1 %vm1557_vm2, %v1388_v39  ;;  %6606 = vmatprep.mubr.msk.f32.mxu0 %vm1557_vm2, %v1373_v40  ;;  %v7148_v39 = vpack.c.bf16 %v1476_v36, %v1475_v35  ;;  %v7196_v40 = vpack.c.bf16 %v1492_v38, %v1491_v37 }
 0x156   : > { %6662 = vmatprep.mubr.msk.f32.mxu1 %vm1557_vm2, %v1389_v42  ;;  %v1350_v42 = vld [vmem:[%s8451_s25 + $0x188] sm:$0xff] }
 0x157   : > { %v1414_v46 = vmul.f32 0.17677669, %v1350_v42 }
 0x158   : > { %6607 = vmatmul.mubr.msk.f32.gmra.mrb[8].mxu0 %vm1557_vm2, %v1374_v48  ;;  %v1336_v48 = vld [vmem:[%s8451_s25 + $0x118] sm:$0xff] }
 0x159   : > { %7123 = vmatpush3.bf16.xpose.msk.msra.mxu0 %vm8849_vm3, %v7118_v31  ;;  %6663 = vmatmul.mubr.msk.f32.gmra.mrb[8].mxu1 %vm1557_vm2, %v1390_v50  ;;  %v1489_v31 = vld [vmem:[%s8453_s9 + $0x1e0] sm:$0xff]  ;;  %v1352_v50 = vld [vmem:[%s8451_s25 + $0x198] sm:$0xff] }
 0x15a   : > { %7171 = vmatpush3.bf16.xpose.msk.msra.mxu1 %vm8849_vm3, %v7166_v34  ;;  %7126 = vmatprep.subr.msk.bf16.mxu0 %vm8849_vm3, %v7124_v53  ;;  %v7190_v34 = vpack.c.bf16 %v1490_v32, %v1489_v31  ;;  %v1416_v6 = vmul.f32 0.17677669, %v1352_v50  ;;  %v1348_v32 = vld [vmem:[%s8451_s25 + $0x178] sm:$0xff] }
 0x15b   : > { %7174 = vmatprep.subr.msk.bf16.mxu1 %vm8849_vm3, %v7172_v56  ;;  %6609 = vmatprep.mubr.msk.f32.mxu0 %vm1557_vm2, %v1375_v57  ;;  %v1354_v57 = vld [vmem:[%s8451_s25 + $0x1a8] sm:$0xff]  ;;  %v1412_v35 = vmul.f32 0.17677669, %v1348_v32 }
 0x15c   : > { %6610 = vmatmul.mubr.msk.f32.gmra.mrb[10].mxu0 %vm1557_vm2, %v1376_v59  ;;  %6665 = vmatprep.mubr.msk.f32.mxu1 %vm1557_vm2, %v1391_v60  ;;  %v1355_v59 = vld [vmem:[%s8451_s25 + $0x1b0] sm:$0xff]  ;;  %v1402_v60 = vmul.f32 0.17677669, %v1338_v55  ;;  %v7900_v55 = vmov 0  }
 0x15d   : > { %6666 = vmatmul.mubr.msk.f32.gmra.mrb[10].mxu1 %vm1557_vm2, %v1392_v61  ;;  %6612 = vmatprep.mubr.msk.f32.mxu0 %vm1557_vm2, %v1377_v62  ;;  %v1418_v61 = vmul.f32 0.17677669, %v1354_v57  ;;  %v1403_v62 = vmul.f32 0.17677669, %v1339_v58 }
 0x15e   : > { %6668 = vmatprep.mubr.msk.f32.mxu1 %vm1557_vm2, %v1393_v0  ;;  %v1419_v0 = vmul.f32 0.17677669, %v1355_v59  ;;  %7422 = vset.pattern.permute.xlu1 %v7900_v55 }
 0x15f   : > { %7423 = vset.pattern.permute.xlu0 %v7900_v55 }
 0x160   : > { %6613 = vmatmul.mubr.msk.f32.gmra.mrb[12].mxu0 %vm1557_vm2, %v1378_v7  ;;  %v1405_v7 = vmul.f32 0.17677669, %v1341_v2 }
 0x161   : > { %7129 = vmatpush3.bf16.xpose.msk.msra.mxu0 %vm8849_vm3, %v7124_v53  ;;  %6669 = vmatmul.mubr.msk.f32.gmra.mrb[12].mxu1 %vm1557_vm2, %v1394_v9  ;;  %v1400_v53 = vmul.f32 0.17677669, %v1336_v48  ;;  %v1421_v9 = vmul.f32 0.17677669, %v1357_v3 }
 0x162   : > { %7177 = vmatpush3.bf16.xpose.msk.msra.mxu1 %vm8849_vm3, %v7172_v56  ;;  %7132 = vmatprep.subr.msk.bf16.mxu0 %vm8849_vm3, %v7130_v12  ;;  %v1417_v56 = vmul.f32 0.17677669, %v1353_v52 }
 0x163   : > { %7180 = vmatprep.subr.msk.bf16.mxu1 %vm8849_vm3, %v7178_v15  ;;  %6615 = vmatprep.mubr.msk.f32.mxu0 %vm1557_vm2, %v1379_v16  ;;  %v1344_v16 = vld [vmem:[%s8451_s25 + $0x158] sm:$0xff] }
 0x164   : > { %6616 = vmatmul.mubr.msk.f32.gmra.mrb[14].mxu0 %vm1557_vm2, %v1380_v18  ;;  %6671 = vmatprep.mubr.msk.f32.mxu1 %vm1557_vm2, %v1395_v19  ;;  %v1360_v18 = vld [vmem:[%s8451_s25 + $0x1d8] sm:$0xff]  ;;  %v1345_v19 = vld [vmem:[%s8451_s25 + $0x160] sm:$0xff] }
 0x165   : > { %6672 = vmatmul.mubr.msk.f32.gmra.mrb[14].mxu1 %vm1557_vm2, %v1396_v20  ;;  %6706 = vmatprep.mubr.msk.f32.mxu0 %vm1557_vm2, %v1397_v21  ;;  %v1361_v20 = vld [vmem:[%s8451_s25 + $0x1e0] sm:$0xff]  ;;  %v1408_v21 = vmul.f32 0.17677669, %v1344_v16  ;;  %v1409_v23 = vmul.f32 0.17677669, %v1345_v19 }
 0x166   : > { %6762 = vmatprep.mubr.msk.f32.mxu1 %vm1557_vm2, %v1413_v22  ;;  %v1424_v22 = vmul.f32 0.17677669, %v1360_v18  ;;  %v1425_v25 = vmul.f32 0.17677669, %v1361_v20 }
 0x169   : > { %7135 = vmatpush3.bf16.xpose.msk.msra.mxu0 %vm8849_vm3, %v7130_v12  ;;  %v1359_v12 = vld [vmem:[%s8451_s25 + $0x1d0] sm:$0xff] }
 0x16a   : > { %7183 = vmatpush3.bf16.xpose.msk.msra.mxu1 %vm8849_vm3, %v7178_v15  ;;  %7138 = vmatprep.subr.msk.bf16.mxu0 %vm8849_vm3, %v7136_v27  ;;  %v1407_v15 = vmul.f32 0.17677669, %v1343_v11  ;;  %v1423_v17 = vmul.f32 0.17677669, %v1359_v12 }
 0x16b   : > { %7186 = vmatprep.subr.msk.bf16.mxu1 %vm8849_vm3, %v7184_v28 }
 0x171   : > { %7141 = vmatpush3.bf16.xpose.msk.msra.mxu0 %vm8849_vm3, %v7136_v27  ;;  %v1347_v27 = vld [vmem:[%s8451_s25 + $0x170] sm:$0xff] }
 0x172   : > { %7189 = vmatpush3.bf16.xpose.msk.msra.mxu1 %vm8849_vm3, %v7184_v28  ;;  %7144 = vmatprep.subr.msk.bf16.mxu0 %vm8849_vm3, %v7142_v33  ;;  %v1363_v28 = vld [vmem:[%s8451_s25 + $0x1f0] sm:$0xff]  ;;  %v1411_v31 = vmul.f32 0.17677669, %v1347_v27 }
 0x173   : > { %7192 = vmatprep.subr.msk.bf16.mxu1 %vm8849_vm3, %v7190_v34 }
 0x179   : > { %7147 = vmatpush3.bf16.xpose.msk.msra.mxu0 %vm8849_vm3, %v7142_v33  ;;  %v1427_v33 = vmul.f32 0.17677669, %v1363_v28 }
 0x17a   : > { %7195 = vmatpush3.bf16.xpose.msk.msra.mxu1 %vm8849_vm3, %v7190_v34  ;;  %7150 = vmatprep.subr.msk.bf16.mxu0 %vm8849_vm3, %v7148_v39  ;;  %v1364_v34 = vld [vmem:[%s8451_s25 + $0x1f8] sm:$0xff] }
 0x17b   : > { %7198 = vmatprep.subr.msk.bf16.mxu1 %vm8849_vm3, %v7196_v40  ;;  %v1428_v36 = vmul.f32 0.17677669, %v1364_v34 }
 0x181   : > { %7153 = vmatpush3.bf16.xpose.msk.msra.mxu0 %vm8849_vm3, %v7148_v39 }
 0x182   : > { %7201 = vmatpush3.bf16.xpose.msk.msra.mxu1 %vm8849_vm3, %v7196_v40 }
 0x188   : > { %6707 = vmatmul.mubr.msk.f32.vlgmr.msra.gmra.mrb[16].mxu0 %vm1557_vm2, %v1398_v45 }
 0x189   : > { %6763 = vmatmul.mubr.msk.f32.vlgmr.msra.gmra.mrb[16].mxu1 %vm1557_vm2, %v1414_v46  ;;  %6709 = vmatprep.mubr.msk.f32.mxu0 %vm1557_vm2, %v1399_v47 }
 0x18a   : > { %6765 = vmatprep.mubr.msk.f32.mxu1 %vm1557_vm2, %v1415_v49 }
 0x18c   : > { %6710 = vmatmul.mubr.msk.f32.gmra.mrb[18].mxu0 %vm1557_vm2, %v1400_v53 }
 0x18d   : > { %6766 = vmatmul.mubr.msk.f32.gmra.mrb[18].mxu1 %vm1557_vm2, %v1416_v6  ;;  %6712 = vmatprep.mubr.msk.f32.mxu0 %vm1557_vm2, %v1401_v54 }
 0x18e   : > { %6768 = vmatprep.mubr.msk.f32.mxu1 %vm1557_vm2, %v1417_v56 }
 0x190   : > { %6713 = vmatmul.mubr.msk.f32.gmra.mrb[20].mxu0 %vm1557_vm2, %v1402_v60 }
 0x191   : > { %6769 = vmatmul.mubr.msk.f32.gmra.mrb[20].mxu1 %vm1557_vm2, %v1418_v61  ;;  %6715 = vmatprep.mubr.msk.f32.mxu0 %vm1557_vm2, %v1403_v62 }
 0x192   : > { %6771 = vmatprep.mubr.msk.f32.mxu1 %vm1557_vm2, %v1419_v0 }
 0x194   : > { %6716 = vmatmul.mubr.msk.f32.gmra.mrb[22].mxu0 %vm1557_vm2, %v1404_v4 }
 0x195   : > { %6772 = vmatmul.mubr.msk.f32.gmra.mrb[22].mxu1 %vm1557_vm2, %v1420_v5  ;;  %6718 = vmatprep.mubr.msk.f32.mxu0 %vm1557_vm2, %v1405_v7 }
 0x196   : > { %6774 = vmatprep.mubr.msk.f32.mxu1 %vm1557_vm2, %v1421_v9 }
 0x198   : > { %6719 = vmatmul.mubr.msk.f32.gmra.mrb[24].mxu0 %vm1557_vm2, %v1406_v13 }
 0x199   : > { %6775 = vmatmul.mubr.msk.f32.gmra.mrb[24].mxu1 %vm1557_vm2, %v1422_v14  ;;  %6721 = vmatprep.mubr.msk.f32.mxu0 %vm1557_vm2, %v1407_v15 }
 0x19a   : > { %6777 = vmatprep.mubr.msk.f32.mxu1 %vm1557_vm2, %v1423_v17 }
 0x19c   : > { %6722 = vmatmul.mubr.msk.f32.gmra.mrb[26].mxu0 %vm1557_vm2, %v1408_v21 }
 0x19d   : > { %6778 = vmatmul.mubr.msk.f32.gmra.mrb[26].mxu1 %vm1557_vm2, %v1424_v22  ;;  %6724 = vmatprep.mubr.msk.f32.mxu0 %vm1557_vm2, %v1409_v23 }
 0x19e   : > { %6780 = vmatprep.mubr.msk.f32.mxu1 %vm1557_vm2, %v1425_v25 }
 0x1a0   : > { %6725 = vmatmul.mubr.msk.f32.gmra.mrb[28].mxu0 %vm1557_vm2, %v1410_v29 }
 0x1a1   : > { %6781 = vmatmul.mubr.msk.f32.gmra.mrb[28].mxu1 %vm1557_vm2, %v1426_v30  ;;  %6727 = vmatprep.mubr.msk.f32.mxu0 %vm1557_vm2, %v1411_v31 }
 0x1a2   : > { %6783 = vmatprep.mubr.msk.f32.mxu1 %vm1557_vm2, %v1427_v33 }
 0x1a4   : > { %6728 = vmatmul.mubr.msk.f32.gmra.mrb[30].mxu0 %vm1557_vm2, %v1412_v35 }
 0x1a5   : > { %6784 = vmatmul.mubr.msk.f32.gmra.mrb[30].mxu1 %vm1557_vm2, %v1428_v36 }
 0x21b   : > { %v9170_v37 = vpop.f32.mrb[0].mxu0 }
 0x21c   : > { %v9172_v38 = vpop.f32.mrb[0].mxu1  ;;  %2588 = vmax.xlane.f32.xlu0 %v9170_v37  ;;  %v9175_v39 = vpop.f32.mrb[1].mxu0 }
 0x21d   : > { %2620 = vmax.xlane.f32.xlu1 %v9172_v38  ;;  %v9178_v40 = vpop.f32.mrb[1].mxu1 }
 0x21f   : > { %v9180_v41 = vpop.f32.mrb[2].mxu0 }
 0x220   : > { %2586 = vmax.xlane.f32.xlu0 %v9175_v39  ;;  %v9183_v42 = vpop.f32.mrb[3].mxu0  ;;  %v9185_v43 = vpop.f32.mrb[2].mxu1 }
 0x221   : > { %2592 = vmax.xlane.f32.xlu1 %v9180_v41  ;;  %v9188_v44 = vpop.f32.mrb[3].mxu1 }
 0x223   : > { %v9190_v45 = vpop.f32.mrb[4].mxu0 }
 0x224   : > { %2618 = vmax.xlane.f32.xlu0 %v9178_v40  ;;  %v9193_v46 = vpop.f32.mrb[5].mxu0  ;;  %v9195_v47 = vpop.f32.mrb[4].mxu1 }
 0x225   : > { %11494 = vst [vmem:[#allocation11_spill] sm:$0xff] %v9193_v46  ;;  %11495 = vst [vmem:[#allocation12_spill] sm:$0xff] %v9195_v47  ;;  %2624 = vmax.xlane.f32.xlu1 %v9185_v43  ;;  %v9198_v48 = vpop.f32.mrb[5].mxu1 }
 0x226   : > { %11496 = vst [vmem:[#allocation13_spill] sm:$0xff] %v9198_v48 }
 0x227   : > { %v9200_v49 = vpop.f32.mrb[6].mxu0 }
 0x228   : > { %11497 = vst [vmem:[#allocation14_spill] sm:$0xff] %v9200_v49  ;;  %2622 = vmax.xlane.f32.xlu0 %v9188_v44  ;;  %v9203_v50 = vpop.f32.mrb[7].mxu0  ;;  %v9205_v51 = vpop.f32.mrb[6].mxu1 }
 0x229   : > { %11498 = vst [vmem:[#allocation15_spill] sm:$0xff] %v9203_v50  ;;  %11499 = vst [vmem:[#allocation16_spill] sm:$0xff] %v9205_v51  ;;  %2590 = vmax.xlane.f32.xlu1 %v9183_v42  ;;  %v9208_v52 = vpop.f32.mrb[7].mxu1 }
 0x22a   : > { %11500 = vst [vmem:[#allocation17_spill] sm:$0xff] %v9208_v52 }
 0x22b   : > { %v9210_v53 = vpop.f32.mrb[8].mxu0 }
 0x22c   : > { %11501 = vst [vmem:[#allocation18_spill] sm:$0xff] %v9210_v53  ;;  %2594 = vmax.xlane.f32.xlu0 %v9193_v46  ;;  %v9213_v6 = vpop.f32.mrb[9].mxu0  ;;  %v9215_v54 = vpop.f32.mrb[8].mxu1 }
 0x22d   : > { %11502 = vst [vmem:[#allocation19_spill] sm:$0xff] %v9213_v6  ;;  %11503 = vst [vmem:[#allocation20_spill] sm:$0xff] %v9215_v54  ;;  %2596 = vmax.xlane.f32.xlu1 %v9190_v45  ;;  %v9218_v56 = vpop.f32.mrb[9].mxu1 }
 0x22e   : > { %11504 = vst [vmem:[#allocation21_spill] sm:$0xff] %v9218_v56 }
 0x22f   : > { %v9220_v57 = vpop.f32.mrb[10].mxu0 }
 0x230   : > { %11505 = vst [vmem:[#allocation22_spill] sm:$0xff] %v9220_v57  ;;  %2626 = vmax.xlane.f32.xlu0 %v9198_v48  ;;  %v9223_v58 = vpop.f32.mrb[11].mxu0  ;;  %v9225_v59 = vpop.f32.mrb[10].mxu1 }
 0x231   : > { %11506 = vst [vmem:[#allocation23_spill] sm:$0xff] %v9223_v58  ;;  %11507 = vst [vmem:[#allocation24_spill] sm:$0xff] %v9225_v59  ;;  %2628 = vmax.xlane.f32.xlu1 %v9195_v47  ;;  %v9228_v60 = vpop.f32.mrb[11].mxu1 }
 0x232   : > { %11508 = vst [vmem:[#allocation25_spill] sm:$0xff] %v9228_v60 }
 0x233   : > { %v9230_v61 = vpop.f32.mrb[12].mxu0 }
 0x234   : > { %11509 = vst [vmem:[#allocation26_spill] sm:$0xff] %v9230_v61  ;;  %2598 = vmax.xlane.f32.xlu0 %v9203_v50  ;;  %v9233_v62 = vpop.f32.mrb[13].mxu0  ;;  %v9235_v63 = vpop.f32.mrb[12].mxu1 }
 0x235   : > { %11510 = vst [vmem:[#allocation27_spill] sm:$0xff] %v9233_v62  ;;  %11511 = vst [vmem:[#allocation28_spill] sm:$0xff] %v9235_v63  ;;  %2600 = vmax.xlane.f32.xlu1 %v9200_v49  ;;  %v9238_v0 = vpop.f32.mrb[13].mxu1 }
 0x236   : > { %11512 = vst [vmem:[#allocation29_spill] sm:$0xff] %v9238_v0 }
 0x237   : > { %v9240_v1 = vpop.f32.mrb[14].mxu0 }
 0x238   : > { %11513 = vst [vmem:[#allocation30_spill] sm:$0xff] %v9240_v1  ;;  %2630 = vmax.xlane.f32.xlu0 %v9208_v52  ;;  %v9243_v2 = vpop.f32.mrb[15].mxu0  ;;  %v9245_v3 = vpop.f32.mrb[14].mxu1 }
 0x239   : > { %11514 = vst [vmem:[#allocation31_spill] sm:$0xff] %v9243_v2  ;;  %11515 = vst [vmem:[#allocation32_spill] sm:$0xff] %v9245_v3  ;;  %2632 = vmax.xlane.f32.xlu1 %v9205_v51  ;;  %v9248_v4 = vpop.f32.mrb[15].mxu1 }
 0x23a   : > { %11516 = vst [vmem:[#allocation33_spill] sm:$0xff] %v9248_v4 }
 0x23c   : > { %2602 = vmax.xlane.f32.xlu0 %v9213_v6  ;;  %v9622_v6 = vld [vmem:[#allocation2 + $0xe0] sm:$0xff] }
 0x23d   : > { %2604 = vmax.xlane.f32.xlu1 %v9210_v53 }
 0x240   : > { %2634 = vmax.xlane.f32.xlu0 %v9218_v56 }
 0x241   : > { %2636 = vmax.xlane.f32.xlu1 %v9215_v54 }
 0x244   : > { %2606 = vmax.xlane.f32.xlu0 %v9223_v58 }
 0x245   : > { %2608 = vmax.xlane.f32.xlu1 %v9220_v57 }
 0x248   : > { %2638 = vmax.xlane.f32.xlu0 %v9228_v60 }
 0x249   : > { %2640 = vmax.xlane.f32.xlu1 %v9225_v59  ;;  %v9560_v59 = vld [vmem:[#allocation2 + $0x50] sm:$0xff] }
 0x24c   : > { %2610 = vmax.xlane.f32.xlu0 %v9233_v62  ;;  %v9536_v62 = vld [vmem:[#allocation2 + $0xc0] sm:$0xff] }
 0x24d   : > { %2612 = vmax.xlane.f32.xlu1 %v9230_v61 }
 0x250   : > { %2642 = vmax.xlane.f32.xlu0 %v9238_v0 }
 0x251   : > { %2644 = vmax.xlane.f32.xlu1 %v9235_v63 }
 0x254   : > { %2614 = vmax.xlane.f32.xlu0 %v9243_v2 }
 0x255   : > { %2616 = vmax.xlane.f32.xlu1 %v9240_v1 }
 0x258   : > { %2646 = vmax.xlane.f32.xlu0 %v9248_v4 }
 0x259   : > { %2648 = vmax.xlane.f32.xlu1 %v9245_v3  ;;  %v9483_v3 = vld [vmem:[#allocation2 + $0x30] sm:$0xff] }
 0x25b   : > { %v9266_v5 = vpop.f32.mrb[16].mxu0 }
 0x25c   : > { %11517 = vst [vmem:[#allocation34_spill] sm:$0xff] %v9266_v5  ;;  %v9268_v7 = vpop.f32.mrb[17].mxu0  ;;  %v9270_v8 = vpop.f32.mrb[16].mxu1 }
 0x25d   : > { %11518 = vst [vmem:[#allocation35_spill] sm:$0xff] %v9268_v7  ;;  %11519 = vst [vmem:[#allocation36_spill] sm:$0xff] %v9270_v8  ;;  %2650 = vmax.xlane.f32.xlu0 %v9268_v7  ;;  %2652 = vmax.xlane.f32.xlu1 %v9266_v5  ;;  %v9274_v9 = vpop.f32.mrb[17].mxu1  ;;  %v1524_v5 = vld [vmem:[%s8455_s26 + $0xf8] sm:$0xff] }
 0x25e   : > { %11520 = vst [vmem:[#allocation37_spill] sm:$0xff] %v9274_v9 }
 0x25f   : > { %v9276_v10 = vpop.f32.mrb[18].mxu0 }
 0x260   : > { %11521 = vst [vmem:[#allocation38_spill] sm:$0xff] %v9276_v10  ;;  %v9278_v11 = vpop.f32.mrb[19].mxu0  ;;  %v9280_v12 = vpop.f32.mrb[18].mxu1 }
 0x261   : > { %11522 = vst [vmem:[#allocation39_spill] sm:$0xff] %v9278_v11  ;;  %11523 = vst [vmem:[#allocation40_spill] sm:$0xff] %v9280_v12  ;;  %2682 = vmax.xlane.f32.xlu0 %v9274_v9  ;;  %2684 = vmax.xlane.f32.xlu1 %v9270_v8  ;;  %v9284_v13 = vpop.f32.mrb[19].mxu1  ;;  %v1522_v9 = vld [vmem:[%s8455_s26 + $0xe8] sm:$0xff] }
 0x262   : > { %11524 = vst [vmem:[#allocation41_spill] sm:$0xff] %v9284_v13 }
 0x263   : > { %v9286_v14 = vpop.f32.mrb[20].mxu0 }
 0x264   : > { %11525 = vst [vmem:[#allocation42_spill] sm:$0xff] %v9286_v14  ;;  %v9288_v15 = vpop.f32.mrb[21].mxu0  ;;  %v9290_v16 = vpop.f32.mrb[20].mxu1 }
 0x265   : > { %11526 = vst [vmem:[#allocation43_spill] sm:$0xff] %v9288_v15  ;;  %11527 = vst [vmem:[#allocation44_spill] sm:$0xff] %v9290_v16  ;;  %2654 = vmax.xlane.f32.xlu0 %v9278_v11  ;;  %2656 = vmax.xlane.f32.xlu1 %v9276_v10  ;;  %v9294_v17 = vpop.f32.mrb[21].mxu1  ;;  %v1521_v10 = vld [vmem:[%s8455_s26 + $0xe0] sm:$0xff] }
 0x266   : > { %11528 = vst [vmem:[#allocation45_spill] sm:$0xff] %v9294_v17  ;;  %v7258_v7 = vpack.c.bf16 %v1522_v9, %v1521_v10 }
 0x267   : > { %v9296_v18 = vpop.f32.mrb[22].mxu0 }
 0x268   : > { %11529 = vst [vmem:[#allocation46_spill] sm:$0xff] %v9296_v18  ;;  %v9298_v19 = vpop.f32.mrb[23].mxu0  ;;  %v9300_v20 = vpop.f32.mrb[22].mxu1 }
 0x269   : > { %11530 = vst [vmem:[#allocation47_spill] sm:$0xff] %v9298_v19  ;;  %11531 = vst [vmem:[#allocation48_spill] sm:$0xff] %v9300_v20  ;;  %2686 = vmax.xlane.f32.xlu0 %v9284_v13  ;;  %2688 = vmax.xlane.f32.xlu1 %v9280_v12  ;;  %v9304_v21 = vpop.f32.mrb[23].mxu1  ;;  %v9443_v12 = vld [vmem:[#allocation2 + $0x20] sm:$0xff] }
 0x26a   : > { %11532 = vst [vmem:[#allocation49_spill] sm:$0xff] %v9304_v21 }
 0x26b   : > { %v9306_v22 = vpop.f32.mrb[24].mxu0 }
 0x26c   : > { %11533 = vst [vmem:[#allocation50_spill] sm:$0xff] %v9306_v22  ;;  %v9308_v23 = vpop.f32.mrb[25].mxu0  ;;  %v9310_v24 = vpop.f32.mrb[24].mxu1 }
 0x26d   : > { %11534 = vst [vmem:[#allocation51_spill] sm:$0xff] %v9308_v23  ;;  %11535 = vst [vmem:[#allocation52_spill] sm:$0xff] %v9310_v24  ;;  %2658 = vmax.xlane.f32.xlu0 %v9288_v15  ;;  %2660 = vmax.xlane.f32.xlu1 %v9286_v14  ;;  %v9314_v25 = vpop.f32.mrb[25].mxu1  ;;  %v1519_v15 = vld [vmem:[%s8455_s26 + $0xd0] sm:$0xff]  ;;  %v1520_v14 = vld [vmem:[%s8455_s26 + $0xd8] sm:$0xff] }
 0x26e   : > { %11536 = vst [vmem:[#allocation53_spill] sm:$0xff] %v9314_v25 }
 0x26f   : > { %v9316_v26 = vpop.f32.mrb[26].mxu0 }
 0x270   : > { %11537 = vst [vmem:[#allocation54_spill] sm:$0xff] %v9316_v26  ;;  %v9318_v27 = vpop.f32.mrb[27].mxu0  ;;  %v9320_v28 = vpop.f32.mrb[26].mxu1 }
 0x271   : > { %11538 = vst [vmem:[#allocation55_spill] sm:$0xff] %v9318_v27  ;;  %11539 = vst [vmem:[#allocation56_spill] sm:$0xff] %v9320_v28  ;;  %2690 = vmax.xlane.f32.xlu0 %v9294_v17  ;;  %2692 = vmax.xlane.f32.xlu1 %v9290_v16  ;;  %v9324_v29 = vpop.f32.mrb[27].mxu1  ;;  %v9423_v16 = vld [vmem:[#allocation2 + $0x90] sm:$0xff] }
 0x272   : > { %11540 = vst [vmem:[#allocation57_spill] sm:$0xff] %v9324_v29 }
 0x273   : > { %v9326_v30 = vpop.f32.mrb[28].mxu0 }
 0x274   : > { %11541 = vst [vmem:[#allocation58_spill] sm:$0xff] %v9326_v30  ;;  %v9328_v31 = vpop.f32.mrb[29].mxu0  ;;  %v9330_v32 = vpop.f32.mrb[28].mxu1 }
 0x275   : > { %11542 = vst [vmem:[#allocation59_spill] sm:$0xff] %v9328_v31  ;;  %11543 = vst [vmem:[#allocation60_spill] sm:$0xff] %v9330_v32  ;;  %2662 = vmax.xlane.f32.xlu0 %v9298_v19  ;;  %2664 = vmax.xlane.f32.xlu1 %v9296_v18  ;;  %v9334_v33 = vpop.f32.mrb[29].mxu1  ;;  %v1518_v18 = vld [vmem:[%s8455_s26 + $0xc8] sm:$0xff] }
 0x276   : > { %11544 = vst [vmem:[#allocation61_spill] sm:$0xff] %v9334_v33 }
 0x277   : > { %v9336_v34 = vpop.f32.mrb[30].mxu0 }
 0x278   : > { %11545 = vst [vmem:[#allocation62_spill] sm:$0xff] %v9336_v34  ;;  %v9338_v35 = vpop.f32.mrb[31].mxu0  ;;  %v9340_v36 = vpop.f32.mrb[30].mxu1 }
 0x279   : > { %11546 = vst [vmem:[#allocation63_spill] sm:$0xff] %v9338_v35  ;;  %11547 = vst [vmem:[#allocation64_spill] sm:$0xff] %v9340_v36  ;;  %2694 = vmax.xlane.f32.xlu0 %v9304_v21  ;;  %2696 = vmax.xlane.f32.xlu1 %v9300_v20  ;;  %v9344_v55 = vpop.f32.mrb[31].mxu1 }
 0x27a   : > { %11548 = vst [vmem:[#allocation65_spill] sm:$0xff] %v9344_v55 }
 0x27d   : > { %2666 = vmax.xlane.f32.xlu0 %v9308_v23  ;;  %2668 = vmax.xlane.f32.xlu1 %v9306_v22  ;;  %v1515_v23 = vld [vmem:[%s8455_s26 + $0xb0] sm:$0xff]  ;;  %v1516_v22 = vld [vmem:[%s8455_s26 + $0xb8] sm:$0xff] }
 0x27e   : > { %v7246_v20 = vpack.c.bf16 %v1516_v22, %v1515_v23  ;;  %v1517_v23 = vld [vmem:[%s8455_s26 + $0xc0] sm:$0xff] }
 0x281   : > { %2698 = vmax.xlane.f32.xlu0 %v9314_v25  ;;  %2700 = vmax.xlane.f32.xlu1 %v9310_v24  ;;  %v1514_v24 = vld [vmem:[%s8455_s26 + $0xa8] sm:$0xff] }
 0x285   : > { %2670 = vmax.xlane.f32.xlu0 %v9318_v27  ;;  %2672 = vmax.xlane.f32.xlu1 %v9316_v26  ;;  %v1510_v27 = vld [vmem:[%s8455_s26 + $0x88] sm:$0xff] }
 0x289   : > { %2702 = vmax.xlane.f32.xlu0 %v9324_v29  ;;  %2704 = vmax.xlane.f32.xlu1 %v9320_v28  ;;  %v1493_v29 = vld [vmem:[%s8455_s26] sm:$0xff] }
 0x28d   : > { %2674 = vmax.xlane.f32.xlu0 %v9328_v31  ;;  %2676 = vmax.xlane.f32.xlu1 %v9326_v30  ;;  %v1494_v31 = vld [vmem:[%s8455_s26 + $0x8] sm:$0xff]  ;;  %v1509_v30 = vld [vmem:[%s8455_s26 + $0x80] sm:$0xff] }
 0x28e   : > { %v7202_v28 = vpack.c.bf16 %v1494_v31, %v1493_v29  ;;  %v7234_v26 = vpack.c.bf16 %v1510_v27, %v1509_v30  ;;  %v9372_v29 = vld [vmem:[#allocation2 + $0x88] sm:$0xff] }
 0x28f   : > { %v1498_v30 = vld [vmem:[%s8455_s26 + $0x28] sm:$0xff] }
 0x290   : > { %7203 = vmatprep.subr.bf16.mxu0 %v7202_v28  ;;  %7235 = vmatprep.subr.bf16.mxu1 %v7234_v26 }
 0x291   : > { %2706 = vmax.xlane.f32.xlu0 %v9334_v33  ;;  %2708 = vmax.xlane.f32.xlu1 %v9330_v32  ;;  %v1496_v33 = vld [vmem:[%s8455_s26 + $0x18] sm:$0xff]  ;;  %v1511_v32 = vld [vmem:[%s8455_s26 + $0x90] sm:$0xff] }
 0x292   : > { %7205 = vmatpush3.bf16.msra.mxu0 %v7202_v28  ;;  %7237 = vmatpush3.bf16.msra.mxu1 %v7234_v26  ;;  %v1497_v28 = vld [vmem:[%s8455_s26 + $0x20] sm:$0xff] }
 0x295   : > { %2678 = vmax.xlane.f32.xlu0 %v9338_v35  ;;  %2680 = vmax.xlane.f32.xlu1 %v9336_v34  ;;  %v1495_v35 = vld [vmem:[%s8455_s26 + $0x10] sm:$0xff] }
 0x296   : > { %v7206_v34 = vpack.c.bf16 %v1496_v33, %v1495_v35  ;;  %v7210_v33 = vpack.c.bf16 %v1498_v30, %v1497_v28  ;;  %v1513_v35 = vld [vmem:[%s8455_s26 + $0xa0] sm:$0xff]  ;;  %v1499_v28 = vld [vmem:[%s8455_s26 + $0x30] sm:$0xff]  ;;  %v1500_v30 = vld [vmem:[%s8455_s26 + $0x38] sm:$0xff] }
 0x298   : > { %7207 = vmatprep.subr.bf16.mxu0 %v7206_v34 }
 0x299   : > { %2710 = vmax.xlane.f32.xlu0 %v9344_v55  ;;  %2712 = vmax.xlane.f32.xlu1 %v9340_v36  ;;  %v1512_v55 = vld [vmem:[%s8455_s26 + $0x98] sm:$0xff]  ;;  %v9370_v36 = vld [vmem:[#allocation2 + $0x8] sm:$0xff] }
 0x29a   : > { %v7238_v25 = vpack.c.bf16 %v1512_v55, %v1511_v32  ;;  %7209 = vmatpush3.bf16.msra.mxu0 %v7206_v34  ;;  %v9384_v55 = vld [vmem:[#allocation2] sm:$0xff]  ;;  %v7242_v34 = vpack.c.bf16 %v1514_v24, %v1513_v35  ;;  %v7214_v35 = vpack.c.bf16 %v1500_v30, %v1499_v28  ;;  %v1502_v30 = vld [vmem:[%s8455_s26 + $0x48] sm:$0xff] }
 0x29b   : > { %7211 = vmatprep.subr.bf16.mxu0 %v7210_v33  ;;  %v1501_v28 = vld [vmem:[%s8455_s26 + $0x40] sm:$0xff] }
 0x29c   : > { %7239 = vmatprep.subr.bf16.mxu1 %v7238_v25  ;;  %v7218_v22 = vpack.c.bf16 %v1502_v30, %v1501_v28  ;;  %v1504_v28 = vld [vmem:[%s8455_s26 + $0x58] sm:$0xff] }
 0x29d   : > { %7241 = vmatpush3.bf16.msra.mxu1 %v7238_v25 }
 0x29e   : > { %7213 = vmatpush3.bf16.msra.mxu0 %v7210_v33  ;;  %7243 = vmatprep.subr.bf16.mxu1 %v7242_v34  ;;  %v9404_v33 = vld [vmem:[#allocation2 + $0x80] sm:$0xff] }
 0x29f   : > { %7215 = vmatprep.subr.bf16.mxu0 %v7214_v35 }
 0x2a1   : > { %7245 = vmatpush3.bf16.msra.mxu1 %v7242_v34 }
 0x2a2   : > { %7217 = vmatpush3.bf16.msra.mxu0 %v7214_v35  ;;  %7247 = vmatprep.subr.bf16.mxu1 %v7246_v20  ;;  %v7250_v35 = vpack.c.bf16 %v1518_v18, %v1517_v23 }
 0x2a3   : > { %7219 = vmatprep.subr.bf16.mxu0 %v7218_v22 }
 0x2a5   : > { %7249 = vmatpush3.bf16.msra.mxu1 %v7246_v20  ;;  %v9428_v20 = vld [vmem:[#allocation2 + $0x10] sm:$0xff] }
 0x2a6   : > { %7221 = vmatpush3.bf16.msra.mxu0 %v7218_v22  ;;  %7251 = vmatprep.subr.bf16.mxu1 %v7250_v35  ;;  %v7254_v22 = vpack.c.bf16 %v1520_v14, %v1519_v15 }
 0x2a9   : > { %v2589_v27 = vpop.xlane.xlu0 %2588  ;;  %7253 = vmatpush3.bf16.msra.mxu1 %v7250_v35  ;;  %v9448_v35 = vld [vmem:[#allocation2 + $0x28] sm:$0xff] }
 0x2aa   : > { %v2621_v31 = vpop.xlane.xlu1 %2620  ;;  %v9377_v26 = vmax.f32 %v9370_v36, %v2589_v27  ;;  %v9389_v27 = vld [vmem:[#allocation2 + $0x18] sm:$0xff]  ;;  %7255 = vmatprep.subr.bf16.mxu1 %v7254_v22 }
 0x2ab   : > { %v9382_v32 = vmax.f32 %v9372_v29, %v2621_v31 }
 0x2ac   : > { %5024 = vst.msk [vmem:[#allocation2 + $0x8] sm:$0xff] %vm3802_vm4, %v9377_v26  ;;  %2977 = vperm.xlu1 %7422, %v9377_v26   ;;  %v2779_v1 = vsub.f32 %v9370_v36, %v9377_v26 }
 0x2ad   : > { %5040 = vst.msk [vmem:[#allocation2 + $0x88] sm:$0xff] %vm3802_vm4, %v9382_v32  ;;  %v2587_v25 = vpop.xlane.xlu0 %2586  ;;  %v2795_v14 = vsub.f32 %v9372_v29, %v9382_v32  ;;  %7257 = vmatpush3.bf16.msra.mxu1 %v7254_v22  ;;  %v9467_v29 = vld [vmem:[#allocation2 + $0xa8] sm:$0xff]  ;;  %v1507_v22 = vld [vmem:[%s8455_s26 + $0x70] sm:$0xff] }
 0x2ae   : > { %v9396_v31 = vmax.f32 %v9384_v55, %v2587_v25  ;;  %v2593_v24 = vpop.xlane.xlu1 %2592  ;;  %v9408_v25 = vld [vmem:[#allocation2 + $0x98] sm:$0xff]  ;;  %7259 = vmatprep.subr.bf16.mxu1 %v7258_v7 }
 0x2af   : > { %v9401_v21 = vmax.f32 %v9389_v27, %v2593_v24  ;;  %3057 = vperm.xlu0 %7423, %v9382_v32  }
 0x2b0   : > { %5023 = vst.msk [vmem:[#allocation2] sm:$0xff] %vm3802_vm4, %v9396_v31 }
 0x2b1   : > { %5026 = vst.msk [vmem:[#allocation2 + $0x18] sm:$0xff] %vm3802_vm4, %v9401_v21  ;;  %v2619_v34 = vpop.xlane.xlu0 %2618  ;;  %7261 = vmatpush3.bf16.msra.mxu1 %v7258_v7 }
 0x2b2   : > { %v9415_v24 = vmax.f32 %v9404_v33, %v2619_v34  ;;  %v2625_v19 = vpop.xlane.xlu1 %2624  ;;  %v1503_v34 = vld [vmem:[%s8455_s26 + $0x50] sm:$0xff] }
 0x2b3   : > { %v9420_v17 = vmax.f32 %v9408_v25, %v2625_v19  ;;  %2972 = vperm.xlu0 %7423, %v9396_v31   ;;  %v7222_v23 = vpack.c.bf16 %v1504_v28, %v1503_v34  ;;  %v1505_v34 = vld [vmem:[%s8455_s26 + $0x60] sm:$0xff]  ;;  %v1506_v28 = vld [vmem:[%s8455_s26 + $0x68] sm:$0xff] }
 0x2b4   : > { %5039 = vst.msk [vmem:[#allocation2 + $0x80] sm:$0xff] %vm3802_vm4, %v9415_v24  ;;  %3052 = vperm.xlu1 %7422, %v9415_v24   ;;  %v7226_v11 = vpack.c.bf16 %v1506_v28, %v1505_v34  ;;  %v2876_v34 = vmul.f32 1.442695, %v2795_v14 }
 0x2b5   : > { %5042 = vst.msk [vmem:[#allocation2 + $0x98] sm:$0xff] %vm3802_vm4, %v9420_v17  ;;  %v2623_v19 = vpop.xlane.xlu0 %2622  ;;  %7223 = vmatprep.subr.bf16.mxu0 %v7222_v23  ;;  %v2797_v26 = vsub.f32 %v9408_v25, %v9420_v17 }
 0x2b6   : > { %v9435_v30 = vmax.f32 %v9423_v16, %v2623_v19  ;;  %v2591_v18 = vpop.xlane.xlu1 %2590  ;;  %7225 = vmatpush3.bf16.msra.mxu0 %v7222_v23  ;;  %v9464_v23 = vld [vmem:[#allocation2 + $0xa0] sm:$0xff]  ;;  %7424 = vpow2.f32 %v2876_v34 }
 0x2b7   : > { %v9440_v13 = vmax.f32 %v9428_v20, %v2591_v18  ;;  %3067 = vperm.xlu0 %7423, %v9420_v17   ;;  %7227 = vmatprep.subr.bf16.mxu0 %v7226_v11  ;;  %v2880_v25 = vmul.f32 1.442695, %v2797_v26 }
 0x2b8   : > { %5041 = vst.msk [vmem:[#allocation2 + $0x90] sm:$0xff] %vm3802_vm4, %v9435_v30  ;;  %2987 = vperm.xlu1 %7422, %v9401_v21  }
 0x2b9   : > { %5025 = vst.msk [vmem:[#allocation2 + $0x10] sm:$0xff] %vm3802_vm4, %v9440_v13  ;;  %v2595_v19 = vpop.xlane.xlu0 %2594 }
 0x2ba   : > { %v2597_v15 = vpop.xlane.xlu1 %2596  ;;  %v9457_v18 = vmax.f32 %v9443_v12, %v2595_v19  ;;  %7229 = vmatpush3.bf16.msra.mxu0 %v7226_v11  ;;  %v1508_v19 = vld [vmem:[%s8455_s26 + $0x78] sm:$0xff] }
 0x2bb   : > { %v9462_v8 = vmax.f32 %v9448_v35, %v2597_v15  ;;  %v7230_v28 = vpack.c.bf16 %v1508_v19, %v1507_v22  ;;  %v1523_v15 = vld [vmem:[%s8455_s26 + $0xf0] sm:$0xff]  ;;  %v9486_v11 = vld [vmem:[#allocation2 + $0x38] sm:$0xff] }
 0x2bc   : > { %2982 = vperm.xlu1 %7422, %v9440_v13   ;;  %5027 = vst.msk [vmem:[#allocation2 + $0x20] sm:$0xff] %vm3802_vm4, %v9457_v18  ;;  %v7262_v2 = vpack.c.bf16 %v1524_v5, %v1523_v15  ;;  %v9499_v22 = vld [vmem:[#allocation2 + $0xb0] sm:$0xff]  ;;  %v9502_v19 = vld [vmem:[#allocation2 + $0xb8] sm:$0xff] }
 0x2bd   : > { %5028 = vst.msk [vmem:[#allocation2 + $0x28] sm:$0xff] %vm3802_vm4, %v9462_v8  ;;  %v2627_v32 = vpop.xlane.xlu0 %2626  ;;  %7231 = vmatprep.subr.bf16.mxu0 %v7230_v28  ;;  %v2783_v58 = vsub.f32 %v9448_v35, %v9462_v8  ;;  %v2796_v35 = vsub.f32 %v9423_v16, %v9435_v30  ;;  %v9648_v16 = vld [vmem:[#allocation2 + $0x70] sm:$0xff] }
 0x2be   : > { %v2629_v9 = vpop.xlane.xlu1 %2628  ;;  %v9476_v10 = vmax.f32 %v9464_v23, %v2627_v32  ;;  %7233 = vmatpush3.bf16.msra.mxu0 %v7230_v28  ;;  %7263 = vmatprep.subr.bf16.mxu1 %v7262_v2 }
 0x2bf   : > { %v9481_v4 = vmax.f32 %v9467_v29, %v2629_v9  ;;  %7265 = vmatpush3.bf16.msra.mxu1 %v7262_v2  ;;  %v2778_v9 = vsub.f32 %v9384_v55, %v9396_v31 }
 0x2c0   : > { %3062 = vperm.xlu1 %7422, %v9435_v30   ;;  %5043 = vst.msk [vmem:[#allocation2 + $0xa0] sm:$0xff] %vm3802_vm4, %v9476_v10  ;;  %v9538_v36 = vpop.eup %7424 }
 0x2c1   : > { %5044 = vst.msk [vmem:[#allocation2 + $0xa8] sm:$0xff] %vm3802_vm4, %v9481_v4  ;;  %3077 = vperm.xlu0 %7423, %v9481_v4   ;;  %v2599_v7 = vpop.xlane.xlu0 %2598  ;;  %v2842_v31 = vmul.f32 1.442695, %v2778_v9  ;;  %11549 = vst [vmem:[#allocation66_spill] sm:$0xff] %v9538_v36  ;;  %v2794_v9 = vsub.f32 %v9404_v33, %v9415_v24  ;;  %v9567_v24 = vld [vmem:[#allocation2 + $0x58] sm:$0xff]  ;;  %v9578_v33 = vld [vmem:[#allocation2 + $0xd0] sm:$0xff] }
 0x2c2   : > { %v2601_v14 = vpop.xlane.xlu1 %2600  ;;  %v9494_v32 = vmax.f32 %v9483_v3, %v2599_v7  ;;  %v9516_v7 = vld [vmem:[#allocation2 + $0x40] sm:$0xff] }
 0x2c3   : > { %v9497_v5 = vmax.f32 %v9486_v11, %v2601_v14  ;;  %v9521_v14 = vld [vmem:[#allocation2 + $0x48] sm:$0xff]  ;;  %7426 = vpow2.f32 %v2842_v31  ;;  %v2874_v17 = vmul.f32 1.442695, %v2794_v9  ;;  %v9585_v9 = vld [vmem:[#allocation2 + $0xd8] sm:$0xff] }
 0x2c4   : > { %2997 = vperm.xlu1 %7422, %v9462_v8   ;;  %5029 = vst.msk [vmem:[#allocation2 + $0x30] sm:$0xff] %vm3802_vm4, %v9494_v32  ;;  %v9631_v8 = vld [vmem:[#allocation2 + $0xe8] sm:$0xff] }
 0x2c5   : > { %5030 = vst.msk [vmem:[#allocation2 + $0x38] sm:$0xff] %vm3802_vm4, %v9497_v5  ;;  %v2631_v34 = vpop.xlane.xlu0 %2630 }
 0x2c6   : > { %v2633_v28 = vpop.xlane.xlu1 %2632  ;;  %v9511_v15 = vmax.f32 %v9499_v22, %v2631_v34  ;;  %v2781_v34 = vsub.f32 %v9389_v27, %v9401_v21  ;;  %v9545_v21 = vld [vmem:[#allocation2 + $0xc8] sm:$0xff]  ;;  %v2844_v27 = vmul.f32 1.442695, %v2779_v1 }
 0x2c7   : > { %v9514_v2 = vmax.f32 %v9502_v19, %v2633_v28 }
 0x2c8   : > { %2992 = vperm.xlu1 %7422, %v9457_v18   ;;  %5045 = vst.msk [vmem:[#allocation2 + $0xb0] sm:$0xff] %vm3802_vm4, %v9511_v15  ;;  %7428 = vpow2.f32 %v2844_v27  ;;  %v9596_v27 = vld [vmem:[#allocation2 + $0x60] sm:$0xff] }
 0x2c9   : > { %5046 = vst.msk [vmem:[#allocation2 + $0xb8] sm:$0xff] %vm3802_vm4, %v9514_v2  ;;  %3087 = vperm.xlu0 %7423, %v9514_v2   ;;  %v2603_v55 = vpop.xlane.xlu0 %2602 }
 0x2ca   : > { %v2605_v28 = vpop.xlane.xlu1 %2604  ;;  %v9531_v0 = vmax.f32 %v9516_v7, %v2603_v55 }
 0x2cb   : > { %v9534_v63 = vmax.f32 %v9521_v14, %v2605_v28  ;;  %v2848_v28 = vmul.f32 1.442695, %v2781_v34 }
 0x2cc   : > { %3072 = vperm.xlu1 %7422, %v9476_v10   ;;  %5031 = vst.msk [vmem:[#allocation2 + $0x40] sm:$0xff] %vm3802_vm4, %v9531_v0 }
 0x2cd   : > { %5032 = vst.msk [vmem:[#allocation2 + $0x48] sm:$0xff] %vm3802_vm4, %v9534_v63  ;;  %4018 = vperm.xlu0 %7423, %v9538_v36   ;;  %v2635_v55 = vpop.xlane.xlu0 %2634  ;;  %7430 = vpow2.f32 %v2848_v28  ;;  %v9598_v36 = vpop.eup %7426 }
 0x2ce   : > { %v2637_v61 = vpop.xlane.xlu1 %2636  ;;  %v9555_v60 = vmax.f32 %v9536_v62, %v2635_v55  ;;  %7432 = vpow2.f32 %v2874_v17  ;;  %11550 = vst [vmem:[#allocation67_spill] sm:$0xff] %v9598_v36 }
 0x2cf   : > { %v9558_v1 = vmax.f32 %v9545_v21, %v2637_v61  ;;  %7434 = vpow2.f32 %v2880_v25  ;;  %v9605_v25 = vld [vmem:[#allocation2 + $0x68] sm:$0xff] }
 0x2d0   : > { %3007 = vperm.xlu1 %7422, %v9497_v5   ;;  %5047 = vst.msk [vmem:[#allocation2 + $0xc0] sm:$0xff] %vm3802_vm4, %v9555_v60 }
 0x2d1   : > { %5048 = vst.msk [vmem:[#allocation2 + $0xc8] sm:$0xff] %vm3802_vm4, %v9558_v1  ;;  %3017 = vperm.xlu0 %7423, %v9534_v63   ;;  %v2607_v61 = vpop.xlane.xlu0 %2606 }
 0x2d2   : > { %v2609_v31 = vpop.xlane.xlu1 %2608  ;;  %v9573_v34 = vmax.f32 %v9560_v59, %v2607_v61  ;;  %v9617_v56 = vpop.eup %7428 }
 0x2d3   : > { %v9576_v55 = vmax.f32 %v9567_v24, %v2609_v31  ;;  %11551 = vst [vmem:[#allocation68_spill] sm:$0xff] %v9617_v56 }
 0x2d4   : > { %3002 = vperm.xlu1 %7422, %v9494_v32   ;;  %5033 = vst.msk [vmem:[#allocation2 + $0x50] sm:$0xff] %vm3802_vm4, %v9573_v34 }
 0x2d5   : > { %5034 = vst.msk [vmem:[#allocation2 + $0x58] sm:$0xff] %vm3802_vm4, %v9576_v55  ;;  %3097 = vperm.xlu0 %7423, %v9558_v1   ;;  %v2639_v26 = vpop.xlane.xlu0 %2638 }
 0x2d6   : > { %v2641_v28 = vpop.xlane.xlu1 %2640  ;;  %v9591_v61 = vmax.f32 %v9578_v33, %v2639_v26  ;;  %v2780_v26 = vsub.f32 %v9428_v20, %v9440_v13 }
 0x2d7   : > { %v9594_v31 = vmax.f32 %v9585_v9, %v2641_v28  ;;  %v9624_v13 = vpop.eup %7430 }
 0x2d8   : > { %3082 = vperm.xlu1 %7422, %v9511_v15   ;;  %5049 = vst.msk [vmem:[#allocation2 + $0xd0] sm:$0xff] %vm3802_vm4, %v9591_v61  ;;  %11552 = vst [vmem:[#allocation69_spill] sm:$0xff] %v9624_v13  ;;  %v9643_v52 = vpop.eup %7432 }
 0x2d9   : > { %5050 = vst.msk [vmem:[#allocation2 + $0xd8] sm:$0xff] %vm3802_vm4, %v9594_v31  ;;  %3933 = vperm.xlu0 %7423, %v9598_v36   ;;  %v2611_v28 = vpop.xlane.xlu0 %2610  ;;  %v2852_v36 = vmul.f32 1.442695, %v2783_v58  ;;  %11553 = vst [vmem:[#allocation70_spill] sm:$0xff] %v9643_v52  ;;  %v9650_v30 = vpop.eup %7434 }
 0x2da   : > { %v2613_v57 = vpop.xlane.xlu1 %2612  ;;  %v9615_v17 = vmax.f32 %v9596_v27, %v2611_v28  ;;  %v2846_v28 = vmul.f32 1.442695, %v2780_v26  ;;  %11554 = vst [vmem:[#allocation71_spill] sm:$0xff] %v9650_v30 }
 0x2db   : > { %v9620_v54 = vmax.f32 %v9605_v25, %v2613_v57 }
 0x2dc   : > { %3938 = vperm.xlu1 %7422, %v9617_v56   ;;  %5035 = vst.msk [vmem:[#allocation2 + $0x60] sm:$0xff] %vm3802_vm4, %v9615_v17  ;;  %v2799_v56 = vsub.f32 %v9467_v29, %v9481_v4  ;;  %v9657_v4 = vld [vmem:[#allocation2 + $0x78] sm:$0xff]  ;;  %v2878_v29 = vmul.f32 1.442695, %v2796_v35  ;;  %7436 = vpow2.f32 %v2846_v28 }
 0x2dd   : > { %5036 = vst.msk [vmem:[#allocation2 + $0x68] sm:$0xff] %vm3802_vm4, %v9620_v54  ;;  %3948 = vperm.xlu0 %7423, %v9624_v13   ;;  %v2643_v57 = vpop.xlane.xlu0 %2642  ;;  %7438 = vpow2.f32 %v2852_v36  ;;  %v9675_v28 = vld [vmem:[#allocation2 + $0xf8] sm:$0xff] }
 0x2de   : > { %v2645_v20 = vpop.xlane.xlu1 %2644  ;;  %v9641_v53 = vmax.f32 %v9622_v6, %v2643_v57  ;;  %7440 = vpow2.f32 %v2878_v29  ;;  %v9691_v29 = vld [vmem:[#allocation2 + $0x108] sm:$0xff] }
 0x2df   : > { %v9646_v51 = vmax.f32 %v9631_v8, %v2645_v20  ;;  %v2884_v20 = vmul.f32 1.442695, %v2799_v56 }
 0x2e0   : > { %4013 = vperm.xlu1 %7422, %v9643_v52   ;;  %5051 = vst.msk [vmem:[#allocation2 + $0xe0] sm:$0xff] %vm3802_vm4, %v9641_v53  ;;  %v9668_v52 = vld [vmem:[#allocation2 + $0xf0] sm:$0xff] }
 0x2e1   : > { %5052 = vst.msk [vmem:[#allocation2 + $0xe8] sm:$0xff] %vm3802_vm4, %v9646_v51  ;;  %4028 = vperm.xlu0 %7423, %v9650_v30   ;;  %v2615_v26 = vpop.xlane.xlu0 %2614  ;;  %7442 = vpow2.f32 %v2884_v20  ;;  %v9693_v30 = vld [vmem:[#allocation2 + $0x100] sm:$0xff]  ;;  %v2782_v20 = vsub.f32 %v9443_v12, %v9457_v18  ;;  %v9713_v12 = vld [vmem:[#allocation2 + $0x188] sm:$0xff] }
 0x2e2   : > { %v2617_v57 = vpop.xlane.xlu1 %2616  ;;  %v9663_v13 = vmax.f32 %v9648_v16, %v2615_v26  ;;  %11555 = vst [vmem:[#allocation72_spill] sm:$0xff] %v9693_v30  ;;  %11558 = vst [vmem:[#allocation75_spill] sm:$0xff] %v9713_v12  ;;  %v9715_v18 = vld [vmem:[#allocation2 + $0x180] sm:$0xff] }
 0x2e3   : > { %v9666_v58 = vmax.f32 %v9657_v4, %v2617_v57  ;;  %11559 = vst [vmem:[#allocation76_spill] sm:$0xff] %v9715_v18  ;;  %v2850_v46 = vmul.f32 1.442695, %v2782_v20 }
 0x2e4   : > { %3012 = vperm.xlu1 %7422, %v9531_v0   ;;  %5037 = vst.msk [vmem:[#allocation2 + $0x70] sm:$0xff] %vm3802_vm4, %v9663_v13 }
 0x2e5   : > { %5038 = vst.msk [vmem:[#allocation2 + $0x78] sm:$0xff] %vm3802_vm4, %v9666_v58  ;;  %3027 = vperm.xlu0 %7423, %v9576_v55   ;;  %v2647_v56 = vpop.xlane.xlu0 %2646  ;;  %7444 = vpow2.f32 %v2850_v46 }
 0x2e6   : > { %v2649_v36 = vpop.xlane.xlu1 %2648  ;;  %v9681_v26 = vmax.f32 %v9668_v52, %v2647_v56  ;;  %v2785_v56 = vsub.f32 %v9486_v11, %v9497_v5  ;;  %v9702_v50 = vpop.eup %7436  ;;  %v2798_v11 = vsub.f32 %v9464_v23, %v9476_v10 }
 0x2e7   : > { %v9684_v57 = vmax.f32 %v9675_v28, %v2649_v36  ;;  %11556 = vst [vmem:[#allocation73_spill] sm:$0xff] %v9702_v50  ;;  %v9710_v47 = vpop.eup %7438 }
 0x2e8   : > { %3092 = vperm.xlu1 %7422, %v9555_v60   ;;  %5053 = vst.msk [vmem:[#allocation2 + $0xf0] sm:$0xff] %vm3802_vm4, %v9681_v26  ;;  %11557 = vst [vmem:[#allocation74_spill] sm:$0xff] %v9710_v47 }
 0x2e9   : > { %5054 = vst.msk [vmem:[#allocation2 + $0xf8] sm:$0xff] %vm3802_vm4, %v9684_v57  ;;  %3107 = vperm.xlu0 %7423, %v9594_v31  }
 0x2ea   : > { %v2653_v36 = vpop.xlane.xlu1 %2652  ;;  %v2651_v35 = vpop.xlane.xlu0 %2650 }
 0x2eb   : > { %v9705_v49 = vmax.f32 %v9691_v29, %v2653_v36  ;;  %v9708_v48 = vmax.f32 %v9693_v30, %v2651_v35  ;;  %v2856_v35 = vmul.f32 1.442695, %v2785_v56  ;;  %v2801_v36 = vsub.f32 %v9502_v19, %v9514_v2  ;;  %v9728_v30 = vpop.eup %7440  ;;  %v9741_v56 = vld [vmem:[#allocation2 + $0x110] sm:$0xff] }
 0x2ec   : > { %3943 = vperm.xlu1 %7422, %v9702_v50   ;;  %11560 = vst [vmem:[#allocation77_spill] sm:$0xff] %v9728_v30  ;;  %v9736_v5 = vpop.eup %7442  ;;  %11563 = vst [vmem:[#allocation80_spill] sm:$0xff] %v9741_v56  ;;  %v2882_v19 = vmul.f32 1.442695, %v2798_v11  ;;  %v9757_v11 = vld [vmem:[#allocation2 + $0x198] sm:$0xff]  ;;  %v9759_v2 = vld [vmem:[#allocation2 + $0x190] sm:$0xff] }
 0x2ed   : > { %5056 = vst.msk [vmem:[#allocation2 + $0x108] sm:$0xff] %vm3802_vm4, %v9705_v49  ;;  %3958 = vperm.xlu0 %7423, %v9710_v47   ;;  %5055 = vst.msk [vmem:[#allocation2 + $0x100] sm:$0xff] %vm3802_vm4, %v9708_v48  ;;  %v9739_v47 = vld [vmem:[#allocation2 + $0x118] sm:$0xff]  ;;  %7446 = vpow2.f32 %v2856_v35 }
 0x2ee   : > { %v2685_v50 = vpop.xlane.xlu1 %2684  ;;  %v2683_v20 = vpop.xlane.xlu0 %2682  ;;  %11561 = vst [vmem:[#allocation78_spill] sm:$0xff] %v9736_v5  ;;  %11562 = vst [vmem:[#allocation79_spill] sm:$0xff] %v9739_v47  ;;  %7448 = vpow2.f32 %v2882_v19  ;;  %v9775_v19 = vld [vmem:[#allocation2 + $0x128] sm:$0xff] }
 0x2ef   : > { %v9731_v23 = vmax.f32 %v9713_v12, %v2685_v50  ;;  %v9734_v10 = vmax.f32 %v9715_v18, %v2683_v20  ;;  %v2888_v50 = vmul.f32 1.442695, %v2801_v36  ;;  %11564 = vst [vmem:[#allocation81_spill] sm:$0xff] %v9757_v11  ;;  %11565 = vst [vmem:[#allocation82_spill] sm:$0xff] %v9759_v2  ;;  %v2784_v12 = vsub.f32 %v9483_v3, %v9494_v32 }
 0x2f0   : > { %4023 = vperm.xlu1 %7422, %v9728_v30  }
 0x2f1   : > { %5072 = vst.msk [vmem:[#allocation2 + $0x188] sm:$0xff] %vm3802_vm4, %v9731_v23  ;;  %4038 = vperm.xlu0 %7423, %v9736_v5   ;;  %5071 = vst.msk [vmem:[#allocation2 + $0x180] sm:$0xff] %vm3802_vm4, %v9734_v10  ;;  %7450 = vpow2.f32 %v2888_v50  ;;  %v9777_v5 = vld [vmem:[#allocation2 + $0x120] sm:$0xff] }
 0x2f2   : > { %v2657_v20 = vpop.xlane.xlu1 %2656  ;;  %v2655_v30 = vpop.xlane.xlu0 %2654  ;;  %11567 = vst [vmem:[#allocation84_spill] sm:$0xff] %v9777_v5 }
 0x2f3   : > { %v9751_v18 = vmax.f32 %v9739_v47, %v2657_v20  ;;  %v9754_v46 = vmax.f32 %v9741_v56, %v2655_v30  ;;  %v9790_v56 = vpop.eup %7444  ;;  %v9803_v47 = vld [vmem:[#allocation2 + $0x1a0] sm:$0xff] }
 0x2f4   : > { %3022 = vperm.xlu1 %7422, %v9573_v34   ;;  %11568 = vst [vmem:[#allocation85_spill] sm:$0xff] %v9790_v56  ;;  %11571 = vst [vmem:[#allocation88_spill] sm:$0xff] %v9803_v47 }
 0x2f5   : > { %5058 = vst.msk [vmem:[#allocation2 + $0x118] sm:$0xff] %vm3802_vm4, %v9751_v18  ;;  %3037 = vperm.xlu0 %7423, %v9620_v54   ;;  %5057 = vst.msk [vmem:[#allocation2 + $0x110] sm:$0xff] %vm3802_vm4, %v9754_v46 }
 0x2f6   : > { %v2689_v30 = vpop.xlane.xlu1 %2688  ;;  %v2687_v35 = vpop.xlane.xlu0 %2686 }
 0x2f7   : > { %v9769_v36 = vmax.f32 %v9757_v11, %v2689_v30  ;;  %v9772_v20 = vmax.f32 %v9759_v2, %v2687_v35  ;;  %v2787_v30 = vsub.f32 %v9521_v14, %v9534_v63  ;;  %v9798_v50 = vpop.eup %7446  ;;  %v9801_v11 = vld [vmem:[#allocation2 + $0x1a8] sm:$0xff]  ;;  %v2800_v63 = vsub.f32 %v9499_v22, %v9511_v15 }
 0x2f8   : > { %3102 = vperm.xlu1 %7422, %v9591_v61   ;;  %11569 = vst [vmem:[#allocation86_spill] sm:$0xff] %v9798_v50  ;;  %11570 = vst [vmem:[#allocation87_spill] sm:$0xff] %v9801_v11 }
 0x2f9   : > { %11566 = vst [vmem:[#allocation83_spill] sm:$0xff] %v9772_v20  ;;  %5074 = vst.msk [vmem:[#allocation2 + $0x198] sm:$0xff] %vm3802_vm4, %v9769_v36  ;;  %3117 = vperm.xlu0 %7423, %v9646_v51  }
 0x2fa   : > { %5073 = vst.msk [vmem:[#allocation2 + $0x190] sm:$0xff] %vm3802_vm4, %v9772_v20  ;;  %v2661_v35 = vpop.xlane.xlu1 %2660  ;;  %v2659_v2 = vpop.xlane.xlu0 %2658  ;;  %v2854_v20 = vmul.f32 1.442695, %v2784_v12 }
 0x2fb   : > { %v9793_v3 = vmax.f32 %v9775_v19, %v2661_v35  ;;  %v9796_v32 = vmax.f32 %v9777_v5, %v2659_v2  ;;  %v2860_v2 = vmul.f32 1.442695, %v2787_v30  ;;  %v2803_v35 = vsub.f32 %v9545_v21, %v9558_v1  ;;  %v9816_v5 = vpop.eup %7448  ;;  %v9829_v30 = vld [vmem:[#allocation2 + $0x130] sm:$0xff]  ;;  %v9847_v1 = vld [vmem:[#allocation2 + $0x1b8] sm:$0xff] }
 0x2fc   : > { %3953 = vperm.xlu1 %7422, %v9790_v56   ;;  %11572 = vst [vmem:[#allocation89_spill] sm:$0xff] %v9816_v5  ;;  %v9824_v14 = vpop.eup %7450  ;;  %11574 = vst [vmem:[#allocation91_spill] sm:$0xff] %v9829_v30  ;;  %7452 = vpow2.f32 %v2854_v20  ;;  %v2886_v21 = vmul.f32 1.442695, %v2800_v63 }
 0x2fd   : > { %5060 = vst.msk [vmem:[#allocation2 + $0x128] sm:$0xff] %vm3802_vm4, %v9793_v3  ;;  %3968 = vperm.xlu0 %7423, %v9798_v50   ;;  %5059 = vst.msk [vmem:[#allocation2 + $0x120] sm:$0xff] %vm3802_vm4, %v9796_v32  ;;  %v9827_v50 = vld [vmem:[#allocation2 + $0x138] sm:$0xff]  ;;  %7454 = vpow2.f32 %v2860_v2  ;;  %v9867_v2 = vld [vmem:[#allocation2 + $0x148] sm:$0xff] }
 0x2fe   : > { %v2693_v56 = vpop.xlane.xlu1 %2692  ;;  %v2691_v12 = vpop.xlane.xlu0 %2690  ;;  %11573 = vst [vmem:[#allocation90_spill] sm:$0xff] %v9824_v14  ;;  %11575 = vst [vmem:[#allocation92_spill] sm:$0xff] %v9847_v1  ;;  %7456 = vpow2.f32 %v2886_v21 }
 0x2ff   : > { %v9819_v22 = vmax.f32 %v9801_v11, %v2693_v56  ;;  %v9822_v15 = vmax.f32 %v9803_v47, %v2691_v12  ;;  %v2892_v56 = vmul.f32 1.442695, %v2803_v35  ;;  %v2789_v12 = vsub.f32 %v9567_v24, %v9576_v55  ;;  %v9869_v11 = vld [vmem:[#allocation2 + $0x140] sm:$0xff] }
 0x300   : > { %4033 = vperm.xlu1 %7422, %v9816_v5   ;;  %v2805_v24 = vsub.f32 %v9585_v9, %v9594_v31  ;;  %11577 = vst [vmem:[#allocation94_spill] sm:$0xff] %v9869_v11  ;;  %v2791_v31 = vsub.f32 %v9605_v25, %v9620_v54  ;;  %v11580_v54 = vsub.f32 %v9516_v7, %v9531_v0 }
 0x301   : > { %5076 = vst.msk [vmem:[#allocation2 + $0x1a8] sm:$0xff] %vm3802_vm4, %v9819_v22  ;;  %4048 = vperm.xlu0 %7423, %v9824_v14   ;;  %5075 = vst.msk [vmem:[#allocation2 + $0x1a0] sm:$0xff] %vm3802_vm4, %v9822_v15  ;;  %v9849_v14 = vld [vmem:[#allocation2 + $0x1b0] sm:$0xff]  ;;  %7458 = vpow2.f32 %v2892_v56 }
 0x302   : > { %v2665_v5 = vpop.xlane.xlu1 %2664  ;;  %v2663_v47 = vpop.xlane.xlu0 %2662  ;;  %11576 = vst [vmem:[#allocation93_spill] sm:$0xff] %v9849_v14  ;;  %v2896_v9 = vmul.f32 1.442695, %v2805_v24  ;;  %v2858_v25 = vmul.f32 1.442695, %v11580_v54 }
 0x303   : > { %v9841_v20 = vmax.f32 %v9827_v50, %v2665_v5  ;;  %v9844_v63 = vmax.f32 %v9829_v30, %v2663_v47  ;;  %v2864_v47 = vmul.f32 1.442695, %v2789_v12  ;;  %v9891_v30 = vld [vmem:[#allocation2 + $0x1c8] sm:$0xff]  ;;  %v2868_v24 = vmul.f32 1.442695, %v2791_v31 }
 0x304   : > { %3032 = vperm.xlu1 %7422, %v9615_v17  }
 0x305   : > { %5062 = vst.msk [vmem:[#allocation2 + $0x138] sm:$0xff] %vm3802_vm4, %v9841_v20  ;;  %3047 = vperm.xlu0 %7423, %v9666_v58   ;;  %5061 = vst.msk [vmem:[#allocation2 + $0x130] sm:$0xff] %vm3802_vm4, %v9844_v63  ;;  %7460 = vpow2.f32 %v2864_v47  ;;  %v9893_v47 = vld [vmem:[#allocation2 + $0x1c0] sm:$0xff] }
 0x306   : > { %v2697_v55 = vpop.xlane.xlu1 %2696  ;;  %v2695_v5 = vpop.xlane.xlu0 %2694  ;;  %7462 = vpow2.f32 %v2896_v9  ;;  %v9918_v9 = vld [vmem:[#allocation2 + $0x150] sm:$0xff] }
 0x307   : > { %v9861_v35 = vmax.f32 %v9847_v1, %v2697_v55  ;;  %v9864_v21 = vmax.f32 %v9849_v14, %v2695_v5  ;;  %v9880_v5 = vpop.eup %7452  ;;  %11583 = vst [vmem:[#allocation99_spill] sm:$0xff] %v9918_v9  ;;  %7464 = vpow2.f32 %v2858_v25 }
 0x308   : > { %3112 = vperm.xlu1 %7422, %v9641_v53   ;;  %11578 = vst [vmem:[#allocation95_spill] sm:$0xff] %v9880_v5  ;;  %v9888_v1 = vpop.eup %7454  ;;  %7466 = vpow2.f32 %v2868_v24  ;;  %v2809_v24 = vsub.f32 %v9675_v28, %v9684_v57  ;;  %v11590_v28 = vsub.f32 %v9578_v33, %v9591_v61 }
 0x309   : > { %5078 = vst.msk [vmem:[#allocation2 + $0x1b8] sm:$0xff] %vm3802_vm4, %v9861_v35  ;;  %3127 = vperm.xlu0 %7423, %v9684_v57   ;;  %5077 = vst.msk [vmem:[#allocation2 + $0x1b0] sm:$0xff] %vm3802_vm4, %v9864_v21 }
 0x30a   : > { %v2669_v12 = vpop.xlane.xlu1 %2668  ;;  %v2667_v55 = vpop.xlane.xlu0 %2666  ;;  %11579 = vst [vmem:[#allocation96_spill] sm:$0xff] %v9888_v1  ;;  %v2894_v57 = vmul.f32 1.442695, %v11590_v28  ;;  %v9985_v28 = vld [vmem:[#allocation2 + $0x1e8] sm:$0xff] }
 0x30b   : > { %v9883_v14 = vmax.f32 %v9867_v2, %v2669_v12  ;;  %v9886_v56 = vmax.f32 %v9869_v11, %v2667_v55  ;;  %v2807_v12 = vsub.f32 %v9631_v8, %v9646_v51  ;;  %v9905_v11 = vpop.eup %7456  ;;  %v11584_v51 = vsub.f32 %v9536_v62, %v9555_v60 }
 0x30c   : > { %3963 = vperm.xlu1 %7422, %v9880_v5   ;;  %11581 = vst [vmem:[#allocation97_spill] sm:$0xff] %v9905_v11  ;;  %v9913_v54 = vpop.eup %7458 }
 0x30d   : > { %5064 = vst.msk [vmem:[#allocation2 + $0x148] sm:$0xff] %vm3802_vm4, %v9883_v14  ;;  %3978 = vperm.xlu0 %7423, %v9888_v1   ;;  %5063 = vst.msk [vmem:[#allocation2 + $0x140] sm:$0xff] %vm3802_vm4, %v9886_v56  ;;  %v9916_v1 = vld [vmem:[#allocation2 + $0x158] sm:$0xff]  ;;  %v2890_v8 = vmul.f32 1.442695, %v11584_v51 }
 0x30e   : > { %v2701_v55 = vpop.xlane.xlu1 %2700  ;;  %v2699_v5 = vpop.xlane.xlu0 %2698  ;;  %11582 = vst [vmem:[#allocation98_spill] sm:$0xff] %v9913_v54  ;;  %v2900_v31 = vmul.f32 1.442695, %v2807_v12  ;;  %v9939_v51 = vld [vmem:[#allocation2 + $0x1d8] sm:$0xff] }
 0x30f   : > { %v9908_v0 = vmax.f32 %v9891_v30, %v2701_v55  ;;  %v9911_v7 = vmax.f32 %v9893_v47, %v2699_v5  ;;  %v2793_v5 = vsub.f32 %v9657_v4, %v9666_v58  ;;  %v9936_v62 = vpop.eup %7460  ;;  %7468 = vpow2.f32 %v2890_v8 }
 0x310   : > { %4043 = vperm.xlu1 %7422, %v9905_v11   ;;  %11585 = vst [vmem:[#allocation100_spill] sm:$0xff] %v9936_v62  ;;  %v11587_v58 = vsub.f32 %v9560_v59, %v9573_v34  ;;  %7470 = vpow2.f32 %v2900_v31  ;;  %v9959_v34 = vpop.eup %7462  ;;  %v2904_v31 = vmul.f32 1.442695, %v2809_v24 }
 0x311   : > { %5080 = vst.msk [vmem:[#allocation2 + $0x1c8] sm:$0xff] %vm3802_vm4, %v9908_v0  ;;  %4058 = vperm.xlu0 %7423, %v9913_v54   ;;  %5079 = vst.msk [vmem:[#allocation2 + $0x1c0] sm:$0xff] %vm3802_vm4, %v9911_v7  ;;  %v9941_v54 = vld [vmem:[#allocation2 + $0x1d0] sm:$0xff] }
 0x312   : > { %v2673_v55 = vpop.xlane.xlu1 %2672  ;;  %v2671_v11 = vpop.xlane.xlu0 %2670  ;;  %11586 = vst [vmem:[#allocation101_spill] sm:$0xff] %v9941_v54  ;;  %v2862_v4 = vmul.f32 1.442695, %v11587_v58  ;;  %11588 = vst [vmem:[#allocation102_spill] sm:$0xff] %v9959_v34  ;;  %v9962_v58 = vld [vmem:[#allocation2 + $0x168] sm:$0xff] }
 0x313   : > { %v9931_v25 = vmax.f32 %v9916_v1, %v2673_v55  ;;  %v9934_v60 = vmax.f32 %v9918_v9, %v2671_v11  ;;  %v2872_v11 = vmul.f32 1.442695, %v2793_v5 }
 0x314   : > { %3042 = vperm.xlu1 %7422, %v9663_v13   ;;  %7472 = vpow2.f32 %v2862_v4 }
 0x315   : > { %5066 = vst.msk [vmem:[#allocation2 + $0x158] sm:$0xff] %vm3802_vm4, %v9931_v25  ;;  %3988 = vperm.xlu0 %7423, %v9936_v62   ;;  %5065 = vst.msk [vmem:[#allocation2 + $0x150] sm:$0xff] %vm3802_vm4, %v9934_v60  ;;  %v9964_v62 = vld [vmem:[#allocation2 + $0x160] sm:$0xff]  ;;  %7474 = vpow2.f32 %v2872_v11  ;;  %v11594_v11 = vsub.f32 %v9596_v27, %v9615_v17  ;;  %v10008_v17 = vld [vmem:[#allocation2 + $0x178] sm:$0xff] }
 0x316   : > { %v2705_v12 = vpop.xlane.xlu1 %2704  ;;  %v2703_v55 = vpop.xlane.xlu0 %2702  ;;  %11589 = vst [vmem:[#allocation103_spill] sm:$0xff] %v9964_v62  ;;  %7476 = vpow2.f32 %v2894_v57  ;;  %11597 = vst [vmem:[#allocation109_spill] sm:$0xff] %v10008_v17 }
 0x317   : > { %v9954_v8 = vmax.f32 %v9939_v51, %v2705_v12  ;;  %v9957_v59 = vmax.f32 %v9941_v54, %v2703_v55  ;;  %v9974_v55 = vpop.eup %7464  ;;  %v2866_v24 = vmul.f32 1.442695, %v11594_v11  ;;  %7478 = vpow2.f32 %v2904_v31  ;;  %v10010_v11 = vld [vmem:[#allocation2 + $0x170] sm:$0xff] }
 0x318   : > { %3122 = vperm.xlu1 %7422, %v9681_v26   ;;  %11591 = vst [vmem:[#allocation104_spill] sm:$0xff] %v9974_v55  ;;  %v9982_v61 = vpop.eup %7466  ;;  %11598 = vst [vmem:[#allocation110_spill] sm:$0xff] %v10010_v11  ;;  %v11599_v31 = vsub.f32 %v9622_v6, %v9641_v53  ;;  %v10031_v6 = vld [vmem:[#allocation2 + $0x1f8] sm:$0xff] }
 0x319   : > { %5082 = vst.msk [vmem:[#allocation2 + $0x1d8] sm:$0xff] %vm3802_vm4, %v9954_v8  ;;  %4068 = vperm.xlu0 %7423, %v9959_v34   ;;  %5081 = vst.msk [vmem:[#allocation2 + $0x1d0] sm:$0xff] %vm3802_vm4, %v9957_v59  ;;  %v9987_v34 = vld [vmem:[#allocation2 + $0x1e0] sm:$0xff]  ;;  %7480 = vpow2.f32 %v2866_v24 }
 0x31a   : > { %v2677_v5 = vpop.xlane.xlu1 %2676  ;;  %v2675_v12 = vpop.xlane.xlu0 %2674  ;;  %11592 = vst [vmem:[#allocation105_spill] sm:$0xff] %v9982_v61  ;;  %11593 = vst [vmem:[#allocation106_spill] sm:$0xff] %v9987_v34 }
 0x31b   : > { %v9977_v4 = vmax.f32 %v9962_v58, %v2677_v5  ;;  %v9980_v33 = vmax.f32 %v9964_v62, %v2675_v12  ;;  %11602 = vst [vmem:[#allocation113_spill] sm:$0xff] %v10031_v6 }
 0x31c   : > { %3973 = vperm.xlu1 %7422, %v9974_v55   ;;  %v9997_v55 = vpop.eup %7468 }
 0x31d   : > { %5068 = vst.msk [vmem:[#allocation2 + $0x168] sm:$0xff] %vm3802_vm4, %v9977_v4  ;;  %3998 = vperm.xlu0 %7423, %v9982_v61   ;;  %5067 = vst.msk [vmem:[#allocation2 + $0x160] sm:$0xff] %vm3802_vm4, %v9980_v33  ;;  %v10005_v27 = vpop.eup %7470  ;;  %v2898_v61 = vmul.f32 1.442695, %v11599_v31  ;;  %v10033_v31 = vld [vmem:[#allocation2 + $0x1f0] sm:$0xff] }
 0x31e   : > { %v2709_v5 = vpop.xlane.xlu1 %2708  ;;  %v2707_v12 = vpop.xlane.xlu0 %2706  ;;  %11595 = vst [vmem:[#allocation107_spill] sm:$0xff] %v9997_v55  ;;  %11596 = vst [vmem:[#allocation108_spill] sm:$0xff] %v10005_v27 }
 0x31f   : > { %v10000_v62 = vmax.f32 %v9985_v28, %v2709_v5  ;;  %v10003_v57 = vmax.f32 %v9987_v34, %v2707_v12  ;;  %11603 = vst [vmem:[#allocation114_spill] sm:$0xff] %v10033_v31  ;;  %7482 = vpow2.f32 %v2898_v61 }
 0x320   : > { %4053 = vperm.xlu1 %7422, %v9997_v55   ;;  %v10020_v55 = vpop.eup %7472 }
 0x321   : > { %5084 = vst.msk [vmem:[#allocation2 + $0x1e8] sm:$0xff] %vm3802_vm4, %v10000_v62  ;;  %4078 = vperm.xlu0 %7423, %v10005_v27   ;;  %5083 = vst.msk [vmem:[#allocation2 + $0x1e0] sm:$0xff] %vm3802_vm4, %v10003_v57  ;;  %v10028_v53 = vpop.eup %7474  ;;  %v11604_v27 = vsub.f32 %v9648_v16, %v9663_v13 }
 0x322   : > { %v2681_v5 = vpop.xlane.xlu1 %2680  ;;  %v2679_v12 = vpop.xlane.xlu0 %2678  ;;  %11600 = vst [vmem:[#allocation111_spill] sm:$0xff] %v10020_v55  ;;  %11601 = vst [vmem:[#allocation112_spill] sm:$0xff] %v10028_v53 }
 0x323   : > { %v10023_v34 = vmax.f32 %v10008_v17, %v2681_v5  ;;  %v10026_v24 = vmax.f32 %v10010_v11, %v2679_v12  ;;  %v2870_v54 = vmul.f32 1.442695, %v11604_v27  ;;  %v11609_v27 = vsub.f32 %v9668_v52, %v9681_v26 }
 0x324   : > { %3983 = vperm.xlu1 %7422, %v10020_v55   ;;  %v10043_v55 = vpop.eup %7476 }
 0x325   : > { %5070 = vst.msk [vmem:[#allocation2 + $0x178] sm:$0xff] %vm3802_vm4, %v10023_v34  ;;  %4008 = vperm.xlu0 %7423, %v10028_v53   ;;  %5069 = vst.msk [vmem:[#allocation2 + $0x170] sm:$0xff] %vm3802_vm4, %v10026_v24  ;;  %v10051_v16 = vpop.eup %7478  ;;  %7484 = vpow2.f32 %v2870_v54  ;;  %v2902_v53 = vmul.f32 1.442695, %v11609_v27  ;;  %v1541_v27 = vld [vmem:[%s8455_s26 + $0x180] sm:$0xff] }
 0x326   : > { %v2713_v5 = vpop.xlane.xlu1 %2712  ;;  %v2711_v12 = vpop.xlane.xlu0 %2710  ;;  %11605 = vst [vmem:[#allocation115_spill] sm:$0xff] %v10043_v55  ;;  %11608 = vst [vmem:[#allocation118_spill] sm:$0xff] %v10051_v16 }
 0x327   : > { %v10046_v61 = vmax.f32 %v10031_v6, %v2713_v5  ;;  %v10049_v13 = vmax.f32 %v10033_v31, %v2711_v12  ;;  %v1525_v5 = vld [vmem:[%s8455_s26 + $0x100] sm:$0xff]  ;;  %v1526_v12 = vld [vmem:[%s8455_s26 + $0x108] sm:$0xff]  ;;  %v10064_v31 = vpop.eup %7480  ;;  %7486 = vpow2.f32 %v2902_v53 }
 0x328   : > { %4063 = vperm.xlu1 %7422, %v10043_v55   ;;  %11610 = vst [vmem:[#allocation119_spill] sm:$0xff] %v10064_v31  ;;  %v10066_v54 = vpack.c.bf16 %v1526_v12, %v1525_v5 }
 0x329   : > { %11606 = vst [vmem:[#allocation116_spill] sm:$0xff] %v10046_v61  ;;  %11607 = vst [vmem:[#allocation117_spill] sm:$0xff] %v10049_v13  ;;  %4088 = vperm.xlu0 %7423, %v10051_v16   ;;  %v1542_v16 = vld [vmem:[%s8455_s26 + $0x188] sm:$0xff]  ;;  %v10074_v6 = vpop.eup %7482 }
 0x32a   : > { %5086 = vst.msk [vmem:[#allocation2 + $0x1f8] sm:$0xff] %vm3802_vm4, %v10046_v61  ;;  %5085 = vst.msk [vmem:[#allocation2 + $0x1f0] sm:$0xff] %vm3802_vm4, %v10049_v13  ;;  %7267 = vmatprep.subr.bf16.mxu0 %v10066_v54  ;;  %v10076_v11 = vpack.c.bf16 %v1542_v16, %v1541_v27 }
 0x32b   : > { %v2978_v55 = vpop.permute.xlu1 %2977  ;;  %11611 = vst [vmem:[#allocation120_spill] sm:$0xff] %v10074_v6 }
 0x32c   : > { %3993 = vperm.xlu1 %7422, %v10064_v31   ;;  %v3291_v52 = vsub.f32 %v9170_v37, %v2978_v55  ;;  %7299 = vmatprep.subr.bf16.mxu1 %v10076_v11 }
 0x32d   : > { %3137 = vperm.xlu0 %7423, %v9705_v49  }
 0x32e   : > { %v3058_v26 = vpop.permute.xlu0 %3057  ;;  %v3356_v53 = vmul.f32 1.442695, %v3291_v52 }
 0x32f   : > { %v3307_v5 = vsub.f32 %v9172_v38, %v3058_v26  ;;  %v10082_v31 = vpop.eup %7484 }
 0x330   : > { %4073 = vperm.xlu1 %7422, %v10074_v6   ;;  %11612 = vst [vmem:[#allocation121_spill] sm:$0xff] %v10082_v31  ;;  %7488 = vpow2.f32 %v3356_v53  ;;  %v11620_v6 = vld [vmem:[#allocation11_spill] sm:$0xff] }
 0x331   : > { %3217 = vperm.xlu0 %7423, %v9731_v23   ;;  %v3388_v16 = vmul.f32 1.442695, %v3307_v5  ;;  %v10088_v26 = vpop.eup %7486 }
 0x332   : > { %v2973_v12 = vpop.permute.xlu0 %2972  ;;  %11613 = vst [vmem:[#allocation122_spill] sm:$0xff] %v10088_v26 }
 0x333   : > { %v3290_v37 = vsub.f32 %v9175_v39, %v2973_v12  ;;  %v3053_v55 = vpop.permute.xlu1 %3052 }
 0x334   : > { %v3306_v17 = vsub.f32 %v9178_v40, %v3053_v55  ;;  %4003 = vperm.xlu1 %7422, %v10082_v31   ;;  %v1532_v31 = vld [vmem:[%s8455_s26 + $0x138] sm:$0xff] }
 0x335   : > { %v3354_v27 = vmul.f32 1.442695, %v3290_v37  ;;  %3147 = vperm.xlu0 %7423, %v9751_v18   ;;  %v11614_v37 = vsub.f32 %v9691_v29, %v9705_v49 }
 0x336   : > { %v3386_v38 = vmul.f32 1.442695, %v3306_v17  ;;  %v3068_v40 = vpop.permute.xlu0 %3067 }
 0x337   : > { %7490 = vpow2.f32 %v3354_v27  ;;  %v2988_v52 = vpop.permute.xlu1 %2987  ;;  %v3309_v53 = vsub.f32 %v9185_v43, %v3068_v40  ;;  %v2908_v55 = vmul.f32 1.442695, %v11614_v37  ;;  %v1527_v27 = vld [vmem:[%s8455_s26 + $0x110] sm:$0xff] }
 0x338   : > { %7492 = vpow2.f32 %v3386_v38  ;;  %4083 = vperm.xlu1 %7422, %v10088_v26   ;;  %v3293_v39 = vsub.f32 %v9180_v41, %v2988_v52  ;;  %v1528_v38 = vld [vmem:[%s8455_s26 + $0x118] sm:$0xff]  ;;  %v1543_v43 = vld [vmem:[%s8455_s26 + $0x190] sm:$0xff] }
 0x339   : > { %7494 = vpow2.f32 %v3388_v16  ;;  %3227 = vperm.xlu0 %7423, %v9769_v36   ;;  %v1531_v26 = vld [vmem:[%s8455_s26 + $0x130] sm:$0xff] }
 0x33a   : > { %v3360_v12 = vmul.f32 1.442695, %v3293_v39  ;;  %v10102_v52 = vpop.eup %7488  ;;  %v1544_v39 = vld [vmem:[%s8455_s26 + $0x198] sm:$0xff] }
 0x33b   : > { %v2983_v5 = vpop.permute.xlu1 %2982  ;;  %11615 = vst [vmem:[#allocation123_spill] sm:$0xff] %v10102_v52 }
 0x33c   : > { %v3292_v17 = vsub.f32 %v9183_v42, %v2983_v5  ;;  %3132 = vperm.xlu1 %7422, %v9708_v48   ;;  %v3392_v5 = vmul.f32 1.442695, %v3309_v53  ;;  %v1529_v53 = vld [vmem:[%s8455_s26 + $0x120] sm:$0xff] }
 0x33d   : > { %3157 = vperm.xlu0 %7423, %v9793_v3  }
 0x33e   : > { %v3358_v41 = vmul.f32 1.442695, %v3292_v17 }
 0x33f   : > { %v3063_v16 = vpop.permute.xlu1 %3062 }
 0x340   : > { %7496 = vpow2.f32 %v3358_v41  ;;  %v3308_v42 = vsub.f32 %v9188_v44, %v3063_v16  ;;  %3212 = vperm.xlu1 %7422, %v9734_v10   ;;  %v7270_v44 = vpack.c.bf16 %v1528_v38, %v1527_v27  ;;  %v7302_v41 = vpack.c.bf16 %v1544_v39, %v1543_v43  ;;  %v3078_v16 = vpop.permute.xlu0 %3077  ;;  %v1546_v27 = vld [vmem:[%s8455_s26 + $0x1a8] sm:$0xff] }
 0x341   : > { %v10108_v40 = vpop.eup %7490  ;;  %7498 = vpow2.f32 %v3360_v12  ;;  %3237 = vperm.xlu0 %7423, %v9819_v22   ;;  %v1530_v12 = vld [vmem:[%s8455_s26 + $0x128] sm:$0xff] }
 0x342   : > { %11616 = vst [vmem:[#allocation124_spill] sm:$0xff] %v10108_v40  ;;  %v10111_v49 = vpop.eup %7492  ;;  %7500 = vpow2.f32 %v2908_v55  ;;  %v3390_v29 = vmul.f32 1.442695, %v3308_v42  ;;  %6818 = vmatprep.mubr.f32.mxu0 %v10108_v40  ;;  %v1545_v55 = vld [vmem:[%s8455_s26 + $0x1a0] sm:$0xff]  ;;  %v7274_v42 = vpack.c.bf16 %v1530_v12, %v1529_v53  ;;  %v11619_v43 = vld [vmem:[#allocation72_spill] sm:$0xff] }
 0x343   : > { %11617 = vst [vmem:[#allocation125_spill] sm:$0xff] %v10111_v49  ;;  %v10114_v17 = vpop.eup %7494  ;;  %6874 = vmatprep.mubr.f32.mxu1 %v10111_v49  ;;  %v2998_v37 = vpop.permute.xlu1 %2997  ;;  %6819 = vmatmul.mubr.f32.vlgmr.msra.gmra.mrb[32].mxu0 %v10102_v52  ;;  %v2810_v39 = vsub.f32 %v11619_v43, %v9708_v48  ;;  %v11622_v49 = vld [vmem:[#allocation12_spill] sm:$0xff]  ;;  %v11623_v12 = vld [vmem:[#allocation79_spill] sm:$0xff]  ;;  %v7278_v43 = vpack.c.bf16 %v1532_v31, %v1531_v26 }
 0x344   : > { %11618 = vst [vmem:[#allocation126_spill] sm:$0xff] %v10114_v17  ;;  %7502 = vpow2.f32 %v3390_v29  ;;  %3142 = vperm.xlu1 %7422, %v9754_v46   ;;  %6875 = vmatmul.mubr.f32.vlgmr.msra.gmra.mrb[32].mxu1 %v10114_v17  ;;  %v3295_v38 = vsub.f32 %v9190_v45, %v2998_v37  ;;  %v11621_v37 = vld [vmem:[#allocation83_spill] sm:$0xff]  ;;  %v1547_v17 = vld [vmem:[%s8455_s26 + $0x1b0] sm:$0xff]  ;;  %v1550_v26 = vld [vmem:[%s8455_s26 + $0x1c8] sm:$0xff] }
 0x345   : > { %7504 = vpow2.f32 %v3392_v5  ;;  %3167 = vperm.xlu0 %7423, %v9841_v20   ;;  %7269 = vmatpush3.bf16.msra.mxu0 %v10066_v54  ;;  %v7306_v5 = vpack.c.bf16 %v1546_v27, %v1545_v55  ;;  %v1548_v54 = vld [vmem:[%s8455_s26 + $0x1b8] sm:$0xff]  ;;  %v11624_v55 = vsub.f32 %v11623_v12, %v9751_v18  ;;  %v11627_v18 = vld [vmem:[#allocation13_spill] sm:$0xff]  ;;  %v1549_v31 = vld [vmem:[%s8455_s26 + $0x1c0] sm:$0xff] }
 0x346   : > { %7271 = vmatprep.subr.bf16.mxu0 %v7270_v44  ;;  %7301 = vmatpush3.bf16.msra.mxu1 %v10076_v11  ;;  %v3311_v11 = vsub.f32 %v11622_v49, %v3078_v16  ;;  %v3364_v53 = vmul.f32 1.442695, %v3295_v38  ;;  %v2906_v49 = vmul.f32 1.442695, %v2810_v39  ;;  %v1534_v38 = vld [vmem:[%s8455_s26 + $0x148] sm:$0xff]  ;;  %v7310_v52 = vpack.c.bf16 %v1548_v54, %v1547_v17 }
 0x347   : > { %v2993_v29 = vpop.permute.xlu1 %2992  ;;  %7303 = vmatprep.subr.bf16.mxu1 %v7302_v41 }
 0x348   : > { %v3294_v40 = vsub.f32 %v11620_v6, %v2993_v29  ;;  %v10133_v45 = vpop.permute.xlu0 %3087  ;;  %3222 = vperm.xlu1 %7422, %v11621_v37   ;;  %v2912_v6 = vmul.f32 1.442695, %v11624_v55 }
 0x349   : > { %3247 = vperm.xlu0 %7423, %v9861_v35   ;;  %7273 = vmatpush3.bf16.msra.mxu0 %v7270_v44  ;;  %v1533_v44 = vld [vmem:[%s8455_s26 + $0x140] sm:$0xff] }
 0x34a   : > { %v10140_v48 = vpop.eup %7496  ;;  %v3362_v27 = vmul.f32 1.442695, %v3294_v40  ;;  %7275 = vmatprep.subr.bf16.mxu0 %v7274_v42  ;;  %7305 = vmatpush3.bf16.msra.mxu1 %v7302_v41  ;;  %v3396_v41 = vmul.f32 1.442695, %v3311_v11  ;;  %v7282_v54 = vpack.c.bf16 %v1534_v38, %v1533_v44  ;;  %v1535_v11 = vld [vmem:[%s8455_s26 + $0x150] sm:$0xff] }
 0x34b   : > { %v10145_v29 = vpop.eup %7498  ;;  %v3073_v16 = vpop.permute.xlu1 %3072  ;;  %6821 = vmatprep.mubr.f32.mxu0 %v10140_v48  ;;  %7307 = vmatprep.subr.bf16.mxu1 %v7306_v5 }
 0x34c   : > { %11625 = vst [vmem:[#allocation72_spill] sm:$0xff] %v10145_v29  ;;  %v10150_v9 = vpop.eup %7500  ;;  %7506 = vpow2.f32 %v3362_v27  ;;  %v3310_v40 = vsub.f32 %v11627_v18, %v3073_v16  ;;  %v10153_v12 = vpop.permute.xlu0 %4018  ;;  %3152 = vperm.xlu1 %7422, %v9796_v32   ;;  %6822 = vmatmul.mubr.f32.gmra.mrb[34].mxu0 %v10145_v29  ;;  %v7314_v16 = vpack.c.bf16 %v1550_v26, %v1549_v31  ;;  %v11631_v18 = vld [vmem:[#allocation80_spill] sm:$0xff]  ;;  %v1537_v26 = vld [vmem:[%s8455_s26 + $0x160] sm:$0xff] }
 0x34d   : > { %11626 = vst [vmem:[#allocation11_spill] sm:$0xff] %v10150_v9  ;;  %11628 = vst [vmem:[#allocation83_spill] sm:$0xff] %v10153_v12  ;;  %7508 = vpow2.f32 %v3364_v53  ;;  %4098 = vperm.xlu0 %7423, %v10150_v9   ;;  %7277 = vmatpush3.bf16.msra.mxu0 %v7274_v42  ;;  %v1536_v53 = vld [vmem:[%s8455_s26 + $0x158] sm:$0xff]  ;;  %v11632_v12 = vld [vmem:[#allocation15_spill] sm:$0xff] }
 0x34e   : > { %v10160_v17 = vpop.eup %7502  ;;  %7510 = vpow2.f32 %v2912_v6  ;;  %v3394_v39 = vmul.f32 1.442695, %v3310_v40  ;;  %7279 = vmatprep.subr.bf16.mxu0 %v7278_v43  ;;  %7309 = vmatpush3.bf16.msra.mxu1 %v7306_v5  ;;  %v1551_v5 = vld [vmem:[%s8455_s26 + $0x1d0] sm:$0xff]  ;;  %v1552_v6 = vld [vmem:[%s8455_s26 + $0x1d8] sm:$0xff]  ;;  %v7286_v38 = vpack.c.bf16 %v1536_v53, %v1535_v11  ;;  %v2812_v40 = vsub.f32 %v11631_v18, %v9754_v46 }
 0x34f   : > { %v10162_v55 = vpop.eup %7504  ;;  %7512 = vpow2.f32 %v2906_v49  ;;  %v3008_v27 = vpop.permute.xlu1 %3007  ;;  %6877 = vmatprep.mubr.f32.mxu1 %v10160_v17  ;;  %7311 = vmatprep.subr.bf16.mxu1 %v7310_v52  ;;  %v11630_v49 = vld [vmem:[#allocation14_spill] sm:$0xff]  ;;  %v7318_v9 = vpack.c.bf16 %v1552_v6, %v1551_v5 }
 0x350   : > { %11629 = vst [vmem:[#allocation12_spill] sm:$0xff] %v10162_v55  ;;  %7514 = vpow2.f32 %v3394_v39  ;;  %v10167_v42 = vpop.permute.xlu0 %3017  ;;  %3232 = vperm.xlu1 %7422, %v9822_v15   ;;  %6878 = vmatmul.mubr.f32.gmra.mrb[34].mxu1 %v10162_v55  ;;  %v3297_v44 = vsub.f32 %v11630_v49, %v3008_v27  ;;  %v1538_v39 = vld [vmem:[%s8455_s26 + $0x168] sm:$0xff]  ;;  %v1553_v27 = vld [vmem:[%s8455_s26 + $0x1e0] sm:$0xff]  ;;  %v2910_v49 = vmul.f32 1.442695, %v2812_v40  ;;  %v1556_v40 = vld [vmem:[%s8455_s26 + $0x1f8] sm:$0xff] }
 0x351   : > { %7516 = vpow2.f32 %v3396_v41  ;;  %3177 = vperm.xlu0 %7423, %v9883_v14   ;;  %7281 = vmatpush3.bf16.msra.mxu0 %v7278_v43  ;;  %v1554_v43 = vld [vmem:[%s8455_s26 + $0x1e8] sm:$0xff] }
 0x352   : > { %7283 = vmatprep.subr.bf16.mxu0 %v7282_v54  ;;  %7313 = vmatpush3.bf16.msra.mxu1 %v7310_v52  ;;  %v11633_v52 = vld [vmem:[#allocation16_spill] sm:$0xff]  ;;  %v3368_v53 = vmul.f32 1.442695, %v3297_v44  ;;  %v1540_v44 = vld [vmem:[%s8455_s26 + $0x178] sm:$0xff] }
 0x353   : > { %v3003_v31 = vpop.permute.xlu1 %3002  ;;  %7315 = vmatprep.subr.bf16.mxu1 %v7314_v16  ;;  %v3313_v11 = vsub.f32 %v11633_v52, %v10133_v45  ;;  %v1539_v45 = vld [vmem:[%s8455_s26 + $0x170] sm:$0xff] }
 0x354   : > { %v3296_v41 = vsub.f32 %v11632_v12, %v3003_v31  ;;  %v10180_v55 = vpop.permute.xlu0 %3097  ;;  %3162 = vperm.xlu1 %7422, %v9844_v63   ;;  %v7290_v12 = vpack.c.bf16 %v1538_v39, %v1537_v26  ;;  %v7322_v31 = vpack.c.bf16 %v1554_v43, %v1553_v27 }
 0x355   : > { %3257 = vperm.xlu0 %7423, %v9908_v0   ;;  %7285 = vmatpush3.bf16.msra.mxu0 %v7282_v54  ;;  %v11635_v54 = vld [vmem:[#allocation17_spill] sm:$0xff]  ;;  %v3400_v39 = vmul.f32 1.442695, %v3313_v11 }
 0x356   : > { %v10188_v46 = vpop.eup %7506  ;;  %v3366_v5 = vmul.f32 1.442695, %v3296_v41  ;;  %7287 = vmatprep.subr.bf16.mxu0 %v7286_v38  ;;  %7317 = vmatpush3.bf16.msra.mxu1 %v7314_v16  ;;  %v1555_v16 = vld [vmem:[%s8455_s26 + $0x1f0] sm:$0xff] }
 0x357   : > { %v10190_v6 = vpop.eup %7508  ;;  %v3083_v18 = vpop.permute.xlu1 %3082  ;;  %6824 = vmatprep.mubr.f32.mxu0 %v10188_v46  ;;  %7319 = vmatprep.subr.bf16.mxu1 %v7318_v9 }
 0x358   : > { %v10195_v52 = vpop.eup %7510  ;;  %7518 = vpow2.f32 %v3366_v5  ;;  %v3312_v41 = vsub.f32 %v11635_v54, %v3083_v18  ;;  %v10198_v29 = vpop.permute.xlu0 %3933  ;;  %3242 = vperm.xlu1 %7422, %v9864_v21   ;;  %6825 = vmatmul.mubr.f32.gmra.mrb[36].mxu0 %v10190_v6  ;;  %v7294_v5 = vpack.c.bf16 %v1540_v44, %v1539_v45 }
 0x359   : > { %11634 = vst [vmem:[#allocation79_spill] sm:$0xff] %v10195_v52  ;;  %11636 = vst [vmem:[#allocation13_spill] sm:$0xff] %v10198_v29  ;;  %v10204_v26 = vpop.eup %7512  ;;  %7520 = vpow2.f32 %v3368_v53  ;;  %4108 = vperm.xlu0 %7423, %v10195_v52   ;;  %7289 = vmatpush3.bf16.msra.mxu0 %v7286_v38  ;;  %v7326_v29 = vpack.c.bf16 %v1556_v40, %v1555_v16  ;;  %v11639_v53 = vld [vmem:[#allocation18_spill] sm:$0xff] }
 0x35a   : > { %11637 = vst [vmem:[#allocation14_spill] sm:$0xff] %v10204_v26  ;;  %v10207_v27 = vpop.eup %7514  ;;  %v3398_v43 = vmul.f32 1.442695, %v3312_v41  ;;  %7291 = vmatprep.subr.bf16.mxu0 %v7290_v12  ;;  %7321 = vmatpush3.bf16.msra.mxu1 %v7318_v9  ;;  %7522 = vpow2.f32 %v2910_v49  ;;  %v3299_v49 = vsub.f32 %v11639_v53, %v10167_v42 }
 0x35b   : > { %v10209_v18 = vpop.eup %7516  ;;  %v10211_v54 = vpop.permute.xlu1 %3938  ;;  %6880 = vmatprep.mubr.f32.mxu1 %v10207_v27  ;;  %7323 = vmatprep.subr.bf16.mxu1 %v7322_v31 }
 0x35c   : > { %7524 = vpow2.f32 %v3398_v43  ;;  %v10214_v11 = vpop.permute.xlu0 %3948  ;;  %4093 = vperm.xlu1 %7422, %v10204_v26   ;;  %6881 = vmatmul.mubr.f32.gmra.mrb[36].mxu1 %v10209_v18  ;;  %v3372_v42 = vmul.f32 1.442695, %v3299_v49  ;;  %v11644_v26 = vld [vmem:[#allocation21_spill] sm:$0xff] }
 0x35d   : > { %7526 = vpow2.f32 %v3400_v39  ;;  %3187 = vperm.xlu0 %7423, %v9931_v25   ;;  %7293 = vmatpush3.bf16.msra.mxu0 %v7290_v12  ;;  %v11642_v39 = vld [vmem:[#allocation20_spill] sm:$0xff] }
 0x35e   : > { %7295 = vmatprep.subr.bf16.mxu0 %v7294_v5  ;;  %7325 = vmatpush3.bf16.msra.mxu1 %v7322_v31  ;;  %v11640_v31 = vld [vmem:[#allocation19_spill] sm:$0xff]  ;;  %v3315_v43 = vsub.f32 %v11642_v39, %v10180_v55 }
 0x35f   : > { %v10219_v9 = vpop.permute.xlu1 %4013  ;;  %7327 = vmatprep.subr.bf16.mxu1 %v7326_v29 }
 0x360   : > { %v10221_v38 = vpop.permute.xlu0 %4028  ;;  %3172 = vperm.xlu1 %7422, %v9886_v56   ;;  %v3404_v55 = vmul.f32 1.442695, %v3315_v43  ;;  %v11649_v43 = vld [vmem:[#allocation84_spill] sm:$0xff] }
 0x361   : > { %11638 = vst [vmem:[#allocation80_spill] sm:$0xff] %v10221_v38  ;;  %3267 = vperm.xlu0 %7423, %v9954_v8   ;;  %7297 = vmatpush3.bf16.msra.mxu0 %v7294_v5  ;;  %v11643_v5 = vsub.f32 %v9775_v19, %v9793_v3  ;;  %v11645_v19 = vsub.f32 %v9827_v50, %v9841_v20 }
 0x362   : > { %v10227_v45 = vpop.eup %7518  ;;  %7329 = vmatpush3.bf16.msra.mxu1 %v7326_v29  ;;  %v2814_v50 = vsub.f32 %v11649_v43, %v9796_v32 }
 0x363   : > { %v10229_v44 = vpop.eup %7520  ;;  %v3013_v12 = vpop.permute.xlu1 %3012  ;;  %6827 = vmatprep.mubr.f32.mxu0 %v10227_v45  ;;  %v2916_v53 = vmul.f32 1.442695, %v11643_v5  ;;  %v2920_v3 = vmul.f32 1.442695, %v11645_v19  ;;  %v11652_v19 = vld [vmem:[#allocation81_spill] sm:$0xff] }
 0x364   : > { %v3298_v41 = vsub.f32 %v11640_v31, %v3013_v12  ;;  %v3028_v16 = vpop.permute.xlu0 %3027  ;;  %3252 = vperm.xlu1 %7422, %v9911_v7   ;;  %6828 = vmatmul.mubr.f32.gmra.mrb[38].mxu0 %v10229_v44  ;;  %v10235_v40 = vpop.eup %7522  ;;  %v2914_v32 = vmul.f32 1.442695, %v2814_v50 }
 0x365   : > { %11641 = vst [vmem:[#allocation15_spill] sm:$0xff] %v10235_v40  ;;  %3197 = vperm.xlu0 %7423, %v9977_v4  }
 0x366   : > { %v10240_v29 = vpop.eup %7524  ;;  %v3370_v12 = vmul.f32 1.442695, %v3298_v41 }
 0x367   : > { %v10245_v31 = vpop.eup %7526  ;;  %v3093_v52 = vpop.permute.xlu1 %3092  ;;  %6883 = vmatprep.mubr.f32.mxu1 %v10240_v29 }
 0x368   : > { %7528 = vpow2.f32 %v3370_v12  ;;  %v3314_v49 = vsub.f32 %v11644_v26, %v3093_v52  ;;  %v3108_v38 = vpop.permute.xlu0 %3107  ;;  %4103 = vperm.xlu1 %7422, %v10235_v40   ;;  %6884 = vmatmul.mubr.f32.gmra.mrb[38].mxu1 %v10245_v31  ;;  %v11647_v52 = vld [vmem:[#allocation75_spill] sm:$0xff]  ;;  %v11651_v12 = vld [vmem:[#allocation22_spill] sm:$0xff] }
 0x369   : > { %7530 = vpow2.f32 %v3372_v42  ;;  %3277 = vperm.xlu0 %7423, %v10000_v62   ;;  %v11648_v26 = vsub.f32 %v11647_v52, %v9731_v23  ;;  %v11653_v23 = vsub.f32 %v11652_v19, %v9769_v36  ;;  %v11654_v52 = vld [vmem:[#allocation91_spill] sm:$0xff] }
 0x36a   : > { %7532 = vpow2.f32 %v2916_v53  ;;  %v3402_v41 = vmul.f32 1.442695, %v3314_v49  ;;  %v3301_v49 = vsub.f32 %v11651_v12, %v3028_v16  ;;  %v11656_v16 = vld [vmem:[#allocation23_spill] sm:$0xff] }
 0x36b   : > { %v10255_v39 = vpop.permute.xlu1 %3943  ;;  %v2940_v42 = vmul.f32 1.442695, %v11648_v26  ;;  %v2816_v26 = vsub.f32 %v11654_v52, %v9844_v63  ;;  %v11658_v63 = vld [vmem:[#allocation87_spill] sm:$0xff] }
 0x36c   : > { %7534 = vpow2.f32 %v3402_v41  ;;  %v10257_v5 = vpop.permute.xlu0 %3958  ;;  %3182 = vperm.xlu1 %7422, %v9934_v60   ;;  %v3376_v36 = vmul.f32 1.442695, %v3301_v49 }
 0x36d   : > { %11646 = vst [vmem:[#allocation16_spill] sm:$0xff] %v10257_v5  ;;  %7536 = vpow2.f32 %v3404_v55  ;;  %3207 = vperm.xlu0 %7423, %v10023_v34  }
 0x36e   : > { %7538 = vpow2.f32 %v2920_v3  ;;  %v2944_v3 = vmul.f32 1.442695, %v11653_v23  ;;  %v11659_v23 = vsub.f32 %v11658_v63, %v9819_v22  ;;  %v11662_v22 = vld [vmem:[#allocation76_spill] sm:$0xff] }
 0x36f   : > { %v10266_v20 = vpop.permute.xlu1 %4023  ;;  %7540 = vpow2.f32 %v2940_v42  ;;  %v11657_v42 = vld [vmem:[#allocation24_spill] sm:$0xff] }
 0x370   : > { %v10268_v53 = vpop.permute.xlu0 %4038  ;;  %3262 = vperm.xlu1 %7422, %v9957_v59   ;;  %v3317_v19 = vsub.f32 %v11657_v42, %v3108_v38  ;;  %7542 = vpow2.f32 %v2944_v3  ;;  %v2948_v52 = vmul.f32 1.442695, %v11659_v23  ;;  %v11661_v38 = vld [vmem:[#allocation25_spill] sm:$0xff]  ;;  %v2826_v3 = vsub.f32 %v11662_v22, %v9734_v10 }
 0x371   : > { %11650 = vst [vmem:[#allocation17_spill] sm:$0xff] %v10268_v53  ;;  %3287 = vperm.xlu0 %7423, %v10046_v61   ;;  %7544 = vpow2.f32 %v2914_v32 }
 0x372   : > { %v10273_v55 = vpop.eup %7528  ;;  %v3408_v32 = vmul.f32 1.442695, %v3317_v19  ;;  %v11666_v19 = vld [vmem:[#allocation82_spill] sm:$0xff] }
 0x373   : > { %v10278_v41 = vpop.eup %7530  ;;  %v3023_v43 = vpop.permute.xlu1 %3022  ;;  %6830 = vmatprep.mubr.f32.mxu0 %v10273_v55 }
 0x374   : > { %v10283_v40 = vpop.eup %7532  ;;  %v3300_v12 = vsub.f32 %v11656_v16, %v3023_v43  ;;  %v10286_v61 = vpop.permute.xlu0 %3037  ;;  %3192 = vperm.xlu1 %7422, %v9980_v33   ;;  %6831 = vmatmul.mubr.f32.gmra.mrb[40].mxu0 %v10278_v41  ;;  %v2918_v16 = vmul.f32 1.442695, %v2816_v26  ;;  %v11663_v26 = vld [vmem:[#allocation92_spill] sm:$0xff] }
 0x375   : > { %11655 = vst [vmem:[#allocation18_spill] sm:$0xff] %v10283_v40  ;;  %4118 = vperm.xlu0 %7423, %v10283_v40  }
 0x376   : > { %v10292_v50 = vpop.eup %7534  ;;  %v3374_v53 = vmul.f32 1.442695, %v3300_v12  ;;  %v11664_v12 = vsub.f32 %v11663_v26, %v9861_v35  ;;  %v11667_v35 = vld [vmem:[#allocation88_spill] sm:$0xff] }
 0x377   : > { %v10297_v43 = vpop.eup %7536  ;;  %v3103_v5 = vpop.permute.xlu1 %3102  ;;  %6886 = vmatprep.mubr.f32.mxu1 %v10292_v50 }
 0x378   : > { %v10300_v49 = vpop.eup %7538  ;;  %7546 = vpow2.f32 %v3374_v53  ;;  %v3316_v42 = vsub.f32 %v11661_v38, %v3103_v5  ;;  %v10303_v40 = vpop.permute.xlu0 %3117  ;;  %3272 = vperm.xlu1 %7422, %v10003_v57   ;;  %6887 = vmatmul.mubr.f32.gmra.mrb[40].mxu1 %v10297_v43  ;;  %v2952_v53 = vmul.f32 1.442695, %v11664_v12  ;;  %v2819_v5 = vsub.f32 %v9867_v2, %v9883_v14 }
 0x379   : > { %11660 = vst [vmem:[#allocation19_spill] sm:$0xff] %v10300_v49  ;;  %7548 = vpow2.f32 %v3376_v36  ;;  %4128 = vperm.xlu0 %7423, %v10300_v49   ;;  %v10317_v38 = vpop.eup %7540  ;;  %v2938_v36 = vmul.f32 1.442695, %v2826_v3  ;;  %v2835_v2 = vsub.f32 %v9891_v30, %v9908_v0  ;;  %v2821_v0 = vsub.f32 %v9916_v1, %v9931_v25 }
 0x37a   : > { %7550 = vpow2.f32 %v2948_v52  ;;  %v3406_v63 = vmul.f32 1.442695, %v3316_v42  ;;  %11665 = vst [vmem:[#allocation20_spill] sm:$0xff] %v10317_v38  ;;  %v2828_v52 = vsub.f32 %v11666_v19, %v11621_v37  ;;  %v2924_v14 = vmul.f32 1.442695, %v2819_v5  ;;  %v10331_v22 = vpop.eup %7542 }
 0x37b   : > { %7552 = vpow2.f32 %v2918_v16  ;;  %v10315_v23 = vpop.permute.xlu1 %3953  ;;  %v2830_v16 = vsub.f32 %v11667_v35, %v9822_v15  ;;  %11668 = vst [vmem:[#allocation21_spill] sm:$0xff] %v10331_v22  ;;  %v10336_v37 = vpop.eup %7544  ;;  %v2956_v15 = vmul.f32 1.442695, %v2835_v2 }
 0x37c   : > { %7554 = vpow2.f32 %v3406_v63  ;;  %v10319_v10 = vpop.permute.xlu0 %3968  ;;  %3202 = vperm.xlu1 %7422, %v10026_v24   ;;  %11669 = vst [vmem:[#allocation75_spill] sm:$0xff] %v10336_v37  ;;  %v2942_v3 = vmul.f32 1.442695, %v2828_v52  ;;  %v11671_v63 = vld [vmem:[#allocation93_spill] sm:$0xff] }
 0x37d   : > { %7556 = vpow2.f32 %v3408_v32  ;;  %4178 = vperm.xlu0 %7423, %v10317_v38   ;;  %v11670_v32 = vld [vmem:[#allocation26_spill] sm:$0xff]  ;;  %v2946_v5 = vmul.f32 1.442695, %v2830_v16  ;;  %v2832_v19 = vsub.f32 %v11671_v63, %v9864_v21  ;;  %v2928_v16 = vmul.f32 1.442695, %v2821_v0 }
 0x37e   : > { %7558 = vpow2.f32 %v2952_v53  ;;  %v3303_v12 = vsub.f32 %v11670_v32, %v10286_v61  ;;  %v11673_v61 = vld [vmem:[#allocation27_spill] sm:$0xff]  ;;  %v2837_v63 = vsub.f32 %v9939_v51, %v9954_v8  ;;  %v11678_v51 = vld [vmem:[#allocation94_spill] sm:$0xff] }
 0x37f   : > { %v10329_v42 = vpop.permute.xlu1 %4033  ;;  %7560 = vpow2.f32 %v2938_v36  ;;  %v2950_v49 = vmul.f32 1.442695, %v2832_v19  ;;  %v2818_v8 = vsub.f32 %v11678_v51, %v9886_v56 }
 0x380   : > { %v10333_v26 = vpop.permute.xlu0 %4048  ;;  %3282 = vperm.xlu1 %7422, %v10049_v13   ;;  %7562 = vpow2.f32 %v2924_v14  ;;  %v3380_v25 = vmul.f32 1.442695, %v3303_v12  ;;  %v11675_v14 = vld [vmem:[#allocation28_spill] sm:$0xff]  ;;  %v2960_v0 = vmul.f32 1.442695, %v2837_v63 }
 0x381   : > { %4188 = vperm.xlu0 %7423, %v10331_v22   ;;  %7564 = vpow2.f32 %v2942_v3  ;;  %v3319_v21 = vsub.f32 %v11675_v14, %v10303_v40  ;;  %v11677_v40 = vld [vmem:[#allocation29_spill] sm:$0xff]  ;;  %v2922_v56 = vmul.f32 1.442695, %v2818_v8  ;;  %v11685_v8 = vld [vmem:[#allocation30_spill] sm:$0xff] }
 0x382   : > { %v10341_v30 = vpop.eup %7546  ;;  %7566 = vpow2.f32 %v2956_v15 }
 0x383   : > { %v10345_v53 = vpop.eup %7548  ;;  %v3033_v36 = vpop.permute.xlu1 %3032  ;;  %6833 = vmatprep.mubr.f32.mxu0 %v10341_v30  ;;  %7568 = vpow2.f32 %v2946_v5  ;;  %v3412_v15 = vmul.f32 1.442695, %v3319_v21  ;;  %v2823_v5 = vsub.f32 %v9962_v58, %v9977_v4  ;;  %v2839_v4 = vsub.f32 %v9985_v28, %v10000_v62  ;;  %v11682_v21 = vld [vmem:[#allocation99_spill] sm:$0xff] }
 0x384   : > { %v10350_v52 = vpop.eup %7550  ;;  %v3302_v35 = vsub.f32 %v11673_v61, %v3033_v36  ;;  %v10353_v32 = vpop.permute.xlu0 %3047  ;;  %4113 = vperm.xlu1 %7422, %v10336_v37   ;;  %6834 = vmatmul.mubr.f32.gmra.mrb[42].mxu0 %v10345_v53  ;;  %v11719_v37 = vld [vmem:[#allocation34_spill] sm:$0xff] }
 0x385   : > { %11672 = vst [vmem:[#allocation84_spill] sm:$0xff] %v10350_v52  ;;  %v10357_v1 = vpop.eup %7552  ;;  %4198 = vperm.xlu0 %7423, %v10350_v52   ;;  %v2932_v58 = vmul.f32 1.442695, %v2823_v5  ;;  %v3305_v62 = vsub.f32 %v11685_v8, %v10353_v32  ;;  %v11689_v32 = vld [vmem:[#allocation31_spill] sm:$0xff] }
 0x386   : > { %11674 = vst [vmem:[#allocation22_spill] sm:$0xff] %v10357_v1  ;;  %v10362_v2 = vpop.eup %7554  ;;  %v3378_v36 = vmul.f32 1.442695, %v3302_v35 }
 0x387   : > { %v10366_v61 = vpop.eup %7556  ;;  %v3113_v22 = vpop.permute.xlu1 %3112  ;;  %6889 = vmatprep.mubr.f32.mxu1 %v10362_v2 }
 0x388   : > { %v10369_v3 = vpop.eup %7558  ;;  %7570 = vpow2.f32 %v3378_v36  ;;  %v3318_v12 = vsub.f32 %v11677_v40, %v3113_v22  ;;  %v10372_v14 = vpop.permute.xlu0 %3127  ;;  %4123 = vperm.xlu1 %7422, %v10357_v1   ;;  %6890 = vmatmul.mubr.f32.gmra.mrb[42].mxu1 %v10366_v61 }
 0x389   : > { %11676 = vst [vmem:[#allocation81_spill] sm:$0xff] %v10369_v3  ;;  %7572 = vpow2.f32 %v3380_v25  ;;  %4208 = vperm.xlu0 %7423, %v10369_v3   ;;  %v10381_v22 = vpop.eup %7560  ;;  %v2834_v25 = vsub.f32 %v9893_v47, %v9911_v7 }
 0x38a   : > { %7574 = vpow2.f32 %v2928_v16  ;;  %v3410_v19 = vmul.f32 1.442695, %v3318_v12  ;;  %11679 = vst [vmem:[#allocation91_spill] sm:$0xff] %v10381_v22  ;;  %v10385_v36 = vpop.eup %7562  ;;  %v2820_v16 = vsub.f32 %v11682_v21, %v9934_v60  ;;  %v2964_v60 = vmul.f32 1.442695, %v2839_v4  ;;  %v11687_v21 = vld [vmem:[#allocation101_spill] sm:$0xff] }
 0x38b   : > { %7576 = vpow2.f32 %v2950_v49  ;;  %v10383_v35 = vpop.permute.xlu1 %3963  ;;  %11680 = vst [vmem:[#allocation23_spill] sm:$0xff] %v10385_v36  ;;  %v10395_v49 = vpop.eup %7564  ;;  %v2954_v7 = vmul.f32 1.442695, %v2834_v25  ;;  %v11692_v4 = vld [vmem:[#allocation32_spill] sm:$0xff] }
 0x38c   : > { %7578 = vpow2.f32 %v3410_v19  ;;  %v10387_v40 = vpop.permute.xlu0 %3978  ;;  %4173 = vperm.xlu1 %7422, %v10381_v22   ;;  %11681 = vst [vmem:[#allocation24_spill] sm:$0xff] %v10395_v49  ;;  %v10401_v12 = vpop.eup %7566  ;;  %v2926_v19 = vmul.f32 1.442695, %v2820_v16  ;;  %v11720_v22 = vld [vmem:[#allocation35_spill] sm:$0xff] }
 0x38d   : > { %7580 = vpow2.f32 %v3412_v15  ;;  %4138 = vperm.xlu0 %7423, %v10385_v36   ;;  %11683 = vst [vmem:[#allocation87_spill] sm:$0xff] %v10401_v12  ;;  %v10406_v47 = vpop.eup %7568  ;;  %v11686_v15 = vld [vmem:[#allocation109_spill] sm:$0xff]  ;;  %v2836_v36 = vsub.f32 %v11687_v21, %v9957_v59  ;;  %v3321_v59 = vsub.f32 %v11692_v4, %v10372_v14 }
 0x38e   : > { %7582 = vpow2.f32 %v2960_v0  ;;  %11684 = vst [vmem:[#allocation25_spill] sm:$0xff] %v10406_v47  ;;  %v2825_v0 = vsub.f32 %v11686_v15, %v10023_v34 }
 0x38f   : > { %v10399_v63 = vpop.permute.xlu1 %4043  ;;  %7584 = vpow2.f32 %v2922_v56 }
 0x390   : > { %v10403_v51 = vpop.permute.xlu0 %4058  ;;  %4183 = vperm.xlu1 %7422, %v10395_v49   ;;  %7586 = vpow2.f32 %v2932_v58  ;;  %v3384_v58 = vmul.f32 1.442695, %v3305_v62  ;;  %v2936_v15 = vmul.f32 1.442695, %v2825_v0 }
 0x391   : > { %4218 = vperm.xlu0 %7423, %v10401_v12   ;;  %7588 = vpow2.f32 %v2954_v7  ;;  %v11694_v7 = vld [vmem:[#allocation33_spill] sm:$0xff] }
 0x392   : > { %v10411_v28 = vpop.eup %7570  ;;  %7590 = vpow2.f32 %v2964_v60  ;;  %v11696_v60 = vld [vmem:[#allocation103_spill] sm:$0xff] }
 0x393   : > { %v10415_v5 = vpop.eup %7572  ;;  %v3043_v56 = vpop.permute.xlu1 %3042  ;;  %6836 = vmatprep.mubr.f32.mxu0 %v10411_v28  ;;  %7592 = vpow2.f32 %v2926_v19  ;;  %v2822_v0 = vsub.f32 %v11696_v60, %v9980_v33  ;;  %v3416_v19 = vmul.f32 1.442695, %v3321_v59  ;;  %v11700_v33 = vld [vmem:[#allocation106_spill] sm:$0xff] }
 0x394   : > { %v10420_v25 = vpop.eup %7574  ;;  %v3304_v8 = vsub.f32 %v11689_v32, %v3043_v56  ;;  %v10423_v12 = vpop.permute.xlu0 %3988  ;;  %4193 = vperm.xlu1 %7422, %v10406_v47   ;;  %6837 = vmatmul.mubr.f32.gmra.mrb[44].mxu0 %v10415_v5  ;;  %v2958_v32 = vmul.f32 1.442695, %v2836_v36 }
 0x395   : > { %11688 = vst [vmem:[#allocation76_spill] sm:$0xff] %v10420_v25  ;;  %11690 = vst [vmem:[#allocation92_spill] sm:$0xff] %v10423_v12  ;;  %v10427_v34 = vpop.eup %7576  ;;  %4148 = vperm.xlu0 %7423, %v10420_v25  }
 0x396   : > { %11691 = vst [vmem:[#allocation82_spill] sm:$0xff] %v10427_v34  ;;  %v10432_v16 = vpop.eup %7578  ;;  %v3382_v21 = vmul.f32 1.442695, %v3304_v8 }
 0x397   : > { %v10434_v56 = vpop.eup %7580  ;;  %v3123_v3 = vpop.permute.xlu1 %3122  ;;  %6892 = vmatprep.mubr.f32.mxu1 %v10432_v16 }
 0x398   : > { %v10437_v52 = vpop.eup %7582  ;;  %7594 = vpow2.f32 %v3382_v21  ;;  %v3320_v62 = vsub.f32 %v11694_v7, %v3123_v3  ;;  %v10440_v14 = vpop.permute.xlu0 %4068  ;;  %4203 = vperm.xlu1 %7422, %v10427_v34   ;;  %6893 = vmatmul.mubr.f32.gmra.mrb[44].mxu1 %v10434_v56  ;;  %v2930_v7 = vmul.f32 1.442695, %v2822_v0 }
 0x399   : > { %11693 = vst [vmem:[#allocation88_spill] sm:$0xff] %v10437_v52  ;;  %11695 = vst [vmem:[#allocation26_spill] sm:$0xff] %v10440_v14  ;;  %7596 = vpow2.f32 %v3384_v58  ;;  %4228 = vperm.xlu0 %7423, %v10437_v52   ;;  %v10447_v8 = vpop.eup %7584  ;;  %v2838_v58 = vsub.f32 %v11700_v33, %v10003_v57 }
 0x39a   : > { %7598 = vpow2.f32 %v2936_v15  ;;  %v3414_v36 = vmul.f32 1.442695, %v3320_v62  ;;  %11697 = vst [vmem:[#allocation93_spill] sm:$0xff] %v10447_v8  ;;  %v10451_v3 = vpop.eup %7586 }
 0x39b   : > { %7600 = vpow2.f32 %v2958_v32  ;;  %v10449_v4 = vpop.permute.xlu1 %3973  ;;  %11698 = vst [vmem:[#allocation27_spill] sm:$0xff] %v10451_v3  ;;  %v10459_v59 = vpop.eup %7588  ;;  %v2962_v0 = vmul.f32 1.442695, %v2838_v58 }
 0x39c   : > { %7602 = vpow2.f32 %v3414_v36  ;;  %v10453_v21 = vpop.permute.xlu0 %3998  ;;  %4133 = vperm.xlu1 %7422, %v10447_v8   ;;  %11701 = vst [vmem:[#allocation29_spill] sm:$0xff] %v10459_v59  ;;  %v10463_v32 = vpop.eup %7590  ;;  %v11705_v36 = vld [vmem:[#allocation110_spill] sm:$0xff] }
 0x39d   : > { %11699 = vst [vmem:[#allocation28_spill] sm:$0xff] %v10453_v21  ;;  %7604 = vpow2.f32 %v3416_v19  ;;  %4158 = vperm.xlu0 %7423, %v10451_v3   ;;  %11702 = vst [vmem:[#allocation94_spill] sm:$0xff] %v10463_v32  ;;  %v10468_v60 = vpop.eup %7592  ;;  %v2824_v57 = vsub.f32 %v11705_v36, %v10026_v24 }
 0x39e   : > { %11704 = vst [vmem:[#allocation30_spill] sm:$0xff] %v10468_v60  ;;  %7606 = vpow2.f32 %v2930_v7 }
 0x39f   : > { %v10461_v15 = vpop.permute.xlu1 %4053  ;;  %7608 = vpow2.f32 %v2962_v0  ;;  %v2934_v24 = vmul.f32 1.442695, %v2824_v57 }
 0x3a0   : > { %v10465_v62 = vpop.permute.xlu0 %4078  ;;  %4213 = vperm.xlu1 %7422, %v10459_v59  }
 0x3a1   : > { %11703 = vst [vmem:[#allocation99_spill] sm:$0xff] %v10465_v62  ;;  %4238 = vperm.xlu0 %7423, %v10463_v32   ;;  %7610 = vpow2.f32 %v2934_v24  ;;  %v11721_v62 = vld [vmem:[#allocation36_spill] sm:$0xff] }
 0x3a2   : > { %v10473_v19 = vpop.eup %7594 }
 0x3a3   : > { %v10475_v33 = vpop.eup %7596  ;;  %v10477_v3 = vpop.permute.xlu1 %3983  ;;  %6839 = vmatprep.mubr.f32.mxu0 %v10473_v19 }
 0x3a4   : > { %11706 = vst [vmem:[#allocation109_spill] sm:$0xff] %v10477_v3  ;;  %v10480_v52 = vpop.eup %7598  ;;  %v10482_v25 = vpop.permute.xlu0 %4008  ;;  %4143 = vperm.xlu1 %7422, %v10468_v60   ;;  %6840 = vmatmul.mubr.f32.gmra.mrb[46].mxu0 %v10475_v33  ;;  %v11723_v3 = vld [vmem:[#allocation38_spill] sm:$0xff] }
 0x3a5   : > { %11707 = vst [vmem:[#allocation101_spill] sm:$0xff] %v10480_v52  ;;  %11708 = vst [vmem:[#allocation31_spill] sm:$0xff] %v10482_v25  ;;  %v10486_v7 = vpop.eup %7600  ;;  %4168 = vperm.xlu0 %7423, %v10480_v52  }
 0x3a6   : > { %11709 = vst [vmem:[#allocation32_spill] sm:$0xff] %v10486_v7  ;;  %v10489_v58 = vpop.eup %7602 }
 0x3a7   : > { %v10491_v36 = vpop.eup %7604  ;;  %v10493_v32 = vpop.permute.xlu1 %4063  ;;  %6895 = vmatprep.mubr.f32.mxu1 %v10489_v58 }
 0x3a8   : > { %11710 = vst [vmem:[#allocation33_spill] sm:$0xff] %v10493_v32  ;;  %v10496_v59 = vpop.permute.xlu0 %4088  ;;  %4223 = vperm.xlu1 %7422, %v10486_v7   ;;  %6896 = vmatmul.mubr.f32.gmra.mrb[46].mxu1 %v10491_v36  ;;  %v10500_v60 = vpop.eup %7606  ;;  %v11722_v32 = vld [vmem:[#allocation37_spill] sm:$0xff] }
 0x3a9   : > { %11711 = vst [vmem:[#allocation103_spill] sm:$0xff] %v10496_v59  ;;  %11712 = vst [vmem:[#allocation106_spill] sm:$0xff] %v10500_v60  ;;  %v10505_v52 = vpop.eup %7608 }
 0x3aa   : > { %11714 = vst [vmem:[#allocation127_spill] sm:$0xff] %v10505_v52 }
 0x3ab   : > { %v10502_v0 = vpop.permute.xlu1 %3993  ;;  %v10510_v38 = vpop.eup %7610 }
 0x3ac   : > { %11713 = vst [vmem:[#allocation110_spill] sm:$0xff] %v10502_v0  ;;  %v3138_v57 = vpop.permute.xlu0 %3137  ;;  %4153 = vperm.xlu1 %7422, %v10500_v60   ;;  %11716 = vst [vmem:[#allocation129_spill] sm:$0xff] %v10510_v38 }
 0x3ad   : > { %v3323_v49 = vsub.f32 %v11719_v37, %v3138_v57  ;;  %v11724_v37 = vld [vmem:[#allocation39_spill] sm:$0xff] }
 0x3af   : > { %v10507_v8 = vpop.permute.xlu1 %4073 }
 0x3b0   : > { %11715 = vst [vmem:[#allocation128_spill] sm:$0xff] %v10507_v8  ;;  %v3218_v34 = vpop.permute.xlu0 %3217  ;;  %4233 = vperm.xlu1 %7422, %v10505_v52   ;;  %v3420_v8 = vmul.f32 1.442695, %v3323_v49 }
 0x3b1   : > { %v3339_v0 = vsub.f32 %v11721_v62, %v3218_v34 }
 0x3b3   : > { %v10512_v7 = vpop.permute.xlu1 %4003 }
 0x3b4   : > { %11717 = vst [vmem:[#allocation130_spill] sm:$0xff] %v10512_v7  ;;  %v3148_v1 = vpop.permute.xlu0 %3147  ;;  %4163 = vperm.xlu1 %7422, %v10510_v38   ;;  %v3452_v38 = vmul.f32 1.442695, %v3339_v0 }
 0x3b7   : > { %v10515_v24 = vpop.permute.xlu1 %4083 }
 0x3b8   : > { %11718 = vst [vmem:[#allocation131_spill] sm:$0xff] %v10515_v24  ;;  %v3228_v47 = vpop.permute.xlu0 %3227  ;;  %v3325_v24 = vsub.f32 %v11723_v3, %v3148_v1 }
 0x3ba   : > { %v3424_v34 = vmul.f32 1.442695, %v3325_v24 }
 0x3bb   : > { %v3133_v60 = vpop.permute.xlu1 %3132 }
 0x3bc   : > { %v3322_v59 = vsub.f32 %v11720_v22, %v3133_v60  ;;  %v3158_v25 = vpop.permute.xlu0 %3157  ;;  %v11725_v22 = vld [vmem:[#allocation123_spill] sm:$0xff] }
 0x3be   : > { %v3418_v52 = vmul.f32 1.442695, %v3322_v59  ;;  %v11726_v59 = vld [vmem:[#allocation40_spill] sm:$0xff] }
 0x3bf   : > { %v3213_v21 = vpop.permute.xlu1 %3212  ;;  %v3341_v62 = vsub.f32 %v11726_v59, %v3228_v47  ;;  %v11730_v47 = vld [vmem:[#allocation43_spill] sm:$0xff] }
 0x3c0   : > { %7612 = vpow2.f32 %v3418_v52  ;;  %v3338_v7 = vsub.f32 %v11722_v32, %v3213_v21  ;;  %v3238_v14 = vpop.permute.xlu0 %3237  ;;  %v11727_v21 = vld [vmem:[#allocation41_spill] sm:$0xff] }
 0x3c1   : > { %7614 = vpow2.f32 %v3420_v8  ;;  %v11728_v32 = vld [vmem:[#allocation125_spill] sm:$0xff] }
 0x3c2   : > { %v3450_v12 = vmul.f32 1.442695, %v3338_v7 }
 0x3c3   : > { %v3143_v13 = vpop.permute.xlu1 %3142 }
 0x3c4   : > { %7616 = vpow2.f32 %v3450_v12  ;;  %v3324_v57 = vsub.f32 %v11724_v37, %v3143_v13  ;;  %3612 = vadd.xlane.f32.xlu0 %v11725_v22  ;;  %v3168_v49 = vpop.permute.xlu0 %3167  ;;  %v3456_v12 = vmul.f32 1.442695, %v3341_v62  ;;  %v11729_v13 = vld [vmem:[#allocation42_spill] sm:$0xff] }
 0x3c5   : > { %7618 = vpow2.f32 %v3452_v38  ;;  %v3327_v7 = vsub.f32 %v11729_v13, %v3158_v25  ;;  %v11732_v25 = vld [vmem:[#allocation44_spill] sm:$0xff]  ;;  %v11734_v13 = vld [vmem:[#allocation46_spill] sm:$0xff] }
 0x3c6   : > { %v3422_v52 = vmul.f32 1.442695, %v3324_v57  ;;  %v3343_v59 = vsub.f32 %v11732_v25, %v3238_v14  ;;  %v3329_v14 = vsub.f32 %v11734_v13, %v3168_v49 }
 0x3c7   : > { %v3223_v60 = vpop.permute.xlu1 %3222 }
 0x3c8   : > { %7620 = vpow2.f32 %v3422_v52  ;;  %v3340_v8 = vsub.f32 %v11727_v21, %v3223_v60  ;;  %3642 = vadd.xlane.f32.xlu0 %v11728_v32  ;;  %v3248_v1 = vpop.permute.xlu0 %3247  ;;  %v11733_v21 = vld [vmem:[#allocation45_spill] sm:$0xff] }
 0x3c9   : > { %7622 = vpow2.f32 %v3424_v34  ;;  %v3428_v34 = vmul.f32 1.442695, %v3327_v7 }
 0x3ca   : > { %v10527_v3 = vpop.eup %7612  ;;  %v3454_v0 = vmul.f32 1.442695, %v3340_v8 }
 0x3cb   : > { %v10530_v37 = vpop.eup %7614  ;;  %v3153_v38 = vpop.permute.xlu1 %3152  ;;  %6930 = vmatprep.mubr.f32.mxu0 %v10527_v3 }
 0x3cc   : > { %7624 = vpow2.f32 %v3454_v0  ;;  %v3326_v24 = vsub.f32 %v11730_v47, %v3153_v38  ;;  %3614 = vadd.xlane.f32.xlu0 %v10140_v48  ;;  %v10535_v57 = vpop.permute.xlu0 %4098  ;;  %6931 = vmatmul.mubr.f32.vlgmr.msra.gmra.mrb[48].mxu0 %v10530_v37  ;;  %v11735_v47 = vld [vmem:[#allocation47_spill] sm:$0xff] }
 0x3cd   : > { %11731 = vst [vmem:[#allocation34_spill] sm:$0xff] %v10535_v57  ;;  %7626 = vpow2.f32 %v3456_v12  ;;  %v3460_v12 = vmul.f32 1.442695, %v3343_v59  ;;  %v11736_v59 = vld [vmem:[#allocation48_spill] sm:$0xff] }
 0x3ce   : > { %v10538_v22 = vpop.eup %7616  ;;  %v3426_v62 = vmul.f32 1.442695, %v3326_v24  ;;  %v3345_v49 = vsub.f32 %v11736_v59, %v3248_v1 }
 0x3cf   : > { %v10541_v52 = vpop.eup %7618  ;;  %v3233_v60 = vpop.permute.xlu1 %3232  ;;  %6986 = vmatprep.mubr.f32.mxu1 %v10538_v22 }
 0x3d0   : > { %7628 = vpow2.f32 %v3426_v62  ;;  %v3342_v8 = vsub.f32 %v11733_v21, %v3233_v60  ;;  %3646 = vadd.xlane.f32.xlu0 %v10160_v17  ;;  %v3178_v48 = vpop.permute.xlu0 %3177  ;;  %6987 = vmatmul.mubr.f32.vlgmr.msra.gmra.mrb[48].mxu1 %v10541_v52  ;;  %v3464_v1 = vmul.f32 1.442695, %v3345_v49 }
 0x3d1   : > { %7630 = vpow2.f32 %v3428_v34  ;;  %v3432_v34 = vmul.f32 1.442695, %v3329_v14 }
 0x3d2   : > { %v10547_v32 = vpop.eup %7620  ;;  %v3458_v7 = vmul.f32 1.442695, %v3342_v8  ;;  %v11737_v8 = vld [vmem:[#allocation49_spill] sm:$0xff] }
 0x3d3   : > { %v10550_v0 = vpop.eup %7622  ;;  %v3163_v38 = vpop.permute.xlu1 %3162  ;;  %6933 = vmatprep.mubr.f32.mxu0 %v10547_v32 }
 0x3d4   : > { %7632 = vpow2.f32 %v3458_v7  ;;  %v3328_v24 = vsub.f32 %v11735_v47, %v3163_v38  ;;  %3618 = vadd.xlane.f32.xlu0 %v10188_v46  ;;  %v3258_v17 = vpop.permute.xlu0 %3257  ;;  %6934 = vmatmul.mubr.f32.gmra.mrb[50].mxu0 %v10550_v0  ;;  %v11739_v7 = vld [vmem:[#allocation126_spill] sm:$0xff] }
 0x3d5   : > { %7634 = vpow2.f32 %v3460_v12 }
 0x3d6   : > { %v10556_v25 = vpop.eup %7624  ;;  %v3430_v62 = vmul.f32 1.442695, %v3328_v24 }
 0x3d7   : > { %v3243_v60 = vpop.permute.xlu1 %3242  ;;  %6989 = vmatprep.mubr.f32.mxu1 %v10556_v25  ;;  %v10560_v21 = vpop.eup %7626 }
 0x3d8   : > { %7636 = vpow2.f32 %v3430_v62  ;;  %v3344_v13 = vsub.f32 %v11737_v8, %v3243_v60  ;;  %3650 = vadd.xlane.f32.xlu0 %v10207_v27  ;;  %v10564_v46 = vpop.permute.xlu0 %4108  ;;  %3644 = vadd.xlane.f32.xlu1 %v11739_v7  ;;  %v11741_v27 = vld [vmem:[#allocation124_spill] sm:$0xff]  ;;  %v11743_v8 = vld [vmem:[#allocation51_spill] sm:$0xff] }
 0x3d9   : > { %11738 = vst [vmem:[#allocation35_spill] sm:$0xff] %v10564_v46  ;;  %6990 = vmatmul.mubr.f32.gmra.mrb[50].mxu1 %v10560_v21  ;;  %7638 = vpow2.f32 %v3432_v34  ;;  %v11742_v34 = vld [vmem:[#allocation50_spill] sm:$0xff] }
 0x3da   : > { %v10568_v12 = vpop.eup %7628  ;;  %v3462_v14 = vmul.f32 1.442695, %v3344_v13  ;;  %v3331_v49 = vsub.f32 %v11742_v34, %v3178_v48 }
 0x3db   : > { %v10570_v38 = vpop.permute.xlu1 %4093  ;;  %6936 = vmatprep.mubr.f32.mxu0 %v10568_v12  ;;  %v10573_v47 = vpop.eup %7630 }
 0x3dc   : > { %11740 = vst [vmem:[#allocation36_spill] sm:$0xff] %v10570_v38  ;;  %7640 = vpow2.f32 %v3462_v14  ;;  %3622 = vadd.xlane.f32.xlu0 %v10227_v45  ;;  %3610 = vadd.xlane.f32.xlu1 %v11741_v27  ;;  %v3188_v24 = vpop.permute.xlu0 %3187  ;;  %v11744_v45 = vld [vmem:[#allocation72_spill] sm:$0xff]  ;;  %v3436_v14 = vmul.f32 1.442695, %v3331_v49 }
 0x3dd   : > { %6937 = vmatmul.mubr.f32.gmra.mrb[52].mxu0 %v10573_v47  ;;  %7642 = vpow2.f32 %v3464_v1  ;;  %v11745_v27 = vld [vmem:[#allocation52_spill] sm:$0xff] }
 0x3de   : > { %v10578_v59 = vpop.eup %7632  ;;  %v3347_v1 = vsub.f32 %v11745_v27, %v3258_v17 }
 0x3df   : > { %v3173_v62 = vpop.permute.xlu1 %3172  ;;  %6992 = vmatprep.mubr.f32.mxu1 %v10578_v59  ;;  %v10582_v60 = vpop.eup %7634 }
 0x3e0   : > { %v3330_v13 = vsub.f32 %v11743_v8, %v3173_v62  ;;  %3654 = vadd.xlane.f32.xlu0 %v10240_v29  ;;  %3616 = vadd.xlane.f32.xlu1 %v11744_v45  ;;  %v3268_v48 = vpop.permute.xlu0 %3267  ;;  %v11746_v62 = vld [vmem:[#allocation53_spill] sm:$0xff]  ;;  %v11747_v29 = vld [vmem:[#allocation12_spill] sm:$0xff]  ;;  %v3468_v17 = vmul.f32 1.442695, %v3347_v1  ;;  %v11750_v1 = vld [vmem:[#allocation55_spill] sm:$0xff] }
 0x3e1   : > { %6993 = vmatmul.mubr.f32.gmra.mrb[52].mxu1 %v10582_v60 }
 0x3e2   : > { %v10588_v7 = vpop.eup %7636  ;;  %v3434_v46 = vmul.f32 1.442695, %v3330_v13 }
 0x3e3   : > { %v3253_v34 = vpop.permute.xlu1 %3252  ;;  %6939 = vmatprep.mubr.f32.mxu0 %v10588_v7  ;;  %v10592_v38 = vpop.eup %7638 }
 0x3e4   : > { %7644 = vpow2.f32 %v3434_v46  ;;  %v3346_v8 = vsub.f32 %v11746_v62, %v3253_v34  ;;  %3626 = vadd.xlane.f32.xlu0 %v10273_v55  ;;  %3648 = vadd.xlane.f32.xlu1 %v11747_v29  ;;  %v3198_v55 = vpop.permute.xlu0 %3197  ;;  %v11749_v46 = vld [vmem:[#allocation54_spill] sm:$0xff] }
 0x3e5   : > { %6940 = vmatmul.mubr.f32.gmra.mrb[54].mxu0 %v10592_v38  ;;  %7646 = vpow2.f32 %v3436_v14  ;;  %v3333_v34 = vsub.f32 %v11749_v46, %v3188_v24  ;;  %v11752_v24 = vld [vmem:[#allocation57_spill] sm:$0xff] }
 0x3e6   : > { %v10598_v45 = vpop.eup %7640  ;;  %v3466_v49 = vmul.f32 1.442695, %v3346_v8 }
 0x3e7   : > { %v10600_v13 = vpop.permute.xlu1 %4103  ;;  %6995 = vmatprep.mubr.f32.mxu1 %v10598_v45  ;;  %v10603_v27 = vpop.eup %7642  ;;  %v3440_v29 = vmul.f32 1.442695, %v3333_v34 }
 0x3e8   : > { %11748 = vst [vmem:[#allocation37_spill] sm:$0xff] %v10600_v13  ;;  %7648 = vpow2.f32 %v3466_v49  ;;  %3658 = vadd.xlane.f32.xlu0 %v10292_v50  ;;  %3620 = vadd.xlane.f32.xlu1 %v10190_v6  ;;  %v11751_v49 = vld [vmem:[#allocation56_spill] sm:$0xff]  ;;  %v3278_v6 = vpop.permute.xlu0 %3277 }
 0x3e9   : > { %6996 = vmatmul.mubr.f32.gmra.mrb[54].mxu1 %v10603_v27  ;;  %7650 = vpow2.f32 %v3468_v17  ;;  %v3349_v50 = vsub.f32 %v11751_v49, %v3268_v48  ;;  %v11753_v48 = vld [vmem:[#allocation58_spill] sm:$0xff] }
 0x3ea   : > { %v3335_v34 = vsub.f32 %v11753_v48, %v3198_v55 }
 0x3eb   : > { %v3183_v14 = vpop.permute.xlu1 %3182 }
 0x3ec   : > { %v3332_v62 = vsub.f32 %v11750_v1, %v3183_v14  ;;  %3630 = vadd.xlane.f32.xlu0 %v10341_v30  ;;  %3652 = vadd.xlane.f32.xlu1 %v10209_v18  ;;  %v3472_v30 = vmul.f32 1.442695, %v3349_v50 }
 0x3ee   : > { %v10612_v8 = vpop.eup %7644  ;;  %v3438_v13 = vmul.f32 1.442695, %v3332_v62 }
 0x3ef   : > { %v3263_v57 = vpop.permute.xlu1 %3262  ;;  %6942 = vmatprep.mubr.f32.mxu0 %v10612_v8  ;;  %v10616_v17 = vpop.eup %7646 }
 0x3f0   : > { %7652 = vpow2.f32 %v3438_v13  ;;  %v3348_v46 = vsub.f32 %v11752_v24, %v3263_v57  ;;  %3662 = vadd.xlane.f32.xlu0 %v10362_v2  ;;  %3624 = vadd.xlane.f32.xlu1 %v10229_v44  ;;  %v11754_v57 = vld [vmem:[#allocation59_spill] sm:$0xff]  ;;  %v3208_v44 = vpop.permute.xlu0 %3207  ;;  %v3444_v2 = vmul.f32 1.442695, %v3335_v34  ;;  %v11756_v24 = vld [vmem:[#allocation61_spill] sm:$0xff] }
 0x3f1   : > { %6943 = vmatmul.mubr.f32.gmra.mrb[56].mxu0 %v10616_v17  ;;  %7654 = vpow2.f32 %v3440_v29  ;;  %v11755_v29 = vld [vmem:[#allocation60_spill] sm:$0xff] }
 0x3f2   : > { %v10622_v18 = vpop.eup %7648  ;;  %v3470_v14 = vmul.f32 1.442695, %v3348_v46  ;;  %v3351_v55 = vsub.f32 %v11755_v29, %v3278_v6 }
 0x3f3   : > { %v3193_v1 = vpop.permute.xlu1 %3192  ;;  %6998 = vmatprep.mubr.f32.mxu1 %v10622_v18  ;;  %v10626_v62 = vpop.eup %7650 }
 0x3f4   : > { %7656 = vpow2.f32 %v3470_v14  ;;  %v3334_v13 = vsub.f32 %v11754_v57, %v3193_v1  ;;  %3634 = vadd.xlane.f32.xlu0 %v10411_v28  ;;  %3656 = vadd.xlane.f32.xlu1 %v10245_v31  ;;  %v3476_v31 = vmul.f32 1.442695, %v3351_v55  ;;  %v11757_v28 = vld [vmem:[#allocation62_spill] sm:$0xff]  ;;  %v11758_v57 = vld [vmem:[#allocation63_spill] sm:$0xff] }
 0x3f5   : > { %6999 = vmatmul.mubr.f32.gmra.mrb[56].mxu1 %v10626_v62  ;;  %7658 = vpow2.f32 %v3472_v30  ;;  %v3337_v14 = vsub.f32 %v11757_v28, %v3208_v44  ;;  %v3288_v30 = vpop.permute.xlu0 %3287  ;;  %v11759_v44 = vld [vmem:[#allocation64_spill] sm:$0xff] }
 0x3f6   : > { %v3442_v49 = vmul.f32 1.442695, %v3334_v13 }
 0x3f7   : > { %v3273_v50 = vpop.permute.xlu1 %3272 }
 0x3f8   : > { %7660 = vpow2.f32 %v3442_v49  ;;  %v3350_v46 = vsub.f32 %v11756_v24, %v3273_v50  ;;  %3666 = vadd.xlane.f32.xlu0 %v10432_v16  ;;  %3628 = vadd.xlane.f32.xlu1 %v10278_v41  ;;  %v3448_v16 = vmul.f32 1.442695, %v3337_v14  ;;  %v11760_v50 = vld [vmem:[#allocation65_spill] sm:$0xff] }
 0x3f9   : > { %7662 = vpow2.f32 %v3444_v2  ;;  %v3353_v2 = vsub.f32 %v11759_v44, %v3288_v30  ;;  %v10663_v28 = vpop.permute.xlu0 %4118  ;;  %v3868_v30 = vld [vmem:[#allocation4 + $0x8] sm:$0xff] }
 0x3fa   : > { %v10636_v48 = vpop.eup %7652  ;;  %v3474_v1 = vmul.f32 1.442695, %v3350_v46 }
 0x3fb   : > { %v3203_v34 = vpop.permute.xlu1 %3202  ;;  %6945 = vmatprep.mubr.f32.mxu0 %v10636_v48  ;;  %v10640_v6 = vpop.eup %7654 }
 0x3fc   : > { %7664 = vpow2.f32 %v3474_v1  ;;  %v3336_v13 = vsub.f32 %v11758_v57, %v3203_v34  ;;  %3638 = vadd.xlane.f32.xlu0 %v10473_v19  ;;  %3660 = vadd.xlane.f32.xlu1 %v10297_v43  ;;  %v3480_v19 = vmul.f32 1.442695, %v3353_v2  ;;  %v3884_v34 = vld [vmem:[#allocation4 + $0x88] sm:$0xff]  ;;  %v3883_v57 = vld [vmem:[#allocation4 + $0x80] sm:$0xff] }
 0x3fd   : > { %6946 = vmatmul.mubr.f32.gmra.mrb[58].mxu0 %v10640_v6  ;;  %7666 = vpow2.f32 %v3476_v31 }
 0x3fe   : > { %v10646_v41 = vpop.eup %7656  ;;  %v3446_v29 = vmul.f32 1.442695, %v3336_v13  ;;  %v11761_v13 = vld [vmem:[#allocation13_spill] sm:$0xff] }
 0x3ff   : > { %v3283_v55 = vpop.permute.xlu1 %3282  ;;  %7001 = vmatprep.mubr.f32.mxu1 %v10646_v41  ;;  %v10650_v49 = vpop.eup %7658 }
 0x400   : > { %7668 = vpow2.f32 %v3446_v29  ;;  %v3352_v24 = vsub.f32 %v11760_v50, %v3283_v55  ;;  %3670 = vadd.xlane.f32.xlu0 %v10489_v58  ;;  %3632 = vadd.xlane.f32.xlu1 %v10345_v53  ;;  %v4267_v50 = vmul.f32 %v10219_v9, %v3883_v57 }
 0x401   : > { %7002 = vmatmul.mubr.f32.gmra.mrb[58].mxu1 %v10650_v49  ;;  %7670 = vpow2.f32 %v3448_v16 }
 0x402   : > { %v10656_v43 = vpop.eup %7660  ;;  %v3478_v46 = vmul.f32 1.442695, %v3352_v24 }
 0x403   : > { %6948 = vmatprep.mubr.f32.mxu0 %v10656_v43  ;;  %v10659_v31 = vpop.eup %7662 }
 0x404   : > { %7672 = vpow2.f32 %v3478_v46  ;;  %3674 = vadd.xlane.f32.xlu0 %v10527_v3  ;;  %3664 = vadd.xlane.f32.xlu1 %v10366_v61  ;;  %v10676_v61 = vpop.permute.xlu0 %4128 }
 0x405   : > { %6949 = vmatmul.mubr.f32.gmra.mrb[60].mxu0 %v10659_v31  ;;  %7674 = vpow2.f32 %v3480_v19 }
 0x406   : > { %v10666_v53 = vpop.eup %7664 }
 0x407   : > { %7004 = vmatprep.mubr.f32.mxu1 %v10666_v53  ;;  %v10669_v58 = vpop.eup %7666 }
 0x408   : > { %3706 = vadd.xlane.f32.xlu0 %v10538_v22  ;;  %3636 = vadd.xlane.f32.xlu1 %v10415_v5  ;;  %v10691_v22 = vpop.permute.xlu0 %4178 }
 0x409   : > { %7005 = vmatmul.mubr.f32.gmra.mrb[60].mxu1 %v10669_v58 }
 0x40a   : > { %v10674_v3 = vpop.eup %7668 }
 0x40b   : > { %6951 = vmatprep.mubr.f32.mxu0 %v10674_v3  ;;  %v10679_v14 = vpop.eup %7670 }
 0x40c   : > { %3678 = vadd.xlane.f32.xlu0 %v10547_v32  ;;  %3668 = vadd.xlane.f32.xlu1 %v10434_v56  ;;  %v3867_v32 = vld [vmem:[#allocation4] sm:$0xff]  ;;  %v4252_v56 = vmul.f32 %v10211_v54, %v3868_v30  ;;  %v3870_v30 = vld [vmem:[#allocation4 + $0x18] sm:$0xff] }
 0x40d   : > { %6952 = vmatmul.mubr.f32.gmra.mrb[62].mxu0 %v10679_v14  ;;  %v4251_v16 = vmul.f32 %v11761_v13, %v3867_v32  ;;  %v3869_v32 = vld [vmem:[#allocation4 + $0x10] sm:$0xff] }
 0x40e   : > { %v10684_v1 = vpop.eup %7672  ;;  %v3885_v13 = vld [vmem:[#allocation4 + $0x90] sm:$0xff] }
 0x40f   : > { %7007 = vmatprep.mubr.f32.mxu1 %v10684_v1  ;;  %v10687_v5 = vpop.eup %7674 }
 0x410   : > { %3710 = vadd.xlane.f32.xlu0 %v10556_v25  ;;  %3640 = vadd.xlane.f32.xlu1 %v10475_v33  ;;  %v11762_v25 = vld [vmem:[#allocation83_spill] sm:$0xff]  ;;  %v10699_v33 = vpop.permute.xlu0 %4188 }
 0x411   : > { %7008 = vmatmul.mubr.f32.gmra.mrb[62].mxu1 %v10687_v5  ;;  %v4268_v2 = vmul.f32 %v11762_v25, %v3884_v34  ;;  %v4253_v34 = vmul.f32 %v10255_v39, %v3869_v32  ;;  %v11763_v25 = vld [vmem:[#allocation80_spill] sm:$0xff] }
 0x414   : > { %3682 = vadd.xlane.f32.xlu0 %v10568_v12  ;;  %3672 = vadd.xlane.f32.xlu1 %v10491_v36  ;;  %v10704_v36 = vpop.permute.xlu1 %4113  ;;  %v10712_v9 = vpop.permute.xlu0 %4198 }
 0x416   : > { %v6820_v44 = vpop.f32.mrb[32].mxu0 }
 0x417   : > { %v4896_v29 = vadd.f32 %v6820_v44, %v4252_v56  ;;  %v4381_v55 = vpop.f32.mrb[33].mxu0  ;;  %v6876_v19 = vpop.f32.mrb[32].mxu1 }
 0x418   : > { %v4895_v24 = vadd.f32 %v4381_v55, %v4251_v16  ;;  %3714 = vadd.xlane.f32.xlu0 %v10578_v59  ;;  %3676 = vadd.xlane.f32.xlu1 %v10530_v37  ;;  %v4912_v54 = vadd.f32 %v6876_v19, %v4268_v2  ;;  %v4526_v12 = vpop.f32.mrb[33].mxu1  ;;  %v4254_v37 = vmul.f32 %v10214_v11, %v3870_v30  ;;  %v3886_v59 = vld [vmem:[#allocation4 + $0x98] sm:$0xff]  ;;  %v10716_v56 = vpop.permute.xlu1 %4123  ;;  %v11764_v19 = vld [vmem:[#allocation16_spill] sm:$0xff]  ;;  %v3887_v30 = vld [vmem:[#allocation4 + $0xa0] sm:$0xff] }
 0x419   : > { %4960 = vst.msk [vmem:[#allocation4 + $0x8] sm:$0xff] %vm1557_vm2, %v4896_v29  ;;  %v4911_v46 = vadd.f32 %v4526_v12, %v4267_v50  ;;  %v4269_v11 = vmul.f32 %v10266_v20, %v3885_v13  ;;  %v10723_v2 = vpop.permute.xlu0 %4208  ;;  %v3872_v50 = vld [vmem:[#allocation4 + $0x28] sm:$0xff]  ;;  %v3871_v20 = vld [vmem:[#allocation4 + $0x20] sm:$0xff] }
 0x41a   : > { %4959 = vst.msk [vmem:[#allocation4] sm:$0xff] %vm1557_vm2, %v4895_v24  ;;  %4976 = vst.msk [vmem:[#allocation4 + $0x88] sm:$0xff] %vm1557_vm2, %v4912_v54  ;;  %v3888_v54 = vld [vmem:[#allocation4 + $0xa8] sm:$0xff] }
 0x41b   : > { %4975 = vst.msk [vmem:[#allocation4 + $0x80] sm:$0xff] %vm1557_vm2, %v4911_v46 }
 0x41c   : > { %3686 = vadd.xlane.f32.xlu0 %v10588_v7  ;;  %3708 = vadd.xlane.f32.xlu1 %v10541_v52  ;;  %v4270_v52 = vmul.f32 %v11763_v25, %v3886_v59  ;;  %v11765_v59 = vld [vmem:[#allocation17_spill] sm:$0xff]  ;;  %v3890_v25 = vld [vmem:[#allocation4 + $0xb8] sm:$0xff] }
 0x41d   : > { %v10734_v24 = vpop.permute.xlu0 %4138 }
 0x41f   : > { %v6823_v57 = vpop.f32.mrb[34].mxu0 }
 0x420   : > { %v4898_v16 = vadd.f32 %v6823_v57, %v4254_v37  ;;  %3718 = vadd.xlane.f32.xlu0 %v10598_v45  ;;  %v4391_v44 = vpop.f32.mrb[35].mxu0  ;;  %3680 = vadd.xlane.f32.xlu1 %v10550_v0  ;;  %v10728_v45 = vpop.permute.xlu1 %4173 }
 0x421   : > { %v4897_v7 = vadd.f32 %v4391_v44, %v4253_v34  ;;  %v4271_v34 = vmul.f32 %v10329_v42, %v3887_v30  ;;  %v10745_v57 = vpop.permute.xlu0 %4218  ;;  %v3874_v44 = vld [vmem:[#allocation4 + $0x38] sm:$0xff]  ;;  %v3873_v42 = vld [vmem:[#allocation4 + $0x30] sm:$0xff]  ;;  %v3892_v30 = vld [vmem:[#allocation4 + $0xc8] sm:$0xff] }
 0x422   : > { %4962 = vst.msk [vmem:[#allocation4 + $0x18] sm:$0xff] %vm1557_vm2, %v4898_v16 }
 0x423   : > { %4961 = vst.msk [vmem:[#allocation4 + $0x10] sm:$0xff] %vm1557_vm2, %v4897_v7  ;;  %v6879_v39 = vpop.f32.mrb[34].mxu1 }
 0x424   : > { %v4914_v29 = vadd.f32 %v6879_v39, %v4270_v52  ;;  %3690 = vadd.xlane.f32.xlu0 %v10612_v8  ;;  %v4536_v55 = vpop.f32.mrb[35].mxu1  ;;  %3712 = vadd.xlane.f32.xlu1 %v10560_v21  ;;  %v4256_v8 = vmul.f32 %v11764_v19, %v3872_v50  ;;  %v4255_v21 = vmul.f32 %v10315_v23, %v3871_v20  ;;  %v10738_v12 = vpop.permute.xlu1 %4183  ;;  %v3889_v39 = vld [vmem:[#allocation4 + $0xb0] sm:$0xff] }
 0x425   : > { %v4913_v0 = vadd.f32 %v4536_v55, %v4269_v11  ;;  %v10756_v7 = vpop.permute.xlu0 %4148  ;;  %v11767_v19 = vld [vmem:[#allocation113_spill] sm:$0xff] }
 0x426   : > { %4978 = vst.msk [vmem:[#allocation4 + $0x98] sm:$0xff] %vm1557_vm2, %v4914_v29 }
 0x427   : > { %4977 = vst.msk [vmem:[#allocation4 + $0x90] sm:$0xff] %vm1557_vm2, %v4913_v0 }
 0x428   : > { %3722 = vadd.xlane.f32.xlu0 %v10622_v18  ;;  %3684 = vadd.xlane.f32.xlu1 %v10573_v47  ;;  %v4272_v47 = vmul.f32 %v11765_v59, %v3888_v54 }
 0x429   : > { %v10767_v0 = vpop.permute.xlu0 %4228 }
 0x42b   : > { %v6826_v46 = vpop.f32.mrb[36].mxu0 }
 0x42c   : > { %v4900_v32 = vadd.f32 %v6826_v46, %v4256_v8  ;;  %3694 = vadd.xlane.f32.xlu0 %v10636_v48  ;;  %v4401_v37 = vpop.f32.mrb[37].mxu0  ;;  %3716 = vadd.xlane.f32.xlu1 %v10582_v60  ;;  %v10750_v48 = vpop.permute.xlu1 %4193 }
 0x42d   : > { %v4899_v18 = vadd.f32 %v4401_v37, %v4255_v21  ;;  %v3891_v37 = vld [vmem:[#allocation4 + $0xc0] sm:$0xff] }
 0x42e   : > { %4964 = vst.msk [vmem:[#allocation4 + $0x28] sm:$0xff] %vm1557_vm2, %v4900_v32 }
 0x42f   : > { %4963 = vst.msk [vmem:[#allocation4 + $0x20] sm:$0xff] %vm1557_vm2, %v4899_v18  ;;  %v6882_v23 = vpop.f32.mrb[36].mxu1 }
 0x430   : > { %v4916_v13 = vadd.f32 %v6882_v23, %v4272_v47  ;;  %3726 = vadd.xlane.f32.xlu0 %v10646_v41  ;;  %v4546_v16 = vpop.f32.mrb[37].mxu1  ;;  %3688 = vadd.xlane.f32.xlu1 %v10592_v38  ;;  %v4258_v41 = vmul.f32 %v10319_v10, %v3874_v44  ;;  %v4257_v38 = vmul.f32 %v10383_v35, %v3873_v42  ;;  %v10760_v52 = vpop.permute.xlu1 %4203 }
 0x431   : > { %v4915_v60 = vadd.f32 %v4546_v16, %v4271_v34  ;;  %v4273_v10 = vmul.f32 %v10399_v63, %v3889_v39  ;;  %v11766_v63 = vld [vmem:[#allocation116_spill] sm:$0xff]  ;;  %v4276_v23 = vmul.f32 %v10403_v51, %v3892_v30  ;;  %v3878_v39 = vld [vmem:[#allocation4 + $0x58] sm:$0xff]  ;;  %v11774_v30 = vld [vmem:[#allocation73_spill] sm:$0xff] }
 0x432   : > { %4980 = vst.msk [vmem:[#allocation4 + $0xa8] sm:$0xff] %vm1557_vm2, %v4916_v13  ;;  %v2841_v8 = vsub.f32 %v11767_v19, %v11766_v63  ;;  %v11768_v51 = vld [vmem:[#allocation68_spill] sm:$0xff]  ;;  %v3894_v19 = vld [vmem:[#allocation4 + $0xd8] sm:$0xff] }
 0x433   : > { %4979 = vst.msk [vmem:[#allocation4 + $0xa0] sm:$0xff] %vm1557_vm2, %v4915_v60  ;;  %v3483_v60 = vld [vmem:[#allocation3 + $0x8] sm:$0xff] }
 0x434   : > { %3698 = vadd.xlane.f32.xlu0 %v10656_v43  ;;  %3720 = vadd.xlane.f32.xlu1 %v10603_v27  ;;  %v4274_v27 = vmul.f32 %v10333_v26, %v3890_v25  ;;  %v10778_v26 = vpop.permute.xlu0 %4158  ;;  %v2968_v46 = vmul.f32 1.442695, %v2841_v8  ;;  %v11769_v25 = vld [vmem:[#allocation117_spill] sm:$0xff] }
 0x435   : > { %v11773_v8 = vld [vmem:[#allocation109_spill] sm:$0xff] }
 0x436   : > { %7676 = vpow2.f32 %v2968_v46 }
 0x437   : > { %v6829_v11 = vpop.f32.mrb[38].mxu0 }
 0x438   : > { %v4902_v29 = vadd.f32 %v6829_v11, %v4258_v41  ;;  %3730 = vadd.xlane.f32.xlu0 %v10666_v53  ;;  %v4411_v55 = vpop.f32.mrb[39].mxu0  ;;  %3692 = vadd.xlane.f32.xlu1 %v10616_v17  ;;  %v10772_v53 = vpop.permute.xlu1 %4133  ;;  %v3498_v41 = vld [vmem:[#allocation3 + $0x80] sm:$0xff] }
 0x439   : > { %v4901_v43 = vadd.f32 %v4411_v55, %v4257_v38  ;;  %v11770_v38 = vld [vmem:[#allocation114_spill] sm:$0xff] }
 0x43a   : > { %4966 = vst.msk [vmem:[#allocation4 + $0x38] sm:$0xff] %vm1557_vm2, %v4902_v29  ;;  %v2840_v11 = vsub.f32 %v11770_v38, %v11769_v25  ;;  %v3877_v29 = vld [vmem:[#allocation4 + $0x50] sm:$0xff]  ;;  %v11771_v55 = vld [vmem:[#allocation70_spill] sm:$0xff]  ;;  %v3486_v25 = vld [vmem:[#allocation3 + $0x20] sm:$0xff] }
 0x43b   : > { %4965 = vst.msk [vmem:[#allocation4 + $0x30] sm:$0xff] %vm1557_vm2, %v4901_v43  ;;  %v6885_v35 = vpop.f32.mrb[38].mxu1  ;;  %v3562_v43 = vmul.f32 %v11771_v55, %v3498_v41  ;;  %v3502_v55 = vld [vmem:[#allocation3 + $0xa0] sm:$0xff] }
 0x43c   : > { %v4918_v50 = vadd.f32 %v6885_v35, %v4274_v27  ;;  %3702 = vadd.xlane.f32.xlu0 %v10674_v3  ;;  %v4556_v20 = vpop.f32.mrb[39].mxu1  ;;  %3724 = vadd.xlane.f32.xlu1 %v10626_v62  ;;  %v3876_v3 = vld [vmem:[#allocation4 + $0x48] sm:$0xff]  ;;  %v10782_v54 = vpop.permute.xlu1 %4213  ;;  %v3875_v62 = vld [vmem:[#allocation4 + $0x40] sm:$0xff]  ;;  %v3484_v35 = vld [vmem:[#allocation3 + $0x10] sm:$0xff] }
 0x43d   : > { %v4917_v17 = vadd.f32 %v4556_v20, %v4273_v10  ;;  %v4260_v21 = vmul.f32 %v10387_v40, %v3876_v3  ;;  %v4259_v32 = vmul.f32 %v10449_v4, %v3875_v62  ;;  %v4275_v40 = vmul.f32 %v10461_v15, %v3891_v37  ;;  %v11772_v20 = vld [vmem:[#allocation92_spill] sm:$0xff] }
 0x43e   : > { %4982 = vst.msk [vmem:[#allocation4 + $0xb8] sm:$0xff] %vm1557_vm2, %v4918_v50  ;;  %v3547_v15 = vmul.f32 %v11768_v51, %v3483_v60  ;;  %v2966_v50 = vmul.f32 1.442695, %v2840_v11  ;;  %v4261_v3 = vmul.f32 %v11773_v8, %v3877_v29  ;;  %v11777_v51 = vld [vmem:[#allocation77_spill] sm:$0xff] }
 0x43f   : > { %4981 = vst.msk [vmem:[#allocation4 + $0xb0] sm:$0xff] %vm1557_vm2, %v4917_v17  ;;  %v4262_v17 = vmul.f32 %v11772_v20, %v3878_v39  ;;  %v11778_v11 = vld [vmem:[#allocation85_spill] sm:$0xff]  ;;  %v3879_v20 = vld [vmem:[#allocation4 + $0x60] sm:$0xff] }
 0x440   : > { %3734 = vadd.xlane.f32.xlu0 %v10684_v1  ;;  %3696 = vadd.xlane.f32.xlu1 %v10640_v6  ;;  %v10787_v1 = vpop.permute.xlu0 %4238  ;;  %v10790_v47 = vpop.permute.xlu1 %4143  ;;  %7678 = vpow2.f32 %v2966_v50 }
 0x441   : > { %v10810_v27 = vpop.eup %7676 }
 0x444   : > { %3728 = vadd.xlane.f32.xlu1 %v10650_v49  ;;  %v10797_v16 = vpop.permute.xlu0 %4168  ;;  %v10800_v44 = vpop.permute.xlu1 %4223 }
 0x447   : > { %v6832_v6 = vpop.f32.mrb[40].mxu0 }
 0x448   : > { %v4904_v18 = vadd.f32 %v6832_v6, %v4260_v21  ;;  %v4421_v59 = vpop.f32.mrb[41].mxu0  ;;  %3700 = vadd.xlane.f32.xlu1 %v10659_v31  ;;  %v10812_v10 = vpop.permute.xlu1 %4153  ;;  %v3893_v21 = vld [vmem:[#allocation4 + $0xd0] sm:$0xff] }
 0x449   : > { %v4903_v34 = vadd.f32 %v4421_v59, %v4259_v32  ;;  %v3548_v32 = vmul.f32 %v11774_v30, %v3484_v35  ;;  %v11775_v59 = vld [vmem:[#allocation26_spill] sm:$0xff]  ;;  %v3880_v35 = vld [vmem:[#allocation4 + $0x68] sm:$0xff] }
 0x44a   : > { %4968 = vst.msk [vmem:[#allocation4 + $0x48] sm:$0xff] %vm1557_vm2, %v4904_v18  ;;  %v3500_v18 = vld [vmem:[#allocation3 + $0x90] sm:$0xff]  ;;  %v10833_v50 = vpop.eup %7678 }
 0x44b   : > { %4967 = vst.msk [vmem:[#allocation4 + $0x40] sm:$0xff] %vm1557_vm2, %v4903_v34  ;;  %v6888_v4 = vpop.f32.mrb[40].mxu1  ;;  %v4278_v34 = vmul.f32 %v11775_v59, %v3894_v19  ;;  %v11780_v19 = vld [vmem:[#allocation66_spill] sm:$0xff] }
 0x44c   : > { %v4920_v49 = vadd.f32 %v6888_v4, %v4276_v23  ;;  %v4566_v13 = vpop.f32.mrb[41].mxu1  ;;  %3732 = vadd.xlane.f32.xlu1 %v10669_v58 }
 0x44d   : > { %v4919_v31 = vadd.f32 %v4566_v13, %v4275_v40  ;;  %v11776_v40 = vld [vmem:[#allocation33_spill] sm:$0xff] }
 0x44e   : > { %4984 = vst.msk [vmem:[#allocation4 + $0xc8] sm:$0xff] %vm1557_vm2, %v4920_v49  ;;  %v4277_v4 = vmul.f32 %v11776_v40, %v3893_v21  ;;  %v10822_v49 = vpop.permute.xlu1 %4233  ;;  %v3488_v21 = vld [vmem:[#allocation3 + $0x30] sm:$0xff] }
 0x44f   : > { %4983 = vst.msk [vmem:[#allocation4 + $0xc0] sm:$0xff] %vm1557_vm2, %v4919_v31 }
 0x450   : > { %3704 = vadd.xlane.f32.xlu1 %v10679_v14 }
 0x451   : > { %v3613_v42 = vpop.xlane.xlu0 %3612 }
 0x452   : > { %v3739_v58 = vadd.f32 %v3613_v42, %v3547_v15  ;;  %v3564_v15 = vmul.f32 %v11777_v51, %v3500_v18  ;;  %v10831_v39 = vpop.permute.xlu1 %4163  ;;  %v11782_v18 = vld [vmem:[#allocation110_spill] sm:$0xff] }
 0x453   : > { %v4263_v59 = vmul.f32 %v11782_v18, %v3879_v20 }
 0x454   : > { %3804 = vst.msk [vmem:[#allocation3 + $0x8] sm:$0xff] %vm3802_vm4, %v3739_v58  ;;  %3736 = vadd.xlane.f32.xlu1 %v10687_v5  ;;  %v3550_v58 = vmul.f32 %v11778_v11, %v3486_v25  ;;  %v3504_v25 = vld [vmem:[#allocation3 + $0xb0] sm:$0xff]  ;;  %v11785_v11 = vld [vmem:[#allocation99_spill] sm:$0xff] }
 0x455   : > { %v3643_v14 = vpop.xlane.xlu0 %3642 }
 0x456   : > { %v3754_v63 = vadd.f32 %v3643_v14, %v3562_v43  ;;  %4248 = vperm.xlu0 %7423, %v10810_v27   ;;  %v3499_v43 = vld [vmem:[#allocation3 + $0x88] sm:$0xff] }
 0x457   : > { %v6835_v62 = vpop.f32.mrb[42].mxu0  ;;  %v3563_v8 = vmul.f32 %v11780_v19, %v3499_v43  ;;  %v11786_v43 = vld [vmem:[#allocation128_spill] sm:$0xff] }
 0x458   : > { %3819 = vst.msk [vmem:[#allocation3 + $0x80] sm:$0xff] %vm3802_vm4, %v3754_v63  ;;  %v4906_v5 = vadd.f32 %v6835_v62, %v4262_v17  ;;  %v4431_v46 = vpop.f32.mrb[43].mxu0  ;;  %v11779_v17 = vld [vmem:[#allocation89_spill] sm:$0xff] }
 0x459   : > { %v4905_v6 = vadd.f32 %v4431_v46, %v4261_v3  ;;  %v3615_v37 = vpop.xlane.xlu0 %3614  ;;  %v3566_v63 = vmul.f32 %v11779_v17, %v3502_v55  ;;  %v11781_v46 = vld [vmem:[#allocation28_spill] sm:$0xff] }
 0x45a   : > { %4970 = vst.msk [vmem:[#allocation4 + $0x58] sm:$0xff] %vm1557_vm2, %v4906_v5  ;;  %v3740_v23 = vadd.f32 %v3615_v37, %v3548_v32  ;;  %v3482_v5 = vld [vmem:[#allocation3] sm:$0xff]  ;;  %v4264_v30 = vmul.f32 %v11781_v46, %v3880_v35  ;;  %v3896_v37 = vld [vmem:[#allocation4 + $0xe8] sm:$0xff] }
 0x45b   : > { %4969 = vst.msk [vmem:[#allocation4 + $0x50] sm:$0xff] %vm1557_vm2, %v4905_v6  ;;  %v6891_v13 = vpop.f32.mrb[42].mxu1  ;;  %v3490_v46 = vld [vmem:[#allocation3 + $0x40] sm:$0xff] }
 0x45c   : > { %3805 = vst.msk [vmem:[#allocation3 + $0x10] sm:$0xff] %vm3802_vm4, %v3740_v23  ;;  %v4922_v31 = vadd.f32 %v6891_v13, %v4278_v34  ;;  %v4576_v60 = vpop.f32.mrb[43].mxu1  ;;  %v3895_v23 = vld [vmem:[#allocation4 + $0xe0] sm:$0xff] }
 0x45d   : > { %v4921_v42 = vadd.f32 %v4576_v60, %v4277_v4  ;;  %v3647_v41 = vpop.xlane.xlu0 %3646  ;;  %v11783_v13 = vld [vmem:[#allocation95_spill] sm:$0xff] }
 0x45e   : > { %4986 = vst.msk [vmem:[#allocation4 + $0xd8] sm:$0xff] %vm1557_vm2, %v4922_v31  ;;  %v3756_v38 = vadd.f32 %v3647_v41, %v3564_v15  ;;  %v3552_v31 = vmul.f32 %v11783_v13, %v3488_v21  ;;  %v11784_v60 = vld [vmem:[#allocation67_spill] sm:$0xff]  ;;  %v3487_v13 = vld [vmem:[#allocation3 + $0x28] sm:$0xff] }
 0x45f   : > { %4985 = vst.msk [vmem:[#allocation4 + $0xd0] sm:$0xff] %vm1557_vm2, %v4921_v42  ;;  %v3546_v51 = vmul.f32 %v11784_v60, %v3482_v5 }
 0x460   : > { %3821 = vst.msk [vmem:[#allocation3 + $0x90] sm:$0xff] %vm3802_vm4, %v3756_v38  ;;  %v3485_v38 = vld [vmem:[#allocation3 + $0x18] sm:$0xff] }
 0x461   : > { %v3619_v29 = vpop.xlane.xlu0 %3618 }
 0x462   : > { %v3742_v14 = vadd.f32 %v3619_v29, %v3550_v58  ;;  %v4280_v58 = vmul.f32 %v11785_v11, %v3896_v37  ;;  %v11789_v37 = vld [vmem:[#allocation104_spill] sm:$0xff] }
 0x463   : > { %v3554_v18 = vmul.f32 %v11789_v37, %v3490_v46 }
 0x464   : > { %3807 = vst.msk [vmem:[#allocation3 + $0x20] sm:$0xff] %vm3802_vm4, %v3742_v14  ;;  %v4279_v14 = vmul.f32 %v11786_v43, %v3895_v23  ;;  %v11793_v43 = vld [vmem:[#allocation31_spill] sm:$0xff] }
 0x465   : > { %v3651_v3 = vpop.xlane.xlu0 %3650  ;;  %v3645_v62 = vpop.xlane.xlu1 %3644  ;;  %4243 = vperm.xlu1 %7422, %v10833_v50  }
 0x466   : > { %v3758_v32 = vadd.f32 %v3651_v3, %v3566_v63  ;;  %v3755_v6 = vadd.f32 %v3645_v62, %v3563_v8  ;;  %v11787_v63 = vld [vmem:[#allocation97_spill] sm:$0xff] }
 0x467   : > { %v6838_v34 = vpop.f32.mrb[44].mxu0  ;;  %v3568_v19 = vmul.f32 %v11787_v63, %v3504_v25  ;;  %v11788_v8 = vld [vmem:[#allocation69_spill] sm:$0xff]  ;;  %v11792_v25 = vld [vmem:[#allocation74_spill] sm:$0xff] }
 0x468   : > { %3823 = vst.msk [vmem:[#allocation3 + $0xa0] sm:$0xff] %vm3802_vm4, %v3758_v32  ;;  %3820 = vst.msk [vmem:[#allocation3 + $0x88] sm:$0xff] %vm3802_vm4, %v3755_v6  ;;  %v4908_v40 = vadd.f32 %v6838_v34, %v4264_v30  ;;  %v4441_v4 = vpop.f32.mrb[45].mxu0  ;;  %v3549_v3 = vmul.f32 %v11788_v8, %v3485_v38  ;;  %v3501_v30 = vld [vmem:[#allocation3 + $0x98] sm:$0xff]  ;;  %v3551_v38 = vmul.f32 %v11792_v25, %v3487_v13 }
 0x469   : > { %v4907_v15 = vadd.f32 %v4441_v4, %v4263_v59  ;;  %v3623_v42 = vpop.xlane.xlu0 %3622  ;;  %v3611_v41 = vpop.xlane.xlu1 %3610  ;;  %v11790_v59 = vld [vmem:[#allocation71_spill] sm:$0xff]  ;;  %v11794_v63 = vld [vmem:[#allocation130_spill] sm:$0xff] }
 0x46a   : > { %4972 = vst.msk [vmem:[#allocation4 + $0x68] sm:$0xff] %vm1557_vm2, %v4908_v40  ;;  %v3744_v29 = vadd.f32 %v3623_v42, %v3552_v31  ;;  %v3738_v55 = vadd.f32 %v3611_v41, %v3546_v51  ;;  %v3565_v34 = vmul.f32 %v11790_v59, %v3501_v30  ;;  %v3506_v4 = vld [vmem:[#allocation3 + $0xc0] sm:$0xff]  ;;  %v3882_v51 = vld [vmem:[#allocation4 + $0x78] sm:$0xff]  ;;  %v3508_v59 = vld [vmem:[#allocation3 + $0xd0] sm:$0xff] }
 0x46b   : > { %4971 = vst.msk [vmem:[#allocation4 + $0x60] sm:$0xff] %vm1557_vm2, %v4907_v15  ;;  %v6894_v35 = vpop.f32.mrb[44].mxu1  ;;  %v3881_v15 = vld [vmem:[#allocation4 + $0x70] sm:$0xff]  ;;  %v11791_v42 = vld [vmem:[#allocation107_spill] sm:$0xff]  ;;  %v11796_v30 = vld [vmem:[#allocation78_spill] sm:$0xff] }
 0x46c   : > { %3809 = vst.msk [vmem:[#allocation3 + $0x30] sm:$0xff] %vm3802_vm4, %v3744_v29  ;;  %3803 = vst.msk [vmem:[#allocation3] sm:$0xff] %vm3802_vm4, %v3738_v55  ;;  %v4924_v20 = vadd.f32 %v6894_v35, %v4280_v58  ;;  %v4586_v17 = vpop.f32.mrb[45].mxu1  ;;  %v3570_v41 = vmul.f32 %v11791_v42, %v3506_v4  ;;  %v3492_v29 = vld [vmem:[#allocation3 + $0x50] sm:$0xff]  ;;  %v3503_v55 = vld [vmem:[#allocation3 + $0xa8] sm:$0xff] }
 0x46d   : > { %v4923_v62 = vadd.f32 %v4586_v17, %v4279_v14  ;;  %v3655_v21 = vpop.xlane.xlu0 %3654  ;;  %v3617_v5 = vpop.xlane.xlu1 %3616  ;;  %v4266_v14 = vmul.f32 %v11793_v43, %v3882_v51  ;;  %v3898_v17 = vld [vmem:[#allocation4 + $0xf8] sm:$0xff]  ;;  %v3494_v43 = vld [vmem:[#allocation3 + $0x60] sm:$0xff] }
 0x46e   : > { %4988 = vst.msk [vmem:[#allocation4 + $0xe8] sm:$0xff] %vm1557_vm2, %v4924_v20  ;;  %v3760_v32 = vadd.f32 %v3655_v21, %v3568_v19  ;;  %v3741_v6 = vadd.f32 %v3617_v5, %v3549_v3  ;;  %v4265_v19 = vmul.f32 %v11794_v63, %v3881_v15  ;;  %v3897_v3 = vld [vmem:[#allocation4 + $0xf0] sm:$0xff]  ;;  %v11795_v5 = vld [vmem:[#allocation111_spill] sm:$0xff] }
 0x46f   : > { %4987 = vst.msk [vmem:[#allocation4 + $0xe0] sm:$0xff] %vm1557_vm2, %v4923_v62  ;;  %v3556_v46 = vmul.f32 %v11795_v5, %v3492_v29  ;;  %v3491_v5 = vld [vmem:[#allocation3 + $0x48] sm:$0xff] }
 0x470   : > { %3825 = vst.msk [vmem:[#allocation3 + $0xb0] sm:$0xff] %vm3802_vm4, %v3760_v32  ;;  %3806 = vst.msk [vmem:[#allocation3 + $0x18] sm:$0xff] %vm3802_vm4, %v3741_v6  ;;  %v3567_v32 = vmul.f32 %v11796_v30, %v3503_v55 }
 0x471   : > { %v3627_v23 = vpop.xlane.xlu0 %3626  ;;  %v3649_v40 = vpop.xlane.xlu1 %3648 }
 0x472   : > { %v3746_v31 = vadd.f32 %v3627_v23, %v3554_v18  ;;  %v3757_v60 = vadd.f32 %v3649_v40, %v3565_v34  ;;  %v3489_v34 = vld [vmem:[#allocation3 + $0x38] sm:$0xff]  ;;  %v11797_v23 = vld [vmem:[#allocation103_spill] sm:$0xff] }
 0x473   : > { %v4282_v40 = vmul.f32 %v11797_v23, %v3898_v17  ;;  %v11801_v17 = vld [vmem:[#allocation119_spill] sm:$0xff]  ;;  %v3496_v23 = vld [vmem:[#allocation3 + $0x70] sm:$0xff] }
 0x474   : > { %3811 = vst.msk [vmem:[#allocation3 + $0x40] sm:$0xff] %vm3802_vm4, %v3746_v31  ;;  %3822 = vst.msk [vmem:[#allocation3 + $0x98] sm:$0xff] %vm3802_vm4, %v3757_v60  ;;  %v11798_v31 = vld [vmem:[#allocation131_spill] sm:$0xff]  ;;  %v3558_v63 = vmul.f32 %v11801_v17, %v3494_v43  ;;  %v11808_v43 = vld [vmem:[#allocation100_spill] sm:$0xff] }
 0x475   : > { %v3659_v11 = vpop.xlane.xlu0 %3658  ;;  %v3621_v58 = vpop.xlane.xlu1 %3620  ;;  %v4281_v60 = vmul.f32 %v11798_v31, %v3897_v3  ;;  %v11805_v31 = vld [vmem:[#allocation121_spill] sm:$0xff]  ;;  %v3514_v17 = vld [vmem:[#allocation3 + $0x100] sm:$0xff] }
 0x476   : > { %v3762_v35 = vadd.f32 %v3659_v11, %v3570_v41  ;;  %v3743_v20 = vadd.f32 %v3621_v58, %v3551_v38  ;;  %v11799_v41 = vld [vmem:[#allocation115_spill] sm:$0xff]  ;;  %v11800_v38 = vld [vmem:[#allocation86_spill] sm:$0xff] }
 0x477   : > { %v6841_v8 = vpop.f32.mrb[46].mxu0  ;;  %v3572_v25 = vmul.f32 %v11799_v41, %v3508_v59  ;;  %v3553_v11 = vmul.f32 %v11800_v38, %v3489_v34  ;;  %v3493_v38 = vld [vmem:[#allocation3 + $0x58] sm:$0xff] }
 0x478   : > { %3827 = vst.msk [vmem:[#allocation3 + $0xc0] sm:$0xff] %vm3802_vm4, %v3762_v35  ;;  %3808 = vst.msk [vmem:[#allocation3 + $0x28] sm:$0xff] %vm3802_vm4, %v3743_v20  ;;  %v4910_v62 = vadd.f32 %v6841_v8, %v4266_v14  ;;  %v4451_v21 = vpop.f32.mrb[47].mxu0  ;;  %v3505_v14 = vld [vmem:[#allocation3 + $0xb8] sm:$0xff] }
 0x479   : > { %v4909_v6 = vadd.f32 %v4451_v21, %v4265_v19  ;;  %v3631_v37 = vpop.xlane.xlu0 %3630  ;;  %v3653_v18 = vpop.xlane.xlu1 %3652  ;;  %v11802_v19 = vld [vmem:[#allocation90_spill] sm:$0xff]  ;;  %v3510_v21 = vld [vmem:[#allocation3 + $0xe0] sm:$0xff] }
 0x47a   : > { %4974 = vst.msk [vmem:[#allocation4 + $0x78] sm:$0xff] %vm1557_vm2, %v4910_v62  ;;  %v3748_v4 = vadd.f32 %v3631_v37, %v3556_v46  ;;  %v3759_v13 = vadd.f32 %v3653_v18, %v3567_v32  ;;  %v3569_v8 = vmul.f32 %v11802_v19, %v3505_v14  ;;  %v11803_v32 = vld [vmem:[#allocation120_spill] sm:$0xff]  ;;  %v3557_v14 = vmul.f32 %v11808_v43, %v3493_v38 }
 0x47b   : > { %4973 = vst.msk [vmem:[#allocation4 + $0x70] sm:$0xff] %vm1557_vm2, %v4909_v6  ;;  %v6897_v51 = vpop.f32.mrb[46].mxu1  ;;  %v3574_v6 = vmul.f32 %v11803_v32, %v3510_v21  ;;  %v11804_v37 = vld [vmem:[#allocation96_spill] sm:$0xff]  ;;  %v11810_v21 = vld [vmem:[#allocation102_spill] sm:$0xff]  ;;  %v3530_v32 = vld [vmem:[#allocation3 + $0x180] sm:$0xff] }
 0x47c   : > { %3813 = vst.msk [vmem:[#allocation3 + $0x50] sm:$0xff] %vm3802_vm4, %v3748_v4  ;;  %3824 = vst.msk [vmem:[#allocation3 + $0xa8] sm:$0xff] %vm3802_vm4, %v3759_v13  ;;  %v4926_v15 = vadd.f32 %v6897_v51, %v4282_v40  ;;  %v4596_v42 = vpop.f32.mrb[47].mxu1  ;;  %v3555_v18 = vmul.f32 %v11804_v37, %v3491_v5  ;;  %v3507_v40 = vld [vmem:[#allocation3 + $0xc8] sm:$0xff]  ;;  %v11806_v51 = vld [vmem:[#allocation98_spill] sm:$0xff] }
 0x47d   : > { %v4925_v58 = vadd.f32 %v4596_v42, %v4281_v60  ;;  %v3663_v29 = vpop.xlane.xlu0 %3662  ;;  %v3625_v55 = vpop.xlane.xlu1 %3624  ;;  %v3560_v60 = vmul.f32 %v11805_v31, %v3496_v23  ;;  %v11812_v23 = vld [vmem:[#allocation105_spill] sm:$0xff] }
 0x47e   : > { %4990 = vst.msk [vmem:[#allocation4 + $0xf8] sm:$0xff] %vm1557_vm2, %v4926_v15  ;;  %v3764_v35 = vadd.f32 %v3663_v29, %v3572_v25  ;;  %v3745_v20 = vadd.f32 %v3625_v55, %v3553_v11  ;;  %v3571_v15 = vmul.f32 %v11806_v51, %v3507_v40  ;;  %v3512_v25 = vld [vmem:[#allocation3 + $0xf0] sm:$0xff]  ;;  %v11807_v29 = vld [vmem:[#allocation122_spill] sm:$0xff] }
 0x47f   : > { %4989 = vst.msk [vmem:[#allocation4 + $0xf0] sm:$0xff] %vm1557_vm2, %v4925_v58  ;;  %v3576_v55 = vmul.f32 %v11807_v29, %v3512_v25  ;;  %v3516_v31 = vld [vmem:[#allocation3 + $0x110] sm:$0xff]  ;;  %v11814_v25 = vld [vmem:[#allocation108_spill] sm:$0xff] }
 0x480   : > { %3829 = vst.msk [vmem:[#allocation3 + $0xd0] sm:$0xff] %vm3802_vm4, %v3764_v35  ;;  %3810 = vst.msk [vmem:[#allocation3 + $0x38] sm:$0xff] %vm3802_vm4, %v3745_v20  ;;  %v3532_v29 = vld [vmem:[#allocation3 + $0x190] sm:$0xff] }
 0x481   : > { %v3635_v3 = vpop.xlane.xlu0 %3634  ;;  %v3657_v62 = vpop.xlane.xlu1 %3656 }
 0x482   : > { %v3750_v46 = vadd.f32 %v3635_v3, %v3558_v63  ;;  %v3761_v30 = vadd.f32 %v3657_v62, %v3569_v8  ;;  %v3509_v63 = vld [vmem:[#allocation3 + $0xd8] sm:$0xff] }
 0x483   : > { %v11809_v3 = vld [vmem:[#allocation14_spill] sm:$0xff]  ;;  %v3573_v5 = vmul.f32 %v11810_v21, %v3509_v63  ;;  %v3518_v21 = vld [vmem:[#allocation3 + $0x120] sm:$0xff] }
 0x484   : > { %3815 = vst.msk [vmem:[#allocation3 + $0x60] sm:$0xff] %vm3802_vm4, %v3750_v46  ;;  %3826 = vst.msk [vmem:[#allocation3 + $0xb8] sm:$0xff] %vm3802_vm4, %v3761_v30  ;;  %v3578_v62 = vmul.f32 %v11809_v3, %v3514_v17  ;;  %v11815_v17 = vld [vmem:[#allocation24_spill] sm:$0xff] }
 0x485   : > { %v3667_v59 = vpop.xlane.xlu0 %3666  ;;  %v3629_v34 = vpop.xlane.xlu1 %3628  ;;  %v3596_v63 = vmul.f32 %v11815_v17, %v3532_v29 }
 0x486   : > { %v3766_v4 = vadd.f32 %v3667_v59, %v3574_v6  ;;  %v3747_v13 = vadd.f32 %v3629_v34, %v3555_v18  ;;  %v3495_v6 = vld [vmem:[#allocation3 + $0x68] sm:$0xff]  ;;  %v11811_v59 = vld [vmem:[#allocation91_spill] sm:$0xff] }
 0x487   : > { %v3594_v34 = vmul.f32 %v11811_v59, %v3530_v32  ;;  %v3559_v40 = vmul.f32 %v11812_v23, %v3495_v6  ;;  %v3916_v59 = vld [vmem:[#allocation4 + $0x188] sm:$0xff]  ;;  %v3915_v23 = vld [vmem:[#allocation4 + $0x180] sm:$0xff] }
 0x488   : > { %3831 = vst.msk [vmem:[#allocation3 + $0xe0] sm:$0xff] %vm3802_vm4, %v3766_v4  ;;  %3812 = vst.msk [vmem:[#allocation3 + $0x48] sm:$0xff] %vm3802_vm4, %v3747_v13 }
 0x489   : > { %v3639_v42 = vpop.xlane.xlu0 %3638  ;;  %v3661_v41 = vpop.xlane.xlu1 %3660 }
 0x48a   : > { %v3752_v11 = vadd.f32 %v3639_v42, %v3560_v60  ;;  %v3763_v58 = vadd.f32 %v3661_v41, %v3571_v15  ;;  %v3511_v60 = vld [vmem:[#allocation3 + $0xe8] sm:$0xff]  ;;  %v11813_v42 = vld [vmem:[#allocation15_spill] sm:$0xff] }
 0x48b   : > { %v3580_v41 = vmul.f32 %v11813_v42, %v3516_v31  ;;  %v3575_v38 = vmul.f32 %v11814_v25, %v3511_v60  ;;  %v11820_v60 = vld [vmem:[#allocation118_spill] sm:$0xff]  ;;  %v3534_v25 = vld [vmem:[#allocation3 + $0x1a0] sm:$0xff] }
 0x48c   : > { %3817 = vst.msk [vmem:[#allocation3 + $0x70] sm:$0xff] %vm3802_vm4, %v3752_v11  ;;  %3828 = vst.msk [vmem:[#allocation3 + $0xc8] sm:$0xff] %vm3802_vm4, %v3763_v58 }
 0x48d   : > { %v3671_v35 = vpop.xlane.xlu0 %3670  ;;  %v3633_v20 = vpop.xlane.xlu1 %3632 }
 0x48e   : > { %v3768_v19 = vadd.f32 %v3671_v35, %v3576_v55  ;;  %v3749_v8 = vadd.f32 %v3633_v20, %v3557_v14  ;;  %v3497_v55 = vld [vmem:[#allocation3 + $0x78] sm:$0xff]  ;;  %v3900_v35 = vld [vmem:[#allocation4 + $0x108] sm:$0xff]  ;;  %v3899_v20 = vld [vmem:[#allocation4 + $0x100] sm:$0xff] }
 0x490   : > { %3833 = vst.msk [vmem:[#allocation3 + $0xf0] sm:$0xff] %vm3802_vm4, %v3768_v19  ;;  %3814 = vst.msk [vmem:[#allocation3 + $0x58] sm:$0xff] %vm3802_vm4, %v3749_v8  ;;  %v11816_v19 = vld [vmem:[#allocation112_spill] sm:$0xff] }
 0x491   : > { %v3675_v46 = vpop.xlane.xlu0 %3674  ;;  %v3665_v30 = vpop.xlane.xlu1 %3664  ;;  %v3561_v8 = vmul.f32 %v11816_v19, %v3497_v55  ;;  %v3902_v55 = vld [vmem:[#allocation4 + $0x118] sm:$0xff] }
 0x492   : > { %v3770_v37 = vadd.f32 %v3675_v46, %v3578_v62  ;;  %v3765_v18 = vadd.f32 %v3665_v30, %v3573_v5  ;;  %v3513_v5 = vld [vmem:[#allocation3 + $0xf8] sm:$0xff] }
 0x493   : > { %v11817_v46 = vld [vmem:[#allocation34_spill] sm:$0xff] }
 0x494   : > { %3835 = vst.msk [vmem:[#allocation3 + $0x100] sm:$0xff] %vm3802_vm4, %v3770_v37  ;;  %3830 = vst.msk [vmem:[#allocation3 + $0xd8] sm:$0xff] %vm3802_vm4, %v3765_v18  ;;  %v4284_v30 = vmul.f32 %v11817_v46, %v3900_v35  ;;  %v11818_v37 = vld [vmem:[#allocation36_spill] sm:$0xff]  ;;  %v3901_v35 = vld [vmem:[#allocation4 + $0x110] sm:$0xff] }
 0x495   : > { %v3707_v4 = vpop.xlane.xlu0 %3706  ;;  %v3637_v13 = vpop.xlane.xlu1 %3636  ;;  %v4283_v18 = vmul.f32 %v11818_v37, %v3899_v20  ;;  %v3531_v46 = vld [vmem:[#allocation3 + $0x188] sm:$0xff]  ;;  %v11824_v37 = vld [vmem:[#allocation37_spill] sm:$0xff] }
 0x496   : > { %v3786_v51 = vadd.f32 %v3707_v4, %v3594_v34  ;;  %v3751_v15 = vadd.f32 %v3637_v13, %v3559_v40  ;;  %v11819_v13 = vld [vmem:[#allocation75_spill] sm:$0xff] }
 0x497   : > { %v3582_v31 = vmul.f32 %v11819_v13, %v3518_v21 }
 0x498   : > { %3851 = vst.msk [vmem:[#allocation3 + $0x180] sm:$0xff] %vm3802_vm4, %v3786_v51  ;;  %3816 = vst.msk [vmem:[#allocation3 + $0x68] sm:$0xff] %vm3802_vm4, %v3751_v15  ;;  %v3577_v51 = vmul.f32 %v11820_v60, %v3513_v5  ;;  %v3520_v5 = vld [vmem:[#allocation3 + $0x130] sm:$0xff] }
 0x499   : > { %v3679_v11 = vpop.xlane.xlu0 %3678  ;;  %v3669_v58 = vpop.xlane.xlu1 %3668 }
 0x49a   : > { %v3772_v43 = vadd.f32 %v3679_v11, %v3580_v41  ;;  %v3767_v14 = vadd.f32 %v3669_v58, %v3575_v38  ;;  %v3515_v38 = vld [vmem:[#allocation3 + $0x108] sm:$0xff]  ;;  %v4300_v11 = vmul.f32 %v10691_v22, %v3916_v59  ;;  %v11822_v22 = vld [vmem:[#allocation11_spill] sm:$0xff] }
 0x49c   : > { %3837 = vst.msk [vmem:[#allocation3 + $0x110] sm:$0xff] %vm3802_vm4, %v3772_v43  ;;  %3832 = vst.msk [vmem:[#allocation3 + $0xe8] sm:$0xff] %vm3802_vm4, %v3767_v14  ;;  %v4299_v43 = vmul.f32 %v10728_v45, %v3915_v23  ;;  %v11823_v45 = vld [vmem:[#allocation35_spill] sm:$0xff] }
 0x49d   : > { %v3711_v3 = vpop.xlane.xlu0 %3710  ;;  %v3641_v62 = vpop.xlane.xlu1 %3640 }
 0x49e   : > { %v3788_v32 = vadd.f32 %v3711_v3, %v3596_v63  ;;  %v3753_v6 = vadd.f32 %v3641_v62, %v3561_v8  ;;  %v11821_v63 = vld [vmem:[#allocation25_spill] sm:$0xff]  ;;  %v3579_v8 = vmul.f32 %v11822_v22, %v3515_v38 }
 0x49f   : > { %v6932_v34 = vpop.f32.mrb[48].mxu0  ;;  %v3598_v19 = vmul.f32 %v11821_v63, %v3534_v25  ;;  %v3536_v25 = vld [vmem:[#allocation3 + $0x1b0] sm:$0xff] }
 0x4a0   : > { %3853 = vst.msk [vmem:[#allocation3 + $0x190] sm:$0xff] %vm3802_vm4, %v3788_v32  ;;  %3818 = vst.msk [vmem:[#allocation3 + $0x78] sm:$0xff] %vm3802_vm4, %v3753_v6  ;;  %v4928_v40 = vadd.f32 %v6932_v34, %v4284_v30  ;;  %v4671_v4 = vpop.f32.mrb[49].mxu0  ;;  %v4286_v30 = vmul.f32 %v11823_v45, %v3902_v55  ;;  %v3918_v34 = vld [vmem:[#allocation4 + $0x198] sm:$0xff]  ;;  %v3904_v55 = vld [vmem:[#allocation4 + $0x128] sm:$0xff] }
 0x4a1   : > { %v4927_v15 = vadd.f32 %v4671_v4, %v4283_v18  ;;  %v3683_v42 = vpop.xlane.xlu0 %3682  ;;  %v3673_v41 = vpop.xlane.xlu1 %3672  ;;  %v4285_v18 = vmul.f32 %v11824_v37, %v3901_v35  ;;  %v11825_v4 = vld [vmem:[#allocation22_spill] sm:$0xff]  ;;  %v11829_v37 = vld [vmem:[#allocation93_spill] sm:$0xff] }
 0x4a2   : > { %4992 = vst.msk [vmem:[#allocation4 + $0x108] sm:$0xff] %vm1557_vm2, %v4928_v40  ;;  %v3774_v58 = vadd.f32 %v3683_v42, %v3582_v31  ;;  %v3769_v29 = vadd.f32 %v3673_v41, %v3577_v51  ;;  %v3584_v13 = vmul.f32 %v11825_v4, %v3520_v5  ;;  %v11826_v31 = vld [vmem:[#allocation20_spill] sm:$0xff]  ;;  %v3917_v51 = vld [vmem:[#allocation4 + $0x190] sm:$0xff]  ;;  %v11827_v35 = vld [vmem:[#allocation82_spill] sm:$0xff] }
 0x4a3   : > { %4991 = vst.msk [vmem:[#allocation4 + $0x100] sm:$0xff] %vm1557_vm2, %v4927_v15  ;;  %v6988_v14 = vpop.f32.mrb[48].mxu1  ;;  %v3595_v60 = vmul.f32 %v11826_v31, %v3531_v46  ;;  %v3533_v46 = vld [vmem:[#allocation3 + $0x198] sm:$0xff] }
 0x4a4   : > { %3839 = vst.msk [vmem:[#allocation3 + $0x120] sm:$0xff] %vm3802_vm4, %v3774_v58  ;;  %3834 = vst.msk [vmem:[#allocation3 + $0xf8] sm:$0xff] %vm3802_vm4, %v3769_v29  ;;  %v4944_v20 = vadd.f32 %v6988_v14, %v4300_v11  ;;  %v4816_v17 = vpop.f32.mrb[49].mxu1  ;;  %v3517_v58 = vld [vmem:[#allocation3 + $0x118] sm:$0xff]  ;;  %v4302_v29 = vmul.f32 %v10699_v33, %v3918_v34 }
 0x4a5   : > { %v4943_v3 = vadd.f32 %v4816_v17, %v4299_v43  ;;  %v3715_v62 = vpop.xlane.xlu0 %3714  ;;  %v3677_v21 = vpop.xlane.xlu1 %3676  ;;  %v4301_v43 = vmul.f32 %v10738_v12, %v3917_v51  ;;  %v3903_v17 = vld [vmem:[#allocation4 + $0x120] sm:$0xff]  ;;  %v4288_v12 = vmul.f32 %v10663_v28, %v3904_v55  ;;  %v11830_v28 = vld [vmem:[#allocation21_spill] sm:$0xff]  ;;  %v3519_v51 = vld [vmem:[#allocation3 + $0x128] sm:$0xff] }
 0x4a6   : > { %5008 = vst.msk [vmem:[#allocation4 + $0x188] sm:$0xff] %vm1557_vm2, %v4944_v20  ;;  %v3790_v32 = vadd.f32 %v3715_v62, %v3598_v19  ;;  %v3771_v6 = vadd.f32 %v3677_v21, %v3579_v8  ;;  %v3600_v20 = vmul.f32 %v11827_v35, %v3536_v25  ;;  %v11828_v8 = vld [vmem:[#allocation79_spill] sm:$0xff]  ;;  %v3597_v4 = vmul.f32 %v11830_v28, %v3533_v46  ;;  %v3921_v46 = vld [vmem:[#allocation4 + $0x1b0] sm:$0xff] }
 0x4a7   : > { %5007 = vst.msk [vmem:[#allocation4 + $0x180] sm:$0xff] %vm1557_vm2, %v4943_v3  ;;  %v6935_v59 = vpop.f32.mrb[50].mxu0  ;;  %v3581_v3 = vmul.f32 %v11828_v8, %v3517_v58  ;;  %v3522_v62 = vld [vmem:[#allocation3 + $0x140] sm:$0xff] }
 0x4a8   : > { %3855 = vst.msk [vmem:[#allocation3 + $0x1a0] sm:$0xff] %vm3802_vm4, %v3790_v32  ;;  %3836 = vst.msk [vmem:[#allocation3 + $0x108] sm:$0xff] %vm3802_vm4, %v3771_v6  ;;  %v4930_v23 = vadd.f32 %v6935_v59, %v4286_v30  ;;  %v4681_v40 = vpop.f32.mrb[51].mxu0  ;;  %v4287_v30 = vmul.f32 %v10704_v36, %v3903_v17  ;;  %v3920_v32 = vld [vmem:[#allocation4 + $0x1a8] sm:$0xff]  ;;  %v3919_v59 = vld [vmem:[#allocation4 + $0x1a0] sm:$0xff] }
 0x4a9   : > { %v4929_v15 = vadd.f32 %v4681_v40, %v4285_v18  ;;  %v3687_v42 = vpop.xlane.xlu0 %3686  ;;  %v3709_v41 = vpop.xlane.xlu1 %3708  ;;  %v3586_v18 = vmul.f32 %v11829_v37, %v3522_v62  ;;  %v4303_v25 = vmul.f32 %v10750_v48, %v3919_v59  ;;  %v3535_v48 = vld [vmem:[#allocation3 + $0x1a8] sm:$0xff]  ;;  %v3922_v62 = vld [vmem:[#allocation4 + $0x1b8] sm:$0xff] }
 0x4aa   : > { %4994 = vst.msk [vmem:[#allocation4 + $0x118] sm:$0xff] %vm1557_vm2, %v4930_v23  ;;  %v3776_v38 = vadd.f32 %v3687_v42, %v3584_v13  ;;  %v3787_v11 = vadd.f32 %v3709_v41, %v3595_v60  ;;  %v3538_v13 = vld [vmem:[#allocation3 + $0x1c0] sm:$0xff]  ;;  %v3906_v41 = vld [vmem:[#allocation4 + $0x138] sm:$0xff] }
 0x4ab   : > { %4993 = vst.msk [vmem:[#allocation4 + $0x110] sm:$0xff] %vm1557_vm2, %v4929_v15  ;;  %v4304_v15 = vmul.f32 %v10712_v9, %v3920_v32  ;;  %v11832_v9 = vld [vmem:[#allocation18_spill] sm:$0xff] }
 0x4ac   : > { %3841 = vst.msk [vmem:[#allocation3 + $0x130] sm:$0xff] %vm3802_vm4, %v3776_v38  ;;  %3852 = vst.msk [vmem:[#allocation3 + $0x188] sm:$0xff] %vm3802_vm4, %v3787_v11  ;;  %v6991_v14 = vpop.f32.mrb[50].mxu1  ;;  %v11831_v11 = vld [vmem:[#allocation29_spill] sm:$0xff]  ;;  %v3583_v35 = vmul.f32 %v11832_v9, %v3519_v51  ;;  %v3521_v59 = vld [vmem:[#allocation3 + $0x138] sm:$0xff] }
 0x4ad   : > { %v4946_v63 = vadd.f32 %v6991_v14, %v4302_v29  ;;  %v4826_v19 = vpop.f32.mrb[51].mxu1  ;;  %v3719_v22 = vpop.xlane.xlu0 %3718  ;;  %v3602_v58 = vmul.f32 %v11831_v11, %v3538_v13  ;;  %v3905_v29 = vld [vmem:[#allocation4 + $0x130] sm:$0xff]  ;;  %v11836_v51 = vld [vmem:[#allocation19_spill] sm:$0xff]  ;;  %v3908_v11 = vld [vmem:[#allocation4 + $0x148] sm:$0xff] }
 0x4ae   : > { %v4945_v33 = vadd.f32 %v4826_v19, %v4301_v43  ;;  %v3792_v21 = vadd.f32 %v3719_v22, %v3600_v20  ;;  %v3681_v5 = vpop.xlane.xlu1 %3680  ;;  %v3524_v20 = vld [vmem:[#allocation3 + $0x150] sm:$0xff]  ;;  %v4290_v22 = vmul.f32 %v10676_v61, %v3906_v41  ;;  %v11834_v61 = vld [vmem:[#allocation84_spill] sm:$0xff] }
 0x4af   : > { %5010 = vst.msk [vmem:[#allocation4 + $0x198] sm:$0xff] %vm1557_vm2, %v4946_v63  ;;  %v3773_v45 = vadd.f32 %v3681_v5, %v3581_v3  ;;  %v4289_v3 = vmul.f32 %v10716_v56, %v3905_v29  ;;  %v3599_v32 = vmul.f32 %v11834_v61, %v3535_v48  ;;  %v3528_v61 = vld [vmem:[#allocation3 + $0x170] sm:$0xff] }
 0x4b0   : > { %5009 = vst.msk [vmem:[#allocation4 + $0x190] sm:$0xff] %vm1557_vm2, %v4945_v33  ;;  %v6938_v6 = vpop.f32.mrb[52].mxu0 }
 0x4b1   : > { %3857 = vst.msk [vmem:[#allocation3 + $0x1b0] sm:$0xff] %vm3802_vm4, %v3792_v21  ;;  %3838 = vst.msk [vmem:[#allocation3 + $0x118] sm:$0xff] %vm3802_vm4, %v3773_v45  ;;  %v4932_v34 = vadd.f32 %v6938_v6, %v4288_v12  ;;  %v4691_v23 = vpop.f32.mrb[53].mxu0  ;;  %v3691_v40 = vpop.xlane.xlu0 %3690  ;;  %v11833_v21 = vld [vmem:[#allocation30_spill] sm:$0xff]  ;;  %v3540_v6 = vld [vmem:[#allocation3 + $0x1d0] sm:$0xff] }
 0x4b2   : > { %v4931_v31 = vadd.f32 %v4691_v23, %v4287_v30  ;;  %v3778_v60 = vadd.f32 %v3691_v40, %v3586_v18  ;;  %v3713_v36 = vpop.xlane.xlu1 %3712  ;;  %v3588_v5 = vmul.f32 %v11833_v21, %v3524_v20  ;;  %v4305_v40 = vmul.f32 %v10760_v52, %v3921_v46  ;;  %v3923_v21 = vld [vmem:[#allocation4 + $0x1c0] sm:$0xff] }
 0x4b3   : > { %4996 = vst.msk [vmem:[#allocation4 + $0x128] sm:$0xff] %vm1557_vm2, %v4932_v34  ;;  %v3789_v42 = vadd.f32 %v3713_v36, %v3597_v4  ;;  %v4306_v34 = vmul.f32 %v10723_v2, %v3922_v62  ;;  %v11835_v4 = vld [vmem:[#allocation32_spill] sm:$0xff]  ;;  %v3526_v2 = vld [vmem:[#allocation3 + $0x160] sm:$0xff] }
 0x4b4   : > { %4995 = vst.msk [vmem:[#allocation4 + $0x120] sm:$0xff] %vm1557_vm2, %v4931_v31  ;;  %v6994_v38 = vpop.f32.mrb[52].mxu1  ;;  %v3604_v13 = vmul.f32 %v11835_v4, %v3540_v6  ;;  %v11839_v62 = vld [vmem:[#allocation127_spill] sm:$0xff] }
 0x4b5   : > { %3843 = vst.msk [vmem:[#allocation3 + $0x140] sm:$0xff] %vm3802_vm4, %v3778_v60  ;;  %3854 = vst.msk [vmem:[#allocation3 + $0x198] sm:$0xff] %vm3802_vm4, %v3789_v42  ;;  %v4948_v55 = vadd.f32 %v6994_v38, %v4304_v15  ;;  %v4836_v43 = vpop.f32.mrb[53].mxu1  ;;  %v3723_v14 = vpop.xlane.xlu0 %3722  ;;  %v3585_v15 = vmul.f32 %v11836_v51, %v3521_v59  ;;  %v3537_v38 = vld [vmem:[#allocation3 + $0x1b8] sm:$0xff] }
 0x4b6   : > { %v4947_v17 = vadd.f32 %v4836_v43, %v4303_v25  ;;  %v3794_v63 = vadd.f32 %v3723_v14, %v3602_v58  ;;  %v3685_v19 = vpop.xlane.xlu1 %3684  ;;  %v11837_v58 = vld [vmem:[#allocation106_spill] sm:$0xff]  ;;  %v11838_v14 = vld [vmem:[#allocation81_spill] sm:$0xff] }
 0x4b7   : > { %5012 = vst.msk [vmem:[#allocation4 + $0x1a8] sm:$0xff] %vm1557_vm2, %v4948_v55  ;;  %v3775_v8 = vadd.f32 %v3685_v19, %v3583_v35  ;;  %v3590_v29 = vmul.f32 %v11837_v58, %v3526_v2  ;;  %v3907_v55 = vld [vmem:[#allocation4 + $0x140] sm:$0xff]  ;;  %v3601_v9 = vmul.f32 %v11838_v14, %v3537_v38  ;;  %v4292_v19 = vmul.f32 %v10734_v24, %v3908_v11  ;;  %v3910_v2 = vld [vmem:[#allocation4 + $0x158] sm:$0xff]  ;;  %v11843_v38 = vld [vmem:[#allocation76_spill] sm:$0xff] }
 0x4b8   : > { %5011 = vst.msk [vmem:[#allocation4 + $0x1a0] sm:$0xff] %vm1557_vm2, %v4947_v17  ;;  %v6941_v33 = vpop.f32.mrb[54].mxu0  ;;  %v3542_v35 = vld [vmem:[#allocation3 + $0x1e0] sm:$0xff]  ;;  %v3926_v14 = vld [vmem:[#allocation4 + $0x1d8] sm:$0xff] }
 0x4b9   : > { %3859 = vst.msk [vmem:[#allocation3 + $0x1c0] sm:$0xff] %vm3802_vm4, %v3794_v63  ;;  %3840 = vst.msk [vmem:[#allocation3 + $0x128] sm:$0xff] %vm3802_vm4, %v3775_v8  ;;  %v4934_v12 = vadd.f32 %v6941_v33, %v4290_v22  ;;  %v4701_v45 = vpop.f32.mrb[55].mxu0  ;;  %v3695_v30 = vpop.xlane.xlu0 %3694  ;;  %v3523_v63 = vld [vmem:[#allocation3 + $0x148] sm:$0xff]  ;;  %v4291_v8 = vmul.f32 %v10772_v53, %v3907_v55  ;;  %v3606_v33 = vmul.f32 %v11839_v62, %v3542_v35 }
 0x4ba   : > { %v4933_v37 = vadd.f32 %v4701_v45, %v4289_v3  ;;  %v3780_v18 = vadd.f32 %v3695_v30, %v3588_v5  ;;  %v3717_v56 = vpop.xlane.xlu1 %3716  ;;  %v3924_v22 = vld [vmem:[#allocation4 + $0x1c8] sm:$0xff]  ;;  %v11840_v45 = vld [vmem:[#allocation23_spill] sm:$0xff]  ;;  %v4294_v55 = vmul.f32 %v10756_v7, %v3910_v2 }
 0x4bb   : > { %4998 = vst.msk [vmem:[#allocation4 + $0x138] sm:$0xff] %vm1557_vm2, %v4934_v12  ;;  %v3791_v23 = vadd.f32 %v3717_v56, %v3599_v32  ;;  %v3587_v30 = vmul.f32 %v11840_v45, %v3523_v63  ;;  %v4308_v53 = vmul.f32 %v10745_v57, %v3924_v22  ;;  %v4307_v56 = vmul.f32 %v10782_v54, %v3923_v21  ;;  %v3544_v57 = vld [vmem:[#allocation3 + $0x1f0] sm:$0xff]  ;;  %v11844_v63 = vld [vmem:[#allocation88_spill] sm:$0xff]  ;;  %v3911_v21 = vld [vmem:[#allocation4 + $0x160] sm:$0xff] }
 0x4bc   : > { %4997 = vst.msk [vmem:[#allocation4 + $0x130] sm:$0xff] %vm1557_vm2, %v4933_v37  ;;  %v6997_v28 = vpop.f32.mrb[54].mxu1  ;;  %v3539_v37 = vld [vmem:[#allocation3 + $0x1c8] sm:$0xff] }
 0x4bd   : > { %3845 = vst.msk [vmem:[#allocation3 + $0x150] sm:$0xff] %vm3802_vm4, %v3780_v18  ;;  %3856 = vst.msk [vmem:[#allocation3 + $0x1a8] sm:$0xff] %vm3802_vm4, %v3791_v23  ;;  %v4950_v31 = vadd.f32 %v6997_v28, %v4306_v34  ;;  %v4846_v60 = vpop.f32.mrb[55].mxu1  ;;  %v3727_v36 = vpop.xlane.xlu0 %3726  ;;  %v11841_v34 = vld [vmem:[#allocation129_spill] sm:$0xff]  ;;  %v3912_v62 = vld [vmem:[#allocation4 + $0x168] sm:$0xff] }
 0x4be   : > { %v4949_v42 = vadd.f32 %v4846_v60, %v4305_v40  ;;  %v3796_v41 = vadd.f32 %v3727_v36, %v3604_v13  ;;  %v3689_v25 = vpop.xlane.xlu1 %3688  ;;  %v3592_v23 = vmul.f32 %v11841_v34, %v3528_v61  ;;  %v11842_v13 = vld [vmem:[#allocation87_spill] sm:$0xff] }
 0x4bf   : > { %5014 = vst.msk [vmem:[#allocation4 + $0x1b8] sm:$0xff] %vm1557_vm2, %v4950_v31  ;;  %v3777_v52 = vadd.f32 %v3689_v25, %v3585_v15  ;;  %v3603_v31 = vmul.f32 %v11842_v13, %v3539_v37  ;;  %v3525_v15 = vld [vmem:[#allocation3 + $0x158] sm:$0xff] }
 0x4c0   : > { %5013 = vst.msk [vmem:[#allocation4 + $0x1b0] sm:$0xff] %vm1557_vm2, %v4949_v42  ;;  %v3608_v42 = vmul.f32 %v10833_v50, %v3544_v57  ;;  %v3914_v13 = vld [vmem:[#allocation4 + $0x178] sm:$0xff]  ;;  %v3913_v57 = vld [vmem:[#allocation4 + $0x170] sm:$0xff] }
 0x4c1   : > { %3861 = vst.msk [vmem:[#allocation3 + $0x1d0] sm:$0xff] %vm3802_vm4, %v3796_v41  ;;  %3842 = vst.msk [vmem:[#allocation3 + $0x138] sm:$0xff] %vm3802_vm4, %v3777_v52  ;;  %v3699_v43 = vpop.xlane.xlu0 %3698  ;;  %v3909_v41 = vld [vmem:[#allocation4 + $0x150] sm:$0xff]  ;;  %v3589_v52 = vmul.f32 %v11843_v38, %v3525_v15 }
 0x4c2   : > { %v3782_v20 = vadd.f32 %v3699_v43, %v3590_v29  ;;  %v3721_v17 = vpop.xlane.xlu1 %3720  ;;  %v3541_v29 = vld [vmem:[#allocation3 + $0x1d8] sm:$0xff] }
 0x4c3   : > { %v3793_v48 = vadd.f32 %v3721_v17, %v3601_v9  ;;  %v4293_v9 = vmul.f32 %v10790_v47, %v3909_v41 }
 0x4c4   : > { %3847 = vst.msk [vmem:[#allocation3 + $0x160] sm:$0xff] %vm3802_vm4, %v3782_v20  ;;  %v6944_v3 = vpop.f32.mrb[56].mxu0  ;;  %v3925_v20 = vld [vmem:[#allocation4 + $0x1d0] sm:$0xff] }
 0x4c5   : > { %3858 = vst.msk [vmem:[#allocation3 + $0x1b8] sm:$0xff] %vm3802_vm4, %v3793_v48  ;;  %v4936_v5 = vadd.f32 %v6944_v3, %v4292_v19  ;;  %v4711_v46 = vpop.f32.mrb[57].mxu0  ;;  %v3731_v12 = vpop.xlane.xlu0 %3730  ;;  %v3605_v19 = vmul.f32 %v11844_v63, %v3541_v29  ;;  %v4310_v3 = vmul.f32 %v10767_v0, %v3926_v14  ;;  %v4309_v47 = vmul.f32 %v10800_v44, %v3925_v20 }
 0x4c6   : > { %v4935_v32 = vadd.f32 %v4711_v46, %v4291_v8  ;;  %v3798_v24 = vadd.f32 %v3731_v12, %v3606_v33  ;;  %v3693_v6 = vpop.xlane.xlu1 %3692  ;;  %v3527_v8 = vld [vmem:[#allocation3 + $0x168] sm:$0xff]  ;;  %v11845_v12 = vld [vmem:[#allocation27_spill] sm:$0xff]  ;;  %v4296_v0 = vmul.f32 %v10778_v26, %v3912_v62  ;;  %v4295_v44 = vmul.f32 %v10812_v10, %v3911_v21  ;;  %v5098_v62 = vld [vmem:[#allocation3 + $0x38] sm:$0xff] (!%p6299_p3) }
 0x4c7   : > { %5000 = vst.msk [vmem:[#allocation4 + $0x148] sm:$0xff] %vm1557_vm2, %v4936_v5  ;;  %v3779_v18 = vadd.f32 %v3693_v6, %v3587_v30  ;;  %v3591_v45 = vmul.f32 %v11845_v12, %v3527_v8  ;;  %v3928_v6 = vld [vmem:[#allocation4 + $0x1e8] sm:$0xff]  ;;  %v5099_v12 = vld [vmem:[#allocation3 + $0x40] sm:$0xff] (!%p6299_p3) }
 0x4c8   : > { %4999 = vst.msk [vmem:[#allocation4 + $0x140] sm:$0xff] %vm1557_vm2, %v4935_v32  ;;  %v7000_v59 = vpop.f32.mrb[56].mxu1  ;;  %v3543_v32 = vld [vmem:[#allocation3 + $0x1e8] sm:$0xff]  ;;  %v4312_v26 = vmul.f32 %v10787_v1, %v3928_v6  ;;  %v4298_v1 = vmul.f32 %v10797_v16, %v3914_v13  ;;  %v5109_v13 = vld [vmem:[#allocation3 + $0x90] sm:$0xff] (!%p6299_p3) }
 0x4c9   : > { %3863 = vst.msk [vmem:[#allocation3 + $0x1e0] sm:$0xff] %vm3802_vm4, %v3798_v24  ;;  %3844 = vst.msk [vmem:[#allocation3 + $0x148] sm:$0xff] %vm3802_vm4, %v3779_v18  ;;  %v4952_v40 = vadd.f32 %v7000_v59, %v4308_v53  ;;  %v4856_v28 = vpop.f32.mrb[57].mxu1  ;;  %v3703_v4 = vpop.xlane.xlu0 %3702  ;;  %v3927_v53 = vld [vmem:[#allocation4 + $0x1e0] sm:$0xff]  ;;  %v11846_v59 = vld [vmem:[#allocation94_spill] sm:$0xff] }
 0x4ca   : > { %v4951_v60 = vadd.f32 %v4856_v28, %v4307_v56  ;;  %v3784_v36 = vadd.f32 %v3703_v4, %v3592_v23  ;;  %v3725_v51 = vpop.xlane.xlu1 %3724  ;;  %v3607_v34 = vmul.f32 %v11846_v59, %v3543_v32  ;;  %v3529_v28 = vld [vmem:[#allocation3 + $0x178] sm:$0xff]  ;;  %v4311_v10 = vmul.f32 %v10822_v49, %v3927_v53  ;;  %v5092_v8 = vld [vmem:[#allocation3 + $0x8] sm:$0xff] (!%p6299_p3)  ;;  %v5101_v32 = vld [vmem:[#allocation3 + $0x50] sm:$0xff] (!%p6299_p3) }
 0x4cb   : > { %5016 = vst.msk [vmem:[#allocation4 + $0x1c8] sm:$0xff] %vm1557_vm2, %v4952_v40  ;;  %v3795_v54 = vadd.f32 %v3725_v51, %v3603_v31  ;;  %v11847_v51 = vld [vmem:[#allocation101_spill] sm:$0xff]  ;;  %v4297_v49 = vmul.f32 %v10831_v39, %v3913_v57  ;;  %v5106_v53 = vld [vmem:[#allocation3 + $0x78] sm:$0xff] (!%p6299_p3) }
 0x4cc   : > { %5015 = vst.msk [vmem:[#allocation4 + $0x1c0] sm:$0xff] %vm1557_vm2, %v4951_v60  ;;  %v3593_v15 = vmul.f32 %v11847_v51, %v3529_v28  ;;  %v5114_v51 = vld [vmem:[#allocation3 + $0xb8] sm:$0xff] (!%p6299_p3) }
 0x4cd   : > { %3849 = vst.msk [vmem:[#allocation3 + $0x170] sm:$0xff] %vm3802_vm4, %v3784_v36  ;;  %3860 = vst.msk [vmem:[#allocation3 + $0x1c8] sm:$0xff] %vm3802_vm4, %v3795_v54  ;;  %v3735_v25 = vpop.xlane.xlu0 %3734 }
 0x4ce   : > { %v3800_v11 = vadd.f32 %v3735_v25, %v3608_v42  ;;  %v3697_v58 = vpop.xlane.xlu1 %3696  ;;  %v3545_v42 = vld [vmem:[#allocation3 + $0x1f8] sm:$0xff] }
 0x4cf   : > { %v3781_v43 = vadd.f32 %v3697_v58, %v3589_v52  ;;  %v3930_v25 = vld [vmem:[#allocation4 + $0x1f8] sm:$0xff]  ;;  %v3609_v29 = vmul.f32 %v10810_v27, %v3545_v42  ;;  %v5093_v27 = vld [vmem:[#allocation3 + $0x10] sm:$0xff] (!%p6299_p3)  ;;  %v5116_v42 = vld [vmem:[#allocation3 + $0xc8] sm:$0xff] (!%p6299_p3) }
 0x4d0   : > { %3865 = vst.msk [vmem:[#allocation3 + $0x1f0] sm:$0xff] %vm3802_vm4, %v3800_v11  ;;  %v6947_v35 = vpop.f32.mrb[58].mxu0  ;;  %7682 = vrcp.f32 (!%p6299_p3), %v5093_v27 }
 0x4d1   : > { %3846 = vst.msk [vmem:[#allocation3 + $0x158] sm:$0xff] %vm3802_vm4, %v3781_v43  ;;  %v4938_v50 = vadd.f32 %v6947_v35, %v4294_v55  ;;  %v4721_v17 = vpop.f32.mrb[59].mxu0 }
 0x4d2   : > { %v4937_v48 = vadd.f32 %v4721_v17, %v4293_v9  ;;  %v3729_v22 = vpop.xlane.xlu1 %3728  ;;  %v3929_v9 = vld [vmem:[#allocation4 + $0x1f0] sm:$0xff] }
 0x4d3   : > { %5002 = vst.msk [vmem:[#allocation4 + $0x158] sm:$0xff] %vm1557_vm2, %v4938_v50  ;;  %v3797_v7 = vadd.f32 %v3729_v22, %v3605_v19  ;;  %v5091_v19 = vld [vmem:[#allocation3] sm:$0xff] (!%p6299_p3)  ;;  %v7901_v22 = vmov (!%p6299_p3), 0  }
 0x4d4   : > { %5001 = vst.msk [vmem:[#allocation4 + $0x150] sm:$0xff] %vm1557_vm2, %v4937_v48  ;;  %v7003_v33 = vpop.f32.mrb[58].mxu1  ;;  %v5094_v48 = vld [vmem:[#allocation3 + $0x18] sm:$0xff] (!%p6299_p3)  ;;  %7681 = vset.pattern.permute.xlu1 (!%p6299_p3), %v7901_v22  ;;  %7680 = vset.pattern.permute.xlu0 (!%p6299_p3), %v7901_v22  ;;  %7684 = vrcp.f32 (!%p6299_p3), %v5091_v19  ;;  %v5125_v19 = vld [vmem:[#allocation3 + $0x110] sm:$0xff] (!%p6299_p3)  ;;  %v5128_v22 = vld [vmem:[#allocation3 + $0x128] sm:$0xff] (!%p6299_p3) }
 0x4d5   : > { %3862 = vst.msk [vmem:[#allocation3 + $0x1d8] sm:$0xff] %vm3802_vm4, %v3797_v7  ;;  %v4954_v5 = vadd.f32 %v7003_v33, %v4310_v3  ;;  %v4866_v46 = vpop.f32.mrb[59].mxu1  ;;  %v4249_v38 = vpop.permute.xlu0 %4248  ;;  %7686 = vrcp.f32 (!%p6299_p3), %v5094_v48  ;;  %v5096_v3 = vld [vmem:[#allocation3 + $0x28] sm:$0xff] (!%p6299_p3)  ;;  %v5095_v7 = vld [vmem:[#allocation3 + $0x20] sm:$0xff] (!%p6299_p3) }
 0x4d6   : > { %v4953_v30 = vadd.f32 %v4866_v46, %v4309_v47  ;;  %v3701_v61 = vpop.xlane.xlu1 %3700  ;;  %v4314_v14 = vmul.f32 %v4249_v38, %v3930_v25  ;;  %7688 = vrcp.f32 (!%p6299_p3), %v5092_v8  ;;  %v5097_v47 = vld [vmem:[#allocation3 + $0x30] sm:$0xff] (!%p6299_p3)  ;;  %v5118_v25 = vld [vmem:[#allocation3 + $0xd8] sm:$0xff] (!%p6299_p3) }
 0x4d7   : > { %5018 = vst.msk [vmem:[#allocation4 + $0x1d8] sm:$0xff] %vm1557_vm2, %v4954_v5  ;;  %v3783_v24 = vadd.f32 %v3701_v61, %v3591_v45  ;;  %7690 = vrcp.f32 (!%p6299_p3), %v5096_v3  ;;  %v5100_v5 = vld [vmem:[#allocation3 + $0x48] sm:$0xff] (!%p6299_p3)  ;;  %v5127_v3 = vld [vmem:[#allocation3 + $0x120] sm:$0xff] (!%p6299_p3) }
 0x4d8   : > { %5017 = vst.msk [vmem:[#allocation4 + $0x1d0] sm:$0xff] %vm1557_vm2, %v4953_v30  ;;  %v6950_v37 = vpop.f32.mrb[60].mxu0  ;;  %7692 = vrcp.f32 (!%p6299_p3), %v5095_v7  ;;  %v5102_v30 = vld [vmem:[#allocation3 + $0x58] sm:$0xff] (!%p6299_p3) }
 0x4d9   : > { %3848 = vst.msk [vmem:[#allocation3 + $0x168] sm:$0xff] %vm3802_vm4, %v3783_v24  ;;  %v4940_v18 = vadd.f32 %v6950_v37, %v4296_v0  ;;  %v4731_v56 = vpop.f32.mrb[61].mxu0  ;;  %7694 = vrcp.f32 (!%p6299_p3), %v5098_v62  ;;  %v5104_v24 = vld [vmem:[#allocation3 + $0x68] sm:$0xff] (!%p6299_p3)  ;;  %v5130_v62 = vld [vmem:[#allocation3 + $0x138] sm:$0xff] (!%p6299_p3) }
 0x4da   : > { %v4939_v23 = vadd.f32 %v4731_v56, %v4295_v44  ;;  %v3733_v40 = vpop.xlane.xlu1 %3732  ;;  %v7683_v33 = vpop.eup (!%p6299_p3), %7682  ;;  %7696 = vrcp.f32 (!%p6299_p3), %v5097_v47  ;;  %v5103_v44 = vld [vmem:[#allocation3 + $0x60] sm:$0xff] (!%p6299_p3)  ;;  %v5105_v56 = vld [vmem:[#allocation3 + $0x70] sm:$0xff] (!%p6299_p3) }
 0x4db   : > { %5004 = vst.msk [vmem:[#allocation4 + $0x168] sm:$0xff] %vm1557_vm2, %v4940_v18  ;;  %v3799_v4 = vadd.f32 %v3733_v40, %v3607_v34  ;;  %5295 = vperm.xlu1 (!%p6299_p3), %7681, %v7683_v33   ;;  %7698 = vrcp.f32 (!%p6299_p3), %v5100_v5  ;;  %v5108_v34 = vld [vmem:[#allocation3 + $0x88] sm:$0xff] (!%p6299_p3)  ;;  %v5107_v40 = vld [vmem:[#allocation3 + $0x80] sm:$0xff] (!%p6299_p3)  ;;  %v5129_v33 = vld [vmem:[#allocation3 + $0x130] sm:$0xff] (!%p6299_p3) }
 0x4dc   : > { %5003 = vst.msk [vmem:[#allocation4 + $0x160] sm:$0xff] %vm1557_vm2, %v4939_v23  ;;  %v7006_v31 = vpop.f32.mrb[60].mxu1  ;;  %7700 = vrcp.f32 (!%p6299_p3), %v5099_v12  ;;  %v5132_v5 = vld [vmem:[#allocation3 + $0x148] sm:$0xff] (!%p6299_p3)  ;;  %v5131_v12 = vld [vmem:[#allocation3 + $0x140] sm:$0xff] (!%p6299_p3) }
 0x4dd   : > { %3864 = vst.msk [vmem:[#allocation3 + $0x1e8] sm:$0xff] %vm3802_vm4, %v3799_v4  ;;  %v4956_v60 = vadd.f32 %v7006_v31, %v4312_v26  ;;  %v4876_v36 = vpop.f32.mrb[61].mxu1  ;;  %7702 = vrcp.f32 (!%p6299_p3), %v5102_v30  ;;  %v5110_v26 = vld [vmem:[#allocation3 + $0x98] sm:$0xff] (!%p6299_p3)  ;;  %v5112_v31 = vld [vmem:[#allocation3 + $0xa8] sm:$0xff] (!%p6299_p3) }
 0x4de   : > { %v4955_v54 = vadd.f32 %v4876_v36, %v4311_v10  ;;  %v3705_v2 = vpop.xlane.xlu1 %3704  ;;  %v7685_v21 = vpop.eup (!%p6299_p3), %7684  ;;  %7704 = vrcp.f32 (!%p6299_p3), %v5101_v32  ;;  %v5134_v30 = vld [vmem:[#allocation3 + $0x158] sm:$0xff] (!%p6299_p3)  ;;  %v5133_v32 = vld [vmem:[#allocation3 + $0x150] sm:$0xff] (!%p6299_p3) }
 0x4df   : > { %5020 = vst.msk [vmem:[#allocation4 + $0x1e8] sm:$0xff] %vm1557_vm2, %v4956_v60  ;;  %v3785_v41 = vadd.f32 %v3705_v2, %v3593_v15  ;;  %v7687_v46 = vpop.eup (!%p6299_p3), %7686  ;;  %5285 = vperm.xlu0 (!%p6299_p3), %7680, %v7685_v21   ;;  %7706 = vrcp.f32 (!%p6299_p3), %v5104_v24  ;;  %v5111_v60 = vld [vmem:[#allocation3 + $0xa0] sm:$0xff] (!%p6299_p3) }
 0x4e0   : > { %5019 = vst.msk [vmem:[#allocation4 + $0x1e0] sm:$0xff] %vm1557_vm2, %v4955_v54  ;;  %v6953_v52 = vpop.f32.mrb[62].mxu0  ;;  %v7689_v45 = vpop.eup (!%p6299_p3), %7688  ;;  %5300 = vperm.xlu1 (!%p6299_p3), %7681, %v7687_v46   ;;  %7708 = vrcp.f32 (!%p6299_p3), %v5103_v44  ;;  %v5113_v54 = vld [vmem:[#allocation3 + $0xb0] sm:$0xff] (!%p6299_p3)  ;;  %v5136_v24 = vld [vmem:[#allocation3 + $0x168] sm:$0xff] (!%p6299_p3)  ;;  %v5135_v44 = vld [vmem:[#allocation3 + $0x160] sm:$0xff] (!%p6299_p3) }
 0x4e1   : > { %3850 = vst.msk [vmem:[#allocation3 + $0x178] sm:$0xff] %vm3802_vm4, %v3785_v41  ;;  %v4942_v11 = vadd.f32 %v6953_v52, %v4298_v1  ;;  %v4741_v58 = vpop.f32.mrb[63].mxu0  ;;  %v7691_v61 = vpop.eup (!%p6299_p3), %7690  ;;  %7710 = vrcp.f32 (!%p6299_p3), %v5106_v53  ;;  %v5115_v41 = vld [vmem:[#allocation3 + $0xc0] sm:$0xff] (!%p6299_p3)  ;;  %v5117_v52 = vld [vmem:[#allocation3 + $0xd0] sm:$0xff] (!%p6299_p3) }
 0x4e2   : > { %v4941_v55 = vadd.f32 %v4741_v58, %v4297_v49  ;;  %v3737_v43 = vpop.xlane.xlu1 %3736  ;;  %v7693_v0 = vpop.eup (!%p6299_p3), %7692  ;;  %7712 = vrcp.f32 (!%p6299_p3), %v5105_v56  ;;  %v5120_v58 = vld [vmem:[#allocation3 + $0xe8] sm:$0xff] (!%p6299_p3)  ;;  %v5137_v56 = vld [vmem:[#allocation3 + $0x170] sm:$0xff] (!%p6299_p3) }
 0x4e3   : > { %5006 = vst.msk [vmem:[#allocation4 + $0x178] sm:$0xff] %vm1557_vm2, %v4942_v11  ;;  %v3801_v16 = vadd.f32 %v3737_v43, %v3609_v29  ;;  %5290 = vperm.xlu0 (!%p6299_p3), %7680, %v7689_v45   ;;  %v7695_v6 = vpop.eup (!%p6299_p3), %7694  ;;  %7714 = vrcp.f32 (!%p6299_p3), %v5108_v34  ;;  %v5140_v34 = vld [vmem:[#allocation3 + $0x188] sm:$0xff] (!%p6299_p3) }
 0x4e4   : > { %5005 = vst.msk [vmem:[#allocation4 + $0x170] sm:$0xff] %vm1557_vm2, %v4941_v55  ;;  %v7009_v39 = vpop.f32.mrb[62].mxu1  ;;  %5310 = vperm.xlu1 (!%p6299_p3), %7681, %v7691_v61   ;;  %v7697_v37 = vpop.eup (!%p6299_p3), %7696  ;;  %7716 = vrcp.f32 (!%p6299_p3), %v5107_v40  ;;  %v5119_v55 = vld [vmem:[#allocation3 + $0xe0] sm:$0xff] (!%p6299_p3) }
 0x4e5   : > { %3866 = vst.msk [vmem:[#allocation3 + $0x1f8] sm:$0xff] %vm3802_vm4, %v3801_v16  ;;  %v4958_v35 = vadd.f32 %v7009_v39, %v4314_v14  ;;  %v4886_v20 = vpop.f32.mrb[63].mxu1  ;;  %5090 = sbr.rel (%p6299_p3) target bundleno = 1502 (0x5de), region = 154  ;;  %v7699_v18 = vpop.eup (!%p6299_p3), %7698  ;;  %7718 = vrcp.f32 (!%p6299_p3), %v5110_v26  ;;  %v5122_v14 = vld [vmem:[#allocation3 + $0xf8] sm:$0xff] (!%p6299_p3)  ;;  %v5121_v39 = vld [vmem:[#allocation3 + $0xf0] sm:$0xff] (!%p6299_p3)  ;;  %v5139_v40 = vld [vmem:[#allocation3 + $0x180] sm:$0xff] (!%p6299_p3) }
 0x4e6   : > { %v4244_v50 = vpop.permute.xlu1 %4243  ;;  %v7701_v59 = vpop.eup (!%p6299_p3), %7700  ;;  %7720 = vrcp.f32 (!%p6299_p3), %v5109_v13  ;;  %v5142_v26 = vld [vmem:[#allocation3 + $0x198] sm:$0xff] (!%p6299_p3)  ;;  %v5141_v13 = vld [vmem:[#allocation3 + $0x190] sm:$0xff] (!%p6299_p3) }
 0x4e7   : > { %5022 = vst.msk [vmem:[#allocation4 + $0x1f8] sm:$0xff] %vm1557_vm2, %v4958_v35  ;;  %v4313_v17 = vmul.f32 %v4244_v50, %v3929_v9  ;;  %5305 = vperm.xlu0 (!%p6299_p3), %7680, %v7693_v0   ;;  %v7703_v23 = vpop.eup (!%p6299_p3), %7702  ;;  %7722 = vrcp.f32 (!%p6299_p3), %v5112_v31  ;;  %v5124_v35 = vld [vmem:[#allocation3 + $0x108] sm:$0xff] (!%p6299_p3)  ;;  %v5123_v50 = vld [vmem:[#allocation3 + $0x100] sm:$0xff] (!%p6299_p3) }
 0x4e8   : > { %5320 = vperm.xlu1 (!%p6299_p3), %7681, %v7695_v6   ;;  %v7705_v28 = vpop.eup (!%p6299_p3), %7704  ;;  %7724 = vrcp.f32 (!%p6299_p3), %v5111_v60  ;;  %v5138_v53 = vld [vmem:[#allocation3 + $0x178] sm:$0xff] (!%p6299_p3)  ;;  %v5144_v31 = vld [vmem:[#allocation3 + $0x1a8] sm:$0xff] (!%p6299_p3)  ;;  %v5143_v60 = vld [vmem:[#allocation3 + $0x1a0] sm:$0xff] (!%p6299_p3) }
 0x4e9   : > { %v4957_v63 = vadd.f32 %v4886_v20, %v4313_v17  ;;  %v7707_v4 = vpop.eup (!%p6299_p3), %7706  ;;  %7726 = vrcp.f32 (!%p6299_p3), %v5114_v51  ;;  %v5146_v51 = vld [vmem:[#allocation3 + $0x1b8] sm:$0xff] (!%p6299_p3) }
 0x4ea   : > { %v7709_v10 = vpop.eup (!%p6299_p3), %7708  ;;  %7728 = vrcp.f32 (!%p6299_p3), %v5113_v54  ;;  %v5145_v54 = vld [vmem:[#allocation3 + $0x1b0] sm:$0xff] (!%p6299_p3) }
 0x4eb   : > { %5021 = vst.msk [vmem:[#allocation4 + $0x1f0] sm:$0xff] %vm1557_vm2, %v4957_v63  ;;  %5315 = vperm.xlu0 (!%p6299_p3), %7680, %v7697_v37   ;;  %v7711_v57 = vpop.eup (!%p6299_p3), %7710  ;;  %7730 = vrcp.f32 (!%p6299_p3), %v5116_v42  ;;  %v5126_v63 = vld [vmem:[#allocation3 + $0x118] sm:$0xff] (!%p6299_p3)  ;;  %v5148_v42 = vld [vmem:[#allocation3 + $0x1c8] sm:$0xff] (!%p6299_p3) }
 0x4ec   : > { %5330 = vperm.xlu1 %7681, %v7699_v18   ;;  %v7713_v36 = vpop.eup %7712  ;;  %7732 = vrcp.f32 %v5115_v41  ;;  %v5147_v41 = vld [vmem:[#allocation3 + $0x1c0] sm:$0xff] }
 0x4ed   : > { %v7715_v15 = vpop.eup %7714  ;;  %7734 = vrcp.f32 %v5118_v25  ;;  %v5150_v25 = vld [vmem:[#allocation3 + $0x1d8] sm:$0xff] }
 0x4ee   : > { %v7717_v2 = vpop.eup %7716  ;;  %7736 = vrcp.f32 %v5117_v52  ;;  %v5149_v52 = vld [vmem:[#allocation3 + $0x1d0] sm:$0xff] }
 0x4ef   : > { %5325 = vperm.xlu0 %7680, %v7701_v59   ;;  %v7719_v1 = vpop.eup %7718  ;;  %7738 = vrcp.f32 %v5120_v58  ;;  %v5152_v58 = vld [vmem:[#allocation3 + $0x1e8] sm:$0xff] }
 0x4f0   : > { %5340 = vperm.xlu1 %7681, %v7703_v23   ;;  %v7721_v49 = vpop.eup %7720  ;;  %7740 = vrcp.f32 %v5119_v55  ;;  %v5151_v55 = vld [vmem:[#allocation3 + $0x1e0] sm:$0xff] }
 0x4f1   : > { %v7723_v38 = vpop.eup %7722  ;;  %7742 = vrcp.f32 %v5122_v14  ;;  %v5154_v14 = vld [vmem:[#allocation3 + $0x1f8] sm:$0xff] }
 0x4f2   : > { %v7725_v11 = vpop.eup %7724  ;;  %7744 = vrcp.f32 %v5121_v39  ;;  %v5153_v39 = vld [vmem:[#allocation3 + $0x1f0] sm:$0xff] }
 0x4f3   : > { %5335 = vperm.xlu0 %7680, %v7705_v28   ;;  %v7727_v29 = vpop.eup %7726  ;;  %7746 = vrcp.f32 %v5124_v35 }
 0x4f4   : > { %5350 = vperm.xlu1 %7681, %v7707_v4   ;;  %v7729_v43 = vpop.eup %7728  ;;  %7748 = vrcp.f32 %v5123_v50 }
 0x4f5   : > { %v7731_v16 = vpop.eup %7730  ;;  %7750 = vrcp.f32 %v5126_v63 }
 0x4f6   : > { %v7733_v9 = vpop.eup %7732  ;;  %7752 = vrcp.f32 %v5125_v19  ;;  %v5221_v19 = vld [vmem:[#allocation4 + $0x10] sm:$0xff] }
 0x4f7   : > { %5345 = vperm.xlu0 %7680, %v7709_v10   ;;  %v7735_v20 = vpop.eup %7734  ;;  %7754 = vrcp.f32 %v5128_v22 }
 0x4f8   : > { %5360 = vperm.xlu1 %7681, %v7711_v57   ;;  %v7737_v17 = vpop.eup %7736  ;;  %7756 = vrcp.f32 %v5127_v3 }
 0x4f9   : > { %v7739_v27 = vpop.eup %7738  ;;  %7758 = vrcp.f32 %v5130_v62  ;;  %v5222_v62 = vld [vmem:[#allocation4 + $0x18] sm:$0xff] }
 0x4fa   : > { %v7741_v48 = vpop.eup %7740  ;;  %7760 = vrcp.f32 %v5129_v33 }
 0x4fb   : > { %5355 = vperm.xlu0 %7680, %v7713_v36   ;;  %v7743_v8 = vpop.eup %7742  ;;  %7762 = vrcp.f32 %v5132_v5 }
 0x4fc   : > { %5370 = vperm.xlu1 %7681, %v7715_v15   ;;  %v7745_v7 = vpop.eup %7744  ;;  %7764 = vrcp.f32 %v5131_v12  ;;  %v5224_v12 = vld [vmem:[#allocation4 + $0x28] sm:$0xff] }
 0x4fd   : > { %v7747_v47 = vpop.eup %7746  ;;  %7766 = vrcp.f32 %v5134_v30 }
 0x4fe   : > { %v7749_v21 = vpop.eup %7748  ;;  %7768 = vrcp.f32 %v5133_v32 }
 0x4ff   : > { %5365 = vperm.xlu0 %7680, %v7717_v2   ;;  %v7751_v46 = vpop.eup %7750  ;;  %7770 = vrcp.f32 %v5136_v24  ;;  %v5226_v24 = vld [vmem:[#allocation4 + $0x38] sm:$0xff] }
 0x500   : > { %5380 = vperm.xlu1 %7681, %v7719_v1   ;;  %v7753_v45 = vpop.eup %7752  ;;  %7772 = vrcp.f32 %v5135_v44 }
 0x501   : > { %v7755_v61 = vpop.eup %7754  ;;  %7774 = vrcp.f32 %v5138_v53 }
 0x502   : > { %v7757_v0 = vpop.eup %7756  ;;  %7776 = vrcp.f32 %v5137_v56  ;;  %v5228_v56 = vld [vmem:[#allocation4 + $0x48] sm:$0xff] }
 0x503   : > { %5375 = vperm.xlu0 %7680, %v7721_v49   ;;  %v7759_v6 = vpop.eup %7758  ;;  %7778 = vrcp.f32 %v5140_v34 }
 0x504   : > { %5390 = vperm.xlu1 %7681, %v7723_v38   ;;  %v7761_v37 = vpop.eup %7760  ;;  %7780 = vrcp.f32 %v5139_v40 }
 0x505   : > { %v7763_v18 = vpop.eup %7762  ;;  %7782 = vrcp.f32 %v5142_v26  ;;  %v5230_v26 = vld [vmem:[#allocation4 + $0x58] sm:$0xff] }
 0x506   : > { %v7765_v59 = vpop.eup %7764  ;;  %7784 = vrcp.f32 %v5141_v13 }
 0x507   : > { %5385 = vperm.xlu0 %7680, %v7725_v11   ;;  %v7767_v23 = vpop.eup %7766  ;;  %7786 = vrcp.f32 %v5144_v31 }
 0x508   : > { %5400 = vperm.xlu1 %7681, %v7727_v29   ;;  %v7769_v28 = vpop.eup %7768  ;;  %7788 = vrcp.f32 %v5143_v60  ;;  %v5232_v60 = vld [vmem:[#allocation4 + $0x68] sm:$0xff] }
 0x509   : > { %v7771_v4 = vpop.eup %7770  ;;  %7790 = vrcp.f32 %v5146_v51 }
 0x50a   : > { %v7773_v10 = vpop.eup %7772  ;;  %7792 = vrcp.f32 %v5145_v54 }
 0x50b   : > { %5395 = vperm.xlu0 %7680, %v7729_v43   ;;  %v7775_v57 = vpop.eup %7774  ;;  %7794 = vrcp.f32 %v5148_v42  ;;  %v5234_v42 = vld [vmem:[#allocation4 + $0x78] sm:$0xff] }
 0x50c   : > { %5410 = vperm.xlu1 %7681, %v7731_v16   ;;  %v7777_v36 = vpop.eup %7776  ;;  %7796 = vrcp.f32 %v5147_v41 }
 0x50d   : > { %v7779_v15 = vpop.eup %7778  ;;  %7798 = vrcp.f32 %v5150_v25 }
 0x50e   : > { %v7781_v2 = vpop.eup %7780  ;;  %7800 = vrcp.f32 %v5149_v52  ;;  %v5236_v52 = vld [vmem:[#allocation4 + $0x88] sm:$0xff] }
 0x50f   : > { %5405 = vperm.xlu0 %7680, %v7733_v9   ;;  %v7783_v1 = vpop.eup %7782  ;;  %7802 = vrcp.f32 %v5152_v58 }
 0x510   : > { %5420 = vperm.xlu1 %7681, %v7735_v20   ;;  %v7785_v49 = vpop.eup %7784  ;;  %7804 = vrcp.f32 %v5151_v55 }
 0x511   : > { %v7787_v38 = vpop.eup %7786  ;;  %7806 = vrcp.f32 %v5154_v14  ;;  %v5238_v14 = vld [vmem:[#allocation4 + $0x98] sm:$0xff] }
 0x512   : > { %v7789_v11 = vpop.eup %7788  ;;  %7808 = vrcp.f32 %v5153_v39 }
 0x513   : > { %5415 = vperm.xlu0 %7680, %v7737_v17   ;;  %v7791_v29 = vpop.eup %7790 }
 0x514   : > { %5430 = vperm.xlu1 %7681, %v7739_v27   ;;  %v7793_v43 = vpop.eup %7792 }
 0x515   : > { %v7795_v16 = vpop.eup %7794 }
 0x516   : > { %v7797_v9 = vpop.eup %7796 }
 0x517   : > { %5425 = vperm.xlu0 %7680, %v7741_v48   ;;  %v7799_v35 = vpop.eup %7798  ;;  %v5219_v48 = vld [vmem:[#allocation4] sm:$0xff] }
 0x518   : > { %5440 = vperm.xlu1 %7681, %v7743_v8   ;;  %v7801_v20 = vpop.eup %7800 }
 0x519   : > { %v7803_v50 = vpop.eup %7802 }
 0x51a   : > { %v7805_v17 = vpop.eup %7804 }
 0x51b   : > { %5435 = vperm.xlu0 %7680, %v7745_v7   ;;  %v7807_v63 = vpop.eup %7806 }
 0x51c   : > { %5450 = vperm.xlu1 %7681, %v7747_v47   ;;  %v7809_v27 = vpop.eup %7808  ;;  %v5220_v47 = vld [vmem:[#allocation4 + $0x8] sm:$0xff] }
 0x51f   : > { %5445 = vperm.xlu0 %7680, %v7749_v21  }
 0x520   : > { %5460 = vperm.xlu1 %7681, %v7751_v46  }
 0x523   : > { %5455 = vperm.xlu0 %7680, %v7753_v45   ;;  %v5223_v45 = vld [vmem:[#allocation4 + $0x20] sm:$0xff] }
 0x524   : > { %5470 = vperm.xlu1 %7681, %v7755_v61  }
 0x527   : > { %5465 = vperm.xlu0 %7680, %v7757_v0  }
 0x528   : > { %5480 = vperm.xlu1 %7681, %v7759_v6   ;;  %v5225_v6 = vld [vmem:[#allocation4 + $0x30] sm:$0xff] }
 0x52b   : > { %5475 = vperm.xlu0 %7680, %v7761_v37  }
 0x52c   : > { %5490 = vperm.xlu1 %7681, %v7763_v18  }
 0x52f   : > { %5485 = vperm.xlu0 %7680, %v7765_v59   ;;  %v5227_v59 = vld [vmem:[#allocation4 + $0x40] sm:$0xff] }
 0x530   : > { %5500 = vperm.xlu1 %7681, %v7767_v23  }
 0x533   : > { %5495 = vperm.xlu0 %7680, %v7769_v28  }
 0x534   : > { %5510 = vperm.xlu1 %7681, %v7771_v4   ;;  %v5229_v4 = vld [vmem:[#allocation4 + $0x50] sm:$0xff] }
 0x537   : > { %5505 = vperm.xlu0 %7680, %v7773_v10  }
 0x538   : > { %5520 = vperm.xlu1 %7681, %v7775_v57  }
 0x53b   : > { %5515 = vperm.xlu0 %7680, %v7777_v36   ;;  %v5231_v36 = vld [vmem:[#allocation4 + $0x60] sm:$0xff] }
 0x53c   : > { %5530 = vperm.xlu1 %7681, %v7779_v15  }
 0x53f   : > { %5525 = vperm.xlu0 %7680, %v7781_v2  }
 0x540   : > { %5540 = vperm.xlu1 %7681, %v7783_v1   ;;  %v5233_v1 = vld [vmem:[#allocation4 + $0x70] sm:$0xff] }
 0x543   : > { %5535 = vperm.xlu0 %7680, %v7785_v49  }
 0x544   : > { %5550 = vperm.xlu1 %7681, %v7787_v38  }
 0x547   : > { %5545 = vperm.xlu0 %7680, %v7789_v11   ;;  %v5235_v11 = vld [vmem:[#allocation4 + $0x80] sm:$0xff] }
 0x548   : > { %5560 = vperm.xlu1 %7681, %v7791_v29  }
 0x54b   : > { %5555 = vperm.xlu0 %7680, %v7793_v43  }
 0x54c   : > { %5570 = vperm.xlu1 %7681, %v7795_v16   ;;  %v5237_v16 = vld [vmem:[#allocation4 + $0x90] sm:$0xff] }
 0x54f   : > { %5565 = vperm.xlu0 %7680, %v7797_v9  }
 0x550   : > { %5580 = vperm.xlu1 %7681, %v7799_v35  }
 0x553   : > { %5575 = vperm.xlu0 %7680, %v7801_v20  }
 0x554   : > { %5590 = vperm.xlu1 %7681, %v7803_v50   ;;  %v5240_v50 = vld [vmem:[#allocation4 + $0xa8] sm:$0xff] }
 0x557   : > { %5585 = vperm.xlu0 %7680, %v7805_v17   ;;  %v5239_v17 = vld [vmem:[#allocation4 + $0xa0] sm:$0xff] }
 0x558   : > { %5600 = vperm.xlu1 %7681, %v7807_v63  }
 0x55a   : > { %v5296_v22 = vpop.permute.xlu1 %5295 }
 0x55b   : > { %5595 = vperm.xlu0 %7680, %v7809_v27   ;;  %v5605_v8 = vmul.f32 %v5296_v22, %v5221_v19  ;;  %v5242_v22 = vld [vmem:[#allocation4 + $0xb8] sm:$0xff] }
 0x55d   : > { %5669 = vst.msk [vmem:[%s8457_s29 + $0x10] sm:$0xff] %vm1557_vm2, %v5605_v8  ;;  %v5241_v8 = vld [vmem:[#allocation4 + $0xb0] sm:$0xff] }
 0x55e   : > { %v5286_v3 = vpop.permute.xlu0 %5285 }
 0x55f   : > { %v5603_v7 = vmul.f32 %v5286_v3, %v5219_v48  ;;  %v5301_v33 = vpop.permute.xlu1 %5300 }
 0x560   : > { %v5606_v21 = vmul.f32 %v5301_v33, %v5222_v62  ;;  %v5244_v33 = vld [vmem:[#allocation4 + $0xc8] sm:$0xff] }
 0x561   : > { %5667 = vst.msk [vmem:[%s8457_s29] sm:$0xff] %vm1557_vm2, %v5603_v7 }
 0x562   : > { %v5291_v5 = vpop.permute.xlu0 %5290  ;;  %5670 = vst.msk [vmem:[%s8457_s29 + $0x18] sm:$0xff] %vm1557_vm2, %v5606_v21  ;;  %v5243_v21 = vld [vmem:[#allocation4 + $0xc0] sm:$0xff] }
 0x563   : > { %v5604_v46 = vmul.f32 %v5291_v5, %v5220_v47  ;;  %v5311_v30 = vpop.permute.xlu1 %5310 }
 0x564   : > { %v5608_v61 = vmul.f32 %v5311_v30, %v5224_v12  ;;  %v5246_v30 = vld [vmem:[#allocation4 + $0xd8] sm:$0xff] }
 0x565   : > { %5668 = vst.msk [vmem:[%s8457_s29 + $0x8] sm:$0xff] %vm1557_vm2, %v5604_v46 }
 0x566   : > { %v5306_v32 = vpop.permute.xlu0 %5305  ;;  %5672 = vst.msk [vmem:[%s8457_s29 + $0x28] sm:$0xff] %vm1557_vm2, %v5608_v61  ;;  %v5245_v61 = vld [vmem:[#allocation4 + $0xd0] sm:$0xff] }
 0x567   : > { %v5607_v0 = vmul.f32 %v5306_v32, %v5223_v45  ;;  %v5321_v44 = vpop.permute.xlu1 %5320 }
 0x568   : > { %v5610_v37 = vmul.f32 %v5321_v44, %v5226_v24  ;;  %v5248_v44 = vld [vmem:[#allocation4 + $0xe8] sm:$0xff] }
 0x569   : > { %5671 = vst.msk [vmem:[%s8457_s29 + $0x20] sm:$0xff] %vm1557_vm2, %v5607_v0 }
 0x56a   : > { %v5316_v53 = vpop.permute.xlu0 %5315  ;;  %5674 = vst.msk [vmem:[%s8457_s29 + $0x38] sm:$0xff] %vm1557_vm2, %v5610_v37  ;;  %v5247_v37 = vld [vmem:[#allocation4 + $0xe0] sm:$0xff] }
 0x56b   : > { %v5609_v18 = vmul.f32 %v5316_v53, %v5225_v6  ;;  %v5331_v34 = vpop.permute.xlu1 %5330 }
 0x56c   : > { %v5612_v23 = vmul.f32 %v5331_v34, %v5228_v56  ;;  %v5250_v34 = vld [vmem:[#allocation4 + $0xf8] sm:$0xff] }
 0x56d   : > { %5673 = vst.msk [vmem:[%s8457_s29 + $0x30] sm:$0xff] %vm1557_vm2, %v5609_v18 }
 0x56e   : > { %v5326_v40 = vpop.permute.xlu0 %5325  ;;  %5676 = vst.msk [vmem:[%s8457_s29 + $0x48] sm:$0xff] %vm1557_vm2, %v5612_v23  ;;  %v5249_v23 = vld [vmem:[#allocation4 + $0xf0] sm:$0xff] }
 0x56f   : > { %v5611_v28 = vmul.f32 %v5326_v40, %v5227_v59  ;;  %v5341_v13 = vpop.permute.xlu1 %5340 }
 0x570   : > { %v5614_v10 = vmul.f32 %v5341_v13, %v5230_v26  ;;  %v5252_v13 = vld [vmem:[#allocation4 + $0x108] sm:$0xff] }
 0x571   : > { %5675 = vst.msk [vmem:[%s8457_s29 + $0x40] sm:$0xff] %vm1557_vm2, %v5611_v28 }
 0x572   : > { %v5336_v31 = vpop.permute.xlu0 %5335  ;;  %5678 = vst.msk [vmem:[%s8457_s29 + $0x58] sm:$0xff] %vm1557_vm2, %v5614_v10  ;;  %v5251_v10 = vld [vmem:[#allocation4 + $0x100] sm:$0xff] }
 0x573   : > { %v5613_v57 = vmul.f32 %v5336_v31, %v5229_v4  ;;  %v5351_v51 = vpop.permute.xlu1 %5350 }
 0x574   : > { %v5616_v15 = vmul.f32 %v5351_v51, %v5232_v60  ;;  %v5254_v51 = vld [vmem:[#allocation4 + $0x118] sm:$0xff] }
 0x575   : > { %5677 = vst.msk [vmem:[%s8457_s29 + $0x50] sm:$0xff] %vm1557_vm2, %v5613_v57 }
 0x576   : > { %v5346_v54 = vpop.permute.xlu0 %5345  ;;  %5680 = vst.msk [vmem:[%s8457_s29 + $0x68] sm:$0xff] %vm1557_vm2, %v5616_v15  ;;  %v5253_v15 = vld [vmem:[#allocation4 + $0x110] sm:$0xff] }
 0x577   : > { %v5615_v2 = vmul.f32 %v5346_v54, %v5231_v36  ;;  %v5361_v41 = vpop.permute.xlu1 %5360 }
 0x578   : > { %v5618_v49 = vmul.f32 %v5361_v41, %v5234_v42  ;;  %v5256_v41 = vld [vmem:[#allocation4 + $0x128] sm:$0xff] }
 0x579   : > { %5679 = vst.msk [vmem:[%s8457_s29 + $0x60] sm:$0xff] %vm1557_vm2, %v5615_v2 }
 0x57a   : > { %v5356_v25 = vpop.permute.xlu0 %5355  ;;  %5682 = vst.msk [vmem:[%s8457_s29 + $0x78] sm:$0xff] %vm1557_vm2, %v5618_v49  ;;  %v5255_v49 = vld [vmem:[#allocation4 + $0x120] sm:$0xff] }
 0x57b   : > { %v5617_v38 = vmul.f32 %v5356_v25, %v5233_v1  ;;  %v5371_v58 = vpop.permute.xlu1 %5370 }
 0x57c   : > { %v5620_v29 = vmul.f32 %v5371_v58, %v5236_v52  ;;  %v5258_v58 = vld [vmem:[#allocation4 + $0x138] sm:$0xff] }
 0x57d   : > { %5681 = vst.msk [vmem:[%s8457_s29 + $0x70] sm:$0xff] %vm1557_vm2, %v5617_v38 }
 0x57e   : > { %v5366_v55 = vpop.permute.xlu0 %5365  ;;  %5684 = vst.msk [vmem:[%s8457_s29 + $0x88] sm:$0xff] %vm1557_vm2, %v5620_v29  ;;  %v5257_v29 = vld [vmem:[#allocation4 + $0x130] sm:$0xff] }
 0x57f   : > { %v5619_v43 = vmul.f32 %v5366_v55, %v5235_v11  ;;  %v5381_v39 = vpop.permute.xlu1 %5380 }
 0x580   : > { %v5622_v9 = vmul.f32 %v5381_v39, %v5238_v14  ;;  %v5260_v39 = vld [vmem:[#allocation4 + $0x148] sm:$0xff] }
 0x581   : > { %5683 = vst.msk [vmem:[%s8457_s29 + $0x80] sm:$0xff] %vm1557_vm2, %v5619_v43 }
 0x582   : > { %v5376_v35 = vpop.permute.xlu0 %5375  ;;  %5686 = vst.msk [vmem:[%s8457_s29 + $0x98] sm:$0xff] %vm1557_vm2, %v5622_v9  ;;  %v5259_v9 = vld [vmem:[#allocation4 + $0x140] sm:$0xff] }
 0x583   : > { %v5621_v20 = vmul.f32 %v5376_v35, %v5237_v16  ;;  %v5391_v63 = vpop.permute.xlu1 %5390 }
 0x584   : > { %v5624_v27 = vmul.f32 %v5391_v63, %v5240_v50  ;;  %v5262_v63 = vld [vmem:[#allocation4 + $0x158] sm:$0xff] }
 0x585   : > { %5685 = vst.msk [vmem:[%s8457_s29 + $0x90] sm:$0xff] %vm1557_vm2, %v5621_v20 }
 0x586   : > { %v5386_v19 = vpop.permute.xlu0 %5385  ;;  %5688 = vst.msk [vmem:[%s8457_s29 + $0xa8] sm:$0xff] %vm1557_vm2, %v5624_v27  ;;  %v5261_v27 = vld [vmem:[#allocation4 + $0x150] sm:$0xff] }
 0x587   : > { %v5623_v48 = vmul.f32 %v5386_v19, %v5239_v17  ;;  %v5401_v3 = vpop.permute.xlu1 %5400 }
 0x588   : > { %v5626_v7 = vmul.f32 %v5401_v3, %v5242_v22  ;;  %v5264_v3 = vld [vmem:[#allocation4 + $0x168] sm:$0xff] }
 0x589   : > { %5687 = vst.msk [vmem:[%s8457_s29 + $0xa0] sm:$0xff] %vm1557_vm2, %v5623_v48 }
 0x58a   : > { %v5396_v62 = vpop.permute.xlu0 %5395  ;;  %5690 = vst.msk [vmem:[%s8457_s29 + $0xb8] sm:$0xff] %vm1557_vm2, %v5626_v7  ;;  %v5263_v7 = vld [vmem:[#allocation4 + $0x160] sm:$0xff] }
 0x58b   : > { %v5625_v47 = vmul.f32 %v5396_v62, %v5241_v8  ;;  %v5411_v5 = vpop.permute.xlu1 %5410 }
 0x58c   : > { %v5628_v46 = vmul.f32 %v5411_v5, %v5244_v33  ;;  %v5266_v5 = vld [vmem:[#allocation4 + $0x178] sm:$0xff] }
 0x58d   : > { %5689 = vst.msk [vmem:[%s8457_s29 + $0xb0] sm:$0xff] %vm1557_vm2, %v5625_v47 }
 0x58e   : > { %v5406_v12 = vpop.permute.xlu0 %5405  ;;  %5692 = vst.msk [vmem:[%s8457_s29 + $0xc8] sm:$0xff] %vm1557_vm2, %v5628_v46  ;;  %v5265_v46 = vld [vmem:[#allocation4 + $0x170] sm:$0xff] }
 0x58f   : > { %v5627_v45 = vmul.f32 %v5406_v12, %v5243_v21  ;;  %v5421_v32 = vpop.permute.xlu1 %5420 }
 0x590   : > { %v5630_v0 = vmul.f32 %v5421_v32, %v5246_v30  ;;  %v5268_v32 = vld [vmem:[#allocation4 + $0x188] sm:$0xff] }
 0x591   : > { %5691 = vst.msk [vmem:[%s8457_s29 + $0xc0] sm:$0xff] %vm1557_vm2, %v5627_v45 }
 0x592   : > { %v5416_v24 = vpop.permute.xlu0 %5415  ;;  %5694 = vst.msk [vmem:[%s8457_s29 + $0xd8] sm:$0xff] %vm1557_vm2, %v5630_v0  ;;  %v5267_v0 = vld [vmem:[#allocation4 + $0x180] sm:$0xff] }
 0x593   : > { %v5629_v6 = vmul.f32 %v5416_v24, %v5245_v61  ;;  %v5431_v53 = vpop.permute.xlu1 %5430 }
 0x594   : > { %v5632_v18 = vmul.f32 %v5431_v53, %v5248_v44  ;;  %v5270_v53 = vld [vmem:[#allocation4 + $0x198] sm:$0xff] }
 0x595   : > { %5693 = vst.msk [vmem:[%s8457_s29 + $0xd0] sm:$0xff] %vm1557_vm2, %v5629_v6 }
 0x596   : > { %v5426_v56 = vpop.permute.xlu0 %5425  ;;  %5696 = vst.msk [vmem:[%s8457_s29 + $0xe8] sm:$0xff] %vm1557_vm2, %v5632_v18  ;;  %v5269_v18 = vld [vmem:[#allocation4 + $0x190] sm:$0xff] }
 0x597   : > { %v5631_v59 = vmul.f32 %v5426_v56, %v5247_v37  ;;  %v5441_v40 = vpop.permute.xlu1 %5440 }
 0x598   : > { %v5634_v28 = vmul.f32 %v5441_v40, %v5250_v34  ;;  %v5272_v40 = vld [vmem:[#allocation4 + $0x1a8] sm:$0xff] }
 0x599   : > { %5695 = vst.msk [vmem:[%s8457_s29 + $0xe0] sm:$0xff] %vm1557_vm2, %v5631_v59 }
 0x59a   : > { %v5436_v26 = vpop.permute.xlu0 %5435  ;;  %5698 = vst.msk [vmem:[%s8457_s29 + $0xf8] sm:$0xff] %vm1557_vm2, %v5634_v28  ;;  %v5271_v28 = vld [vmem:[#allocation4 + $0x1a0] sm:$0xff] }
 0x59b   : > { %v5633_v4 = vmul.f32 %v5436_v26, %v5249_v23  ;;  %v5451_v31 = vpop.permute.xlu1 %5450 }
 0x59c   : > { %v5636_v57 = vmul.f32 %v5451_v31, %v5252_v13  ;;  %v5274_v31 = vld [vmem:[#allocation4 + $0x1b8] sm:$0xff] }
 0x59d   : > { %5697 = vst.msk [vmem:[%s8457_s29 + $0xf0] sm:$0xff] %vm1557_vm2, %v5633_v4 }
 0x59e   : > { %v5446_v60 = vpop.permute.xlu0 %5445  ;;  %5700 = vst.msk [vmem:[%s8457_s29 + $0x108] sm:$0xff] %vm1557_vm2, %v5636_v57  ;;  %v5273_v57 = vld [vmem:[#allocation4 + $0x1b0] sm:$0xff] }
 0x59f   : > { %v5635_v36 = vmul.f32 %v5446_v60, %v5251_v10  ;;  %v5461_v54 = vpop.permute.xlu1 %5460 }
 0x5a0   : > { %v5638_v2 = vmul.f32 %v5461_v54, %v5254_v51  ;;  %v5276_v54 = vld [vmem:[#allocation4 + $0x1c8] sm:$0xff] }
 0x5a1   : > { %5699 = vst.msk [vmem:[%s8457_s29 + $0x100] sm:$0xff] %vm1557_vm2, %v5635_v36 }
 0x5a2   : > { %v5456_v42 = vpop.permute.xlu0 %5455  ;;  %5702 = vst.msk [vmem:[%s8457_s29 + $0x118] sm:$0xff] %vm1557_vm2, %v5638_v2  ;;  %v5275_v2 = vld [vmem:[#allocation4 + $0x1c0] sm:$0xff] }
 0x5a3   : > { %v5637_v1 = vmul.f32 %v5456_v42, %v5253_v15  ;;  %v5471_v25 = vpop.permute.xlu1 %5470 }
 0x5a4   : > { %v5640_v38 = vmul.f32 %v5471_v25, %v5256_v41  ;;  %v5278_v25 = vld [vmem:[#allocation4 + $0x1d8] sm:$0xff] }
 0x5a5   : > { %5701 = vst.msk [vmem:[%s8457_s29 + $0x110] sm:$0xff] %vm1557_vm2, %v5637_v1 }
 0x5a6   : > { %v5466_v52 = vpop.permute.xlu0 %5465  ;;  %5704 = vst.msk [vmem:[%s8457_s29 + $0x128] sm:$0xff] %vm1557_vm2, %v5640_v38  ;;  %v5277_v38 = vld [vmem:[#allocation4 + $0x1d0] sm:$0xff] }
 0x5a7   : > { %v5639_v11 = vmul.f32 %v5466_v52, %v5255_v49  ;;  %v5481_v55 = vpop.permute.xlu1 %5480 }
 0x5a8   : > { %v5642_v43 = vmul.f32 %v5481_v55, %v5258_v58  ;;  %v5280_v55 = vld [vmem:[#allocation4 + $0x1e8] sm:$0xff] }
 0x5a9   : > { %5703 = vst.msk [vmem:[%s8457_s29 + $0x120] sm:$0xff] %vm1557_vm2, %v5639_v11 }
 0x5aa   : > { %v5476_v14 = vpop.permute.xlu0 %5475  ;;  %5706 = vst.msk [vmem:[%s8457_s29 + $0x138] sm:$0xff] %vm1557_vm2, %v5642_v43  ;;  %v5279_v43 = vld [vmem:[#allocation4 + $0x1e0] sm:$0xff] }
 0x5ab   : > { %v5641_v16 = vmul.f32 %v5476_v14, %v5257_v29  ;;  %v5491_v35 = vpop.permute.xlu1 %5490 }
 0x5ac   : > { %v5644_v20 = vmul.f32 %v5491_v35, %v5260_v39  ;;  %v5282_v35 = vld [vmem:[#allocation4 + $0x1f8] sm:$0xff] }
 0x5ad   : > { %5705 = vst.msk [vmem:[%s8457_s29 + $0x130] sm:$0xff] %vm1557_vm2, %v5641_v16 }
 0x5ae   : > { %v5486_v50 = vpop.permute.xlu0 %5485  ;;  %5708 = vst.msk [vmem:[%s8457_s29 + $0x148] sm:$0xff] %vm1557_vm2, %v5644_v20  ;;  %v5281_v20 = vld [vmem:[#allocation4 + $0x1f0] sm:$0xff] }
 0x5af   : > { %v5643_v17 = vmul.f32 %v5486_v50, %v5259_v9  ;;  %v5501_v19 = vpop.permute.xlu1 %5500 }
 0x5b0   : > { %v5646_v48 = vmul.f32 %v5501_v19, %v5262_v63 }
 0x5b1   : > { %5707 = vst.msk [vmem:[%s8457_s29 + $0x140] sm:$0xff] %vm1557_vm2, %v5643_v17 }
 0x5b2   : > { %v5496_v22 = vpop.permute.xlu0 %5495  ;;  %5710 = vst.msk [vmem:[%s8457_s29 + $0x158] sm:$0xff] %vm1557_vm2, %v5646_v48 }
 0x5b3   : > { %v5645_v8 = vmul.f32 %v5496_v22, %v5261_v27  ;;  %v5511_v62 = vpop.permute.xlu1 %5510 }
 0x5b4   : > { %v5648_v47 = vmul.f32 %v5511_v62, %v5264_v3 }
 0x5b5   : > { %5709 = vst.msk [vmem:[%s8457_s29 + $0x150] sm:$0xff] %vm1557_vm2, %v5645_v8 }
 0x5b6   : > { %v5506_v33 = vpop.permute.xlu0 %5505  ;;  %5712 = vst.msk [vmem:[%s8457_s29 + $0x168] sm:$0xff] %vm1557_vm2, %v5648_v47 }
 0x5b7   : > { %v5647_v21 = vmul.f32 %v5506_v33, %v5263_v7  ;;  %v5521_v12 = vpop.permute.xlu1 %5520 }
 0x5b8   : > { %v5650_v45 = vmul.f32 %v5521_v12, %v5266_v5 }
 0x5b9   : > { %5711 = vst.msk [vmem:[%s8457_s29 + $0x160] sm:$0xff] %vm1557_vm2, %v5647_v21 }
 0x5ba   : > { %v5516_v30 = vpop.permute.xlu0 %5515  ;;  %5714 = vst.msk [vmem:[%s8457_s29 + $0x178] sm:$0xff] %vm1557_vm2, %v5650_v45 }
 0x5bb   : > { %v5649_v61 = vmul.f32 %v5516_v30, %v5265_v46  ;;  %v5531_v24 = vpop.permute.xlu1 %5530 }
 0x5bc   : > { %v5652_v6 = vmul.f32 %v5531_v24, %v5268_v32 }
 0x5bd   : > { %5713 = vst.msk [vmem:[%s8457_s29 + $0x170] sm:$0xff] %vm1557_vm2, %v5649_v61 }
 0x5be   : > { %v5526_v44 = vpop.permute.xlu0 %5525  ;;  %5716 = vst.msk [vmem:[%s8457_s29 + $0x188] sm:$0xff] %vm1557_vm2, %v5652_v6 }
 0x5bf   : > { %v5651_v37 = vmul.f32 %v5526_v44, %v5267_v0  ;;  %v5541_v56 = vpop.permute.xlu1 %5540 }
 0x5c0   : > { %v5654_v59 = vmul.f32 %v5541_v56, %v5270_v53 }
 0x5c1   : > { %5715 = vst.msk [vmem:[%s8457_s29 + $0x180] sm:$0xff] %vm1557_vm2, %v5651_v37 }
 0x5c2   : > { %v5536_v34 = vpop.permute.xlu0 %5535  ;;  %5718 = vst.msk [vmem:[%s8457_s29 + $0x198] sm:$0xff] %vm1557_vm2, %v5654_v59 }
 0x5c3   : > { %v5653_v23 = vmul.f32 %v5536_v34, %v5269_v18  ;;  %v5551_v26 = vpop.permute.xlu1 %5550 }
 0x5c4   : > { %v5656_v4 = vmul.f32 %v5551_v26, %v5272_v40 }
 0x5c5   : > { %5717 = vst.msk [vmem:[%s8457_s29 + $0x190] sm:$0xff] %vm1557_vm2, %v5653_v23 }
 0x5c6   : > { %v5546_v13 = vpop.permute.xlu0 %5545  ;;  %5720 = vst.msk [vmem:[%s8457_s29 + $0x1a8] sm:$0xff] %vm1557_vm2, %v5656_v4 }
 0x5c7   : > { %v5655_v10 = vmul.f32 %v5546_v13, %v5271_v28  ;;  %v5561_v60 = vpop.permute.xlu1 %5560 }
 0x5c8   : > { %v5658_v36 = vmul.f32 %v5561_v60, %v5274_v31 }
 0x5c9   : > { %5719 = vst.msk [vmem:[%s8457_s29 + $0x1a0] sm:$0xff] %vm1557_vm2, %v5655_v10 }
 0x5ca   : > { %v5556_v51 = vpop.permute.xlu0 %5555  ;;  %5722 = vst.msk [vmem:[%s8457_s29 + $0x1b8] sm:$0xff] %vm1557_vm2, %v5658_v36 }
 0x5cb   : > { %v5657_v15 = vmul.f32 %v5556_v51, %v5273_v57  ;;  %v5571_v42 = vpop.permute.xlu1 %5570 }
 0x5cc   : > { %v5660_v1 = vmul.f32 %v5571_v42, %v5276_v54 }
 0x5cd   : > { %5721 = vst.msk [vmem:[%s8457_s29 + $0x1b0] sm:$0xff] %vm1557_vm2, %v5657_v15 }
 0x5ce   : > { %v5566_v41 = vpop.permute.xlu0 %5565  ;;  %5724 = vst.msk [vmem:[%s8457_s29 + $0x1c8] sm:$0xff] %vm1557_vm2, %v5660_v1 }
 0x5cf   : > { %v5659_v49 = vmul.f32 %v5566_v41, %v5275_v2  ;;  %v5581_v52 = vpop.permute.xlu1 %5580 }
 0x5d0   : > { %v5662_v11 = vmul.f32 %v5581_v52, %v5278_v25 }
 0x5d1   : > { %5723 = vst.msk [vmem:[%s8457_s29 + $0x1c0] sm:$0xff] %vm1557_vm2, %v5659_v49 }
 0x5d2   : > { %v5576_v58 = vpop.permute.xlu0 %5575  ;;  %5726 = vst.msk [vmem:[%s8457_s29 + $0x1d8] sm:$0xff] %vm1557_vm2, %v5662_v11 }
 0x5d3   : > { %v5661_v29 = vmul.f32 %v5576_v58, %v5277_v38  ;;  %v5591_v14 = vpop.permute.xlu1 %5590 }
 0x5d4   : > { %v5664_v16 = vmul.f32 %v5591_v14, %v5280_v55 }
 0x5d5   : > { %5725 = vst.msk [vmem:[%s8457_s29 + $0x1d0] sm:$0xff] %vm1557_vm2, %v5661_v29 }
 0x5d6   : > { %v5586_v39 = vpop.permute.xlu0 %5585  ;;  %5728 = vst.msk [vmem:[%s8457_s29 + $0x1e8] sm:$0xff] %vm1557_vm2, %v5664_v16 }
 0x5d7   : > { %v5663_v9 = vmul.f32 %v5586_v39, %v5279_v43  ;;  %v5601_v50 = vpop.permute.xlu1 %5600 }
 0x5d8   : > { %v5666_v17 = vmul.f32 %v5601_v50, %v5282_v35 }
 0x5d9   : > { %5727 = vst.msk [vmem:[%s8457_s29 + $0x1e0] sm:$0xff] %vm1557_vm2, %v5663_v9 }
 0x5da   : > { %v5596_v63 = vpop.permute.xlu0 %5595  ;;  %5730 = vst.msk [vmem:[%s8457_s29 + $0x1f8] sm:$0xff] %vm1557_vm2, %v5666_v17 }
 0x5db   : > { %v5665_v27 = vmul.f32 %v5596_v63, %v5281_v20 }
 0x5dd   : > { %5729 = vst.msk [vmem:[%s8457_s29 + $0x1f0] sm:$0xff] %vm1557_vm2, %v5665_v27 }
 0x5de PF: > { %5737 = sbr.rel (!%p8013_p9) target bundleno = 1539 (0x603), region = 158  ;;  %s6301_s12 = sshll.u32 (%p8013_p9), %s7876_s17, 4  ;;  %v5896_v19 = vld [vmem:[%s8457_s29] sm:$0xff] (%p8013_p9)  ;;  %v5898_v48 = vld [vmem:[%s8457_s29 + $0x8] sm:$0xff] (%p8013_p9)  ;;  %v5900_v22 = vld [vmem:[%s8457_s29 + $0x10] sm:$0xff] (%p8013_p9) }
 0x5df   : > { %s6302_s14 = sshll.u32 (%p8013_p9), %s7880_s18, 7  ;;  %v5902_v8 = vld [vmem:[%s8457_s29 + $0x18] sm:$0xff] (%p8013_p9)  ;;  %v5904_v3 = vld [vmem:[%s8457_s29 + $0x20] sm:$0xff] (%p8013_p9)  ;;  %v5906_v7 = vld [vmem:[%s8457_s29 + $0x28] sm:$0xff] (%p8013_p9) }
 0x5e0   : > { %s5740_s16 = sadd.s32 (%p8013_p9), %s6302_s14, %s6301_s12  ;;  %v5908_v62 = vld [vmem:[%s8457_s29 + $0x30] sm:$0xff] (%p8013_p9)  ;;  %v5910_v47 = vld [vmem:[%s8457_s29 + $0x38] sm:$0xff] (%p8013_p9)  ;;  %v5912_v33 = vld [vmem:[%s8457_s29 + $0x40] sm:$0xff] (%p8013_p9) }
 0x5e1   : > { %s6303_s5 = sshll.u32 (%p8013_p9), %s5740_s16, 3  ;;  %v5914_v21 = vld [vmem:[%s8457_s29 + $0x48] sm:$0xff] (%p8013_p9)  ;;  %v5916_v5 = vld [vmem:[%s8457_s29 + $0x50] sm:$0xff] (%p8013_p9)  ;;  %v5918_v46 = vld [vmem:[%s8457_s29 + $0x58] sm:$0xff] (%p8013_p9) }
 0x5e2   : > { %s11178_s8 = scalar_lea.vmem (%p8013_p9), %s11335_s3, %s6303_s5  ;;  %v5920_v12 = vld [vmem:[%s8457_s29 + $0x60] sm:$0xff] (%p8013_p9)  ;;  %v5922_v45 = vld [vmem:[%s8457_s29 + $0x68] sm:$0xff] (%p8013_p9)  ;;  %v5924_v30 = vld [vmem:[%s8457_s29 + $0x70] sm:$0xff] (%p8013_p9) }
 0x5e3   : > { %5897 = vst [vmem:[%s11178_s8] sm:$0xff] (%p8013_p9), %v5896_v19  ;;  %5899 = vst [vmem:[%s11178_s8 + $0x8] sm:$0xff] (%p8013_p9), %v5898_v48  ;;  %v5926_v61 = vld [vmem:[%s8457_s29 + $0x78] sm:$0xff] (%p8013_p9)  ;;  %v5928_v32 = vld [vmem:[%s8457_s29 + $0x80] sm:$0xff] (%p8013_p9) }
 0x5e4   : > { %5901 = vst [vmem:[%s11178_s8 + $0x10] sm:$0xff] (%p8013_p9), %v5900_v22  ;;  %5903 = vst [vmem:[%s11178_s8 + $0x18] sm:$0xff] (%p8013_p9), %v5902_v8  ;;  %v5930_v0 = vld [vmem:[%s8457_s29 + $0x88] sm:$0xff] (%p8013_p9)  ;;  %v5932_v24 = vld [vmem:[%s8457_s29 + $0x90] sm:$0xff] (%p8013_p9) }
 0x5e5   : > { %5905 = vst [vmem:[%s11178_s8 + $0x20] sm:$0xff] %v5904_v3  ;;  %5907 = vst [vmem:[%s11178_s8 + $0x28] sm:$0xff] %v5906_v7  ;;  %v5934_v6 = vld [vmem:[%s8457_s29 + $0x98] sm:$0xff]  ;;  %v5936_v44 = vld [vmem:[%s8457_s29 + $0xa0] sm:$0xff] }
 0x5e6   : > { %5909 = vst [vmem:[%s11178_s8 + $0x30] sm:$0xff] %v5908_v62  ;;  %5911 = vst [vmem:[%s11178_s8 + $0x38] sm:$0xff] %v5910_v47  ;;  %v5938_v37 = vld [vmem:[%s8457_s29 + $0xa8] sm:$0xff]  ;;  %v5940_v53 = vld [vmem:[%s8457_s29 + $0xb0] sm:$0xff] }
 0x5e7   : > { %5913 = vst [vmem:[%s11178_s8 + $0x40] sm:$0xff] %v5912_v33  ;;  %5915 = vst [vmem:[%s11178_s8 + $0x48] sm:$0xff] %v5914_v21  ;;  %v5942_v18 = vld [vmem:[%s8457_s29 + $0xb8] sm:$0xff]  ;;  %v5944_v56 = vld [vmem:[%s8457_s29 + $0xc0] sm:$0xff] }
 0x5e8   : > { %5917 = vst [vmem:[%s11178_s8 + $0x50] sm:$0xff] %v5916_v5  ;;  %5919 = vst [vmem:[%s11178_s8 + $0x58] sm:$0xff] %v5918_v46  ;;  %v5946_v59 = vld [vmem:[%s8457_s29 + $0xc8] sm:$0xff]  ;;  %v5948_v34 = vld [vmem:[%s8457_s29 + $0xd0] sm:$0xff] }
 0x5e9   : > { %5921 = vst [vmem:[%s11178_s8 + $0x60] sm:$0xff] %v5920_v12  ;;  %5923 = vst [vmem:[%s11178_s8 + $0x68] sm:$0xff] %v5922_v45  ;;  %v5950_v23 = vld [vmem:[%s8457_s29 + $0xd8] sm:$0xff]  ;;  %v5952_v40 = vld [vmem:[%s8457_s29 + $0xe0] sm:$0xff] }
 0x5ea   : > { %5925 = vst [vmem:[%s11178_s8 + $0x70] sm:$0xff] %v5924_v30  ;;  %5927 = vst [vmem:[%s11178_s8 + $0x78] sm:$0xff] %v5926_v61  ;;  %v5954_v28 = vld [vmem:[%s8457_s29 + $0xe8] sm:$0xff]  ;;  %v5956_v26 = vld [vmem:[%s8457_s29 + $0xf0] sm:$0xff] }
 0x5eb   : > { %5929 = vst [vmem:[%s11178_s8 + $0x100] sm:$0xff] %v5928_v32  ;;  %5931 = vst [vmem:[%s11178_s8 + $0x108] sm:$0xff] %v5930_v0  ;;  %v5958_v4 = vld [vmem:[%s8457_s29 + $0xf8] sm:$0xff]  ;;  %v5960_v13 = vld [vmem:[%s8457_s29 + $0x100] sm:$0xff] }
 0x5ec   : > { %5933 = vst [vmem:[%s11178_s8 + $0x110] sm:$0xff] %v5932_v24  ;;  %5935 = vst [vmem:[%s11178_s8 + $0x118] sm:$0xff] %v5934_v6  ;;  %v5962_v10 = vld [vmem:[%s8457_s29 + $0x108] sm:$0xff]  ;;  %v5964_v31 = vld [vmem:[%s8457_s29 + $0x110] sm:$0xff] }
 0x5ed   : > { %5937 = vst [vmem:[%s11178_s8 + $0x120] sm:$0xff] %v5936_v44  ;;  %5939 = vst [vmem:[%s11178_s8 + $0x128] sm:$0xff] %v5938_v37  ;;  %v5966_v57 = vld [vmem:[%s8457_s29 + $0x118] sm:$0xff]  ;;  %v5968_v60 = vld [vmem:[%s8457_s29 + $0x120] sm:$0xff] }
 0x5ee   : > { %5941 = vst [vmem:[%s11178_s8 + $0x130] sm:$0xff] %v5940_v53  ;;  %5943 = vst [vmem:[%s11178_s8 + $0x138] sm:$0xff] %v5942_v18  ;;  %v5970_v36 = vld [vmem:[%s8457_s29 + $0x128] sm:$0xff]  ;;  %v5972_v51 = vld [vmem:[%s8457_s29 + $0x130] sm:$0xff] }
 0x5ef   : > { %5945 = vst [vmem:[%s11178_s8 + $0x140] sm:$0xff] %v5944_v56  ;;  %5947 = vst [vmem:[%s11178_s8 + $0x148] sm:$0xff] %v5946_v59  ;;  %v5974_v15 = vld [vmem:[%s8457_s29 + $0x138] sm:$0xff]  ;;  %v5976_v54 = vld [vmem:[%s8457_s29 + $0x140] sm:$0xff] }
 0x5f0   : > { %5949 = vst [vmem:[%s11178_s8 + $0x150] sm:$0xff] %v5948_v34  ;;  %5951 = vst [vmem:[%s11178_s8 + $0x158] sm:$0xff] %v5950_v23  ;;  %v5978_v2 = vld [vmem:[%s8457_s29 + $0x148] sm:$0xff]  ;;  %v5980_v42 = vld [vmem:[%s8457_s29 + $0x150] sm:$0xff] }
 0x5f1   : > { %5953 = vst [vmem:[%s11178_s8 + $0x160] sm:$0xff] %v5952_v40  ;;  %5955 = vst [vmem:[%s11178_s8 + $0x168] sm:$0xff] %v5954_v28  ;;  %v5982_v1 = vld [vmem:[%s8457_s29 + $0x158] sm:$0xff]  ;;  %v5984_v41 = vld [vmem:[%s8457_s29 + $0x160] sm:$0xff] }
 0x5f2   : > { %5957 = vst [vmem:[%s11178_s8 + $0x170] sm:$0xff] %v5956_v26  ;;  %5959 = vst [vmem:[%s11178_s8 + $0x178] sm:$0xff] %v5958_v4  ;;  %v5986_v49 = vld [vmem:[%s8457_s29 + $0x168] sm:$0xff]  ;;  %v5988_v25 = vld [vmem:[%s8457_s29 + $0x170] sm:$0xff] }
 0x5f3   : > { %5961 = vst [vmem:[%s11178_s8 + $0x200] sm:$0xff] %v5960_v13  ;;  %5963 = vst [vmem:[%s11178_s8 + $0x208] sm:$0xff] %v5962_v10  ;;  %v5990_v38 = vld [vmem:[%s8457_s29 + $0x178] sm:$0xff]  ;;  %v5992_v52 = vld [vmem:[%s8457_s29 + $0x180] sm:$0xff] }
 0x5f4   : > { %5965 = vst [vmem:[%s11178_s8 + $0x210] sm:$0xff] %v5964_v31  ;;  %5967 = vst [vmem:[%s11178_s8 + $0x218] sm:$0xff] %v5966_v57  ;;  %v5994_v11 = vld [vmem:[%s8457_s29 + $0x188] sm:$0xff]  ;;  %v5996_v58 = vld [vmem:[%s8457_s29 + $0x190] sm:$0xff] }
 0x5f5   : > { %5969 = vst [vmem:[%s11178_s8 + $0x220] sm:$0xff] %v5968_v60  ;;  %5971 = vst [vmem:[%s11178_s8 + $0x228] sm:$0xff] %v5970_v36  ;;  %v5998_v29 = vld [vmem:[%s8457_s29 + $0x198] sm:$0xff]  ;;  %v6000_v55 = vld [vmem:[%s8457_s29 + $0x1a0] sm:$0xff] }
 0x5f6   : > { %5973 = vst [vmem:[%s11178_s8 + $0x230] sm:$0xff] %v5972_v51  ;;  %5975 = vst [vmem:[%s11178_s8 + $0x238] sm:$0xff] %v5974_v15  ;;  %v6002_v43 = vld [vmem:[%s8457_s29 + $0x1a8] sm:$0xff]  ;;  %v6004_v14 = vld [vmem:[%s8457_s29 + $0x1b0] sm:$0xff] }
 0x5f7   : > { %5977 = vst [vmem:[%s11178_s8 + $0x240] sm:$0xff] %v5976_v54  ;;  %5979 = vst [vmem:[%s11178_s8 + $0x248] sm:$0xff] %v5978_v2  ;;  %v6006_v16 = vld [vmem:[%s8457_s29 + $0x1b8] sm:$0xff]  ;;  %v6008_v39 = vld [vmem:[%s8457_s29 + $0x1c0] sm:$0xff] }
 0x5f8   : > { %5981 = vst [vmem:[%s11178_s8 + $0x250] sm:$0xff] %v5980_v42  ;;  %5983 = vst [vmem:[%s11178_s8 + $0x258] sm:$0xff] %v5982_v1  ;;  %v6010_v9 = vld [vmem:[%s8457_s29 + $0x1c8] sm:$0xff]  ;;  %v6012_v35 = vld [vmem:[%s8457_s29 + $0x1d0] sm:$0xff] }
 0x5f9   : > { %5985 = vst [vmem:[%s11178_s8 + $0x260] sm:$0xff] %v5984_v41  ;;  %5987 = vst [vmem:[%s11178_s8 + $0x268] sm:$0xff] %v5986_v49  ;;  %v6014_v20 = vld [vmem:[%s8457_s29 + $0x1d8] sm:$0xff]  ;;  %v6016_v50 = vld [vmem:[%s8457_s29 + $0x1e0] sm:$0xff] }
 0x5fa   : > { %5989 = vst [vmem:[%s11178_s8 + $0x270] sm:$0xff] %v5988_v25  ;;  %5991 = vst [vmem:[%s11178_s8 + $0x278] sm:$0xff] %v5990_v38  ;;  %v6018_v17 = vld [vmem:[%s8457_s29 + $0x1e8] sm:$0xff]  ;;  %v6020_v63 = vld [vmem:[%s8457_s29 + $0x1f0] sm:$0xff] }
 0x5fb   : > { %5993 = vst [vmem:[%s11178_s8 + $0x300] sm:$0xff] %v5992_v52  ;;  %5995 = vst [vmem:[%s11178_s8 + $0x308] sm:$0xff] %v5994_v11  ;;  %v6022_v27 = vld [vmem:[%s8457_s29 + $0x1f8] sm:$0xff] }
 0x5fc   : > { %5997 = vst [vmem:[%s11178_s8 + $0x310] sm:$0xff] %v5996_v58  ;;  %5999 = vst [vmem:[%s11178_s8 + $0x318] sm:$0xff] %v5998_v29 }
 0x5fd   : > { %6001 = vst [vmem:[%s11178_s8 + $0x320] sm:$0xff] %v6000_v55  ;;  %6003 = vst [vmem:[%s11178_s8 + $0x328] sm:$0xff] %v6002_v43 }
 0x5fe   : > { %6005 = vst [vmem:[%s11178_s8 + $0x330] sm:$0xff] %v6004_v14  ;;  %6007 = vst [vmem:[%s11178_s8 + $0x338] sm:$0xff] %v6006_v16 }
 0x5ff   : > { %6009 = vst [vmem:[%s11178_s8 + $0x340] sm:$0xff] %v6008_v39  ;;  %6011 = vst [vmem:[%s11178_s8 + $0x348] sm:$0xff] %v6010_v9 }
 0x600   : > { %6013 = vst [vmem:[%s11178_s8 + $0x350] sm:$0xff] %v6012_v35  ;;  %6015 = vst [vmem:[%s11178_s8 + $0x358] sm:$0xff] %v6014_v20 }
 0x601   : > { %6017 = vst [vmem:[%s11178_s8 + $0x360] sm:$0xff] %v6016_v50  ;;  %6019 = vst [vmem:[%s11178_s8 + $0x368] sm:$0xff] %v6018_v17 }
 0x602   : > { %6021 = vst [vmem:[%s11178_s8 + $0x370] sm:$0xff] %v6020_v63  ;;  %6023 = vst [vmem:[%s11178_s8 + $0x378] sm:$0xff] %v6022_v27 }
 0x603 PF: > { %s13_s22 = sadd.s32 1, %s7896_s22   ;;  %s11848_s30 = sld [smem:[#allocation9_spill]] }
 0x604   : > { %p10_p4 = scmp.ge.s32.totalorder %s13_s22, 10   ;;  %s11849_s4 = sld [smem:[#allocation10_spill]] }
 0x605   : > { %s11850_s12 = smov %s7860_s13  ;;  %s11851_s13 = smov %s8024_s11 }
 0x606   : > { %s11852_s14 = smov %s7868_s15  ;;  %s11853_s15 = smov %s8021_s10 }
 0x607   : > { %s11854_s16 = smov %s7884_s19  ;;  %s11855_s17 = smov %s7888_s20 }
 0x608   : > { %s11856_s18 = smov %s7892_s21  ;;  %s11857_s19 = smov %s11861_s23 }
 0x609   : > { %s11858_s20 = smov %s11848_s30  ;;  %12 = sbr.rel (!%p10_p4) target bundleno = 6 (0x6), region = 243 }
 0x60a   : > { %s11859_s21 = smov %s11849_s4 }

</bundles_post_ra>
